<compile_context>
chip_gen: v6e
topology: v6e:2x2x1
jax: 0.10.0
libtpu: 0.0.40
codegen_flags: <defaults>
</compile_context>

<pallas_src>
import functools

import jax
import jax.numpy as jnp
import numpy as np
from jax.experimental import pallas as pl
from jax.experimental.pallas import tpu as pltpu

_LN_EPS = 1e-5


def _cdiv(a: int, b: int) -> int:
    return -(-a // b)


def _round_up(n: int, m: int) -> int:
    return _cdiv(n, m) * m


def _pad_gates(w, h: int, hp: int):
    """(4h, X) with gate-major rows [i;f;g;o] -> (4hp, X), zero pad per gate."""
    x = w.reshape(4, h, -1)
    x = jnp.pad(x, ((0, 0), (0, hp - h), (0, 0)))
    return x.reshape(4 * hp, -1)


# ------------------------------ Pallas kernel ------------------------------- #

def _lstm_bf_kernel(x_ref,                        # (t_tile, f_tile, C)
                    w1i_ref, u1_ref, b1_ref,      # (C,4Hp) (Hp,4Hp) (1,4Hp)
                    w2_ref, b2_ref,               # (2Hp,4Hp) (1,4Hp)
                    wd1_ref, bd1_ref,             # (Hp,Hp) (1,Hp)
                    wd2_ref, bd2_ref,             # (Hp,2Mp) (1,2Mp)
                    lng_ref, lnb_ref,             # (1,C) (1,C)
                    o_ref,                        # (t_tile, f_tile, 2Mp)
                    z_ref,                        # (f_tile, 2Hp)  [h1 | h2]
                    c1_ref, c2_ref,               # (f_tile, Hp)
                    g1s_ref,                      # (t_tile, f_tile, 4Hp)
                    h2s_ref,                      # (t_tile, f_tile, Hp)
                    *, hid, eps, unroll):
    ti = pl.program_id(2)

    # Reset recurrent state at the start of every (b, f-tile) sequence.
    @pl.when(ti == 0)
    def _init():
        z_ref[...] = jnp.zeros_like(z_ref)
        c1_ref[...] = jnp.zeros_like(c1_ref)
        c2_ref[...] = jnp.zeros_like(c2_ref)

    t_tile, f_tile, c_dim = x_ref.shape
    hp = hid
    inv_c = 1.0 / float(c_dim)
    mm_dtype = w1i_ref.dtype

    # -------- block-level work (off the recurrent critical path) ---------- #
    # LayerNorm over the embed dim, batched over all t*f rows.  Two-pass
    # (centered) variance, f32 stats (stability per review).
    xf = x_ref[...].reshape(t_tile * f_tile, c_dim)
    mean = jnp.sum(xf, axis=1, keepdims=True) * inv_c
    xc = xf - mean
    var = jnp.sum(xc * xc, axis=1, keepdims=True) * inv_c
    xn = xc * jax.lax.rsqrt(var + eps) * lng_ref[...] + lnb_ref[...]

    # Hoisted LSTM-1 input projection: one big MXU matmul for the whole block.
    g1_all = (jnp.dot(xn.astype(mm_dtype), w1i_ref[...],
                      preferred_element_type=jnp.float32) + b1_ref[...])
    g1s_ref[...] = g1_all.reshape(t_tile, f_tile, 4 * hp)

    u1 = u1_ref[...]
    w2 = w2_ref[...]
    b2 = b2_ref[...]

    def sig(v):                                   # 1 EUP op per sigmoid
        return 0.5 * jnp.tanh(0.5 * v) + 0.5

    def gates(g, c_prev):
        # Slices fall on 128-lane (vreg) boundaries because hp % 128 == 0.
        i_g = sig(g[:, 0 * hp:1 * hp])
        f_g = sig(g[:, 1 * hp:2 * hp])
        c_g = jnp.tanh(g[:, 2 * hp:3 * hp])
        o_g = sig(g[:, 3 * hp:4 * hp])
        c_new = f_g * c_prev + i_g * c_g
        h_new = o_g * jnp.tanh(c_new)
        return h_new, c_new

    # -------- serial recurrence over the time block ------------------------ #
    def step(t, carry):
        # Layer 1: only the recurrent matmul on the serial path.
        h1_prev = z_ref[:, 0:hp]
        g1 = g1s_ref[t] + jnp.dot(h1_prev.astype(mm_dtype), u1,
                                  preferred_element_type=jnp.float32)
        h1, c1 = gates(g1, c1_ref[...])
        c1_ref[...] = c1
        z_ref[:, 0:hp] = h1                    # z now holds [h1_t | h2_{t-1}]

        # Layer 2: fused input+recurrent matmul on [h1_t | h2_{t-1}].
        g2 = (jnp.dot(z_ref[...].astype(mm_dtype), w2,
                      preferred_element_type=jnp.float32) + b2)
        h2, c2 = gates(g2, c2_ref[...])
        c2_ref[...] = c2
        z_ref[:, hp:2 * hp] = h2
        h2s_ref[t] = h2
        return carry

    jax.lax.fori_loop(0, t_tile, step, 0, unroll=unroll)

    # -------- batched MLP + single lane-dense store ------------------------ #
    hflat = h2s_ref[...].reshape(t_tile * f_tile, hp)
    zmid = jnp.maximum(
        jnp.dot(hflat.astype(mm_dtype), wd1_ref[...],
                preferred_element_type=jnp.float32) + bd1_ref[...], 0.0)
    y = (jnp.dot(zmid.astype(mm_dtype), wd2_ref[...],
                 preferred_element_type=jnp.float32) + bd2_ref[...])
    o_ref[...] = y.reshape(t_tile, f_tile, o_ref.shape[-1]).astype(o_ref.dtype)


# --------------------------------- module ----------------------------------- #

class LSTM_BF:
    def __init__(self, embed_dim: int, M: int, hid_node: int = 64, *,
                 key=None, t_tile: int = 32, f_tile_max: int = 128,
                 matmul_dtype=jnp.float32):
        self.embed_dim = embed_dim
        self.M = M
        self.hid_node = hid_node
        self.t_tile = t_tile            # sweepable (review: 32-64)
        self.f_tile_max = f_tile_max    # sweepable (128 default; 256 on v6e)
        self.matmul_dtype = matmul_dtype

        if key is None:
            key = jax.random.PRNGKey(0)
        ks = jax.random.split(key, 12)
        bound = 1.0 / np.sqrt(hid_node)

        def unif(k, shape):
            return jax.random.uniform(k, shape, jnp.float32, -bound, bound)

        H, C = hid_node, embed_dim
        assert H % 8 == 0, "hid_node must be a multiple of 8"
        # PyTorch-layout parameters (rows = [i; f; g; o]).
        self.w1_ih = unif(ks[0], (4 * H, C))
        self.w1_hh = unif(ks[1], (4 * H, H))
        self.b1_ih = unif(ks[2], (4 * H,))
        self.b1_hh = unif(ks[3], (4 * H,))
        self.w2_ih = unif(ks[4], (4 * H, H))
        self.w2_hh = unif(ks[5], (4 * H, H))
        self.b2_ih = unif(ks[6], (4 * H,))
        self.b2_hh = unif(ks[7], (4 * H,))
        self.wd1 = unif(ks[8], (H, H))
        self.bd1 = unif(ks[9], (H,))
        self.wd2 = unif(ks[10], (2 * M, H))
        self.bd2 = unif(ks[11], (2 * M,))
        self.ln_g = jnp.ones((C,), jnp.float32)
        self.ln_b = jnp.zeros((C,), jnp.float32)

        # Kernel-layout parameters, prepared ONCE.
        #  - hidden padded to a multiple of 128 -> vreg-aligned gate slices,
        #    aligned [h1|h2] split, aligned MLP dims.  Zero-padded gates keep
        #    the padded h/c state identically zero, so results are exact.
        #  - output columns padded to a multiple of 128 -> unmasked stores.
        Hp = _round_up(H, 128)
        Mp2 = _round_up(2 * M, 128)
        self.hid_pad = Hp
        self.out_cols_pad = Mp2

        def gate_pad_mat(w, in_pad=None):
            w = _pad_gates(w, H, Hp)                       # (4Hp, K)
            if in_pad is not None:
                w = jnp.pad(w, ((0, 0), (0, in_pad - w.shape[1])))
            return w

        w1i = gate_pad_mat(self.w1_ih)                     # (4Hp, C)
        w1h = gate_pad_mat(self.w1_hh, in_pad=Hp)          # (4Hp, Hp)
        b1 = _pad_gates((self.b1_ih + self.b1_hh)[:, None], H, Hp)[:, 0]
        w2i = gate_pad_mat(self.w2_ih, in_pad=Hp)          # (4Hp, Hp)
        w2h = gate_pad_mat(self.w2_hh, in_pad=Hp)          # (4Hp, Hp)
        b2 = _pad_gates((self.b2_ih + self.b2_hh)[:, None], H, Hp)[:, 0]
        wd1 = jnp.pad(self.wd1, ((0, Hp - H), (0, Hp - H)))      # (Hp, Hp)
        bd1 = jnp.pad(self.bd1, (0, Hp - H))
        wd2 = jnp.pad(self.wd2, ((0, Mp2 - 2 * M), (0, Hp - H)))  # (Mp2, Hp)
        bd2 = jnp.pad(self.bd2, (0, Mp2 - 2 * M))

        mmdt = matmul_dtype
        self._kparams = (
            jnp.transpose(w1i).astype(mmdt),               # (C, 4Hp)
            jnp.transpose(w1h).astype(mmdt),               # (Hp, 4Hp)
            b1[None, :].astype(jnp.float32),               # (1, 4Hp)
            jnp.concatenate([jnp.transpose(w2i),
                             jnp.transpose(w2h)], axis=0).astype(mmdt),  # (2Hp, 4Hp)
            b2[None, :].astype(jnp.float32),               # (1, 4Hp)
            jnp.transpose(wd1).astype(mmdt),               # (Hp, Hp)
            bd1[None, :].astype(jnp.float32),              # (1, Hp)
            jnp.transpose(wd2).astype(mmdt),               # (Hp, Mp2)
            bd2[None, :].astype(jnp.float32),              # (1, Mp2)
            self.ln_g[None, :].astype(jnp.float32),        # (1, C)
            self.ln_b[None, :].astype(jnp.float32),        # (1, C)
        )

    def param_dict(self):
        return dict(w1_ih=self.w1_ih, w1_hh=self.w1_hh,
                    b1_ih=self.b1_ih, b1_hh=self.b1_hh,
                    w2_ih=self.w2_ih, w2_hh=self.w2_hh,
                    b2_ih=self.b2_ih, b2_hh=self.b2_hh,
                    wd1=self.wd1, bd1=self.bd1, wd2=self.wd2, bd2=self.bd2,
                    ln_g=self.ln_g, ln_b=self.ln_b)

    def __call__(self, embed_x):
        B, C, T, F = embed_x.shape
        assert C == self.embed_dim
        Hp = self.hid_pad
        M = self.M
        two_m = 2 * M
        two_mp = self.out_cols_pad

        # Single input layout pass (the PyTorch module itself does
        # permute().contiguous()); puts the embed dim on lanes.
        x = jnp.transpose(embed_x.astype(jnp.float32), (0, 2, 3, 1))  # (B,T,F,C)

        # Balanced F tiling (avoid mostly-padded last tiles); keep >= 2
        # parallel grid iterations for v7x's two TensorCores when possible.
        n_f = _cdiv(F, self.f_tile_max)
        if B * n_f < 2 and F > 8:
            n_f = 2
        f_tile = _round_up(_cdiv(F, n_f), 8)
        Fp = n_f * f_tile

        # Time tiling: big T-blocks amortize per-grid-step overhead.
        n_t = _cdiv(T, self.t_tile)
        t_tile = _cdiv(T, n_t)
        Tp = n_t * t_tile

        if (Fp, Tp) != (F, T):
            x = jnp.pad(x, ((0, 0), (0, Tp - T), (0, Fp - F), (0, 0)))

        grid = (B, n_f, n_t)
        params = self._kparams
        unroll = max(1, min(8, t_tile))

        flops_per_row = 2 * (4 * Hp * (C + Hp + 2 * Hp) + Hp * Hp + Hp * two_mp)
        cost = pl.CostEstimate(
            flops=int(B * Tp * Fp) * flops_per_row,
            transcendentals=int(B * Tp * Fp) * 10 * Hp,
            bytes_accessed=int(x.size * 4 + B * Tp * Fp * two_mp * 4
                               + sum(int(p.size) * p.dtype.itemsize
                                     for p in params)),
        )

        out = pl.pallas_call(
            functools.partial(_lstm_bf_kernel, hid=Hp, eps=_LN_EPS,
                              unroll=unroll),
            out_shape=jax.ShapeDtypeStruct((B, Tp, Fp, two_mp), jnp.float32),
            grid_spec=pltpu.PrefetchScalarGridSpec(
                num_scalar_prefetch=0,
                grid=grid,
                in_specs=[pl.BlockSpec((None, t_tile, f_tile, C),
                                       lambda b, fi, ti: (b, ti, fi, 0))]
                         + [pl.BlockSpec(p.shape, lambda b, fi, ti: (0, 0))
                            for p in params],
                out_specs=pl.BlockSpec((None, t_tile, f_tile, two_mp),
                                       lambda b, fi, ti: (b, ti, fi, 0)),
                scratch_shapes=[
                    pltpu.VMEM((f_tile, 2 * Hp), jnp.float32),        # [h1|h2]
                    pltpu.VMEM((f_tile, Hp), jnp.float32),            # c1
                    pltpu.VMEM((f_tile, Hp), jnp.float32),            # c2
                    pltpu.VMEM((t_tile, f_tile, 4 * Hp), jnp.float32),  # g1 stash
                    pltpu.VMEM((t_tile, f_tile, Hp), jnp.float32),      # h2 stash
                ],
            ),
            compiler_params=pltpu.CompilerParams(
                dimension_semantics=("parallel", "parallel", "arbitrary"),
                vmem_limit_bytes=32 * 1024 * 1024,
            ),
            cost_estimate=cost,
        )(x, *params)

        out = out[:, :T, :F, :two_m]
        return out.reshape(B, T, F, M, 2)


# --------------------------- plain-JAX reference ---------------------------- #

def _ref_forward(embed_x, p, M, hid, eps=_LN_EPS):
    B, C, T, F = embed_x.shape
    x = jnp.transpose(embed_x, (0, 3, 2, 1))                  # (B, F, T, C)
    mu = jnp.mean(x, -1, keepdims=True)
    var = jnp.mean((x - mu) ** 2, -1, keepdims=True)
    x = (x - mu) / jnp.sqrt(var + eps) * p["ln_g"] + p["ln_b"]
    x = x.reshape(B * F, T, C)

    def run_lstm(seq, w_ih, w_hh, b_ih, b_hh):
        N = seq.shape[0]
        h0 = jnp.zeros((N, hid), jnp.float32)
        c0 = jnp.zeros((N, hid), jnp.float32)

        def step(carry, xt):
            h, c = carry
            g = xt @ w_ih.T + b_ih + h @ w_hh.T + b_hh
            i = jax.nn.sigmoid(g[:, :hid])
            f = jax.nn.sigmoid(g[:, hid:2 * hid])
            gg = jnp.tanh(g[:, 2 * hid:3 * hid])
            o = jax.nn.sigmoid(g[:, 3 * hid:])
            c = f * c + i * gg
            h = o * jnp.tanh(c)
            return (h, c), h

        _, hs = jax.lax.scan(step, (h0, c0), jnp.swapaxes(seq, 0, 1))
        return jnp.swapaxes(hs, 0, 1)

    h = run_lstm(x, p["w1_ih"], p["w1_hh"], p["b1_ih"], p["b1_hh"])
    h = run_lstm(h, p["w2_ih"], p["w2_hh"], p["b2_ih"], p["b2_hh"])
    h = h.reshape(B, F, T, hid).transpose(0, 2, 1, 3)          # (B, T, F, H)
    y = jnp.maximum(h @ p["wd1"].T + p["bd1"], 0.0) @ p["wd2"].T + p["bd2"]
    return y.reshape(B, T, F, M, 2)


# ----------------------------------- main ------------------------------------ #

if __name__ == "__main__":
    B, C, T, F = 2, 16, 8, 16          # (batch, embed_dim, time, freq)
    M, hid = 4, 32

    key = jax.random.PRNGKey(0)
    k_x, k_p = jax.random.split(key)
    embed_x = jax.random.normal(k_x, (B, C, T, F), dtype=jnp.float32)

    model = LSTM_BF(embed_dim=C, M=M, hid_node=hid, key=k_p)

    out = jax.block_until_ready(model(embed_x))
    assert out.shape == (B, T, F, M, 2), out.shape

    ref = jax.block_until_ready(_ref_forward(embed_x, model.param_dict(), M, hid))
    np.testing.assert_allclose(np.asarray(out), np.asarray(ref),
                               rtol=2e-3, atol=2e-3)

    print("KERNEL_OK")
</pallas_src>

<mosaic_0001>
module attributes {stable_mosaic.version = 11 : i64} {
  func.func @_lstm_bf_kernel(%arg0: i32, %arg1: i32, %arg2: i32, %arg3: memref<1x8x16x16xf32, #tpu.memory_space<vmem>>, %arg4: memref<16x512xf32, #tpu.memory_space<vmem>>, %arg5: memref<128x512xf32, #tpu.memory_space<vmem>>, %arg6: memref<1x512xf32, #tpu.memory_space<vmem>>, %arg7: memref<256x512xf32, #tpu.memory_space<vmem>>, %arg8: memref<1x512xf32, #tpu.memory_space<vmem>>, %arg9: memref<128x128xf32, #tpu.memory_space<vmem>>, %arg10: memref<1x128xf32, #tpu.memory_space<vmem>>, %arg11: memref<128x128xf32, #tpu.memory_space<vmem>>, %arg12: memref<1x128xf32, #tpu.memory_space<vmem>>, %arg13: memref<1x16xf32, #tpu.memory_space<vmem>>, %arg14: memref<1x16xf32, #tpu.memory_space<vmem>>, %arg15: memref<1x8x16x128xf32, #tpu.memory_space<vmem>>, %arg16: memref<16x256xf32, #tpu.memory_space<vmem>>, %arg17: memref<16x128xf32, #tpu.memory_space<vmem>>, %arg18: memref<16x128xf32, #tpu.memory_space<vmem>>, %arg19: memref<8x16x512xf32, #tpu.memory_space<vmem>>, %arg20: memref<8x16x128xf32, #tpu.memory_space<vmem>>) attributes {dimension_semantics = [#tpu.dimension_semantics<parallel>, #tpu.dimension_semantics<parallel>, #tpu.dimension_semantics<arbitrary>], iteration_bounds = array<i64: 2, 1, 1>, scalar_prefetch = 0 : i64, scratch_operands = 5 : i64, tpu.core_type = #tpu.core_type<tc>, window_params = [{transform_indices = @transform_0, window_bounds = array<i64: 1, 8, 16, 16>}, {pipeline_mode = #tpu.pipeline_mode<synchronous>, transform_indices = @transform_1, window_bounds = array<i64: 16, 512>}, {pipeline_mode = #tpu.pipeline_mode<synchronous>, transform_indices = @transform_2, window_bounds = array<i64: 128, 512>}, {pipeline_mode = #tpu.pipeline_mode<synchronous>, transform_indices = @transform_3, window_bounds = array<i64: 1, 512>}, {pipeline_mode = #tpu.pipeline_mode<synchronous>, transform_indices = @transform_4, window_bounds = array<i64: 256, 512>}, {pipeline_mode = #tpu.pipeline_mode<synchronous>, transform_indices = @transform_5, window_bounds = array<i64: 1, 512>}, {pipeline_mode = #tpu.pipeline_mode<synchronous>, transform_indices = @transform_6, window_bounds = array<i64: 128, 128>}, {pipeline_mode = #tpu.pipeline_mode<synchronous>, transform_indices = @transform_7, window_bounds = array<i64: 1, 128>}, {pipeline_mode = #tpu.pipeline_mode<synchronous>, transform_indices = @transform_8, window_bounds = array<i64: 128, 128>}, {pipeline_mode = #tpu.pipeline_mode<synchronous>, transform_indices = @transform_9, window_bounds = array<i64: 1, 128>}, {pipeline_mode = #tpu.pipeline_mode<synchronous>, transform_indices = @transform_10, window_bounds = array<i64: 1, 16>}, {pipeline_mode = #tpu.pipeline_mode<synchronous>, transform_indices = @transform_11, window_bounds = array<i64: 1, 16>}, {transform_indices = @transform_12, window_bounds = array<i64: 1, 8, 16, 128>}]} {
    %c0_i32 = arith.constant 0 : i32
    %0 = arith.cmpi eq, %arg2, %c0_i32 : i32
    %1 = arith.extui %0 : i1 to i32
    %c0_i32_0 = arith.constant 0 : i32
    %2 = arith.cmpi ne, %1, %c0_i32_0 : i32
    scf.if %2 {
      %cst_364 = arith.constant 0.000000e+00 : f32
      %712 = vector.broadcast %cst_364 : f32 to vector<16x256xf32>
      %c0_365 = arith.constant 0 : index
      %c0_366 = arith.constant 0 : index
      %713 = vector.load %arg16[%c0_365, %c0_366] : memref<16x256xf32, #tpu.memory_space<vmem>>, vector<16x256xf32>
      tpu.vector_store %arg16[%c0_365, %c0_366], %712 {strides = array<i32>} : memref<16x256xf32, #tpu.memory_space<vmem>>, vector<16x256xf32>,
      %cst_367 = arith.constant 0.000000e+00 : f32
      %714 = vector.broadcast %cst_367 : f32 to vector<16x128xf32>
      %c0_368 = arith.constant 0 : index
      %c0_369 = arith.constant 0 : index
      %715 = vector.load %arg17[%c0_368, %c0_369] : memref<16x128xf32, #tpu.memory_space<vmem>>, vector<16x128xf32>
      tpu.vector_store %arg17[%c0_368, %c0_369], %714 {strides = array<i32>} : memref<16x128xf32, #tpu.memory_space<vmem>>, vector<16x128xf32>,
      %cst_370 = arith.constant 0.000000e+00 : f32
      %716 = vector.broadcast %cst_370 : f32 to vector<16x128xf32>
      %c0_371 = arith.constant 0 : index
      %c0_372 = arith.constant 0 : index
      %717 = vector.load %arg18[%c0_371, %c0_372] : memref<16x128xf32, #tpu.memory_space<vmem>>, vector<16x128xf32>
      tpu.vector_store %arg18[%c0_371, %c0_372], %716 {strides = array<i32>} : memref<16x128xf32, #tpu.memory_space<vmem>>, vector<16x128xf32>,
    } else {
    }
    %c0 = arith.constant 0 : index
    %c0_1 = arith.constant 0 : index
    %c0_2 = arith.constant 0 : index
    %c0_3 = arith.constant 0 : index
    %3 = vector.load %arg3[%c0, %c0_1, %c0_2, %c0_3] : memref<1x8x16x16xf32, #tpu.memory_space<vmem>>, vector<1x8x16x16xf32>
    %4 = vector.shape_cast %3 : vector<1x8x16x16xf32> to vector<8x16x16xf32>
    %5 = vector.shape_cast %4 : vector<8x16x16xf32> to vector<128x16xf32>
    %cst = arith.constant dense<0.000000e+00> : vector<128xf32>
    %6 = vector.multi_reduction <add>, %5, %cst [1] : vector<128x16xf32> to vector<128xf32>
    %7 = vector.shape_cast %6 : vector<128xf32> to vector<128x1xf32>
    %cst_4 = arith.constant 6.250000e-02 : f32
    %8 = vector.broadcast %cst_4 : f32 to vector<128x1xf32>
    %9 = arith.mulf %7, %8 : vector<128x1xf32>
    %10 = vector.broadcast %9 : vector<128x1xf32> to vector<128x16xf32>
    %11 = arith.subf %5, %10 : vector<128x16xf32>
    %12 = arith.mulf %11, %11 : vector<128x16xf32>
    %cst_5 = arith.constant dense<0.000000e+00> : vector<128xf32>
    %13 = vector.multi_reduction <add>, %12, %cst_5 [1] : vector<128x16xf32> to vector<128xf32>
    %14 = vector.shape_cast %13 : vector<128xf32> to vector<128x1xf32>
    %cst_6 = arith.constant 6.250000e-02 : f32
    %15 = vector.broadcast %cst_6 : f32 to vector<128x1xf32>
    %16 = arith.mulf %14, %15 : vector<128x1xf32>
    %cst_7 = arith.constant 9.99999974E-6 : f32
    %17 = vector.broadcast %cst_7 : f32 to vector<128x1xf32>
    %18 = arith.addf %16, %17 : vector<128x1xf32>
    %19 = math.rsqrt %18 : vector<128x1xf32>
    %20 = vector.broadcast %19 : vector<128x1xf32> to vector<128x16xf32>
    %21 = arith.mulf %11, %20 : vector<128x16xf32>
    %c0_8 = arith.constant 0 : index
    %c0_9 = arith.constant 0 : index
    %22 = vector.load %arg13[%c0_8, %c0_9] : memref<1x16xf32, #tpu.memory_space<vmem>>, vector<1x16xf32>
    %23 = vector.broadcast %22 : vector<1x16xf32> to vector<128x16xf32>
    %24 = arith.mulf %21, %23 : vector<128x16xf32>
    %c0_10 = arith.constant 0 : index
    %c0_11 = arith.constant 0 : index
    %25 = vector.load %arg14[%c0_10, %c0_11] : memref<1x16xf32, #tpu.memory_space<vmem>>, vector<1x16xf32>
    %26 = vector.broadcast %25 : vector<1x16xf32> to vector<128x16xf32>
    %27 = arith.addf %24, %26 : vector<128x16xf32>
    %c0_12 = arith.constant 0 : index
    %c0_13 = arith.constant 0 : index
    %28 = vector.load %arg4[%c0_12, %c0_13] : memref<16x512xf32, #tpu.memory_space<vmem>>, vector<16x512xf32>
    %cst_14 = arith.constant dense<0.000000e+00> : vector<128x512xf32>
    %29 = tpu.matmul %27, %28, %cst_14 {dimension_numbers = #tpu.dot_dimension_numbers<[1], [0], [0], [1], [0, 0, 1, 1], [], []>} : vector<128x16xf32>, vector<16x512xf32>, vector<128x512xf32> -> vector<128x512xf32>
    %c0_15 = arith.constant 0 : index
    %c0_16 = arith.constant 0 : index
    %30 = vector.load %arg6[%c0_15, %c0_16] : memref<1x512xf32, #tpu.memory_space<vmem>>, vector<1x512xf32>
    %31 = vector.broadcast %30 : vector<1x512xf32> to vector<128x512xf32>
    %32 = arith.addf %29, %31 : vector<128x512xf32>
    %33 = vector.shape_cast %32 : vector<128x512xf32> to vector<8x16x512xf32>
    %c0_17 = arith.constant 0 : index
    %c0_18 = arith.constant 0 : index
    %c0_19 = arith.constant 0 : index
    %34 = vector.load %arg19[%c0_17, %c0_18, %c0_19] : memref<8x16x512xf32, #tpu.memory_space<vmem>>, vector<8x16x512xf32>
    tpu.vector_store %arg19[%c0_17, %c0_18, %c0_19], %33 {strides = array<i32>} : memref<8x16x512xf32, #tpu.memory_space<vmem>>, vector<8x16x512xf32>,
    %c0_20 = arith.constant 0 : index
    %c0_21 = arith.constant 0 : index
    %35 = vector.load %arg5[%c0_20, %c0_21] : memref<128x512xf32, #tpu.memory_space<vmem>>, vector<128x512xf32>
    %c0_22 = arith.constant 0 : index
    %c0_23 = arith.constant 0 : index
    %36 = vector.load %arg7[%c0_22, %c0_23] : memref<256x512xf32, #tpu.memory_space<vmem>>, vector<256x512xf32>
    %c0_24 = arith.constant 0 : index
    %c0_25 = arith.constant 0 : index
    %37 = vector.load %arg8[%c0_24, %c0_25] : memref<1x512xf32, #tpu.memory_space<vmem>>, vector<1x512xf32>
    %c0_i32_26 = arith.constant 0 : i32
    %c0_27 = arith.constant 0 : index
    %c0_28 = arith.constant 0 : index
    %38 = vector.load %arg16[%c0_27, %c0_28] : memref<16x256xf32, #tpu.memory_space<vmem>>, vector<16x128xf32>
    %39 = arith.index_cast %c0_i32_26 : i32 to index
    %c0_29 = arith.constant 0 : index
    %c0_30 = arith.constant 0 : index
    %40 = vector.load %arg19[%39, %c0_29, %c0_30] : memref<8x16x512xf32, #tpu.memory_space<vmem>>, vector<1x16x512xf32>
    %41 = vector.shape_cast %40 : vector<1x16x512xf32> to vector<16x512xf32>
    %cst_31 = arith.constant dense<0.000000e+00> : vector<16x512xf32>
    %42 = tpu.matmul %38, %35, %cst_31 {dimension_numbers = #tpu.dot_dimension_numbers<[1], [0], [0], [1], [0, 0, 1, 1], [], []>} : vector<16x128xf32>, vector<128x512xf32>, vector<16x512xf32> -> vector<16x512xf32>
    %43 = arith.addf %41, %42 : vector<16x512xf32>
    %c0_32 = arith.constant 0 : index
    %c0_33 = arith.constant 0 : index
    %44 = vector.load %arg17[%c0_32, %c0_33] : memref<16x128xf32, #tpu.memory_space<vmem>>, vector<16x128xf32>
    %45 = vector.extract_strided_slice %43 {offsets = [0, 0], sizes = [16, 128], strides = [1, 1]} : vector<16x512xf32> to vector<16x128xf32>
    %cst_34 = arith.constant 5.000000e-01 : f32
    %46 = vector.broadcast %cst_34 : f32 to vector<16x128xf32>
    %47 = arith.mulf %46, %45 : vector<16x128xf32>
    %48 = math.tanh %47 : vector<16x128xf32>
    %cst_35 = arith.constant 5.000000e-01 : f32
    %49 = vector.broadcast %cst_35 : f32 to vector<16x128xf32>
    %50 = arith.mulf %49, %48 : vector<16x128xf32>
    %cst_36 = arith.constant 5.000000e-01 : f32
    %51 = vector.broadcast %cst_36 : f32 to vector<16x128xf32>
    %52 = arith.addf %50, %51 : vector<16x128xf32>
    %53 = vector.extract_strided_slice %43 {offsets = [0, 128], sizes = [16, 128], strides = [1, 1]} : vector<16x512xf32> to vector<16x128xf32>
    %cst_37 = arith.constant 5.000000e-01 : f32
    %54 = vector.broadcast %cst_37 : f32 to vector<16x128xf32>
    %55 = arith.mulf %54, %53 : vector<16x128xf32>
    %56 = math.tanh %55 : vector<16x128xf32>
    %cst_38 = arith.constant 5.000000e-01 : f32
    %57 = vector.broadcast %cst_38 : f32 to vector<16x128xf32>
    %58 = arith.mulf %57, %56 : vector<16x128xf32>
    %cst_39 = arith.constant 5.000000e-01 : f32
    %59 = vector.broadcast %cst_39 : f32 to vector<16x128xf32>
    %60 = arith.addf %58, %59 : vector<16x128xf32>
    %61 = vector.extract_strided_slice %43 {offsets = [0, 256], sizes = [16, 128], strides = [1, 1]} : vector<16x512xf32> to vector<16x128xf32>
    %62 = math.tanh %61 : vector<16x128xf32>
    %63 = vector.extract_strided_slice %43 {offsets = [0, 384], sizes = [16, 128], strides = [1, 1]} : vector<16x512xf32> to vector<16x128xf32>
    %cst_40 = arith.constant 5.000000e-01 : f32
    %64 = vector.broadcast %cst_40 : f32 to vector<16x128xf32>
    %65 = arith.mulf %64, %63 : vector<16x128xf32>
    %66 = math.tanh %65 : vector<16x128xf32>
    %cst_41 = arith.constant 5.000000e-01 : f32
    %67 = vector.broadcast %cst_41 : f32 to vector<16x128xf32>
    %68 = arith.mulf %67, %66 : vector<16x128xf32>
    %cst_42 = arith.constant 5.000000e-01 : f32
    %69 = vector.broadcast %cst_42 : f32 to vector<16x128xf32>
    %70 = arith.addf %68, %69 : vector<16x128xf32>
    %71 = arith.mulf %60, %44 : vector<16x128xf32>
    %72 = arith.mulf %52, %62 : vector<16x128xf32>
    %73 = arith.addf %71, %72 : vector<16x128xf32>
    %74 = math.tanh %73 : vector<16x128xf32>
    %75 = arith.mulf %70, %74 : vector<16x128xf32>
    %c0_43 = arith.constant 0 : index
    %c0_44 = arith.constant 0 : index
    %76 = vector.load %arg17[%c0_43, %c0_44] : memref<16x128xf32, #tpu.memory_space<vmem>>, vector<16x128xf32>
    tpu.vector_store %arg17[%c0_43, %c0_44], %73 {strides = array<i32>} : memref<16x128xf32, #tpu.memory_space<vmem>>, vector<16x128xf32>,
    %c0_45 = arith.constant 0 : index
    %c0_46 = arith.constant 0 : index
    %77 = vector.load %arg16[%c0_45, %c0_46] : memref<16x256xf32, #tpu.memory_space<vmem>>, vector<16x128xf32>
    tpu.vector_store %arg16[%c0_45, %c0_46], %75 {strides = array<i32>} : memref<16x256xf32, #tpu.memory_space<vmem>>, vector<16x128xf32>,
    %c0_47 = arith.constant 0 : index
    %c0_48 = arith.constant 0 : index
    %78 = vector.load %arg16[%c0_47, %c0_48] : memref<16x256xf32, #tpu.memory_space<vmem>>, vector<16x256xf32>
    %cst_49 = arith.constant dense<0.000000e+00> : vector<16x512xf32>
    %79 = tpu.matmul %78, %36, %cst_49 {dimension_numbers = #tpu.dot_dimension_numbers<[1], [0], [0], [1], [0, 0, 1, 1], [], []>} : vector<16x256xf32>, vector<256x512xf32>, vector<16x512xf32> -> vector<16x512xf32>
    %80 = vector.broadcast %37 : vector<1x512xf32> to vector<16x512xf32>
    %81 = arith.addf %79, %80 : vector<16x512xf32>
    %c0_50 = arith.constant 0 : index
    %c0_51 = arith.constant 0 : index
    %82 = vector.load %arg18[%c0_50, %c0_51] : memref<16x128xf32, #tpu.memory_space<vmem>>, vector<16x128xf32>
    %83 = vector.extract_strided_slice %81 {offsets = [0, 0], sizes = [16, 128], strides = [1, 1]} : vector<16x512xf32> to vector<16x128xf32>
    %cst_52 = arith.constant 5.000000e-01 : f32
    %84 = vector.broadcast %cst_52 : f32 to vector<16x128xf32>
    %85 = arith.mulf %84, %83 : vector<16x128xf32>
    %86 = math.tanh %85 : vector<16x128xf32>
    %cst_53 = arith.constant 5.000000e-01 : f32
    %87 = vector.broadcast %cst_53 : f32 to vector<16x128xf32>
    %88 = arith.mulf %87, %86 : vector<16x128xf32>
    %cst_54 = arith.constant 5.000000e-01 : f32
    %89 = vector.broadcast %cst_54 : f32 to vector<16x128xf32>
    %90 = arith.addf %88, %89 : vector<16x128xf32>
    %91 = vector.extract_strided_slice %81 {offsets = [0, 128], sizes = [16, 128], strides = [1, 1]} : vector<16x512xf32> to vector<16x128xf32>
    %cst_55 = arith.constant 5.000000e-01 : f32
    %92 = vector.broadcast %cst_55 : f32 to vector<16x128xf32>
    %93 = arith.mulf %92, %91 : vector<16x128xf32>
    %94 = math.tanh %93 : vector<16x128xf32>
    %cst_56 = arith.constant 5.000000e-01 : f32
    %95 = vector.broadcast %cst_56 : f32 to vector<16x128xf32>
    %96 = arith.mulf %95, %94 : vector<16x128xf32>
    %cst_57 = arith.constant 5.000000e-01 : f32
    %97 = vector.broadcast %cst_57 : f32 to vector<16x128xf32>
    %98 = arith.addf %96, %97 : vector<16x128xf32>
    %99 = vector.extract_strided_slice %81 {offsets = [0, 256], sizes = [16, 128], strides = [1, 1]} : vector<16x512xf32> to vector<16x128xf32>
    %100 = math.tanh %99 : vector<16x128xf32>
    %101 = vector.extract_strided_slice %81 {offsets = [0, 384], sizes = [16, 128], strides = [1, 1]} : vector<16x512xf32> to vector<16x128xf32>
    %cst_58 = arith.constant 5.000000e-01 : f32
    %102 = vector.broadcast %cst_58 : f32 to vector<16x128xf32>
    %103 = arith.mulf %102, %101 : vector<16x128xf32>
    %104 = math.tanh %103 : vector<16x128xf32>
    %cst_59 = arith.constant 5.000000e-01 : f32
    %105 = vector.broadcast %cst_59 : f32 to vector<16x128xf32>
    %106 = arith.mulf %105, %104 : vector<16x128xf32>
    %cst_60 = arith.constant 5.000000e-01 : f32
    %107 = vector.broadcast %cst_60 : f32 to vector<16x128xf32>
    %108 = arith.addf %106, %107 : vector<16x128xf32>
    %109 = arith.mulf %98, %82 : vector<16x128xf32>
    %110 = arith.mulf %90, %100 : vector<16x128xf32>
    %111 = arith.addf %109, %110 : vector<16x128xf32>
    %112 = math.tanh %111 : vector<16x128xf32>
    %113 = arith.mulf %108, %112 : vector<16x128xf32>
    %c0_61 = arith.constant 0 : index
    %c0_62 = arith.constant 0 : index
    %114 = vector.load %arg18[%c0_61, %c0_62] : memref<16x128xf32, #tpu.memory_space<vmem>>, vector<16x128xf32>
    tpu.vector_store %arg18[%c0_61, %c0_62], %111 {strides = array<i32>} : memref<16x128xf32, #tpu.memory_space<vmem>>, vector<16x128xf32>,
    %c0_63 = arith.constant 0 : index
    %c128 = arith.constant 128 : index
    %115 = vector.load %arg16[%c0_63, %c128] : memref<16x256xf32, #tpu.memory_space<vmem>>, vector<16x128xf32>
    tpu.vector_store %arg16[%c0_63, %c128], %113 {strides = array<i32>} : memref<16x256xf32, #tpu.memory_space<vmem>>, vector<16x128xf32>,
    %116 = arith.index_cast %c0_i32_26 : i32 to index
    %c0_64 = arith.constant 0 : index
    %c0_65 = arith.constant 0 : index
    %117 = vector.load %arg20[%116, %c0_64, %c0_65] : memref<8x16x128xf32, #tpu.memory_space<vmem>>, vector<1x16x128xf32>
    %118 = vector.shape_cast %117 : vector<1x16x128xf32> to vector<16x128xf32>
    %119 = vector.shape_cast %113 : vector<16x128xf32> to vector<1x16x128xf32>
    tpu.vector_store %arg20[%116, %c0_64, %c0_65], %119 {strides = array<i32>} : memref<8x16x128xf32, #tpu.memory_space<vmem>>, vector<1x16x128xf32>,
    %c1_i32 = arith.constant 1 : i32
    %c0_66 = arith.constant 0 : index
    %c0_67 = arith.constant 0 : index
    %120 = vector.load %arg16[%c0_66, %c0_67] : memref<16x256xf32, #tpu.memory_space<vmem>>, vector<16x128xf32>
    %121 = arith.index_cast %c1_i32 : i32 to index
    %c0_68 = arith.constant 0 : index
    %c0_69 = arith.constant 0 : index
    %122 = vector.load %arg19[%121, %c0_68, %c0_69] : memref<8x16x512xf32, #tpu.memory_space<vmem>>, vector<1x16x512xf32>
    %123 = vector.shape_cast %122 : vector<1x16x512xf32> to vector<16x512xf32>
    %cst_70 = arith.constant dense<0.000000e+00> : vector<16x512xf32>
    %124 = tpu.matmul %120, %35, %cst_70 {dimension_numbers = #tpu.dot_dimension_numbers<[1], [0], [0], [1], [0, 0, 1, 1], [], []>} : vector<16x128xf32>, vector<128x512xf32>, vector<16x512xf32> -> vector<16x512xf32>
    %125 = arith.addf %123, %124 : vector<16x512xf32>
    %c0_71 = arith.constant 0 : index
    %c0_72 = arith.constant 0 : index
    %126 = vector.load %arg17[%c0_71, %c0_72] : memref<16x128xf32, #tpu.memory_space<vmem>>, vector<16x128xf32>
    %127 = vector.extract_strided_slice %125 {offsets = [0, 0], sizes = [16, 128], strides = [1, 1]} : vector<16x512xf32> to vector<16x128xf32>
    %cst_73 = arith.constant 5.000000e-01 : f32
    %128 = vector.broadcast %cst_73 : f32 to vector<16x128xf32>
    %129 = arith.mulf %128, %127 : vector<16x128xf32>
    %130 = math.tanh %129 : vector<16x128xf32>
    %cst_74 = arith.constant 5.000000e-01 : f32
    %131 = vector.broadcast %cst_74 : f32 to vector<16x128xf32>
    %132 = arith.mulf %131, %130 : vector<16x128xf32>
    %cst_75 = arith.constant 5.000000e-01 : f32
    %133 = vector.broadcast %cst_75 : f32 to vector<16x128xf32>
    %134 = arith.addf %132, %133 : vector<16x128xf32>
    %135 = vector.extract_strided_slice %125 {offsets = [0, 128], sizes = [16, 128], strides = [1, 1]} : vector<16x512xf32> to vector<16x128xf32>
    %cst_76 = arith.constant 5.000000e-01 : f32
    %136 = vector.broadcast %cst_76 : f32 to vector<16x128xf32>
    %137 = arith.mulf %136, %135 : vector<16x128xf32>
    %138 = math.tanh %137 : vector<16x128xf32>
    %cst_77 = arith.constant 5.000000e-01 : f32
    %139 = vector.broadcast %cst_77 : f32 to vector<16x128xf32>
    %140 = arith.mulf %139, %138 : vector<16x128xf32>
    %cst_78 = arith.constant 5.000000e-01 : f32
    %141 = vector.broadcast %cst_78 : f32 to vector<16x128xf32>
    %142 = arith.addf %140, %141 : vector<16x128xf32>
    %143 = vector.extract_strided_slice %125 {offsets = [0, 256], sizes = [16, 128], strides = [1, 1]} : vector<16x512xf32> to vector<16x128xf32>
    %144 = math.tanh %143 : vector<16x128xf32>
    %145 = vector.extract_strided_slice %125 {offsets = [0, 384], sizes = [16, 128], strides = [1, 1]} : vector<16x512xf32> to vector<16x128xf32>
    %cst_79 = arith.constant 5.000000e-01 : f32
    %146 = vector.broadcast %cst_79 : f32 to vector<16x128xf32>
    %147 = arith.mulf %146, %145 : vector<16x128xf32>
    %148 = math.tanh %147 : vector<16x128xf32>
    %cst_80 = arith.constant 5.000000e-01 : f32
    %149 = vector.broadcast %cst_80 : f32 to vector<16x128xf32>
    %150 = arith.mulf %149, %148 : vector<16x128xf32>
    %cst_81 = arith.constant 5.000000e-01 : f32
    %151 = vector.broadcast %cst_81 : f32 to vector<16x128xf32>
    %152 = arith.addf %150, %151 : vector<16x128xf32>
    %153 = arith.mulf %142, %126 : vector<16x128xf32>
    %154 = arith.mulf %134, %144 : vector<16x128xf32>
    %155 = arith.addf %153, %154 : vector<16x128xf32>
    %156 = math.tanh %155 : vector<16x128xf32>
    %157 = arith.mulf %152, %156 : vector<16x128xf32>
    %c0_82 = arith.constant 0 : index
    %c0_83 = arith.constant 0 : index
    %158 = vector.load %arg17[%c0_82, %c0_83] : memref<16x128xf32, #tpu.memory_space<vmem>>, vector<16x128xf32>
    tpu.vector_store %arg17[%c0_82, %c0_83], %155 {strides = array<i32>} : memref<16x128xf32, #tpu.memory_space<vmem>>, vector<16x128xf32>,
    %c0_84 = arith.constant 0 : index
    %c0_85 = arith.constant 0 : index
    %159 = vector.load %arg16[%c0_84, %c0_85] : memref<16x256xf32, #tpu.memory_space<vmem>>, vector<16x128xf32>
    tpu.vector_store %arg16[%c0_84, %c0_85], %157 {strides = array<i32>} : memref<16x256xf32, #tpu.memory_space<vmem>>, vector<16x128xf32>,
    %c0_86 = arith.constant 0 : index
    %c0_87 = arith.constant 0 : index
    %160 = vector.load %arg16[%c0_86, %c0_87] : memref<16x256xf32, #tpu.memory_space<vmem>>, vector<16x256xf32>
    %cst_88 = arith.constant dense<0.000000e+00> : vector<16x512xf32>
    %161 = tpu.matmul %160, %36, %cst_88 {dimension_numbers = #tpu.dot_dimension_numbers<[1], [0], [0], [1], [0, 0, 1, 1], [], []>} : vector<16x256xf32>, vector<256x512xf32>, vector<16x512xf32> -> vector<16x512xf32>
    %162 = vector.broadcast %37 : vector<1x512xf32> to vector<16x512xf32>
    %163 = arith.addf %161, %162 : vector<16x512xf32>
    %c0_89 = arith.constant 0 : index
    %c0_90 = arith.constant 0 : index
    %164 = vector.load %arg18[%c0_89, %c0_90] : memref<16x128xf32, #tpu.memory_space<vmem>>, vector<16x128xf32>
    %165 = vector.extract_strided_slice %163 {offsets = [0, 0], sizes = [16, 128], strides = [1, 1]} : vector<16x512xf32> to vector<16x128xf32>
    %cst_91 = arith.constant 5.000000e-01 : f32
    %166 = vector.broadcast %cst_91 : f32 to vector<16x128xf32>
    %167 = arith.mulf %166, %165 : vector<16x128xf32>
    %168 = math.tanh %167 : vector<16x128xf32>
    %cst_92 = arith.constant 5.000000e-01 : f32
    %169 = vector.broadcast %cst_92 : f32 to vector<16x128xf32>
    %170 = arith.mulf %169, %168 : vector<16x128xf32>
    %cst_93 = arith.constant 5.000000e-01 : f32
    %171 = vector.broadcast %cst_93 : f32 to vector<16x128xf32>
    %172 = arith.addf %170, %171 : vector<16x128xf32>
    %173 = vector.extract_strided_slice %163 {offsets = [0, 128], sizes = [16, 128], strides = [1, 1]} : vector<16x512xf32> to vector<16x128xf32>
    %cst_94 = arith.constant 5.000000e-01 : f32
    %174 = vector.broadcast %cst_94 : f32 to vector<16x128xf32>
    %175 = arith.mulf %174, %173 : vector<16x128xf32>
    %176 = math.tanh %175 : vector<16x128xf32>
    %cst_95 = arith.constant 5.000000e-01 : f32
    %177 = vector.broadcast %cst_95 : f32 to vector<16x128xf32>
    %178 = arith.mulf %177, %176 : vector<16x128xf32>
    %cst_96 = arith.constant 5.000000e-01 : f32
    %179 = vector.broadcast %cst_96 : f32 to vector<16x128xf32>
    %180 = arith.addf %178, %179 : vector<16x128xf32>
    %181 = vector.extract_strided_slice %163 {offsets = [0, 256], sizes = [16, 128], strides = [1, 1]} : vector<16x512xf32> to vector<16x128xf32>
    %182 = math.tanh %181 : vector<16x128xf32>
    %183 = vector.extract_strided_slice %163 {offsets = [0, 384], sizes = [16, 128], strides = [1, 1]} : vector<16x512xf32> to vector<16x128xf32>
    %cst_97 = arith.constant 5.000000e-01 : f32
    %184 = vector.broadcast %cst_97 : f32 to vector<16x128xf32>
    %185 = arith.mulf %184, %183 : vector<16x128xf32>
    %186 = math.tanh %185 : vector<16x128xf32>
    %cst_98 = arith.constant 5.000000e-01 : f32
    %187 = vector.broadcast %cst_98 : f32 to vector<16x128xf32>
    %188 = arith.mulf %187, %186 : vector<16x128xf32>
    %cst_99 = arith.constant 5.000000e-01 : f32
    %189 = vector.broadcast %cst_99 : f32 to vector<16x128xf32>
    %190 = arith.addf %188, %189 : vector<16x128xf32>
    %191 = arith.mulf %180, %164 : vector<16x128xf32>
    %192 = arith.mulf %172, %182 : vector<16x128xf32>
    %193 = arith.addf %191, %192 : vector<16x128xf32>
    %194 = math.tanh %193 : vector<16x128xf32>
    %195 = arith.mulf %190, %194 : vector<16x128xf32>
    %c0_100 = arith.constant 0 : index
    %c0_101 = arith.constant 0 : index
    %196 = vector.load %arg18[%c0_100, %c0_101] : memref<16x128xf32, #tpu.memory_space<vmem>>, vector<16x128xf32>
    tpu.vector_store %arg18[%c0_100, %c0_101], %193 {strides = array<i32>} : memref<16x128xf32, #tpu.memory_space<vmem>>, vector<16x128xf32>,
    %c0_102 = arith.constant 0 : index
    %c128_103 = arith.constant 128 : index
    %197 = vector.load %arg16[%c0_102, %c128_103] : memref<16x256xf32, #tpu.memory_space<vmem>>, vector<16x128xf32>
    tpu.vector_store %arg16[%c0_102, %c128_103], %195 {strides = array<i32>} : memref<16x256xf32, #tpu.memory_space<vmem>>, vector<16x128xf32>,
    %198 = arith.index_cast %c1_i32 : i32 to index
    %c0_104 = arith.constant 0 : index
    %c0_105 = arith.constant 0 : index
    %199 = vector.load %arg20[%198, %c0_104, %c0_105] : memref<8x16x128xf32, #tpu.memory_space<vmem>>, vector<1x16x128xf32>
    %200 = vector.shape_cast %199 : vector<1x16x128xf32> to vector<16x128xf32>
    %201 = vector.shape_cast %195 : vector<16x128xf32> to vector<1x16x128xf32>
    tpu.vector_store %arg20[%198, %c0_104, %c0_105], %201 {strides = array<i32>} : memref<8x16x128xf32, #tpu.memory_space<vmem>>, vector<1x16x128xf32>,
    %c2_i32 = arith.constant 2 : i32
    %c0_106 = arith.constant 0 : index
    %c0_107 = arith.constant 0 : index
    %202 = vector.load %arg16[%c0_106, %c0_107] : memref<16x256xf32, #tpu.memory_space<vmem>>, vector<16x128xf32>
    %203 = arith.index_cast %c2_i32 : i32 to index
    %c0_108 = arith.constant 0 : index
    %c0_109 = arith.constant 0 : index
    %204 = vector.load %arg19[%203, %c0_108, %c0_109] : memref<8x16x512xf32, #tpu.memory_space<vmem>>, vector<1x16x512xf32>
    %205 = vector.shape_cast %204 : vector<1x16x512xf32> to vector<16x512xf32>
    %cst_110 = arith.constant dense<0.000000e+00> : vector<16x512xf32>
    %206 = tpu.matmul %202, %35, %cst_110 {dimension_numbers = #tpu.dot_dimension_numbers<[1], [0], [0], [1], [0, 0, 1, 1], [], []>} : vector<16x128xf32>, vector<128x512xf32>, vector<16x512xf32> -> vector<16x512xf32>
    %207 = arith.addf %205, %206 : vector<16x512xf32>
    %c0_111 = arith.constant 0 : index
    %c0_112 = arith.constant 0 : index
    %208 = vector.load %arg17[%c0_111, %c0_112] : memref<16x128xf32, #tpu.memory_space<vmem>>, vector<16x128xf32>
    %209 = vector.extract_strided_slice %207 {offsets = [0, 0], sizes = [16, 128], strides = [1, 1]} : vector<16x512xf32> to vector<16x128xf32>
    %cst_113 = arith.constant 5.000000e-01 : f32
    %210 = vector.broadcast %cst_113 : f32 to vector<16x128xf32>
    %211 = arith.mulf %210, %209 : vector<16x128xf32>
    %212 = math.tanh %211 : vector<16x128xf32>
    %cst_114 = arith.constant 5.000000e-01 : f32
    %213 = vector.broadcast %cst_114 : f32 to vector<16x128xf32>
    %214 = arith.mulf %213, %212 : vector<16x128xf32>
    %cst_115 = arith.constant 5.000000e-01 : f32
    %215 = vector.broadcast %cst_115 : f32 to vector<16x128xf32>
    %216 = arith.addf %214, %215 : vector<16x128xf32>
    %217 = vector.extract_strided_slice %207 {offsets = [0, 128], sizes = [16, 128], strides = [1, 1]} : vector<16x512xf32> to vector<16x128xf32>
    %cst_116 = arith.constant 5.000000e-01 : f32
    %218 = vector.broadcast %cst_116 : f32 to vector<16x128xf32>
    %219 = arith.mulf %218, %217 : vector<16x128xf32>
    %220 = math.tanh %219 : vector<16x128xf32>
    %cst_117 = arith.constant 5.000000e-01 : f32
    %221 = vector.broadcast %cst_117 : f32 to vector<16x128xf32>
    %222 = arith.mulf %221, %220 : vector<16x128xf32>
    %cst_118 = arith.constant 5.000000e-01 : f32
    %223 = vector.broadcast %cst_118 : f32 to vector<16x128xf32>
    %224 = arith.addf %222, %223 : vector<16x128xf32>
    %225 = vector.extract_strided_slice %207 {offsets = [0, 256], sizes = [16, 128], strides = [1, 1]} : vector<16x512xf32> to vector<16x128xf32>
    %226 = math.tanh %225 : vector<16x128xf32>
    %227 = vector.extract_strided_slice %207 {offsets = [0, 384], sizes = [16, 128], strides = [1, 1]} : vector<16x512xf32> to vector<16x128xf32>
    %cst_119 = arith.constant 5.000000e-01 : f32
    %228 = vector.broadcast %cst_119 : f32 to vector<16x128xf32>
    %229 = arith.mulf %228, %227 : vector<16x128xf32>
    %230 = math.tanh %229 : vector<16x128xf32>
    %cst_120 = arith.constant 5.000000e-01 : f32
    %231 = vector.broadcast %cst_120 : f32 to vector<16x128xf32>
    %232 = arith.mulf %231, %230 : vector<16x128xf32>
    %cst_121 = arith.constant 5.000000e-01 : f32
    %233 = vector.broadcast %cst_121 : f32 to vector<16x128xf32>
    %234 = arith.addf %232, %233 : vector<16x128xf32>
    %235 = arith.mulf %224, %208 : vector<16x128xf32>
    %236 = arith.mulf %216, %226 : vector<16x128xf32>
    %237 = arith.addf %235, %236 : vector<16x128xf32>
    %238 = math.tanh %237 : vector<16x128xf32>
    %239 = arith.mulf %234, %238 : vector<16x128xf32>
    %c0_122 = arith.constant 0 : index
    %c0_123 = arith.constant 0 : index
    %240 = vector.load %arg17[%c0_122, %c0_123] : memref<16x128xf32, #tpu.memory_space<vmem>>, vector<16x128xf32>
    tpu.vector_store %arg17[%c0_122, %c0_123], %237 {strides = array<i32>} : memref<16x128xf32, #tpu.memory_space<vmem>>, vector<16x128xf32>,
    %c0_124 = arith.constant 0 : index
    %c0_125 = arith.constant 0 : index
    %241 = vector.load %arg16[%c0_124, %c0_125] : memref<16x256xf32, #tpu.memory_space<vmem>>, vector<16x128xf32>
    tpu.vector_store %arg16[%c0_124, %c0_125], %239 {strides = array<i32>} : memref<16x256xf32, #tpu.memory_space<vmem>>, vector<16x128xf32>,
    %c0_126 = arith.constant 0 : index
    %c0_127 = arith.constant 0 : index
    %242 = vector.load %arg16[%c0_126, %c0_127] : memref<16x256xf32, #tpu.memory_space<vmem>>, vector<16x256xf32>
    %cst_128 = arith.constant dense<0.000000e+00> : vector<16x512xf32>
    %243 = tpu.matmul %242, %36, %cst_128 {dimension_numbers = #tpu.dot_dimension_numbers<[1], [0], [0], [1], [0, 0, 1, 1], [], []>} : vector<16x256xf32>, vector<256x512xf32>, vector<16x512xf32> -> vector<16x512xf32>
    %244 = vector.broadcast %37 : vector<1x512xf32> to vector<16x512xf32>
    %245 = arith.addf %243, %244 : vector<16x512xf32>
    %c0_129 = arith.constant 0 : index
    %c0_130 = arith.constant 0 : index
    %246 = vector.load %arg18[%c0_129, %c0_130] : memref<16x128xf32, #tpu.memory_space<vmem>>, vector<16x128xf32>
    %247 = vector.extract_strided_slice %245 {offsets = [0, 0], sizes = [16, 128], strides = [1, 1]} : vector<16x512xf32> to vector<16x128xf32>
    %cst_131 = arith.constant 5.000000e-01 : f32
    %248 = vector.broadcast %cst_131 : f32 to vector<16x128xf32>
    %249 = arith.mulf %248, %247 : vector<16x128xf32>
    %250 = math.tanh %249 : vector<16x128xf32>
    %cst_132 = arith.constant 5.000000e-01 : f32
    %251 = vector.broadcast %cst_132 : f32 to vector<16x128xf32>
    %252 = arith.mulf %251, %250 : vector<16x128xf32>
    %cst_133 = arith.constant 5.000000e-01 : f32
    %253 = vector.broadcast %cst_133 : f32 to vector<16x128xf32>
    %254 = arith.addf %252, %253 : vector<16x128xf32>
    %255 = vector.extract_strided_slice %245 {offsets = [0, 128], sizes = [16, 128], strides = [1, 1]} : vector<16x512xf32> to vector<16x128xf32>
    %cst_134 = arith.constant 5.000000e-01 : f32
    %256 = vector.broadcast %cst_134 : f32 to vector<16x128xf32>
    %257 = arith.mulf %256, %255 : vector<16x128xf32>
    %258 = math.tanh %257 : vector<16x128xf32>
    %cst_135 = arith.constant 5.000000e-01 : f32
    %259 = vector.broadcast %cst_135 : f32 to vector<16x128xf32>
    %260 = arith.mulf %259, %258 : vector<16x128xf32>
    %cst_136 = arith.constant 5.000000e-01 : f32
    %261 = vector.broadcast %cst_136 : f32 to vector<16x128xf32>
    %262 = arith.addf %260, %261 : vector<16x128xf32>
    %263 = vector.extract_strided_slice %245 {offsets = [0, 256], sizes = [16, 128], strides = [1, 1]} : vector<16x512xf32> to vector<16x128xf32>
    %264 = math.tanh %263 : vector<16x128xf32>
    %265 = vector.extract_strided_slice %245 {offsets = [0, 384], sizes = [16, 128], strides = [1, 1]} : vector<16x512xf32> to vector<16x128xf32>
    %cst_137 = arith.constant 5.000000e-01 : f32
    %266 = vector.broadcast %cst_137 : f32 to vector<16x128xf32>
    %267 = arith.mulf %266, %265 : vector<16x128xf32>
    %268 = math.tanh %267 : vector<16x128xf32>
    %cst_138 = arith.constant 5.000000e-01 : f32
    %269 = vector.broadcast %cst_138 : f32 to vector<16x128xf32>
    %270 = arith.mulf %269, %268 : vector<16x128xf32>
    %cst_139 = arith.constant 5.000000e-01 : f32
    %271 = vector.broadcast %cst_139 : f32 to vector<16x128xf32>
    %272 = arith.addf %270, %271 : vector<16x128xf32>
    %273 = arith.mulf %262, %246 : vector<16x128xf32>
    %274 = arith.mulf %254, %264 : vector<16x128xf32>
    %275 = arith.addf %273, %274 : vector<16x128xf32>
    %276 = math.tanh %275 : vector<16x128xf32>
    %277 = arith.mulf %272, %276 : vector<16x128xf32>
    %c0_140 = arith.constant 0 : index
    %c0_141 = arith.constant 0 : index
    %278 = vector.load %arg18[%c0_140, %c0_141] : memref<16x128xf32, #tpu.memory_space<vmem>>, vector<16x128xf32>
    tpu.vector_store %arg18[%c0_140, %c0_141], %275 {strides = array<i32>} : memref<16x128xf32, #tpu.memory_space<vmem>>, vector<16x128xf32>,
    %c0_142 = arith.constant 0 : index
    %c128_143 = arith.constant 128 : index
    %279 = vector.load %arg16[%c0_142, %c128_143] : memref<16x256xf32, #tpu.memory_space<vmem>>, vector<16x128xf32>
    tpu.vector_store %arg16[%c0_142, %c128_143], %277 {strides = array<i32>} : memref<16x256xf32, #tpu.memory_space<vmem>>, vector<16x128xf32>,
    %280 = arith.index_cast %c2_i32 : i32 to index
    %c0_144 = arith.constant 0 : index
    %c0_145 = arith.constant 0 : index
    %281 = vector.load %arg20[%280, %c0_144, %c0_145] : memref<8x16x128xf32, #tpu.memory_space<vmem>>, vector<1x16x128xf32>
    %282 = vector.shape_cast %281 : vector<1x16x128xf32> to vector<16x128xf32>
    %283 = vector.shape_cast %277 : vector<16x128xf32> to vector<1x16x128xf32>
    tpu.vector_store %arg20[%280, %c0_144, %c0_145], %283 {strides = array<i32>} : memref<8x16x128xf32, #tpu.memory_space<vmem>>, vector<1x16x128xf32>,
    %c3_i32 = arith.constant 3 : i32
    %c0_146 = arith.constant 0 : index
    %c0_147 = arith.constant 0 : index
    %284 = vector.load %arg16[%c0_146, %c0_147] : memref<16x256xf32, #tpu.memory_space<vmem>>, vector<16x128xf32>
    %285 = arith.index_cast %c3_i32 : i32 to index
    %c0_148 = arith.constant 0 : index
    %c0_149 = arith.constant 0 : index
    %286 = vector.load %arg19[%285, %c0_148, %c0_149] : memref<8x16x512xf32, #tpu.memory_space<vmem>>, vector<1x16x512xf32>
    %287 = vector.shape_cast %286 : vector<1x16x512xf32> to vector<16x512xf32>
    %cst_150 = arith.constant dense<0.000000e+00> : vector<16x512xf32>
    %288 = tpu.matmul %284, %35, %cst_150 {dimension_numbers = #tpu.dot_dimension_numbers<[1], [0], [0], [1], [0, 0, 1, 1], [], []>} : vector<16x128xf32>, vector<128x512xf32>, vector<16x512xf32> -> vector<16x512xf32>
    %289 = arith.addf %287, %288 : vector<16x512xf32>
    %c0_151 = arith.constant 0 : index
    %c0_152 = arith.constant 0 : index
    %290 = vector.load %arg17[%c0_151, %c0_152] : memref<16x128xf32, #tpu.memory_space<vmem>>, vector<16x128xf32>
    %291 = vector.extract_strided_slice %289 {offsets = [0, 0], sizes = [16, 128], strides = [1, 1]} : vector<16x512xf32> to vector<16x128xf32>
    %cst_153 = arith.constant 5.000000e-01 : f32
    %292 = vector.broadcast %cst_153 : f32 to vector<16x128xf32>
    %293 = arith.mulf %292, %291 : vector<16x128xf32>
    %294 = math.tanh %293 : vector<16x128xf32>
    %cst_154 = arith.constant 5.000000e-01 : f32
    %295 = vector.broadcast %cst_154 : f32 to vector<16x128xf32>
    %296 = arith.mulf %295, %294 : vector<16x128xf32>
    %cst_155 = arith.constant 5.000000e-01 : f32
    %297 = vector.broadcast %cst_155 : f32 to vector<16x128xf32>
    %298 = arith.addf %296, %297 : vector<16x128xf32>
    %299 = vector.extract_strided_slice %289 {offsets = [0, 128], sizes = [16, 128], strides = [1, 1]} : vector<16x512xf32> to vector<16x128xf32>
    %cst_156 = arith.constant 5.000000e-01 : f32
    %300 = vector.broadcast %cst_156 : f32 to vector<16x128xf32>
    %301 = arith.mulf %300, %299 : vector<16x128xf32>
    %302 = math.tanh %301 : vector<16x128xf32>
    %cst_157 = arith.constant 5.000000e-01 : f32
    %303 = vector.broadcast %cst_157 : f32 to vector<16x128xf32>
    %304 = arith.mulf %303, %302 : vector<16x128xf32>
    %cst_158 = arith.constant 5.000000e-01 : f32
    %305 = vector.broadcast %cst_158 : f32 to vector<16x128xf32>
    %306 = arith.addf %304, %305 : vector<16x128xf32>
    %307 = vector.extract_strided_slice %289 {offsets = [0, 256], sizes = [16, 128], strides = [1, 1]} : vector<16x512xf32> to vector<16x128xf32>
    %308 = math.tanh %307 : vector<16x128xf32>
    %309 = vector.extract_strided_slice %289 {offsets = [0, 384], sizes = [16, 128], strides = [1, 1]} : vector<16x512xf32> to vector<16x128xf32>
    %cst_159 = arith.constant 5.000000e-01 : f32
    %310 = vector.broadcast %cst_159 : f32 to vector<16x128xf32>
    %311 = arith.mulf %310, %309 : vector<16x128xf32>
    %312 = math.tanh %311 : vector<16x128xf32>
    %cst_160 = arith.constant 5.000000e-01 : f32
    %313 = vector.broadcast %cst_160 : f32 to vector<16x128xf32>
    %314 = arith.mulf %313, %312 : vector<16x128xf32>
    %cst_161 = arith.constant 5.000000e-01 : f32
    %315 = vector.broadcast %cst_161 : f32 to vector<16x128xf32>
    %316 = arith.addf %314, %315 : vector<16x128xf32>
    %317 = arith.mulf %306, %290 : vector<16x128xf32>
    %318 = arith.mulf %298, %308 : vector<16x128xf32>
    %319 = arith.addf %317, %318 : vector<16x128xf32>
    %320 = math.tanh %319 : vector<16x128xf32>
    %321 = arith.mulf %316, %320 : vector<16x128xf32>
    %c0_162 = arith.constant 0 : index
    %c0_163 = arith.constant 0 : index
    %322 = vector.load %arg17[%c0_162, %c0_163] : memref<16x128xf32, #tpu.memory_space<vmem>>, vector<16x128xf32>
    tpu.vector_store %arg17[%c0_162, %c0_163], %319 {strides = array<i32>} : memref<16x128xf32, #tpu.memory_space<vmem>>, vector<16x128xf32>,
    %c0_164 = arith.constant 0 : index
    %c0_165 = arith.constant 0 : index
    %323 = vector.load %arg16[%c0_164, %c0_165] : memref<16x256xf32, #tpu.memory_space<vmem>>, vector<16x128xf32>
    tpu.vector_store %arg16[%c0_164, %c0_165], %321 {strides = array<i32>} : memref<16x256xf32, #tpu.memory_space<vmem>>, vector<16x128xf32>,
    %c0_166 = arith.constant 0 : index
    %c0_167 = arith.constant 0 : index
    %324 = vector.load %arg16[%c0_166, %c0_167] : memref<16x256xf32, #tpu.memory_space<vmem>>, vector<16x256xf32>
    %cst_168 = arith.constant dense<0.000000e+00> : vector<16x512xf32>
    %325 = tpu.matmul %324, %36, %cst_168 {dimension_numbers = #tpu.dot_dimension_numbers<[1], [0], [0], [1], [0, 0, 1, 1], [], []>} : vector<16x256xf32>, vector<256x512xf32>, vector<16x512xf32> -> vector<16x512xf32>
    %326 = vector.broadcast %37 : vector<1x512xf32> to vector<16x512xf32>
    %327 = arith.addf %325, %326 : vector<16x512xf32>
    %c0_169 = arith.constant 0 : index
    %c0_170 = arith.constant 0 : index
    %328 = vector.load %arg18[%c0_169, %c0_170] : memref<16x128xf32, #tpu.memory_space<vmem>>, vector<16x128xf32>
    %329 = vector.extract_strided_slice %327 {offsets = [0, 0], sizes = [16, 128], strides = [1, 1]} : vector<16x512xf32> to vector<16x128xf32>
    %cst_171 = arith.constant 5.000000e-01 : f32
    %330 = vector.broadcast %cst_171 : f32 to vector<16x128xf32>
    %331 = arith.mulf %330, %329 : vector<16x128xf32>
    %332 = math.tanh %331 : vector<16x128xf32>
    %cst_172 = arith.constant 5.000000e-01 : f32
    %333 = vector.broadcast %cst_172 : f32 to vector<16x128xf32>
    %334 = arith.mulf %333, %332 : vector<16x128xf32>
    %cst_173 = arith.constant 5.000000e-01 : f32
    %335 = vector.broadcast %cst_173 : f32 to vector<16x128xf32>
    %336 = arith.addf %334, %335 : vector<16x128xf32>
    %337 = vector.extract_strided_slice %327 {offsets = [0, 128], sizes = [16, 128], strides = [1, 1]} : vector<16x512xf32> to vector<16x128xf32>
    %cst_174 = arith.constant 5.000000e-01 : f32
    %338 = vector.broadcast %cst_174 : f32 to vector<16x128xf32>
    %339 = arith.mulf %338, %337 : vector<16x128xf32>
    %340 = math.tanh %339 : vector<16x128xf32>
    %cst_175 = arith.constant 5.000000e-01 : f32
    %341 = vector.broadcast %cst_175 : f32 to vector<16x128xf32>
    %342 = arith.mulf %341, %340 : vector<16x128xf32>
    %cst_176 = arith.constant 5.000000e-01 : f32
    %343 = vector.broadcast %cst_176 : f32 to vector<16x128xf32>
    %344 = arith.addf %342, %343 : vector<16x128xf32>
    %345 = vector.extract_strided_slice %327 {offsets = [0, 256], sizes = [16, 128], strides = [1, 1]} : vector<16x512xf32> to vector<16x128xf32>
    %346 = math.tanh %345 : vector<16x128xf32>
    %347 = vector.extract_strided_slice %327 {offsets = [0, 384], sizes = [16, 128], strides = [1, 1]} : vector<16x512xf32> to vector<16x128xf32>
    %cst_177 = arith.constant 5.000000e-01 : f32
    %348 = vector.broadcast %cst_177 : f32 to vector<16x128xf32>
    %349 = arith.mulf %348, %347 : vector<16x128xf32>
    %350 = math.tanh %349 : vector<16x128xf32>
    %cst_178 = arith.constant 5.000000e-01 : f32
    %351 = vector.broadcast %cst_178 : f32 to vector<16x128xf32>
    %352 = arith.mulf %351, %350 : vector<16x128xf32>
    %cst_179 = arith.constant 5.000000e-01 : f32
    %353 = vector.broadcast %cst_179 : f32 to vector<16x128xf32>
    %354 = arith.addf %352, %353 : vector<16x128xf32>
    %355 = arith.mulf %344, %328 : vector<16x128xf32>
    %356 = arith.mulf %336, %346 : vector<16x128xf32>
    %357 = arith.addf %355, %356 : vector<16x128xf32>
    %358 = math.tanh %357 : vector<16x128xf32>
    %359 = arith.mulf %354, %358 : vector<16x128xf32>
    %c0_180 = arith.constant 0 : index
    %c0_181 = arith.constant 0 : index
    %360 = vector.load %arg18[%c0_180, %c0_181] : memref<16x128xf32, #tpu.memory_space<vmem>>, vector<16x128xf32>
    tpu.vector_store %arg18[%c0_180, %c0_181], %357 {strides = array<i32>} : memref<16x128xf32, #tpu.memory_space<vmem>>, vector<16x128xf32>,
    %c0_182 = arith.constant 0 : index
    %c128_183 = arith.constant 128 : index
    %361 = vector.load %arg16[%c0_182, %c128_183] : memref<16x256xf32, #tpu.memory_space<vmem>>, vector<16x128xf32>
    tpu.vector_store %arg16[%c0_182, %c128_183], %359 {strides = array<i32>} : memref<16x256xf32, #tpu.memory_space<vmem>>, vector<16x128xf32>,
    %362 = arith.index_cast %c3_i32 : i32 to index
    %c0_184 = arith.constant 0 : index
    %c0_185 = arith.constant 0 : index
    %363 = vector.load %arg20[%362, %c0_184, %c0_185] : memref<8x16x128xf32, #tpu.memory_space<vmem>>, vector<1x16x128xf32>
    %364 = vector.shape_cast %363 : vector<1x16x128xf32> to vector<16x128xf32>
    %365 = vector.shape_cast %359 : vector<16x128xf32> to vector<1x16x128xf32>
    tpu.vector_store %arg20[%362, %c0_184, %c0_185], %365 {strides = array<i32>} : memref<8x16x128xf32, #tpu.memory_space<vmem>>, vector<1x16x128xf32>,
    %c4_i32 = arith.constant 4 : i32
    %c0_186 = arith.constant 0 : index
    %c0_187 = arith.constant 0 : index
    %366 = vector.load %arg16[%c0_186, %c0_187] : memref<16x256xf32, #tpu.memory_space<vmem>>, vector<16x128xf32>
    %367 = arith.index_cast %c4_i32 : i32 to index
    %c0_188 = arith.constant 0 : index
    %c0_189 = arith.constant 0 : index
    %368 = vector.load %arg19[%367, %c0_188, %c0_189] : memref<8x16x512xf32, #tpu.memory_space<vmem>>, vector<1x16x512xf32>
    %369 = vector.shape_cast %368 : vector<1x16x512xf32> to vector<16x512xf32>
    %cst_190 = arith.constant dense<0.000000e+00> : vector<16x512xf32>
    %370 = tpu.matmul %366, %35, %cst_190 {dimension_numbers = #tpu.dot_dimension_numbers<[1], [0], [0], [1], [0, 0, 1, 1], [], []>} : vector<16x128xf32>, vector<128x512xf32>, vector<16x512xf32> -> vector<16x512xf32>
    %371 = arith.addf %369, %370 : vector<16x512xf32>
    %c0_191 = arith.constant 0 : index
    %c0_192 = arith.constant 0 : index
    %372 = vector.load %arg17[%c0_191, %c0_192] : memref<16x128xf32, #tpu.memory_space<vmem>>, vector<16x128xf32>
    %373 = vector.extract_strided_slice %371 {offsets = [0, 0], sizes = [16, 128], strides = [1, 1]} : vector<16x512xf32> to vector<16x128xf32>
    %cst_193 = arith.constant 5.000000e-01 : f32
    %374 = vector.broadcast %cst_193 : f32 to vector<16x128xf32>
    %375 = arith.mulf %374, %373 : vector<16x128xf32>
    %376 = math.tanh %375 : vector<16x128xf32>
    %cst_194 = arith.constant 5.000000e-01 : f32
    %377 = vector.broadcast %cst_194 : f32 to vector<16x128xf32>
    %378 = arith.mulf %377, %376 : vector<16x128xf32>
    %cst_195 = arith.constant 5.000000e-01 : f32
    %379 = vector.broadcast %cst_195 : f32 to vector<16x128xf32>
    %380 = arith.addf %378, %379 : vector<16x128xf32>
    %381 = vector.extract_strided_slice %371 {offsets = [0, 128], sizes = [16, 128], strides = [1, 1]} : vector<16x512xf32> to vector<16x128xf32>
    %cst_196 = arith.constant 5.000000e-01 : f32
    %382 = vector.broadcast %cst_196 : f32 to vector<16x128xf32>
    %383 = arith.mulf %382, %381 : vector<16x128xf32>
    %384 = math.tanh %383 : vector<16x128xf32>
    %cst_197 = arith.constant 5.000000e-01 : f32
    %385 = vector.broadcast %cst_197 : f32 to vector<16x128xf32>
    %386 = arith.mulf %385, %384 : vector<16x128xf32>
    %cst_198 = arith.constant 5.000000e-01 : f32
    %387 = vector.broadcast %cst_198 : f32 to vector<16x128xf32>
    %388 = arith.addf %386, %387 : vector<16x128xf32>
    %389 = vector.extract_strided_slice %371 {offsets = [0, 256], sizes = [16, 128], strides = [1, 1]} : vector<16x512xf32> to vector<16x128xf32>
    %390 = math.tanh %389 : vector<16x128xf32>
    %391 = vector.extract_strided_slice %371 {offsets = [0, 384], sizes = [16, 128], strides = [1, 1]} : vector<16x512xf32> to vector<16x128xf32>
    %cst_199 = arith.constant 5.000000e-01 : f32
    %392 = vector.broadcast %cst_199 : f32 to vector<16x128xf32>
    %393 = arith.mulf %392, %391 : vector<16x128xf32>
    %394 = math.tanh %393 : vector<16x128xf32>
    %cst_200 = arith.constant 5.000000e-01 : f32
    %395 = vector.broadcast %cst_200 : f32 to vector<16x128xf32>
    %396 = arith.mulf %395, %394 : vector<16x128xf32>
    %cst_201 = arith.constant 5.000000e-01 : f32
    %397 = vector.broadcast %cst_201 : f32 to vector<16x128xf32>
    %398 = arith.addf %396, %397 : vector<16x128xf32>
    %399 = arith.mulf %388, %372 : vector<16x128xf32>
    %400 = arith.mulf %380, %390 : vector<16x128xf32>
    %401 = arith.addf %399, %400 : vector<16x128xf32>
    %402 = math.tanh %401 : vector<16x128xf32>
    %403 = arith.mulf %398, %402 : vector<16x128xf32>
    %c0_202 = arith.constant 0 : index
    %c0_203 = arith.constant 0 : index
    %404 = vector.load %arg17[%c0_202, %c0_203] : memref<16x128xf32, #tpu.memory_space<vmem>>, vector<16x128xf32>
    tpu.vector_store %arg17[%c0_202, %c0_203], %401 {strides = array<i32>} : memref<16x128xf32, #tpu.memory_space<vmem>>, vector<16x128xf32>,
    %c0_204 = arith.constant 0 : index
    %c0_205 = arith.constant 0 : index
    %405 = vector.load %arg16[%c0_204, %c0_205] : memref<16x256xf32, #tpu.memory_space<vmem>>, vector<16x128xf32>
    tpu.vector_store %arg16[%c0_204, %c0_205], %403 {strides = array<i32>} : memref<16x256xf32, #tpu.memory_space<vmem>>, vector<16x128xf32>,
    %c0_206 = arith.constant 0 : index
    %c0_207 = arith.constant 0 : index
    %406 = vector.load %arg16[%c0_206, %c0_207] : memref<16x256xf32, #tpu.memory_space<vmem>>, vector<16x256xf32>
    %cst_208 = arith.constant dense<0.000000e+00> : vector<16x512xf32>
    %407 = tpu.matmul %406, %36, %cst_208 {dimension_numbers = #tpu.dot_dimension_numbers<[1], [0], [0], [1], [0, 0, 1, 1], [], []>} : vector<16x256xf32>, vector<256x512xf32>, vector<16x512xf32> -> vector<16x512xf32>
    %408 = vector.broadcast %37 : vector<1x512xf32> to vector<16x512xf32>
    %409 = arith.addf %407, %408 : vector<16x512xf32>
    %c0_209 = arith.constant 0 : index
    %c0_210 = arith.constant 0 : index
    %410 = vector.load %arg18[%c0_209, %c0_210] : memref<16x128xf32, #tpu.memory_space<vmem>>, vector<16x128xf32>
    %411 = vector.extract_strided_slice %409 {offsets = [0, 0], sizes = [16, 128], strides = [1, 1]} : vector<16x512xf32> to vector<16x128xf32>
    %cst_211 = arith.constant 5.000000e-01 : f32
    %412 = vector.broadcast %cst_211 : f32 to vector<16x128xf32>
    %413 = arith.mulf %412, %411 : vector<16x128xf32>
    %414 = math.tanh %413 : vector<16x128xf32>
    %cst_212 = arith.constant 5.000000e-01 : f32
    %415 = vector.broadcast %cst_212 : f32 to vector<16x128xf32>
    %416 = arith.mulf %415, %414 : vector<16x128xf32>
    %cst_213 = arith.constant 5.000000e-01 : f32
    %417 = vector.broadcast %cst_213 : f32 to vector<16x128xf32>
    %418 = arith.addf %416, %417 : vector<16x128xf32>
    %419 = vector.extract_strided_slice %409 {offsets = [0, 128], sizes = [16, 128], strides = [1, 1]} : vector<16x512xf32> to vector<16x128xf32>
    %cst_214 = arith.constant 5.000000e-01 : f32
    %420 = vector.broadcast %cst_214 : f32 to vector<16x128xf32>
    %421 = arith.mulf %420, %419 : vector<16x128xf32>
    %422 = math.tanh %421 : vector<16x128xf32>
    %cst_215 = arith.constant 5.000000e-01 : f32
    %423 = vector.broadcast %cst_215 : f32 to vector<16x128xf32>
    %424 = arith.mulf %423, %422 : vector<16x128xf32>
    %cst_216 = arith.constant 5.000000e-01 : f32
    %425 = vector.broadcast %cst_216 : f32 to vector<16x128xf32>
    %426 = arith.addf %424, %425 : vector<16x128xf32>
    %427 = vector.extract_strided_slice %409 {offsets = [0, 256], sizes = [16, 128], strides = [1, 1]} : vector<16x512xf32> to vector<16x128xf32>
    %428 = math.tanh %427 : vector<16x128xf32>
    %429 = vector.extract_strided_slice %409 {offsets = [0, 384], sizes = [16, 128], strides = [1, 1]} : vector<16x512xf32> to vector<16x128xf32>
    %cst_217 = arith.constant 5.000000e-01 : f32
    %430 = vector.broadcast %cst_217 : f32 to vector<16x128xf32>
    %431 = arith.mulf %430, %429 : vector<16x128xf32>
    %432 = math.tanh %431 : vector<16x128xf32>
    %cst_218 = arith.constant 5.000000e-01 : f32
    %433 = vector.broadcast %cst_218 : f32 to vector<16x128xf32>
    %434 = arith.mulf %433, %432 : vector<16x128xf32>
    %cst_219 = arith.constant 5.000000e-01 : f32
    %435 = vector.broadcast %cst_219 : f32 to vector<16x128xf32>
    %436 = arith.addf %434, %435 : vector<16x128xf32>
    %437 = arith.mulf %426, %410 : vector<16x128xf32>
    %438 = arith.mulf %418, %428 : vector<16x128xf32>
    %439 = arith.addf %437, %438 : vector<16x128xf32>
    %440 = math.tanh %439 : vector<16x128xf32>
    %441 = arith.mulf %436, %440 : vector<16x128xf32>
    %c0_220 = arith.constant 0 : index
    %c0_221 = arith.constant 0 : index
    %442 = vector.load %arg18[%c0_220, %c0_221] : memref<16x128xf32, #tpu.memory_space<vmem>>, vector<16x128xf32>
    tpu.vector_store %arg18[%c0_220, %c0_221], %439 {strides = array<i32>} : memref<16x128xf32, #tpu.memory_space<vmem>>, vector<16x128xf32>,
    %c0_222 = arith.constant 0 : index
    %c128_223 = arith.constant 128 : index
    %443 = vector.load %arg16[%c0_222, %c128_223] : memref<16x256xf32, #tpu.memory_space<vmem>>, vector<16x128xf32>
    tpu.vector_store %arg16[%c0_222, %c128_223], %441 {strides = array<i32>} : memref<16x256xf32, #tpu.memory_space<vmem>>, vector<16x128xf32>,
    %444 = arith.index_cast %c4_i32 : i32 to index
    %c0_224 = arith.constant 0 : index
    %c0_225 = arith.constant 0 : index
    %445 = vector.load %arg20[%444, %c0_224, %c0_225] : memref<8x16x128xf32, #tpu.memory_space<vmem>>, vector<1x16x128xf32>
    %446 = vector.shape_cast %445 : vector<1x16x128xf32> to vector<16x128xf32>
    %447 = vector.shape_cast %441 : vector<16x128xf32> to vector<1x16x128xf32>
    tpu.vector_store %arg20[%444, %c0_224, %c0_225], %447 {strides = array<i32>} : memref<8x16x128xf32, #tpu.memory_space<vmem>>, vector<1x16x128xf32>,
    %c5_i32 = arith.constant 5 : i32
    %c0_226 = arith.constant 0 : index
    %c0_227 = arith.constant 0 : index
    %448 = vector.load %arg16[%c0_226, %c0_227] : memref<16x256xf32, #tpu.memory_space<vmem>>, vector<16x128xf32>
    %449 = arith.index_cast %c5_i32 : i32 to index
    %c0_228 = arith.constant 0 : index
    %c0_229 = arith.constant 0 : index
    %450 = vector.load %arg19[%449, %c0_228, %c0_229] : memref<8x16x512xf32, #tpu.memory_space<vmem>>, vector<1x16x512xf32>
    %451 = vector.shape_cast %450 : vector<1x16x512xf32> to vector<16x512xf32>
    %cst_230 = arith.constant dense<0.000000e+00> : vector<16x512xf32>
    %452 = tpu.matmul %448, %35, %cst_230 {dimension_numbers = #tpu.dot_dimension_numbers<[1], [0], [0], [1], [0, 0, 1, 1], [], []>} : vector<16x128xf32>, vector<128x512xf32>, vector<16x512xf32> -> vector<16x512xf32>
    %453 = arith.addf %451, %452 : vector<16x512xf32>
    %c0_231 = arith.constant 0 : index
    %c0_232 = arith.constant 0 : index
    %454 = vector.load %arg17[%c0_231, %c0_232] : memref<16x128xf32, #tpu.memory_space<vmem>>, vector<16x128xf32>
    %455 = vector.extract_strided_slice %453 {offsets = [0, 0], sizes = [16, 128], strides = [1, 1]} : vector<16x512xf32> to vector<16x128xf32>
    %cst_233 = arith.constant 5.000000e-01 : f32
    %456 = vector.broadcast %cst_233 : f32 to vector<16x128xf32>
    %457 = arith.mulf %456, %455 : vector<16x128xf32>
    %458 = math.tanh %457 : vector<16x128xf32>
    %cst_234 = arith.constant 5.000000e-01 : f32
    %459 = vector.broadcast %cst_234 : f32 to vector<16x128xf32>
    %460 = arith.mulf %459, %458 : vector<16x128xf32>
    %cst_235 = arith.constant 5.000000e-01 : f32
    %461 = vector.broadcast %cst_235 : f32 to vector<16x128xf32>
    %462 = arith.addf %460, %461 : vector<16x128xf32>
    %463 = vector.extract_strided_slice %453 {offsets = [0, 128], sizes = [16, 128], strides = [1, 1]} : vector<16x512xf32> to vector<16x128xf32>
    %cst_236 = arith.constant 5.000000e-01 : f32
    %464 = vector.broadcast %cst_236 : f32 to vector<16x128xf32>
    %465 = arith.mulf %464, %463 : vector<16x128xf32>
    %466 = math.tanh %465 : vector<16x128xf32>
    %cst_237 = arith.constant 5.000000e-01 : f32
    %467 = vector.broadcast %cst_237 : f32 to vector<16x128xf32>
    %468 = arith.mulf %467, %466 : vector<16x128xf32>
    %cst_238 = arith.constant 5.000000e-01 : f32
    %469 = vector.broadcast %cst_238 : f32 to vector<16x128xf32>
    %470 = arith.addf %468, %469 : vector<16x128xf32>
    %471 = vector.extract_strided_slice %453 {offsets = [0, 256], sizes = [16, 128], strides = [1, 1]} : vector<16x512xf32> to vector<16x128xf32>
    %472 = math.tanh %471 : vector<16x128xf32>
    %473 = vector.extract_strided_slice %453 {offsets = [0, 384], sizes = [16, 128], strides = [1, 1]} : vector<16x512xf32> to vector<16x128xf32>
    %cst_239 = arith.constant 5.000000e-01 : f32
    %474 = vector.broadcast %cst_239 : f32 to vector<16x128xf32>
    %475 = arith.mulf %474, %473 : vector<16x128xf32>
    %476 = math.tanh %475 : vector<16x128xf32>
    %cst_240 = arith.constant 5.000000e-01 : f32
    %477 = vector.broadcast %cst_240 : f32 to vector<16x128xf32>
    %478 = arith.mulf %477, %476 : vector<16x128xf32>
    %cst_241 = arith.constant 5.000000e-01 : f32
    %479 = vector.broadcast %cst_241 : f32 to vector<16x128xf32>
    %480 = arith.addf %478, %479 : vector<16x128xf32>
    %481 = arith.mulf %470, %454 : vector<16x128xf32>
    %482 = arith.mulf %462, %472 : vector<16x128xf32>
    %483 = arith.addf %481, %482 : vector<16x128xf32>
    %484 = math.tanh %483 : vector<16x128xf32>
    %485 = arith.mulf %480, %484 : vector<16x128xf32>
    %c0_242 = arith.constant 0 : index
    %c0_243 = arith.constant 0 : index
    %486 = vector.load %arg17[%c0_242, %c0_243] : memref<16x128xf32, #tpu.memory_space<vmem>>, vector<16x128xf32>
    tpu.vector_store %arg17[%c0_242, %c0_243], %483 {strides = array<i32>} : memref<16x128xf32, #tpu.memory_space<vmem>>, vector<16x128xf32>,
    %c0_244 = arith.constant 0 : index
    %c0_245 = arith.constant 0 : index
    %487 = vector.load %arg16[%c0_244, %c0_245] : memref<16x256xf32, #tpu.memory_space<vmem>>, vector<16x128xf32>
    tpu.vector_store %arg16[%c0_244, %c0_245], %485 {strides = array<i32>} : memref<16x256xf32, #tpu.memory_space<vmem>>, vector<16x128xf32>,
    %c0_246 = arith.constant 0 : index
    %c0_247 = arith.constant 0 : index
    %488 = vector.load %arg16[%c0_246, %c0_247] : memref<16x256xf32, #tpu.memory_space<vmem>>, vector<16x256xf32>
    %cst_248 = arith.constant dense<0.000000e+00> : vector<16x512xf32>
    %489 = tpu.matmul %488, %36, %cst_248 {dimension_numbers = #tpu.dot_dimension_numbers<[1], [0], [0], [1], [0, 0, 1, 1], [], []>} : vector<16x256xf32>, vector<256x512xf32>, vector<16x512xf32> -> vector<16x512xf32>
    %490 = vector.broadcast %37 : vector<1x512xf32> to vector<16x512xf32>
    %491 = arith.addf %489, %490 : vector<16x512xf32>
    %c0_249 = arith.constant 0 : index
    %c0_250 = arith.constant 0 : index
    %492 = vector.load %arg18[%c0_249, %c0_250] : memref<16x128xf32, #tpu.memory_space<vmem>>, vector<16x128xf32>
    %493 = vector.extract_strided_slice %491 {offsets = [0, 0], sizes = [16, 128], strides = [1, 1]} : vector<16x512xf32> to vector<16x128xf32>
    %cst_251 = arith.constant 5.000000e-01 : f32
    %494 = vector.broadcast %cst_251 : f32 to vector<16x128xf32>
    %495 = arith.mulf %494, %493 : vector<16x128xf32>
    %496 = math.tanh %495 : vector<16x128xf32>
    %cst_252 = arith.constant 5.000000e-01 : f32
    %497 = vector.broadcast %cst_252 : f32 to vector<16x128xf32>
    %498 = arith.mulf %497, %496 : vector<16x128xf32>
    %cst_253 = arith.constant 5.000000e-01 : f32
    %499 = vector.broadcast %cst_253 : f32 to vector<16x128xf32>
    %500 = arith.addf %498, %499 : vector<16x128xf32>
    %501 = vector.extract_strided_slice %491 {offsets = [0, 128], sizes = [16, 128], strides = [1, 1]} : vector<16x512xf32> to vector<16x128xf32>
    %cst_254 = arith.constant 5.000000e-01 : f32
    %502 = vector.broadcast %cst_254 : f32 to vector<16x128xf32>
    %503 = arith.mulf %502, %501 : vector<16x128xf32>
    %504 = math.tanh %503 : vector<16x128xf32>
    %cst_255 = arith.constant 5.000000e-01 : f32
    %505 = vector.broadcast %cst_255 : f32 to vector<16x128xf32>
    %506 = arith.mulf %505, %504 : vector<16x128xf32>
    %cst_256 = arith.constant 5.000000e-01 : f32
    %507 = vector.broadcast %cst_256 : f32 to vector<16x128xf32>
    %508 = arith.addf %506, %507 : vector<16x128xf32>
    %509 = vector.extract_strided_slice %491 {offsets = [0, 256], sizes = [16, 128], strides = [1, 1]} : vector<16x512xf32> to vector<16x128xf32>
    %510 = math.tanh %509 : vector<16x128xf32>
    %511 = vector.extract_strided_slice %491 {offsets = [0, 384], sizes = [16, 128], strides = [1, 1]} : vector<16x512xf32> to vector<16x128xf32>
    %cst_257 = arith.constant 5.000000e-01 : f32
    %512 = vector.broadcast %cst_257 : f32 to vector<16x128xf32>
    %513 = arith.mulf %512, %511 : vector<16x128xf32>
    %514 = math.tanh %513 : vector<16x128xf32>
    %cst_258 = arith.constant 5.000000e-01 : f32
    %515 = vector.broadcast %cst_258 : f32 to vector<16x128xf32>
    %516 = arith.mulf %515, %514 : vector<16x128xf32>
    %cst_259 = arith.constant 5.000000e-01 : f32
    %517 = vector.broadcast %cst_259 : f32 to vector<16x128xf32>
    %518 = arith.addf %516, %517 : vector<16x128xf32>
    %519 = arith.mulf %508, %492 : vector<16x128xf32>
    %520 = arith.mulf %500, %510 : vector<16x128xf32>
    %521 = arith.addf %519, %520 : vector<16x128xf32>
    %522 = math.tanh %521 : vector<16x128xf32>
    %523 = arith.mulf %518, %522 : vector<16x128xf32>
    %c0_260 = arith.constant 0 : index
    %c0_261 = arith.constant 0 : index
    %524 = vector.load %arg18[%c0_260, %c0_261] : memref<16x128xf32, #tpu.memory_space<vmem>>, vector<16x128xf32>
    tpu.vector_store %arg18[%c0_260, %c0_261], %521 {strides = array<i32>} : memref<16x128xf32, #tpu.memory_space<vmem>>, vector<16x128xf32>,
    %c0_262 = arith.constant 0 : index
    %c128_263 = arith.constant 128 : index
    %525 = vector.load %arg16[%c0_262, %c128_263] : memref<16x256xf32, #tpu.memory_space<vmem>>, vector<16x128xf32>
    tpu.vector_store %arg16[%c0_262, %c128_263], %523 {strides = array<i32>} : memref<16x256xf32, #tpu.memory_space<vmem>>, vector<16x128xf32>,
    %526 = arith.index_cast %c5_i32 : i32 to index
    %c0_264 = arith.constant 0 : index
    %c0_265 = arith.constant 0 : index
    %527 = vector.load %arg20[%526, %c0_264, %c0_265] : memref<8x16x128xf32, #tpu.memory_space<vmem>>, vector<1x16x128xf32>
    %528 = vector.shape_cast %527 : vector<1x16x128xf32> to vector<16x128xf32>
    %529 = vector.shape_cast %523 : vector<16x128xf32> to vector<1x16x128xf32>
    tpu.vector_store %arg20[%526, %c0_264, %c0_265], %529 {strides = array<i32>} : memref<8x16x128xf32, #tpu.memory_space<vmem>>, vector<1x16x128xf32>,
    %c6_i32 = arith.constant 6 : i32
    %c0_266 = arith.constant 0 : index
    %c0_267 = arith.constant 0 : index
    %530 = vector.load %arg16[%c0_266, %c0_267] : memref<16x256xf32, #tpu.memory_space<vmem>>, vector<16x128xf32>
    %531 = arith.index_cast %c6_i32 : i32 to index
    %c0_268 = arith.constant 0 : index
    %c0_269 = arith.constant 0 : index
    %532 = vector.load %arg19[%531, %c0_268, %c0_269] : memref<8x16x512xf32, #tpu.memory_space<vmem>>, vector<1x16x512xf32>
    %533 = vector.shape_cast %532 : vector<1x16x512xf32> to vector<16x512xf32>
    %cst_270 = arith.constant dense<0.000000e+00> : vector<16x512xf32>
    %534 = tpu.matmul %530, %35, %cst_270 {dimension_numbers = #tpu.dot_dimension_numbers<[1], [0], [0], [1], [0, 0, 1, 1], [], []>} : vector<16x128xf32>, vector<128x512xf32>, vector<16x512xf32> -> vector<16x512xf32>
    %535 = arith.addf %533, %534 : vector<16x512xf32>
    %c0_271 = arith.constant 0 : index
    %c0_272 = arith.constant 0 : index
    %536 = vector.load %arg17[%c0_271, %c0_272] : memref<16x128xf32, #tpu.memory_space<vmem>>, vector<16x128xf32>
    %537 = vector.extract_strided_slice %535 {offsets = [0, 0], sizes = [16, 128], strides = [1, 1]} : vector<16x512xf32> to vector<16x128xf32>
    %cst_273 = arith.constant 5.000000e-01 : f32
    %538 = vector.broadcast %cst_273 : f32 to vector<16x128xf32>
    %539 = arith.mulf %538, %537 : vector<16x128xf32>
    %540 = math.tanh %539 : vector<16x128xf32>
    %cst_274 = arith.constant 5.000000e-01 : f32
    %541 = vector.broadcast %cst_274 : f32 to vector<16x128xf32>
    %542 = arith.mulf %541, %540 : vector<16x128xf32>
    %cst_275 = arith.constant 5.000000e-01 : f32
    %543 = vector.broadcast %cst_275 : f32 to vector<16x128xf32>
    %544 = arith.addf %542, %543 : vector<16x128xf32>
    %545 = vector.extract_strided_slice %535 {offsets = [0, 128], sizes = [16, 128], strides = [1, 1]} : vector<16x512xf32> to vector<16x128xf32>
    %cst_276 = arith.constant 5.000000e-01 : f32
    %546 = vector.broadcast %cst_276 : f32 to vector<16x128xf32>
    %547 = arith.mulf %546, %545 : vector<16x128xf32>
    %548 = math.tanh %547 : vector<16x128xf32>
    %cst_277 = arith.constant 5.000000e-01 : f32
    %549 = vector.broadcast %cst_277 : f32 to vector<16x128xf32>
    %550 = arith.mulf %549, %548 : vector<16x128xf32>
    %cst_278 = arith.constant 5.000000e-01 : f32
    %551 = vector.broadcast %cst_278 : f32 to vector<16x128xf32>
    %552 = arith.addf %550, %551 : vector<16x128xf32>
    %553 = vector.extract_strided_slice %535 {offsets = [0, 256], sizes = [16, 128], strides = [1, 1]} : vector<16x512xf32> to vector<16x128xf32>
    %554 = math.tanh %553 : vector<16x128xf32>
    %555 = vector.extract_strided_slice %535 {offsets = [0, 384], sizes = [16, 128], strides = [1, 1]} : vector<16x512xf32> to vector<16x128xf32>
    %cst_279 = arith.constant 5.000000e-01 : f32
    %556 = vector.broadcast %cst_279 : f32 to vector<16x128xf32>
    %557 = arith.mulf %556, %555 : vector<16x128xf32>
    %558 = math.tanh %557 : vector<16x128xf32>
    %cst_280 = arith.constant 5.000000e-01 : f32
    %559 = vector.broadcast %cst_280 : f32 to vector<16x128xf32>
    %560 = arith.mulf %559, %558 : vector<16x128xf32>
    %cst_281 = arith.constant 5.000000e-01 : f32
    %561 = vector.broadcast %cst_281 : f32 to vector<16x128xf32>
    %562 = arith.addf %560, %561 : vector<16x128xf32>
    %563 = arith.mulf %552, %536 : vector<16x128xf32>
    %564 = arith.mulf %544, %554 : vector<16x128xf32>
    %565 = arith.addf %563, %564 : vector<16x128xf32>
    %566 = math.tanh %565 : vector<16x128xf32>
    %567 = arith.mulf %562, %566 : vector<16x128xf32>
    %c0_282 = arith.constant 0 : index
    %c0_283 = arith.constant 0 : index
    %568 = vector.load %arg17[%c0_282, %c0_283] : memref<16x128xf32, #tpu.memory_space<vmem>>, vector<16x128xf32>
    tpu.vector_store %arg17[%c0_282, %c0_283], %565 {strides = array<i32>} : memref<16x128xf32, #tpu.memory_space<vmem>>, vector<16x128xf32>,
    %c0_284 = arith.constant 0 : index
    %c0_285 = arith.constant 0 : index
    %569 = vector.load %arg16[%c0_284, %c0_285] : memref<16x256xf32, #tpu.memory_space<vmem>>, vector<16x128xf32>
    tpu.vector_store %arg16[%c0_284, %c0_285], %567 {strides = array<i32>} : memref<16x256xf32, #tpu.memory_space<vmem>>, vector<16x128xf32>,
    %c0_286 = arith.constant 0 : index
    %c0_287 = arith.constant 0 : index
    %570 = vector.load %arg16[%c0_286, %c0_287] : memref<16x256xf32, #tpu.memory_space<vmem>>, vector<16x256xf32>
    %cst_288 = arith.constant dense<0.000000e+00> : vector<16x512xf32>
    %571 = tpu.matmul %570, %36, %cst_288 {dimension_numbers = #tpu.dot_dimension_numbers<[1], [0], [0], [1], [0, 0, 1, 1], [], []>} : vector<16x256xf32>, vector<256x512xf32>, vector<16x512xf32> -> vector<16x512xf32>
    %572 = vector.broadcast %37 : vector<1x512xf32> to vector<16x512xf32>
    %573 = arith.addf %571, %572 : vector<16x512xf32>
    %c0_289 = arith.constant 0 : index
    %c0_290 = arith.constant 0 : index
    %574 = vector.load %arg18[%c0_289, %c0_290] : memref<16x128xf32, #tpu.memory_space<vmem>>, vector<16x128xf32>
    %575 = vector.extract_strided_slice %573 {offsets = [0, 0], sizes = [16, 128], strides = [1, 1]} : vector<16x512xf32> to vector<16x128xf32>
    %cst_291 = arith.constant 5.000000e-01 : f32
    %576 = vector.broadcast %cst_291 : f32 to vector<16x128xf32>
    %577 = arith.mulf %576, %575 : vector<16x128xf32>
    %578 = math.tanh %577 : vector<16x128xf32>
    %cst_292 = arith.constant 5.000000e-01 : f32
    %579 = vector.broadcast %cst_292 : f32 to vector<16x128xf32>
    %580 = arith.mulf %579, %578 : vector<16x128xf32>
    %cst_293 = arith.constant 5.000000e-01 : f32
    %581 = vector.broadcast %cst_293 : f32 to vector<16x128xf32>
    %582 = arith.addf %580, %581 : vector<16x128xf32>
    %583 = vector.extract_strided_slice %573 {offsets = [0, 128], sizes = [16, 128], strides = [1, 1]} : vector<16x512xf32> to vector<16x128xf32>
    %cst_294 = arith.constant 5.000000e-01 : f32
    %584 = vector.broadcast %cst_294 : f32 to vector<16x128xf32>
    %585 = arith.mulf %584, %583 : vector<16x128xf32>
    %586 = math.tanh %585 : vector<16x128xf32>
    %cst_295 = arith.constant 5.000000e-01 : f32
    %587 = vector.broadcast %cst_295 : f32 to vector<16x128xf32>
    %588 = arith.mulf %587, %586 : vector<16x128xf32>
    %cst_296 = arith.constant 5.000000e-01 : f32
    %589 = vector.broadcast %cst_296 : f32 to vector<16x128xf32>
    %590 = arith.addf %588, %589 : vector<16x128xf32>
    %591 = vector.extract_strided_slice %573 {offsets = [0, 256], sizes = [16, 128], strides = [1, 1]} : vector<16x512xf32> to vector<16x128xf32>
    %592 = math.tanh %591 : vector<16x128xf32>
    %593 = vector.extract_strided_slice %573 {offsets = [0, 384], sizes = [16, 128], strides = [1, 1]} : vector<16x512xf32> to vector<16x128xf32>
    %cst_297 = arith.constant 5.000000e-01 : f32
    %594 = vector.broadcast %cst_297 : f32 to vector<16x128xf32>
    %595 = arith.mulf %594, %593 : vector<16x128xf32>
    %596 = math.tanh %595 : vector<16x128xf32>
    %cst_298 = arith.constant 5.000000e-01 : f32
    %597 = vector.broadcast %cst_298 : f32 to vector<16x128xf32>
    %598 = arith.mulf %597, %596 : vector<16x128xf32>
    %cst_299 = arith.constant 5.000000e-01 : f32
    %599 = vector.broadcast %cst_299 : f32 to vector<16x128xf32>
    %600 = arith.addf %598, %599 : vector<16x128xf32>
    %601 = arith.mulf %590, %574 : vector<16x128xf32>
    %602 = arith.mulf %582, %592 : vector<16x128xf32>
    %603 = arith.addf %601, %602 : vector<16x128xf32>
    %604 = math.tanh %603 : vector<16x128xf32>
    %605 = arith.mulf %600, %604 : vector<16x128xf32>
    %c0_300 = arith.constant 0 : index
    %c0_301 = arith.constant 0 : index
    %606 = vector.load %arg18[%c0_300, %c0_301] : memref<16x128xf32, #tpu.memory_space<vmem>>, vector<16x128xf32>
    tpu.vector_store %arg18[%c0_300, %c0_301], %603 {strides = array<i32>} : memref<16x128xf32, #tpu.memory_space<vmem>>, vector<16x128xf32>,
    %c0_302 = arith.constant 0 : index
    %c128_303 = arith.constant 128 : index
    %607 = vector.load %arg16[%c0_302, %c128_303] : memref<16x256xf32, #tpu.memory_space<vmem>>, vector<16x128xf32>
    tpu.vector_store %arg16[%c0_302, %c128_303], %605 {strides = array<i32>} : memref<16x256xf32, #tpu.memory_space<vmem>>, vector<16x128xf32>,
    %608 = arith.index_cast %c6_i32 : i32 to index
    %c0_304 = arith.constant 0 : index
    %c0_305 = arith.constant 0 : index
    %609 = vector.load %arg20[%608, %c0_304, %c0_305] : memref<8x16x128xf32, #tpu.memory_space<vmem>>, vector<1x16x128xf32>
    %610 = vector.shape_cast %609 : vector<1x16x128xf32> to vector<16x128xf32>
    %611 = vector.shape_cast %605 : vector<16x128xf32> to vector<1x16x128xf32>
    tpu.vector_store %arg20[%608, %c0_304, %c0_305], %611 {strides = array<i32>} : memref<8x16x128xf32, #tpu.memory_space<vmem>>, vector<1x16x128xf32>,
    %c7_i32 = arith.constant 7 : i32
    %c0_306 = arith.constant 0 : index
    %c0_307 = arith.constant 0 : index
    %612 = vector.load %arg16[%c0_306, %c0_307] : memref<16x256xf32, #tpu.memory_space<vmem>>, vector<16x128xf32>
    %613 = arith.index_cast %c7_i32 : i32 to index
    %c0_308 = arith.constant 0 : index
    %c0_309 = arith.constant 0 : index
    %614 = vector.load %arg19[%613, %c0_308, %c0_309] : memref<8x16x512xf32, #tpu.memory_space<vmem>>, vector<1x16x512xf32>
    %615 = vector.shape_cast %614 : vector<1x16x512xf32> to vector<16x512xf32>
    %cst_310 = arith.constant dense<0.000000e+00> : vector<16x512xf32>
    %616 = tpu.matmul %612, %35, %cst_310 {dimension_numbers = #tpu.dot_dimension_numbers<[1], [0], [0], [1], [0, 0, 1, 1], [], []>} : vector<16x128xf32>, vector<128x512xf32>, vector<16x512xf32> -> vector<16x512xf32>
    %617 = arith.addf %615, %616 : vector<16x512xf32>
    %c0_311 = arith.constant 0 : index
    %c0_312 = arith.constant 0 : index
    %618 = vector.load %arg17[%c0_311, %c0_312] : memref<16x128xf32, #tpu.memory_space<vmem>>, vector<16x128xf32>
    %619 = vector.extract_strided_slice %617 {offsets = [0, 0], sizes = [16, 128], strides = [1, 1]} : vector<16x512xf32> to vector<16x128xf32>
    %cst_313 = arith.constant 5.000000e-01 : f32
    %620 = vector.broadcast %cst_313 : f32 to vector<16x128xf32>
    %621 = arith.mulf %620, %619 : vector<16x128xf32>
    %622 = math.tanh %621 : vector<16x128xf32>
    %cst_314 = arith.constant 5.000000e-01 : f32
    %623 = vector.broadcast %cst_314 : f32 to vector<16x128xf32>
    %624 = arith.mulf %623, %622 : vector<16x128xf32>
    %cst_315 = arith.constant 5.000000e-01 : f32
    %625 = vector.broadcast %cst_315 : f32 to vector<16x128xf32>
    %626 = arith.addf %624, %625 : vector<16x128xf32>
    %627 = vector.extract_strided_slice %617 {offsets = [0, 128], sizes = [16, 128], strides = [1, 1]} : vector<16x512xf32> to vector<16x128xf32>
    %cst_316 = arith.constant 5.000000e-01 : f32
    %628 = vector.broadcast %cst_316 : f32 to vector<16x128xf32>
    %629 = arith.mulf %628, %627 : vector<16x128xf32>
    %630 = math.tanh %629 : vector<16x128xf32>
    %cst_317 = arith.constant 5.000000e-01 : f32
    %631 = vector.broadcast %cst_317 : f32 to vector<16x128xf32>
    %632 = arith.mulf %631, %630 : vector<16x128xf32>
    %cst_318 = arith.constant 5.000000e-01 : f32
    %633 = vector.broadcast %cst_318 : f32 to vector<16x128xf32>
    %634 = arith.addf %632, %633 : vector<16x128xf32>
    %635 = vector.extract_strided_slice %617 {offsets = [0, 256], sizes = [16, 128], strides = [1, 1]} : vector<16x512xf32> to vector<16x128xf32>
    %636 = math.tanh %635 : vector<16x128xf32>
    %637 = vector.extract_strided_slice %617 {offsets = [0, 384], sizes = [16, 128], strides = [1, 1]} : vector<16x512xf32> to vector<16x128xf32>
    %cst_319 = arith.constant 5.000000e-01 : f32
    %638 = vector.broadcast %cst_319 : f32 to vector<16x128xf32>
    %639 = arith.mulf %638, %637 : vector<16x128xf32>
    %640 = math.tanh %639 : vector<16x128xf32>
    %cst_320 = arith.constant 5.000000e-01 : f32
    %641 = vector.broadcast %cst_320 : f32 to vector<16x128xf32>
    %642 = arith.mulf %641, %640 : vector<16x128xf32>
    %cst_321 = arith.constant 5.000000e-01 : f32
    %643 = vector.broadcast %cst_321 : f32 to vector<16x128xf32>
    %644 = arith.addf %642, %643 : vector<16x128xf32>
    %645 = arith.mulf %634, %618 : vector<16x128xf32>
    %646 = arith.mulf %626, %636 : vector<16x128xf32>
    %647 = arith.addf %645, %646 : vector<16x128xf32>
    %648 = math.tanh %647 : vector<16x128xf32>
    %649 = arith.mulf %644, %648 : vector<16x128xf32>
    %c0_322 = arith.constant 0 : index
    %c0_323 = arith.constant 0 : index
    %650 = vector.load %arg17[%c0_322, %c0_323] : memref<16x128xf32, #tpu.memory_space<vmem>>, vector<16x128xf32>
    tpu.vector_store %arg17[%c0_322, %c0_323], %647 {strides = array<i32>} : memref<16x128xf32, #tpu.memory_space<vmem>>, vector<16x128xf32>,
    %c0_324 = arith.constant 0 : index
    %c0_325 = arith.constant 0 : index
    %651 = vector.load %arg16[%c0_324, %c0_325] : memref<16x256xf32, #tpu.memory_space<vmem>>, vector<16x128xf32>
    tpu.vector_store %arg16[%c0_324, %c0_325], %649 {strides = array<i32>} : memref<16x256xf32, #tpu.memory_space<vmem>>, vector<16x128xf32>,
    %c0_326 = arith.constant 0 : index
    %c0_327 = arith.constant 0 : index
    %652 = vector.load %arg16[%c0_326, %c0_327] : memref<16x256xf32, #tpu.memory_space<vmem>>, vector<16x256xf32>
    %cst_328 = arith.constant dense<0.000000e+00> : vector<16x512xf32>
    %653 = tpu.matmul %652, %36, %cst_328 {dimension_numbers = #tpu.dot_dimension_numbers<[1], [0], [0], [1], [0, 0, 1, 1], [], []>} : vector<16x256xf32>, vector<256x512xf32>, vector<16x512xf32> -> vector<16x512xf32>
    %654 = vector.broadcast %37 : vector<1x512xf32> to vector<16x512xf32>
    %655 = arith.addf %653, %654 : vector<16x512xf32>
    %c0_329 = arith.constant 0 : index
    %c0_330 = arith.constant 0 : index
    %656 = vector.load %arg18[%c0_329, %c0_330] : memref<16x128xf32, #tpu.memory_space<vmem>>, vector<16x128xf32>
    %657 = vector.extract_strided_slice %655 {offsets = [0, 0], sizes = [16, 128], strides = [1, 1]} : vector<16x512xf32> to vector<16x128xf32>
    %cst_331 = arith.constant 5.000000e-01 : f32
    %658 = vector.broadcast %cst_331 : f32 to vector<16x128xf32>
    %659 = arith.mulf %658, %657 : vector<16x128xf32>
    %660 = math.tanh %659 : vector<16x128xf32>
    %cst_332 = arith.constant 5.000000e-01 : f32
    %661 = vector.broadcast %cst_332 : f32 to vector<16x128xf32>
    %662 = arith.mulf %661, %660 : vector<16x128xf32>
    %cst_333 = arith.constant 5.000000e-01 : f32
    %663 = vector.broadcast %cst_333 : f32 to vector<16x128xf32>
    %664 = arith.addf %662, %663 : vector<16x128xf32>
    %665 = vector.extract_strided_slice %655 {offsets = [0, 128], sizes = [16, 128], strides = [1, 1]} : vector<16x512xf32> to vector<16x128xf32>
    %cst_334 = arith.constant 5.000000e-01 : f32
    %666 = vector.broadcast %cst_334 : f32 to vector<16x128xf32>
    %667 = arith.mulf %666, %665 : vector<16x128xf32>
    %668 = math.tanh %667 : vector<16x128xf32>
    %cst_335 = arith.constant 5.000000e-01 : f32
    %669 = vector.broadcast %cst_335 : f32 to vector<16x128xf32>
    %670 = arith.mulf %669, %668 : vector<16x128xf32>
    %cst_336 = arith.constant 5.000000e-01 : f32
    %671 = vector.broadcast %cst_336 : f32 to vector<16x128xf32>
    %672 = arith.addf %670, %671 : vector<16x128xf32>
    %673 = vector.extract_strided_slice %655 {offsets = [0, 256], sizes = [16, 128], strides = [1, 1]} : vector<16x512xf32> to vector<16x128xf32>
    %674 = math.tanh %673 : vector<16x128xf32>
    %675 = vector.extract_strided_slice %655 {offsets = [0, 384], sizes = [16, 128], strides = [1, 1]} : vector<16x512xf32> to vector<16x128xf32>
    %cst_337 = arith.constant 5.000000e-01 : f32
    %676 = vector.broadcast %cst_337 : f32 to vector<16x128xf32>
    %677 = arith.mulf %676, %675 : vector<16x128xf32>
    %678 = math.tanh %677 : vector<16x128xf32>
    %cst_338 = arith.constant 5.000000e-01 : f32
    %679 = vector.broadcast %cst_338 : f32 to vector<16x128xf32>
    %680 = arith.mulf %679, %678 : vector<16x128xf32>
    %cst_339 = arith.constant 5.000000e-01 : f32
    %681 = vector.broadcast %cst_339 : f32 to vector<16x128xf32>
    %682 = arith.addf %680, %681 : vector<16x128xf32>
    %683 = arith.mulf %672, %656 : vector<16x128xf32>
    %684 = arith.mulf %664, %674 : vector<16x128xf32>
    %685 = arith.addf %683, %684 : vector<16x128xf32>
    %686 = math.tanh %685 : vector<16x128xf32>
    %687 = arith.mulf %682, %686 : vector<16x128xf32>
    %c0_340 = arith.constant 0 : index
    %c0_341 = arith.constant 0 : index
    %688 = vector.load %arg18[%c0_340, %c0_341] : memref<16x128xf32, #tpu.memory_space<vmem>>, vector<16x128xf32>
    tpu.vector_store %arg18[%c0_340, %c0_341], %685 {strides = array<i32>} : memref<16x128xf32, #tpu.memory_space<vmem>>, vector<16x128xf32>,
    %c0_342 = arith.constant 0 : index
    %c128_343 = arith.constant 128 : index
    %689 = vector.load %arg16[%c0_342, %c128_343] : memref<16x256xf32, #tpu.memory_space<vmem>>, vector<16x128xf32>
    tpu.vector_store %arg16[%c0_342, %c128_343], %687 {strides = array<i32>} : memref<16x256xf32, #tpu.memory_space<vmem>>, vector<16x128xf32>,
    %690 = arith.index_cast %c7_i32 : i32 to index
    %c0_344 = arith.constant 0 : index
    %c0_345 = arith.constant 0 : index
    %691 = vector.load %arg20[%690, %c0_344, %c0_345] : memref<8x16x128xf32, #tpu.memory_space<vmem>>, vector<1x16x128xf32>
    %692 = vector.shape_cast %691 : vector<1x16x128xf32> to vector<16x128xf32>
    %693 = vector.shape_cast %687 : vector<16x128xf32> to vector<1x16x128xf32>
    tpu.vector_store %arg20[%690, %c0_344, %c0_345], %693 {strides = array<i32>} : memref<8x16x128xf32, #tpu.memory_space<vmem>>, vector<1x16x128xf32>,
    %c8_i32 = arith.constant 8 : i32
    %c0_346 = arith.constant 0 : index
    %c0_347 = arith.constant 0 : index
    %c0_348 = arith.constant 0 : index
    %694 = vector.load %arg20[%c0_346, %c0_347, %c0_348] : memref<8x16x128xf32, #tpu.memory_space<vmem>>, vector<8x16x128xf32>
    %695 = vector.shape_cast %694 : vector<8x16x128xf32> to vector<128x128xf32>
    %c0_349 = arith.constant 0 : index
    %c0_350 = arith.constant 0 : index
    %696 = vector.load %arg9[%c0_349, %c0_350] : memref<128x128xf32, #tpu.memory_space<vmem>>, vector<128x128xf32>
    %cst_351 = arith.constant dense<0.000000e+00> : vector<128x128xf32>
    %697 = tpu.matmul %695, %696, %cst_351 {dimension_numbers = #tpu.dot_dimension_numbers<[1], [0], [0], [1], [0, 0, 1, 1], [], []>} : vector<128x128xf32>, vector<128x128xf32>, vector<128x128xf32> -> vector<128x128xf32>
    %c0_352 = arith.constant 0 : index
    %c0_353 = arith.constant 0 : index
    %698 = vector.load %arg10[%c0_352, %c0_353] : memref<1x128xf32, #tpu.memory_space<vmem>>, vector<1x128xf32>
    %699 = vector.broadcast %698 : vector<1x128xf32> to vector<128x128xf32>
    %700 = arith.addf %697, %699 : vector<128x128xf32>
    %cst_354 = arith.constant 0.000000e+00 : f32
    %701 = vector.broadcast %cst_354 : f32 to vector<128x128xf32>
    %702 = arith.maximumf %700, %701 : vector<128x128xf32>
    %c0_355 = arith.constant 0 : index
    %c0_356 = arith.constant 0 : index
    %703 = vector.load %arg11[%c0_355, %c0_356] : memref<128x128xf32, #tpu.memory_space<vmem>>, vector<128x128xf32>
    %cst_357 = arith.constant dense<0.000000e+00> : vector<128x128xf32>
    %704 = tpu.matmul %702, %703, %cst_357 {dimension_numbers = #tpu.dot_dimension_numbers<[1], [0], [0], [1], [0, 0, 1, 1], [], []>} : vector<128x128xf32>, vector<128x128xf32>, vector<128x128xf32> -> vector<128x128xf32>
    %c0_358 = arith.constant 0 : index
    %c0_359 = arith.constant 0 : index
    %705 = vector.load %arg12[%c0_358, %c0_359] : memref<1x128xf32, #tpu.memory_space<vmem>>, vector<1x128xf32>
    %706 = vector.broadcast %705 : vector<1x128xf32> to vector<128x128xf32>
    %707 = arith.addf %704, %706 : vector<128x128xf32>
    %708 = vector.shape_cast %707 : vector<128x128xf32> to vector<8x16x128xf32>
    %c0_360 = arith.constant 0 : index
    %c0_361 = arith.constant 0 : index
    %c0_362 = arith.constant 0 : index
    %c0_363 = arith.constant 0 : index
    %709 = vector.load %arg15[%c0_360, %c0_361, %c0_362, %c0_363] : memref<1x8x16x128xf32, #tpu.memory_space<vmem>>, vector<1x8x16x128xf32>
    %710 = vector.shape_cast %709 : vector<1x8x16x128xf32> to vector<8x16x128xf32>
    %711 = vector.shape_cast %708 : vector<8x16x128xf32> to vector<1x8x16x128xf32>
    tpu.vector_store %arg15[%c0_360, %c0_361, %c0_362, %c0_363], %711 {strides = array<i32>} : memref<1x8x16x128xf32, #tpu.memory_space<vmem>>, vector<1x8x16x128xf32>,
    return
  }
  func.func @transform_0(%arg0: i32, %arg1: i32, %arg2: i32) -> (i32, i32, i32, i32) {
    %c0_i32 = arith.constant 0 : i32
    %c0_i32_0 = arith.constant 0 : i32
    return %arg0, %arg2, %arg1, %c0_i32 : i32, i32, i32, i32
  }
  func.func @transform_1(%arg0: i32, %arg1: i32, %arg2: i32) -> (i32, i32) {
    %c0_i32 = arith.constant 0 : i32
    %c0_i32_0 = arith.constant 0 : i32
    %c0_i32_1 = arith.constant 0 : i32
    return %c0_i32, %c0_i32_0 : i32, i32
  }
  func.func @transform_2(%arg0: i32, %arg1: i32, %arg2: i32) -> (i32, i32) {
    %c0_i32 = arith.constant 0 : i32
    %c0_i32_0 = arith.constant 0 : i32
    %c0_i32_1 = arith.constant 0 : i32
    return %c0_i32, %c0_i32_0 : i32, i32
  }
  func.func @transform_3(%arg0: i32, %arg1: i32, %arg2: i32) -> (i32, i32) {
    %c0_i32 = arith.constant 0 : i32
    %c0_i32_0 = arith.constant 0 : i32
    %c0_i32_1 = arith.constant 0 : i32
    return %c0_i32, %c0_i32_0 : i32, i32
  }
  func.func @transform_4(%arg0: i32, %arg1: i32, %arg2: i32) -> (i32, i32) {
    %c0_i32 = arith.constant 0 : i32
    %c0_i32_0 = arith.constant 0 : i32
    %c0_i32_1 = arith.constant 0 : i32
    return %c0_i32, %c0_i32_0 : i32, i32
  }
  func.func @transform_5(%arg0: i32, %arg1: i32, %arg2: i32) -> (i32, i32) {
    %c0_i32 = arith.constant 0 : i32
    %c0_i32_0 = arith.constant 0 : i32
    %c0_i32_1 = arith.constant 0 : i32
    return %c0_i32, %c0_i32_0 : i32, i32
  }
  func.func @transform_6(%arg0: i32, %arg1: i32, %arg2: i32) -> (i32, i32) {
    %c0_i32 = arith.constant 0 : i32
    %c0_i32_0 = arith.constant 0 : i32
    %c0_i32_1 = arith.constant 0 : i32
    return %c0_i32, %c0_i32_0 : i32, i32
  }
  func.func @transform_7(%arg0: i32, %arg1: i32, %arg2: i32) -> (i32, i32) {
    %c0_i32 = arith.constant 0 : i32
    %c0_i32_0 = arith.constant 0 : i32
    %c0_i32_1 = arith.constant 0 : i32
    return %c0_i32, %c0_i32_0 : i32, i32
  }
  func.func @transform_8(%arg0: i32, %arg1: i32, %arg2: i32) -> (i32, i32) {
    %c0_i32 = arith.constant 0 : i32
    %c0_i32_0 = arith.constant 0 : i32
    %c0_i32_1 = arith.constant 0 : i32
    return %c0_i32, %c0_i32_0 : i32, i32
  }
  func.func @transform_9(%arg0: i32, %arg1: i32, %arg2: i32) -> (i32, i32) {
    %c0_i32 = arith.constant 0 : i32
    %c0_i32_0 = arith.constant 0 : i32
    %c0_i32_1 = arith.constant 0 : i32
    return %c0_i32, %c0_i32_0 : i32, i32
  }
  func.func @transform_10(%arg0: i32, %arg1: i32, %arg2: i32) -> (i32, i32) {
    %c0_i32 = arith.constant 0 : i32
    %c0_i32_0 = arith.constant 0 : i32
    %c0_i32_1 = arith.constant 0 : i32
    return %c0_i32, %c0_i32_0 : i32, i32
  }
  func.func @transform_11(%arg0: i32, %arg1: i32, %arg2: i32) -> (i32, i32) {
    %c0_i32 = arith.constant 0 : i32
    %c0_i32_0 = arith.constant 0 : i32
    %c0_i32_1 = arith.constant 0 : i32
    return %c0_i32, %c0_i32_0 : i32, i32
  }
  func.func @transform_12(%arg0: i32, %arg1: i32, %arg2: i32) -> (i32, i32, i32, i32) {
    %c0_i32 = arith.constant 0 : i32
    %c0_i32_0 = arith.constant 0 : i32
    return %arg0, %arg2, %arg1, %c0_i32 : i32, i32, i32, i32
  }
}

</mosaic_0001>

<bundles_post_ra>
// kernel: tpu_custom_call.1
= control target key start
LH: loop header
LB: loop body
LE: loop exit
PB: predicated region body
PF: predicated region fallthrough
CT: control target
= control target key end

     0   :  { %s11042_s0 = inlined_call_operand.hbm [shape: f32[2,8,16,16], index: 0, kind: input, shape index: {}]   ;;  %s11043_s1 = inlined_call_operand.hbm [shape: f32[16,512], index: 1, kind: input, shape index: {}]   ;;  %s11044_s2 = inlined_call_operand.hbm [shape: f32[128,512], index: 2, kind: input, shape index: {}]   ;;  %s11045_s3 = inlined_call_operand.vmem [shape: f32[1,512], index: 3, kind: input, shape index: {}]   ;;  %s11046_s4 = inlined_call_operand.hbm [shape: f32[256,512], index: 4, kind: input, shape index: {}]   ;;  %s11047_s5 = inlined_call_operand.vmem [shape: f32[1,512], index: 5, kind: input, shape index: {}]   ;;  %s11048_s6 = inlined_call_operand.hbm [shape: f32[128,128], index: 6, kind: input, shape index: {}]   ;;  %s11049_s7 = inlined_call_operand.vmem [shape: f32[1,128], index: 7, kind: input, shape index: {}]   ;;  %s11050_s8 = inlined_call_operand.hbm [shape: f32[128,128], index: 8, kind: input, shape index: {}]   ;;  %s11051_s9 = inlined_call_operand.vmem [shape: f32[1,128], index: 9, kind: input, shape index: {}]   ;;  %s11052_s10 = inlined_call_operand.vmem [shape: f32[1,16], index: 10, kind: input, shape index: {}]   ;;  %s11053_s11 = inlined_call_operand.vmem [shape: f32[1,16], index: 11, kind: input, shape index: {}]   ;;  %s11054_s12 = inlined_call_operand.hbm [shape: f32[2,8,16,128], index: 12, kind: output, shape index: {}]  }
   0x1   :  { %11562 = sst [smem:[#allocation215_spill]] %s11043_s1 }
   0x2   :  { %11563 = sst [smem:[#allocation216_spill]] %s11044_s2 }
   0x3   :  { %11564 = sst [smem:[#allocation217_spill]] %s11046_s4 }
   0x4   :  { %11565 = sst [smem:[#allocation218_spill]] %s11048_s6 }
   0x5   :  { %11566 = sst [smem:[#allocation219_spill]] %s11050_s8 }
   0x6   :  { %11567 = sst [smem:[#allocation220_spill]] %s11054_s12 }
   0x7   :  { %17 = vsyncpa [#allocation8], 0 }
   0x8   :  { %19 = vsyncpa [#allocation8 + $0x1], 0 }
   0x9   :  { %20 = vsyncpa [#allocation11], 0 }
   0xa   :  { %21 = vsyncpa [#allocation14], 0 }
   0xb   :  { %22 = vsyncpa [#allocation17], 0 }
   0xc   :  { %23 = vsyncpa [#allocation9], 0 }
   0xd   :  { %25 = vsyncpa [#allocation9 + $0x1], 0  ;;  %s7095_s21 = smov 0   ;;  %s7097_s22 = smov 0  }
   0xe   :  { %s7099_s23 = smov 0   ;;  %s7101_s24 = smov 0  }
   0xf   :  { %s7103_s25 = smov 0   ;;  %s7105_s26 = smov 0  }
  0x10 LB: > { %11568 = sst [smem:[#allocation24_spill]] %s7006_s24  ;;  %s11055_s27 = sadd.s32 4294967295, %s7014_s26   ;;  %s7014_s26 = sphi %s7105_s26, %s31_s26   ;;  %s7010_s25 = sphi %s7103_s25, %s12686_s25   ;;  %s7006_s24 = sphi %s7101_s24, %s12690_s24   ;;  %s7002_s23 = sphi %s7099_s23, %s12689_s23   ;;  %s6998_s22 = sphi %s7097_s22, %s12688_s22   ;;  %s6994_s21 = sphi %s7095_s21, %s12687_s21  }
  0x11   : > { %11569 = sst [smem:[#allocation25_spill]] %s7010_s25  ;;  %p5391_p0 = scmp.ge.s32.totalorder %s7014_s26, 1 }
  0x12   : > { %p7129_p1 = scmp.eq.s32.totalorder %s11055_s27, 0  ;;  %p346_p2 = scmp.lt.s32.totalorder %s7014_s26, 3 }
  0x13   : > { %s7016_s30 = smov [#allocation10]   ;;  %s7017_s15 = smov [#allocation13]  }
  0x14   : > { %s11570_s28 = scalar_select %p7129_p1, 1, 0 }
  0x15   : > { %p7134_p3 = pnand %p5391_p0, %p346_p2  ;;  %s358_s13 = sshll.u32 %s7016_s30, 4  ;;  %s359_s13 = int_to_ptr.vmem [resolvable:$true] %s358_s13 }
  0x16   : > { %s387_s16 = sshll.u32 %s7017_s15, 4  ;;  %s7018_s17 = smov [#allocation12]   ;;  %s388_s16 = int_to_ptr.vmem [resolvable:$true] %s387_s16 }
  0x17   : > { %s11571_s29 = scalar_select %p7134_p3, 1, 0 }
  0x18   : > { %p5652_p4 = pneg %p7134_p3  ;;  %s371_s18 = sshll.u32 %s7018_s17, 4  ;;  %s372_s18 = int_to_ptr.vmem [resolvable:$true] %s371_s18 }
  0x19   : > { %s6775_s20 = scalar_lea.vmem %s359_s13, 1024  ;;  %p6783_p11 = scmp.lt.s32.totalorder %s359_s13, %s359_s13 }
  0x1a   : > { %p7143_p6 = pnand %p5652_p4, %p7129_p1  ;;  %p6776_p8 = scmp.ne.s32.totalorder %s359_s13, %s6775_s20 }
  0x1b   : > { %p6784_p12 = scmp.lt.s32.totalorder %s6775_s20, %s6775_s20 }
  0x1c   : > { %p7149_p7 = pneg %p7143_p6 }
  0x1d   : > { %p6785_p13 = por %p6784_p12, %p6783_p11 }
  0x1e   : > { %p6778_p9 = pnand %p6776_p8, %p7149_p7 }
  0x20   : > { %p6779_p10 = pneg %p6778_p9 }
  0x22   : > { %p6786_p0 = pnand %p6785_p13, %p6779_p10 }
  0x24   : > { %6789 = shalt.err (!%p6786_p0)
}
  0x25   : > { %s7019_s30 = smov 512   ;;  %s7020_s15 = smov 32  }
  0x26   : > { %s11574_s1 = sld [smem:[#allocation215_spill]]  ;;  %s6801_s12 = scalar_lea.vmem %s388_s16, 16384 }
  0x27   : > { %p6802_p2 = scmp.ne.s32.totalorder %s388_s16, %s6801_s12  ;;  %p6809_p9 = scmp.lt.s32.totalorder %s388_s16, %s388_s16 }
  0x28   : > { %p6810_p5 = scmp.lt.s32.totalorder %s6801_s12, %s6801_s12 }
  0x29   : > { %p6804_p4 = pnand %p6802_p2, %p7149_p7 }
  0x2a   : > { %p6811_p3 = por %p6810_p5, %p6809_p9 }
  0x2b   : > { %p6805_p8 = pneg %p6804_p4 }
  0x2c   : > { %5655 = dma.hbm_to_vmem [thread:$0]  (!%p7143_p6), %s11574_s1, 1024, %s359_s13, [#allocation11], %s7019_s30, %s7019_s30, %s7020_s15  }
  0x2d   : > { %p6812_p11 = pnand %p6811_p3, %p6805_p8 }
  0x2f   : > { %6815 = shalt.err (!%p6812_p11)
}
  0x30   : > { %s11575_s4 = sld [smem:[#allocation217_spill]]  ;;  %s6827_s27 = scalar_lea.vmem %s372_s18, 8192 }
  0x31   : > { %p6828_p10 = scmp.ne.s32.totalorder %s372_s18, %s6827_s27  ;;  %p6835_p0 = scmp.lt.s32.totalorder %s372_s18, %s372_s18 }
  0x32   : > { %p6836_p2 = scmp.lt.s32.totalorder %s6827_s27, %s6827_s27 }
  0x33   : > { %p6830_p12 = pnand %p6828_p10, %p7149_p7 }
  0x34   : > { %p6837_p4 = por %p6836_p2, %p6835_p0 }
  0x35   : > { %p6831_p13 = pneg %p6830_p12 }
  0x36   : > { %5661 = dma.hbm_to_vmem [thread:$0]  (!%p7143_p6), %s11575_s4, 16384, %s388_s16, [#allocation14], %s7019_s30, %s7019_s30, %s7020_s15  }
  0x37   : > { %p6838_p1 = pnand %p6837_p4, %p6831_p13 }
  0x39   : > { %6841 = shalt.err (!%p6838_p1)
}
  0x3a   : > { %s11576_s2 = sld [smem:[#allocation216_spill]]  ;;  %s7021_s24 = smov [#allocation15]  }
  0x3b   : > { %s403_s16 = sshll.u32 %s7021_s24, 4  ;;  %s404_s16 = int_to_ptr.vmem [resolvable:$true] %s403_s16 }
  0x3c   : > { %s6853_s17 = scalar_lea.vmem %s404_s16, 2048  ;;  %p6861_p9 = scmp.lt.s32.totalorder %s404_s16, %s404_s16 }
  0x3d   : > { %p6854_p3 = scmp.ne.s32.totalorder %s404_s16, %s6853_s17  ;;  %p6862_p11 = scmp.lt.s32.totalorder %s6853_s17, %s6853_s17 }
  0x3f   : > { %p6856_p5 = pnand %p6854_p3, %p7149_p7  ;;  %p6863_p10 = por %p6862_p11, %p6861_p9 }
  0x40   : > { %5658 = dma.hbm_to_vmem [thread:$0]  (!%p7143_p6), %s11576_s2, 8192, %s372_s18, [#allocation11], %s7019_s30, %s7019_s30, %s7020_s15  }
  0x41   : > { %p6857_p8 = pneg %p6856_p5 }
  0x43   : > { %p6864_p12 = pnand %p6863_p10, %p6857_p8 }
  0x45   : > { %6867 = shalt.err (!%p6864_p12)
}
  0x46   : > { %s11060_s20 = smov 128   ;;  %s11061_s27 = smov 8  }
  0x47   : > { %s11577_s6 = sld [smem:[#allocation218_spill]]  ;;  %s7024_s15 = smov [#allocation16]  }
  0x48   : > { %s419_s12 = sshll.u32 %s7024_s15, 4  ;;  %s420_s12 = int_to_ptr.vmem [resolvable:$true] %s419_s12 }
  0x49   : > { %s6879_s13 = scalar_lea.vmem %s420_s12, 2048  ;;  %p6887_p2 = scmp.lt.s32.totalorder %s420_s12, %s420_s12 }
  0x4a   : > { %p6880_p1 = scmp.ne.s32.totalorder %s420_s12, %s6879_s13  ;;  %p6888_p4 = scmp.lt.s32.totalorder %s6879_s13, %s6879_s13 }
  0x4c   : > { %p6882_p13 = pnand %p6880_p1, %p7149_p7  ;;  %p6889_p3 = por %p6888_p4, %p6887_p2 }
  0x4d   : > { %5664 = dma.hbm_to_vmem [thread:$0]  (!%p7143_p6), %s11577_s6, 2048, %s404_s16, [#allocation14], %s11060_s20, %s11060_s20, %s11061_s27  }
  0x4e   : > { %p6883_p0 = pneg %p6882_p13 }
  0x50   : > { %p6890_p5 = pnand %p6889_p3, %p6883_p0 }
  0x52   : > { %6893 = shalt.err (!%p6890_p5)
}
  0x53   : > { %s11578_s8 = sld [smem:[#allocation219_spill]]  ;;  %s5390_s14 = sadd.s32 4294967294, %s7014_s26  }
  0x54   : > { %s50_s19 = sadd.s32 1, %s7010_s25  ;;  %s61_s17 = sadd.s32 1, %s7002_s23 }
  0x55   : > { %p52_p7 = scmp.ge.s32.totalorder %s50_s19, 2  ;;  %p68_p8 = scmp.ne.s32.totalorder %s7002_s23, %s6998_s22 }
  0x56   : > { %p69_p9 = scmp.eq.s32.totalorder %s7014_s26, 0  ;;  %p74_p11 = scmp.ne.s32.totalorder %s6998_s22, %s6994_s21 }
  0x57   : > { %s12692_s19 = smov (%p52_p7, %s50_s19), 0  ;;  %p11581_p12 = scmp.ne.s32.totalorder %s11570_s28, 0 }
  0x58   : > { %11579 = sst [smem:[#allocation26_spill]] %s12692_s19  ;;  %p7204_p10 = por %p69_p9, %p68_p8 }
  0x59   : > { %5667 = dma.hbm_to_vmem [thread:$0]  (!%p7143_p6), %s11578_s8, 2048, %s420_s12, [#allocation17], %s11060_s20, %s11060_s20, %s11061_s27  }
  0x5a   : > { %p7210_p6 = por %p11581_p12, %p74_p11  ;;  %s54_s15 = ssub.s32 %s7010_s25, %s12692_s19 }
  0x5b   : > { %s11583_s12 = sadd.s32 4294967295, %s7014_s26   ;;  %p59_p13 = scmp.eq.s32.totalorder %s54_s15, 0 }
  0x5c   : > { %p333_p1 = scmp.eq.s32.totalorder %s11583_s12, 1  ;;  %p339_p0 = scmp.eq.s32.totalorder %s5390_s14, 1 }
  0x5d   : > { %p5681_p4 = scmp.lt.s32.totalorder %s7014_s26, 2  ;;  %s442_s20 = sand.u32 1, %s7002_s23  }
  0x5e   : > { %p7218_p2 = por %p333_p1, %p68_p8  ;;  %p7226_p3 = por %p339_p0, %p74_p11 }
  0x5f   : > { %s7224_s24 = scalar_select %p59_p13, %s7002_s23, %s61_s17  }
  0x60   : > { %s5398_s27 = sshll.u32 %s442_s20, 7  ;;  %s5450_s1 = sshll.u32 %s7010_s25, 11 }
  0x61   : > { %s457_s12 = scalar_lea.hbm %s11042_s0, %s5450_s1  ;;  %s446_s15 = scalar_lea.vmem [#allocation7], %s5398_s27 }
  0x62   : > { %s458_s14 = sshll.u32 %s446_s15, 4  ;;  %p7237_p5 = pnand %p5681_p4, %p7204_p10  ;;  %s459_s14 = int_to_ptr.vmem [resolvable:$true] %s458_s14 }
  0x63   : > { %s443_s17 = scalar_lea.sflag [#allocation8], %s442_s20  ;;  %s6907_s8 = scalar_lea.vmem %s459_s14, 2048 }
  0x64   : > { %p6896_p7 = pneg %p7237_p5  ;;  %p6908_p8 = scmp.ne.s32.totalorder %s459_s14, %s6907_s8 }
  0x65   : > { %s7025_s19 = smov [#allocation7]  }
  0x66   : > { %p6910_p9 = pnand %p6908_p8, %p6896_p7  ;;  %s6912_s25 = sshll.u32 %s7025_s19, 4  ;;  %s6913_s25 = int_to_ptr.vmem [resolvable:$false] %s6912_s25 }
  0x67   : > { %s6914_s1 = scalar_lea.vmem %s6913_s25, 4096  ;;  %p6915_p12 = scmp.lt.s32.totalorder %s459_s14, %s6913_s25 }
  0x68   : > { %p6911_p11 = pneg %p6910_p9  ;;  %p6916_p1 = scmp.lt.s32.totalorder %s6914_s1, %s6907_s8 }
  0x6a   : > { %p6917_p13 = por %p6916_p1, %p6915_p12 }
  0x6c   : > { %p6918_p0 = pnand %p6917_p13, %p6911_p11 }
  0x6e   : > { %6921 = shalt.err (!%p6918_p0)
}
  0x6f   : > { %s11587_s2 = smov 8   ;;  %s11588_s4 = smov 128  }
  0x70   : > { %5671 = dma.hbm_to_vmem [thread:$0]  (!%p7237_p5), %s457_s12, 2048, %s459_s14, %s443_s17, %s11588_s4, %s11588_s4, %s11587_s2  }
  0x71   : > { %p11589_p10 = scmp.ne.s32.totalorder %s11571_s29, 0 }
  0x73   : > { %470 = sbr.rel (%p11589_p10) target bundleno = 3297 (0xce1), region = 68 }
  0x78   : > { %s7251_s20 = sand.u32 1, %s6998_s22  }
  0x79   : > { %s5402_s8 = sshll.u32 %s7251_s20, 7  ;;  %s473_s25 = scalar_lea.sflag [#allocation8], %s7251_s20 }
  0x7a   : > { %s7257_s27 = scalar_lea.vmem [#allocation7], %s5402_s8 }
  0x7b   : > { %6973 = dma.done.wait (%p7210_p6), %s473_s25, 2048  }
  0x7c   : > { %6975 = vsyncadd (%p7210_p6), %s473_s25, 4294965248  ;;  %p11590_p4 = scmp.ne.s32.totalorder %s11570_s28, 0 }
  0x7e   : > { %6977 = dma.done.wait (%p11590_p4), [#allocation11], 9216  }
  0x7f   : > { %6979 = vsyncadd (%p11590_p4), [#allocation11], 4294958080 }
  0x80   : > { %6981 = dma.done.wait (%p11590_p4), [#allocation14], 18432  }
  0x81   : > { %6983 = vsyncadd (%p11590_p4), [#allocation14], 4294948864 }
  0x82   : > { %6985 = dma.done.wait (%p11590_p4), [#allocation17], 2048  }
  0x83   : > { %6987 = vsyncadd (%p11590_p4), [#allocation17], 4294965248  ;;  %vm569_vm0 = vcmask 130048   ;;  %v553_v0 = vld [vmem:[%s7257_s27] sm:$0xff]  ;;  %v555_v1 = vld [vmem:[%s7257_s27 + $0x10] sm:$0xff]  ;;  %s10967_s4 = scalar_lea.vmem [#allocation18], %s5402_s8 }
  0x84   : > { %v554_v2 = vld [vmem:[%s7257_s27 + $0x8] sm:$0xff]  ;;  %v570_v3 = vsel %vm569_vm0, %v553_v0, 0.0  ;;  %v576_v4 = vsel %vm569_vm0, %v555_v1, 0.0  ;;  %v556_v5 = vld [vmem:[%s7257_s27 + $0x18] sm:$0xff]  ;;  %v557_v8 = vld [vmem:[%s7257_s27 + $0x20] sm:$0xff]  ;;  %s12682_s8 = sld [smem:[#allocation24_spill]] }
  0x85   : > { %571 = vadd.xlane.f32.xlu0 %v570_v3  ;;  %577 = vadd.xlane.f32.xlu1 %v576_v4  ;;  %v573_v6 = vsel %vm569_vm0, %v554_v2, 0.0  ;;  %v579_v7 = vsel %vm569_vm0, %v556_v5, 0.0  ;;  %v558_v9 = vld [vmem:[%s7257_s27 + $0x28] sm:$0xff]  ;;  %v582_v10 = vsel %vm569_vm0, %v557_v8, 0.0  ;;  %v7288_v12 = vld [vmem:[%s7257_s27 + $0x30] sm:$0xff]  ;;  %v7291_v13 = vld [vmem:[%s7257_s27 + $0x38] sm:$0xff] }
  0x86   : > { %v585_v11 = vsel %vm569_vm0, %v558_v9, 0.0  ;;  %v588_v14 = vsel %vm569_vm0, %v7288_v12, 0.0  ;;  %v591_v15 = vsel %vm569_vm0, %v7291_v13, 0.0  ;;  %v7298_v16 = vld [vmem:[%s7257_s27 + $0x40] sm:$0xff]  ;;  %v7301_v17 = vld [vmem:[%s7257_s27 + $0x48] sm:$0xff]  ;;  %v7308_v20 = vld [vmem:[%s7257_s27 + $0x50] sm:$0xff] }
  0x87   : > { %v594_v18 = vsel %vm569_vm0, %v7298_v16, 0.0  ;;  %v597_v19 = vsel %vm569_vm0, %v7301_v17, 0.0  ;;  %v7311_v21 = vld [vmem:[%s7257_s27 + $0x58] sm:$0xff]  ;;  %v600_v22 = vsel %vm569_vm0, %v7308_v20, 0.0  ;;  %v7318_v24 = vld [vmem:[%s7257_s27 + $0x60] sm:$0xff]  ;;  %v7321_v25 = vld [vmem:[%s7257_s27 + $0x68] sm:$0xff] }
  0x88   : > { %v603_v23 = vsel %vm569_vm0, %v7311_v21, 0.0  ;;  %v606_v26 = vsel %vm569_vm0, %v7318_v24, 0.0  ;;  %v609_v27 = vsel %vm569_vm0, %v7321_v25, 0.0  ;;  %v7328_v28 = vld [vmem:[%s7257_s27 + $0x70] sm:$0xff]  ;;  %v7331_v29 = vld [vmem:[%s7257_s27 + $0x78] sm:$0xff]  ;;  %s5247_s27 = sshll.u32 %s10967_s4, 4  ;;  %s10992_s27 = int_to_ptr.vmem [resolvable:$true] %s5247_s27 }
  0x89   : > { %574 = vadd.xlane.f32.xlu0 %v573_v6  ;;  %580 = vadd.xlane.f32.xlu1 %v579_v7  ;;  %v612_v30 = vsel %vm569_vm0, %v7328_v28, 0.0  ;;  %v615_v31 = vsel %vm569_vm0, %v7331_v29, 0.0  ;;  %s12683_s29 = sld [smem:[#allocation220_spill]]  ;;  %s5229_s18 = scalar_lea.sflag [#allocation9], %s7251_s20 }
  0x8a   : > { %s5451_s25 = sshll.u32 %s12682_s8, 11  ;;  %s6922_s30 = scalar_lea.vmem %s10992_s27, 2048 }
  0x8b   : > { %p6923_p6 = scmp.ne.s32.totalorder %s10992_s27, %s6922_s30  ;;  %s7027_s12 = smov [#allocation18]  }
  0x8c   : > { %s6926_s15 = sshll.u32 %s7027_s12, 4  ;;  %s6927_s15 = int_to_ptr.vmem [resolvable:$false] %s6926_s15 }
  0x8d   : > { %583 = vadd.xlane.f32.xlu0 %v582_v10  ;;  %586 = vadd.xlane.f32.xlu1 %v585_v11  ;;  %p6924_p5 = pnand %p6923_p6, %p7218_p2  ;;  %s6928_s14 = scalar_lea.vmem %s6927_s15, 4096 }
  0x8e   : > { %p6929_p8 = scmp.lt.s32.totalorder %s10992_s27, %s6927_s15  ;;  %p6930_p9 = scmp.lt.s32.totalorder %s6928_s14, %s6922_s30 }
  0x8f   : > { %s10990_s19 = scalar_lea.hbm %s12683_s29, %s5451_s25  ;;  %p6925_p7 = pneg %p6924_p5 }
  0x90   : > { %p6931_p11 = por %p6930_p9, %p6929_p8 }
  0x91   : > { %589 = vadd.xlane.f32.xlu0 %v588_v14  ;;  %592 = vadd.xlane.f32.xlu1 %v591_v15 }
  0x92   : > { %p6932_p12 = pnand %p6931_p11, %p6925_p7 }
  0x95   : > { %595 = vadd.xlane.f32.xlu0 %v594_v18  ;;  %598 = vadd.xlane.f32.xlu1 %v597_v19 }
  0x99   : > { %601 = vadd.xlane.f32.xlu0 %v600_v22  ;;  %604 = vadd.xlane.f32.xlu1 %v603_v23 }
  0x9d   : > { %607 = vadd.xlane.f32.xlu0 %v606_v26  ;;  %610 = vadd.xlane.f32.xlu1 %v609_v27 }
  0xa1   : > { %613 = vadd.xlane.f32.xlu0 %v612_v30  ;;  %616 = vadd.xlane.f32.xlu1 %v615_v31 }
 0x10e   : > { %v572_v32 = vpop.xlane.xlu0 %571  ;;  %v578_v33 = vpop.xlane.xlu1 %577 }
 0x10f   : > { %v618_v34 = vmul.f32 0.0625, %v572_v32  ;;  %v620_v35 = vmul.f32 0.0625, %v578_v33 }
 0x111   : > { %v7337_v36 = vsub.f32 %v553_v0, %v618_v34  ;;  %v7339_v37 = vsub.f32 %v555_v1, %v620_v35 }
 0x112   : > { %v575_v38 = vpop.xlane.xlu0 %574  ;;  %v581_v39 = vpop.xlane.xlu1 %580 }
 0x113   : > { %v619_v40 = vmul.f32 0.0625, %v575_v38  ;;  %v621_v41 = vmul.f32 0.0625, %v581_v39  ;;  %v650_v42 = vmul.f32 %v7337_v36, %v7337_v36  ;;  %v652_v43 = vmul.f32 %v7339_v37, %v7339_v37 }
 0x115   : > { %v7345_v44 = vsub.f32 %v554_v2, %v619_v40  ;;  %v7347_v45 = vsub.f32 %v556_v5, %v621_v41  ;;  %v666_v46 = vsel %vm569_vm0, %v650_v42, 0.0  ;;  %v672_v49 = vsel %vm569_vm0, %v652_v43, 0.0 }
 0x116   : > { %667 = vadd.xlane.f32.xlu0 %v666_v46  ;;  %v584_v47 = vpop.xlane.xlu0 %583  ;;  %v587_v48 = vpop.xlane.xlu1 %586 }
 0x117   : > { %v622_v50 = vmul.f32 0.0625, %v584_v47  ;;  %v623_v51 = vmul.f32 0.0625, %v587_v48  ;;  %v651_v52 = vmul.f32 %v7345_v44, %v7345_v44  ;;  %v653_v53 = vmul.f32 %v7347_v45, %v7347_v45 }
 0x119   : > { %v7355_v54 = vsub.f32 %v557_v8, %v622_v50  ;;  %v7357_v55 = vsub.f32 %v558_v9, %v623_v51  ;;  %v669_v56 = vsel %vm569_vm0, %v651_v52, 0.0  ;;  %v675_v59 = vsel %vm569_vm0, %v653_v53, 0.0  ;;  %v831_v53 = vld [vmem:[#allocation10 + $0x38] sm:$0xff] }
 0x11a   : > { %673 = vadd.xlane.f32.xlu0 %v672_v49  ;;  %670 = vadd.xlane.f32.xlu1 %v669_v56  ;;  %v590_v57 = vpop.xlane.xlu0 %589  ;;  %v593_v58 = vpop.xlane.xlu1 %592  ;;  %v828_v56 = vld [vmem:[#allocation10 + $0x20] sm:$0xff] }
 0x11b   : > { %v624_v60 = vmul.f32 0.0625, %v590_v57  ;;  %v625_v61 = vmul.f32 0.0625, %v593_v58  ;;  %v654_v62 = vmul.f32 %v7355_v54, %v7355_v54  ;;  %v655_v63 = vmul.f32 %v7357_v55, %v7357_v55  ;;  %1091 = vmatprep.subr.mxu1 %v831_v53  ;;  %v830_v57 = vld [vmem:[#allocation10 + $0x30] sm:$0xff]  ;;  %v825_v58 = vld [vmem:[#allocation10 + $0x8] sm:$0xff] }
 0x11c   : > { %1092 = vmatpush1.msra.mxu1 %v830_v57  ;;  %v1350_v57 = vld [vmem:[#allocation12 + $0x1f0] sm:$0xff] }
 0x11d   : > { %v7366_v0 = vsub.f32 %v7288_v12, %v624_v60  ;;  %v7369_v1 = vsub.f32 %v7291_v13, %v625_v61  ;;  %v678_v2 = vsel %vm569_vm0, %v654_v62, 0.0  ;;  %v681_v5 = vsel %vm569_vm0, %v655_v63, 0.0  ;;  %v824_v60 = vld [vmem:[#allocation10] sm:$0xff]  ;;  %v826_v61 = vld [vmem:[#allocation10 + $0x10] sm:$0xff]  ;;  %v1349_v63 = vld [vmem:[#allocation12 + $0x1e8] sm:$0xff] }
 0x11e   : > { %676 = vadd.xlane.f32.xlu1 %v675_v59  ;;  %679 = vadd.xlane.f32.xlu0 %v678_v2  ;;  %v596_v3 = vpop.xlane.xlu0 %595  ;;  %v599_v4 = vpop.xlane.xlu1 %598  ;;  %v827_v59 = vld [vmem:[#allocation10 + $0x18] sm:$0xff]  ;;  %v11064_v62 = vmov 0.0  }
 0x11f   : > { %v626_v6 = vmul.f32 0.0625, %v596_v3  ;;  %v627_v7 = vmul.f32 0.0625, %v599_v4  ;;  %v656_v8 = vmul.f32 %v7366_v0, %v7366_v0  ;;  %v657_v9 = vmul.f32 %v7369_v1, %v7369_v1  ;;  %1093 = vmatprep.subr.mxu1 %v827_v59  ;;  %966 = vmatprep.mubr.f32.mxu0 %v11064_v62  ;;  %v1351_v2 = vld [vmem:[#allocation12 + $0x1f8] sm:$0xff] }
 0x120   : > { %1094 = vmatpush1.msra.mxu1 %v826_v61  ;;  %1127 = vmatprep.mubr.f32.mxu1 %v11064_v62 }
 0x121   : > { %v7378_v10 = vsub.f32 %v7298_v16, %v626_v6  ;;  %v7381_v11 = vsub.f32 %v7301_v17, %v627_v7  ;;  %v684_v12 = vsel %vm569_vm0, %v656_v8, 0.0  ;;  %v687_v15 = vsel %vm569_vm0, %v657_v9, 0.0  ;;  %1568 = vmatprep.subr.mxu1 %v1351_v2 }
 0x122   : > { %682 = vadd.xlane.f32.xlu1 %v681_v5  ;;  %685 = vadd.xlane.f32.xlu0 %v684_v12  ;;  %v602_v13 = vpop.xlane.xlu0 %601  ;;  %v605_v14 = vpop.xlane.xlu1 %604 }
 0x123   : > { %v628_v18 = vmul.f32 0.0625, %v602_v13  ;;  %v629_v19 = vmul.f32 0.0625, %v605_v14  ;;  %v658_v22 = vmul.f32 %v7378_v10, %v7378_v10  ;;  %v659_v16 = vmul.f32 %v7381_v11, %v7381_v11 }
 0x125   : > { %v7390_v23 = vsub.f32 %v7308_v20, %v628_v18  ;;  %v7393_v17 = vsub.f32 %v7311_v21, %v629_v19  ;;  %v690_v26 = vsel %vm569_vm0, %v658_v22, 0.0  ;;  %v693_v31 = vsel %vm569_vm0, %v659_v16, 0.0 }
 0x126   : > { %688 = vadd.xlane.f32.xlu1 %v687_v15  ;;  %691 = vadd.xlane.f32.xlu0 %v690_v26  ;;  %v608_v27 = vpop.xlane.xlu0 %607  ;;  %v611_v30 = vpop.xlane.xlu1 %610 }
 0x127   : > { %v630_v32 = vmul.f32 0.0625, %v608_v27  ;;  %v631_v33 = vmul.f32 0.0625, %v611_v30  ;;  %v660_v34 = vmul.f32 %v7390_v23, %v7390_v23  ;;  %v661_v20 = vmul.f32 %v7393_v17, %v7393_v17 }
 0x129   : > { %v7402_v35 = vsub.f32 %v7318_v24, %v630_v32  ;;  %v7405_v21 = vsub.f32 %v7321_v25, %v631_v33  ;;  %v696_v38 = vsel %vm569_vm0, %v660_v34, 0.0  ;;  %v699_v41 = vsel %vm569_vm0, %v661_v20, 0.0  ;;  %v7432_v20 = vld [vmem:[%s11052_s10] ss:$0 sm:$0xff] }
 0x12a   : > { %694 = vadd.xlane.f32.xlu1 %v693_v31  ;;  %697 = vadd.xlane.f32.xlu0 %v696_v38  ;;  %v614_v39 = vpop.xlane.xlu0 %613  ;;  %v617_v40 = vpop.xlane.xlu1 %616 }
 0x12b   : > { %v632_v42 = vmul.f32 0.0625, %v614_v39  ;;  %v633_v43 = vmul.f32 0.0625, %v617_v40  ;;  %v662_v46 = vmul.f32 %v7402_v35, %v7402_v35  ;;  %v663_v24 = vmul.f32 %v7405_v21, %v7405_v21 }
 0x12d   : > { %v7414_v47 = vsub.f32 %v7328_v28, %v632_v42  ;;  %v7417_v25 = vsub.f32 %v7331_v29, %v633_v43  ;;  %v702_v48 = vsel %vm569_vm0, %v662_v46, 0.0  ;;  %v705_v49 = vsel %vm569_vm0, %v663_v24, 0.0  ;;  %v829_v29 = vld [vmem:[#allocation10 + $0x28] sm:$0xff]  ;;  %v7438_v42 = vld [vmem:[%s11053_s11] ss:$0 sm:$0xff] }
 0x12e   : > { %700 = vadd.xlane.f32.xlu1 %v699_v41  ;;  %703 = vadd.xlane.f32.xlu0 %v702_v48 }
 0x12f   : > { %v664_v50 = vmul.f32 %v7414_v47, %v7414_v47  ;;  %v665_v51 = vmul.f32 %v7417_v25, %v7417_v25  ;;  %930 = vmatprep.subr.mxu0 %v829_v29  ;;  %v1345_v29 = vld [vmem:[#allocation12 + $0x1c8] sm:$0xff] }
 0x130   : > { %931 = vmatpush1.msra.mxu0 %v828_v56  ;;  %v1344_v56 = vld [vmem:[#allocation12 + $0x1c0] sm:$0xff] }
 0x131   : > { %v708_v52 = vsel %vm569_vm0, %v664_v50, 0.0  ;;  %v711_v28 = vsel %vm569_vm0, %v665_v51, 0.0  ;;  %932 = vmatprep.subr.mxu0 %v825_v58 }
 0x132   : > { %706 = vadd.xlane.f32.xlu1 %v705_v49  ;;  %709 = vadd.xlane.f32.xlu0 %v708_v52  ;;  %v1348_v52 = vld [vmem:[#allocation12 + $0x1e0] sm:$0xff] }
 0x133   : > { %933 = vmatpush1.msra.mxu0 %v824_v60 }
 0x134   : > { %1491 = vmatprep.subr.mxu0 %v1349_v63 }
 0x136   : > { %712 = vadd.xlane.f32.xlu1 %v711_v28 }
 0x19f   : > { %v668_v3 = vpop.xlane.xlu0 %667 }
 0x1a0   : > { %v714_v4 = vmul.f32 0.0625, %v668_v3  ;;  %v1341_v3 = vld [vmem:[#allocation12 + $0x1a8] sm:$0xff] }
 0x1a2   : > { %v730_v5 = vadd.f32 1e-05, %v714_v4  ;;  %v1347_v4 = vld [vmem:[#allocation12 + $0x1d8] sm:$0xff] }
 0x1a3   : > { %v671_v6 = vpop.xlane.xlu1 %670  ;;  %v674_v7 = vpop.xlane.xlu0 %673 }
 0x1a4   : > { %5748 = vrsqrt.f32 %v730_v5  ;;  %v715_v8 = vmul.f32 0.0625, %v671_v6  ;;  %v716_v9 = vmul.f32 0.0625, %v674_v7  ;;  %v1340_v5 = vld [vmem:[#allocation12 + $0x1a0] sm:$0xff]  ;;  %v1346_v6 = vld [vmem:[#allocation12 + $0x1d0] sm:$0xff] }
 0x1a6   : > { %v731_v12 = vadd.f32 1e-05, %v715_v8  ;;  %v732_v13 = vadd.f32 1e-05, %v716_v9 }
 0x1a7   : > { %v677_v14 = vpop.xlane.xlu1 %676  ;;  %v680_v15 = vpop.xlane.xlu0 %679 }
 0x1a8   : > { %5750 = vrsqrt.f32 %v731_v12  ;;  %v717_v18 = vmul.f32 0.0625, %v677_v14  ;;  %v718_v19 = vmul.f32 0.0625, %v680_v15  ;;  %v1337_v15 = vld [vmem:[#allocation12 + $0x188] sm:$0xff] }
 0x1a9   : > { %5752 = vrsqrt.f32 %v732_v13 }
 0x1aa   : > { %v733_v22 = vadd.f32 1e-05, %v717_v18  ;;  %v734_v16 = vadd.f32 1e-05, %v718_v19  ;;  %v1343_v18 = vld [vmem:[#allocation12 + $0x1b8] sm:$0xff]  ;;  %v1336_v19 = vld [vmem:[#allocation12 + $0x180] sm:$0xff] }
 0x1ab   : > { %v683_v26 = vpop.xlane.xlu1 %682  ;;  %v686_v27 = vpop.xlane.xlu0 %685 }
 0x1ac   : > { %5754 = vrsqrt.f32 %v733_v22  ;;  %v719_v30 = vmul.f32 0.0625, %v683_v26  ;;  %v720_v32 = vmul.f32 0.0625, %v686_v27  ;;  %v1342_v22 = vld [vmem:[#allocation12 + $0x1b0] sm:$0xff] }
 0x1ad   : > { %5756 = vrsqrt.f32 %v734_v16 }
 0x1ae   : > { %v735_v31 = vadd.f32 1e-05, %v719_v30  ;;  %v736_v38 = vadd.f32 1e-05, %v720_v32 }
 0x1af   : > { %v689_v33 = vpop.xlane.xlu1 %688  ;;  %v692_v40 = vpop.xlane.xlu0 %691 }
 0x1b0   : > { %5758 = vrsqrt.f32 %v735_v31  ;;  %v721_v39 = vmul.f32 0.0625, %v689_v33  ;;  %v722_v24 = vmul.f32 0.0625, %v692_v40  ;;  %v1333_v33 = vld [vmem:[#allocation12 + $0x168] sm:$0xff] }
 0x1b1   : > { %v5749_v34 = vpop.eup %5748  ;;  %5760 = vrsqrt.f32 %v736_v38  ;;  %v1332_v38 = vld [vmem:[#allocation12 + $0x160] sm:$0xff] }
 0x1b2   : > { %v762_v41 = vmul.f32 %v5749_v34, %v7337_v36  ;;  %v737_v49 = vadd.f32 1e-05, %v721_v39  ;;  %v738_v59 = vadd.f32 1e-05, %v722_v24  ;;  %v1339_v34 = vld [vmem:[#allocation12 + $0x198] sm:$0xff]  ;;  %v1338_v39 = vld [vmem:[#allocation12 + $0x190] sm:$0xff] }
 0x1b3   : > { %v695_v50 = vpop.xlane.xlu1 %694  ;;  %v698_v61 = vpop.xlane.xlu0 %697 }
 0x1b4   : > { %v785_v43 = vmul.f32 %v7432_v20, %v762_v41  ;;  %v723_v60 = vmul.f32 0.0625, %v695_v50  ;;  %5762 = vrsqrt.f32 %v737_v49  ;;  %v724_v8 = vmul.f32 0.0625, %v698_v61  ;;  %v1329_v49 = vld [vmem:[#allocation12 + $0x148] sm:$0xff]  ;;  %v1335_v50 = vld [vmem:[#allocation12 + $0x178] sm:$0xff]  ;;  %v1330_v61 = vld [vmem:[#allocation12 + $0x150] sm:$0xff] }
 0x1b5   : > { %v5751_v46 = vpop.eup %5750  ;;  %5764 = vrsqrt.f32 %v738_v59  ;;  %v1331_v59 = vld [vmem:[#allocation12 + $0x158] sm:$0xff] }
 0x1b6   : > { %v5753_v48 = vpop.eup %5752  ;;  %v808_v51 = vadd.f32 %v7438_v42, %v785_v43  ;;  %v763_v28 = vmul.f32 %v5751_v46, %v7345_v44  ;;  %v739_v7 = vadd.f32 1e-05, %v723_v60  ;;  %v740_v16 = vadd.f32 1e-05, %v724_v8  ;;  %v1324_v60 = vld [vmem:[#allocation12 + $0x120] sm:$0xff]  ;;  %v1326_v8 = vld [vmem:[#allocation12 + $0x130] sm:$0xff] }
 0x1b7   : > { %v764_v36 = vmul.f32 %v5753_v48, %v7339_v37  ;;  %v701_v14 = vpop.xlane.xlu1 %700 }
 0x1b8   : > { %5411 = vmatmul.mubr.msk.f32.vlgmr.msra.gmra.mxu0 %vm569_vm0, %v808_v51  ;;  %5427 = vmatmul.mubr.msk.f32.vlgmr.msra.gmra.mxu1 %vm569_vm0, %v808_v51  ;;  %v786_v53 = vmul.f32 %v7432_v20, %v763_v28  ;;  %5766 = vrsqrt.f32 %v739_v7  ;;  %v725_v26 = vmul.f32 0.0625, %v701_v14  ;;  %v1328_v51 = vld [vmem:[#allocation12 + $0x140] sm:$0xff] }
 0x1b9   : > { %v5755_v58 = vpop.eup %5754  ;;  %1492 = vmatpush1.msra.mxu0 %v1348_v52  ;;  %972 = vmatprep.mubr.f32.mxu0 %v11064_v62  ;;  %v787_v44 = vmul.f32 %v7432_v20, %v764_v36  ;;  %5768 = vrsqrt.f32 %v740_v16  ;;  %v1334_v52 = vld [vmem:[#allocation12 + $0x170] sm:$0xff]  ;;  %v1320_v7 = vld [vmem:[#allocation12 + $0x100] sm:$0xff] }
 0x1ba   : > { %1133 = vmatprep.mubr.f32.mxu1 %v11064_v62  ;;  %1493 = vmatprep.subr.mxu0 %v1345_v29  ;;  %v809_v37 = vadd.f32 %v7438_v42, %v786_v53  ;;  %v765_v63 = vmul.f32 %v5755_v58, %v7347_v45  ;;  %v5757_v2 = vpop.eup %5756  ;;  %v741_v41 = vadd.f32 1e-05, %v725_v26  ;;  %v1325_v58 = vld [vmem:[#allocation12 + $0x128] sm:$0xff] }
 0x1bb   : > { %1494 = vmatpush1.msra.mxu0 %v1344_v56  ;;  %1569 = vmatpush1.msra.mxu1 %v1350_v57  ;;  %v810_v45 = vadd.f32 %v7438_v42, %v787_v44  ;;  %v766_v12 = vmul.f32 %v5757_v2, %v7355_v54  ;;  %v704_v54 = vpop.xlane.xlu0 %703  ;;  %v707_v43 = vpop.xlane.xlu1 %706 }
 0x1bc   : > { %5412 = vmatmul.mubr.msk.f32.gmra.mxu0 %vm569_vm0, %v809_v37  ;;  %5428 = vmatmul.mubr.msk.f32.gmra.mxu1 %vm569_vm0, %v809_v37  ;;  %v788_v9 = vmul.f32 %v7432_v20, %v765_v63  ;;  %v726_v40 = vmul.f32 0.0625, %v704_v54  ;;  %v727_v29 = vmul.f32 0.0625, %v707_v43  ;;  %5770 = vrsqrt.f32 %v741_v41  ;;  %v1315_v41 = vld [vmem:[#allocation12 + $0xd8] sm:$0xff]  ;;  %v1308_v43 = vld [vmem:[#allocation12 + $0xa0] sm:$0xff] }
 0x1bd   : > { %978 = vmatprep.mubr.f32.mxu0 %v11064_v62  ;;  %1139 = vmatprep.mubr.f32.mxu1 %v11064_v62  ;;  %v5759_v13 = vpop.eup %5758  ;;  %v789_v30 = vmul.f32 %v7432_v20, %v766_v12 }
 0x1be   : > { %1495 = vmatprep.subr.mxu0 %v1341_v3  ;;  %1570 = vmatprep.subr.mxu1 %v1347_v4  ;;  %v811_v27 = vadd.f32 %v7438_v42, %v788_v9  ;;  %v767_v31 = vmul.f32 %v5759_v13, %v7357_v55  ;;  %v5761_v32 = vpop.eup %5760  ;;  %v742_v28 = vadd.f32 1e-05, %v726_v40  ;;  %v743_v37 = vadd.f32 1e-05, %v727_v29  ;;  %v1309_v40 = vld [vmem:[#allocation12 + $0xa8] sm:$0xff] }
 0x1bf   : > { %1496 = vmatpush1.msra.mxu0 %v1340_v5  ;;  %1571 = vmatpush1.msra.mxu1 %v1346_v6  ;;  %v812_v55 = vadd.f32 %v7438_v42, %v789_v30  ;;  %v768_v24 = vmul.f32 %v5761_v32, %v7366_v0  ;;  %v710_v36 = vpop.xlane.xlu0 %709  ;;  %v713_v4 = vpop.xlane.xlu1 %712  ;;  %v1321_v5 = vld [vmem:[#allocation12 + $0x108] sm:$0xff]  ;;  %v1327_v6 = vld [vmem:[#allocation12 + $0x138] sm:$0xff]  ;;  %v1312_v32 = vld [vmem:[#allocation12 + $0xc0] sm:$0xff] }
 0x1c0   : > { %5413 = vmatmul.mubr.msk.f32.gmra.mxu0 %vm569_vm0, %v810_v45  ;;  %5429 = vmatmul.mubr.msk.f32.gmra.mxu1 %vm569_vm0, %v810_v45  ;;  %v790_v46 = vmul.f32 %v7432_v20, %v767_v31  ;;  %v728_v44 = vmul.f32 0.0625, %v710_v36  ;;  %5772 = vrsqrt.f32 %v742_v28  ;;  %v729_v12 = vmul.f32 0.0625, %v713_v4  ;;  %v1313_v30 = vld [vmem:[#allocation12 + $0xc8] sm:$0xff]  ;;  %v1319_v31 = vld [vmem:[#allocation12 + $0xf8] sm:$0xff] }
 0x1c1   : > { %984 = vmatprep.mubr.f32.mxu0 %v11064_v62  ;;  %1145 = vmatprep.mubr.f32.mxu1 %v11064_v62  ;;  %v5763_v48 = vpop.eup %5762  ;;  %v791_v53 = vmul.f32 %v7432_v20, %v768_v24  ;;  %5774 = vrsqrt.f32 %v743_v37  ;;  %v1303_v37 = vld [vmem:[#allocation12 + $0x78] sm:$0xff] }
 0x1c2   : > { %1497 = vmatprep.subr.mxu0 %v1337_v15  ;;  %1572 = vmatprep.subr.mxu1 %v1343_v18  ;;  %v813_v0 = vadd.f32 %v7438_v42, %v790_v46  ;;  %v769_v56 = vmul.f32 %v5763_v48, %v7369_v1  ;;  %v5765_v57 = vpop.eup %5764  ;;  %v744_v45 = vadd.f32 1e-05, %v728_v44  ;;  %v1317_v15 = vld [vmem:[#allocation12 + $0xe8] sm:$0xff]  ;;  %v1323_v18 = vld [vmem:[#allocation12 + $0x118] sm:$0xff]  ;;  %v745_v16 = vadd.f32 1e-05, %v729_v12 }
 0x1c3   : > { %1498 = vmatpush1.msra.mxu0 %v1336_v19  ;;  %1573 = vmatpush1.msra.mxu1 %v1342_v22  ;;  %v814_v1 = vadd.f32 %v7438_v42, %v791_v53  ;;  %v770_v3 = vmul.f32 %v5765_v57, %v7378_v10  ;;  %v1316_v19 = vld [vmem:[#allocation12 + $0xe0] sm:$0xff]  ;;  %v1322_v22 = vld [vmem:[#allocation12 + $0x110] sm:$0xff]  ;;  %v1307_v53 = vld [vmem:[#allocation12 + $0x98] sm:$0xff] }
 0x1c4   : > { %5414 = vmatmul.mubr.msk.f32.gmra.mxu0 %vm569_vm0, %v811_v27  ;;  %5430 = vmatmul.mubr.msk.f32.gmra.mxu1 %vm569_vm0, %v811_v27  ;;  %v792_v2 = vmul.f32 %v7432_v20, %v769_v56  ;;  %5776 = vrsqrt.f32 %v744_v45  ;;  %v1300_v56 = vld [vmem:[#allocation12 + $0x60] sm:$0xff]  ;;  %v1306_v57 = vld [vmem:[#allocation12 + $0x90] sm:$0xff]  ;;  %v1299_v4 = vld [vmem:[#allocation12 + $0x58] sm:$0xff] }
 0x1c5   : > { %990 = vmatprep.mubr.f32.mxu0 %v11064_v62  ;;  %1151 = vmatprep.mubr.f32.mxu1 %v11064_v62  ;;  %v5767_v63 = vpop.eup %5766  ;;  %v793_v13 = vmul.f32 %v7432_v20, %v770_v3  ;;  %5778 = vrsqrt.f32 %v745_v16  ;;  %v1296_v44 = vld [vmem:[#allocation12 + $0x40] sm:$0xff]  ;;  %v1293_v3 = vld [vmem:[#allocation12 + $0x28] sm:$0xff]  ;;  %v1295_v45 = vld [vmem:[#allocation12 + $0x38] sm:$0xff] }
 0x1c6   : > { %1499 = vmatprep.subr.mxu0 %v1333_v33  ;;  %1574 = vmatprep.subr.mxu1 %v1339_v34  ;;  %v5769_v9 = vpop.eup %5768  ;;  %v815_v10 = vadd.f32 %v7438_v42, %v792_v2  ;;  %v771_v14 = vmul.f32 %v5767_v63, %v7381_v11  ;;  %v1318_v33 = vld [vmem:[#allocation12 + $0xf0] sm:$0xff]  ;;  %v1408_v16 = vld [vmem:[#allocation13 + $0x1c0] sm:$0xff] }
 0x1c7   : > { %1500 = vmatpush1.msra.mxu0 %v1332_v38  ;;  %1575 = vmatpush1.msra.mxu1 %v1338_v39  ;;  %v816_v26 = vadd.f32 %v7438_v42, %v793_v13  ;;  %v772_v54 = vmul.f32 %v5769_v9, %v7390_v23  ;;  %v1302_v63 = vld [vmem:[#allocation12 + $0x70] sm:$0xff]  ;;  %v1288_v9 = vld [vmem:[#allocation12] sm:$0xff]  ;;  %v1291_v13 = vld [vmem:[#allocation12 + $0x18] sm:$0xff] }
 0x1c8   : > { %5415 = vmatmul.mubr.msk.f32.gmra.mxu0 %vm569_vm0, %v812_v55  ;;  %5431 = vmatmul.mubr.msk.f32.gmra.mxu1 %vm569_vm0, %v812_v55  ;;  %v794_v11 = vmul.f32 %v7432_v20, %v771_v14  ;;  %v1314_v55 = vld [vmem:[#allocation12 + $0xd0] sm:$0xff]  ;;  %v1415_v14 = vld [vmem:[#allocation13 + $0x1f8] sm:$0xff] }
 0x1c9   : > { %996 = vmatprep.mubr.f32.mxu0 %v11064_v62  ;;  %1157 = vmatprep.mubr.f32.mxu1 %v11064_v62  ;;  %v5771_v27 = vpop.eup %5770  ;;  %v795_v23 = vmul.f32 %v7432_v20, %v772_v54  ;;  %v1294_v12 = vld [vmem:[#allocation12 + $0x30] sm:$0xff]  ;;  %v1407_v54 = vld [vmem:[#allocation13 + $0x1b8] sm:$0xff] }
 0x1ca   : > { %1501 = vmatprep.subr.mxu0 %v1329_v49  ;;  %1576 = vmatprep.subr.mxu1 %v1335_v50  ;;  %v817_v34 = vadd.f32 %v7438_v42, %v794_v11  ;;  %v773_v38 = vmul.f32 %v5771_v27, %v7393_v17  ;;  %v1305_v49 = vld [vmem:[#allocation12 + $0x88] sm:$0xff]  ;;  %v1311_v50 = vld [vmem:[#allocation12 + $0xb8] sm:$0xff]  ;;  %v1404_v27 = vld [vmem:[#allocation13 + $0x1a0] sm:$0xff] }
 0x1cb   : > { %1502 = vmatpush1.msra.mxu0 %v1328_v51  ;;  %1577 = vmatpush1.msra.mxu1 %v1334_v52  ;;  %v818_v24 = vadd.f32 %v7438_v42, %v795_v23  ;;  %v1304_v51 = vld [vmem:[#allocation12 + $0x80] sm:$0xff]  ;;  %v1310_v52 = vld [vmem:[#allocation12 + $0xb0] sm:$0xff]  ;;  %v1405_v11 = vld [vmem:[#allocation13 + $0x1a8] sm:$0xff] }
 0x1cc   : > { %5416 = vmatmul.mubr.msk.f32.gmra.mxu0 %vm569_vm0, %v813_v0  ;;  %5432 = vmatmul.mubr.msk.f32.gmra.mxu1 %vm569_vm0, %v813_v0  ;;  %v796_v17 = vmul.f32 %v7432_v20, %v773_v38  ;;  %v1301_v0 = vld [vmem:[#allocation12 + $0x68] sm:$0xff]  ;;  %v1399_v38 = vld [vmem:[#allocation13 + $0x178] sm:$0xff] }
 0x1cd   : > { %1002 = vmatprep.mubr.f32.mxu0 %v11064_v62  ;;  %1163 = vmatprep.mubr.f32.mxu1 %v11064_v62  ;;  %v5773_v39 = vpop.eup %5772  ;;  %v1397_v23 = vld [vmem:[#allocation13 + $0x168] sm:$0xff] }
 0x1ce   : > { %1503 = vmatprep.subr.mxu0 %v1325_v58  ;;  %1578 = vmatprep.subr.mxu1 %v1331_v59  ;;  %v5775_v46 = vpop.eup %5774  ;;  %v774_v48 = vmul.f32 %v5773_v39, %v7402_v35  ;;  %v819_v29 = vadd.f32 %v7438_v42, %v796_v17  ;;  %v1396_v39 = vld [vmem:[#allocation13 + $0x160] sm:$0xff]  ;;  %v7561_v17 = vld [vmem:[#allocation13 + $0x138] sm:$0xff] }
 0x1cf   : > { %1504 = vmatpush1.msra.mxu0 %v1324_v60  ;;  %1579 = vmatpush1.msra.mxu1 %v1330_v61  ;;  %v775_v36 = vmul.f32 %v5775_v46, %v7405_v21  ;;  %v1297_v61 = vld [vmem:[#allocation12 + $0x48] sm:$0xff]  ;;  %v1394_v46 = vld [vmem:[#allocation13 + $0x150] sm:$0xff] }
 0x1d0   : > { %5417 = vmatmul.mubr.msk.f32.gmra.mxu0 %vm569_vm0, %v814_v1  ;;  %5433 = vmatmul.mubr.msk.f32.gmra.mxu1 %vm569_vm0, %v814_v1  ;;  %v797_v35 = vmul.f32 %v7432_v20, %v774_v48  ;;  %v7565_v48 = vld [vmem:[#allocation13 + $0x120] sm:$0xff] }
 0x1d1   : > { %1008 = vmatprep.mubr.f32.mxu0 %v11064_v62  ;;  %1169 = vmatprep.mubr.f32.mxu1 %v11064_v62  ;;  %v5777_v28 = vpop.eup %5776  ;;  %v798_v21 = vmul.f32 %v7432_v20, %v775_v36  ;;  %v7589_v36 = vld [vmem:[#allocation13 + $0xe0] sm:$0xff] }
 0x1d2   : > { %1505 = vmatprep.subr.mxu0 %v1321_v5  ;;  %1580 = vmatprep.subr.mxu1 %v1327_v6  ;;  %v820_v58 = vadd.f32 %v7438_v42, %v797_v35  ;;  %v776_v59 = vmul.f32 %v5777_v28, %v7414_v47  ;;  %v5779_v60 = vpop.eup %5778  ;;  %v1292_v5 = vld [vmem:[#allocation12 + $0x20] sm:$0xff]  ;;  %v1298_v6 = vld [vmem:[#allocation12 + $0x50] sm:$0xff]  ;;  %v7585_v35 = vld [vmem:[#allocation13 + $0xf8] sm:$0xff] }
 0x1d3   : > { %1506 = vmatpush1.msra.mxu0 %v1320_v7  ;;  %1581 = vmatpush1.msra.mxu1 %v1326_v8  ;;  %v821_v1 = vadd.f32 %v7438_v42, %v798_v21  ;;  %v777_v2 = vmul.f32 %v5779_v60, %v7417_v25  ;;  %v1289_v8 = vld [vmem:[#allocation12 + $0x8] sm:$0xff]  ;;  %v7579_v28 = vld [vmem:[#allocation13 + $0x110] sm:$0xff]  ;;  %v7613_v60 = vld [vmem:[#allocation13 + $0xa0] sm:$0xff] }
 0x1d4   : > { %5418 = vmatmul.mubr.msk.f32.gmra.mxu0 %vm569_vm0, %v815_v10  ;;  %5434 = vmatmul.mubr.msk.f32.gmra.mxu1 %vm569_vm0, %v815_v10  ;;  %v799_v47 = vmul.f32 %v7432_v20, %v776_v59  ;;  %v7607_v21 = vld [vmem:[#allocation13 + $0xa8] sm:$0xff]  ;;  %v7609_v59 = vld [vmem:[#allocation13 + $0xb8] sm:$0xff] }
 0x1d5   : > { %1014 = vmatprep.mubr.f32.mxu0 %v11064_v62  ;;  %1175 = vmatprep.mubr.f32.mxu1 %v11064_v62  ;;  %v800_v25 = vmul.f32 %v7432_v20, %v777_v2  ;;  %v1290_v20 = vld [vmem:[#allocation12 + $0x10] sm:$0xff]  ;;  %v7633_v2 = vld [vmem:[#allocation13 + $0x78] sm:$0xff] }
 0x1d6   : > { %1507 = vmatprep.subr.mxu0 %v1317_v15  ;;  %1582 = vmatprep.subr.mxu1 %v1323_v18  ;;  %v822_v7 = vadd.f32 %v7438_v42, %v799_v47  ;;  %v1412_v15 = vld [vmem:[#allocation13 + $0x1e0] sm:$0xff]  ;;  %v1414_v18 = vld [vmem:[#allocation13 + $0x1f0] sm:$0xff]  ;;  %v7631_v47 = vld [vmem:[#allocation13 + $0x68] sm:$0xff] }
 0x1d7   : > { %1508 = vmatpush1.msra.mxu0 %v1316_v19  ;;  %1583 = vmatpush1.msra.mxu1 %v1322_v22  ;;  %v823_v10 = vadd.f32 %v7438_v42, %v800_v25  ;;  %v1413_v42 = vld [vmem:[#allocation13 + $0x1e8] sm:$0xff]  ;;  %v1411_v22 = vld [vmem:[#allocation13 + $0x1d8] sm:$0xff]  ;;  %v7651_v25 = vld [vmem:[#allocation13 + $0x50] sm:$0xff] }
 0x1d8   : > { %5419 = vmatmul.mubr.msk.f32.gmra.mxu0 %vm569_vm0, %v816_v26  ;;  %5435 = vmatmul.mubr.msk.f32.gmra.mxu1 %vm569_vm0, %v816_v26  ;;  %v1409_v19 = vld [vmem:[#allocation13 + $0x1c8] sm:$0xff]  ;;  %v1410_v26 = vld [vmem:[#allocation13 + $0x1d0] sm:$0xff] }
 0x1d9   : > { %1020 = vmatprep.mubr.f32.mxu0 %v11064_v62  ;;  %1181 = vmatprep.mubr.f32.mxu1 %v11064_v62 }
 0x1da   : > { %1509 = vmatprep.subr.mxu0 %v1313_v30  ;;  %1584 = vmatprep.subr.mxu1 %v1319_v31  ;;  %v1406_v30 = vld [vmem:[#allocation13 + $0x1b0] sm:$0xff]  ;;  %v1401_v31 = vld [vmem:[#allocation13 + $0x188] sm:$0xff] }
 0x1db   : > { %1510 = vmatpush1.msra.mxu0 %v1312_v32  ;;  %1585 = vmatpush1.msra.mxu1 %v1318_v33  ;;  %v1403_v32 = vld [vmem:[#allocation13 + $0x198] sm:$0xff]  ;;  %v1400_v33 = vld [vmem:[#allocation13 + $0x180] sm:$0xff] }
 0x1dc   : > { %5420 = vmatmul.mubr.msk.f32.gmra.mxu0 %vm569_vm0, %v817_v34  ;;  %5436 = vmatmul.mubr.msk.f32.gmra.mxu1 %vm569_vm0, %v817_v34  ;;  %v1402_v34 = vld [vmem:[#allocation13 + $0x190] sm:$0xff] }
 0x1dd   : > { %1026 = vmatprep.mubr.f32.mxu0 %v11064_v62  ;;  %1187 = vmatprep.mubr.f32.mxu1 %v11064_v62 }
 0x1de   : > { %1511 = vmatprep.subr.mxu0 %v1309_v40  ;;  %1586 = vmatprep.subr.mxu1 %v1315_v41  ;;  %v1398_v40 = vld [vmem:[#allocation13 + $0x170] sm:$0xff]  ;;  %v1393_v41 = vld [vmem:[#allocation13 + $0x148] sm:$0xff] }
 0x1df   : > { %1512 = vmatpush1.msra.mxu0 %v1308_v43  ;;  %1587 = vmatpush1.msra.mxu1 %v1314_v55  ;;  %v1395_v43 = vld [vmem:[#allocation13 + $0x158] sm:$0xff]  ;;  %v1392_v55 = vld [vmem:[#allocation13 + $0x140] sm:$0xff] }
 0x1e0   : > { %5421 = vmatmul.mubr.msk.f32.gmra.mxu0 %vm569_vm0, %v818_v24  ;;  %5437 = vmatmul.mubr.msk.f32.gmra.mxu1 %vm569_vm0, %v818_v24  ;;  %v7559_v24 = vld [vmem:[#allocation13 + $0x128] sm:$0xff] }
 0x1e1   : > { %1032 = vmatprep.mubr.f32.mxu0 %v11064_v62  ;;  %1193 = vmatprep.mubr.f32.mxu1 %v11064_v62 }
 0x1e2   : > { %1513 = vmatprep.subr.mxu0 %v1305_v49  ;;  %1588 = vmatprep.subr.mxu1 %v1311_v50  ;;  %v7567_v49 = vld [vmem:[#allocation13 + $0x130] sm:$0xff]  ;;  %v7571_v50 = vld [vmem:[#allocation13 + $0x108] sm:$0xff] }
 0x1e3   : > { %1514 = vmatpush1.msra.mxu0 %v1304_v51  ;;  %1589 = vmatpush1.msra.mxu1 %v1310_v52  ;;  %v7573_v51 = vld [vmem:[#allocation13 + $0x118] sm:$0xff]  ;;  %v7577_v52 = vld [vmem:[#allocation13 + $0x100] sm:$0xff] }
 0x1e4   : > { %5422 = vmatmul.mubr.msk.f32.gmra.mxu0 %vm569_vm0, %v819_v29  ;;  %5438 = vmatmul.mubr.msk.f32.gmra.mxu1 %vm569_vm0, %v819_v29  ;;  %v7583_v29 = vld [vmem:[#allocation13 + $0xe8] sm:$0xff] }
 0x1e5   : > { %1038 = vmatprep.mubr.f32.mxu0 %v11064_v62  ;;  %1199 = vmatprep.mubr.f32.mxu1 %v11064_v62 }
 0x1e6   : > { %1515 = vmatprep.subr.mxu0 %v1301_v0  ;;  %1590 = vmatprep.subr.mxu1 %v1307_v53  ;;  %v7591_v0 = vld [vmem:[#allocation13 + $0xf0] sm:$0xff]  ;;  %v7595_v53 = vld [vmem:[#allocation13 + $0xc8] sm:$0xff] }
 0x1e7   : > { %1516 = vmatpush1.msra.mxu0 %v1300_v56  ;;  %1591 = vmatpush1.msra.mxu1 %v1306_v57  ;;  %v7597_v56 = vld [vmem:[#allocation13 + $0xd8] sm:$0xff]  ;;  %v7601_v57 = vld [vmem:[#allocation13 + $0xc0] sm:$0xff] }
 0x1e8   : > { %5423 = vmatmul.mubr.msk.f32.gmra.mxu0 %vm569_vm0, %v820_v58  ;;  %5439 = vmatmul.mubr.msk.f32.gmra.mxu1 %vm569_vm0, %v820_v58  ;;  %v7603_v58 = vld [vmem:[#allocation13 + $0xd0] sm:$0xff] }
 0x1e9   : > { %1044 = vmatprep.mubr.f32.mxu0 %v11064_v62  ;;  %1205 = vmatprep.mubr.f32.mxu1 %v11064_v62 }
 0x1ea   : > { %1517 = vmatprep.subr.mxu0 %v1297_v61  ;;  %1592 = vmatprep.subr.mxu1 %v1303_v37  ;;  %v7615_v61 = vld [vmem:[#allocation13 + $0xb0] sm:$0xff]  ;;  %v7619_v37 = vld [vmem:[#allocation13 + $0x88] sm:$0xff] }
 0x1eb   : > { %1518 = vmatpush1.msra.mxu0 %v1296_v44  ;;  %1593 = vmatpush1.msra.mxu1 %v1302_v63  ;;  %v7621_v44 = vld [vmem:[#allocation13 + $0x98] sm:$0xff]  ;;  %v7625_v63 = vld [vmem:[#allocation13 + $0x80] sm:$0xff] }
 0x1ec   : > { %5424 = vmatmul.mubr.msk.f32.gmra.mxu0 %vm569_vm0, %v821_v1  ;;  %5440 = vmatmul.mubr.msk.f32.gmra.mxu1 %vm569_vm0, %v821_v1  ;;  %v7627_v1 = vld [vmem:[#allocation13 + $0x90] sm:$0xff] }
 0x1ed   : > { %1050 = vmatprep.mubr.f32.mxu0 %v11064_v62  ;;  %1211 = vmatprep.mubr.f32.mxu1 %v11064_v62 }
 0x1ee   : > { %1519 = vmatprep.subr.mxu0 %v1293_v3  ;;  %1594 = vmatprep.subr.mxu1 %v1299_v4  ;;  %v7637_v3 = vld [vmem:[#allocation13 + $0x60] sm:$0xff]  ;;  %v7639_v4 = vld [vmem:[#allocation13 + $0x70] sm:$0xff] }
 0x1ef   : > { %1520 = vmatpush1.msra.mxu0 %v1292_v5  ;;  %1595 = vmatpush1.msra.mxu1 %v1298_v6  ;;  %v7643_v5 = vld [vmem:[#allocation13 + $0x48] sm:$0xff]  ;;  %v7645_v6 = vld [vmem:[#allocation13 + $0x58] sm:$0xff] }
 0x1f0   : > { %5425 = vmatmul.mubr.msk.f32.gmra.mxu0 %vm569_vm0, %v822_v7  ;;  %5441 = vmatmul.mubr.msk.f32.gmra.mxu1 %vm569_vm0, %v822_v7  ;;  %v7649_v7 = vld [vmem:[#allocation13 + $0x40] sm:$0xff] }
 0x1f1   : > { %1056 = vmatprep.mubr.f32.mxu0 %v11064_v62  ;;  %1217 = vmatprep.mubr.f32.mxu1 %v11064_v62 }
 0x1f2   : > { %1521 = vmatprep.subr.mxu0 %v1289_v8  ;;  %1596 = vmatprep.subr.mxu1 %v1295_v45  ;;  %v7655_v8 = vld [vmem:[#allocation13 + $0x28] sm:$0xff]  ;;  %v7657_v45 = vld [vmem:[#allocation13 + $0x38] sm:$0xff] }
 0x1f3   : > { %1522 = vmatpush1.msra.mxu0 %v1288_v9  ;;  %1597 = vmatpush1.msra.mxu1 %v1294_v12  ;;  %v7661_v9 = vld [vmem:[#allocation13 + $0x20] sm:$0xff]  ;;  %v7663_v12 = vld [vmem:[#allocation13 + $0x30] sm:$0xff] }
 0x1f4   : > { %5426 = vmatmul.mubr.msk.f32.gmra.mxu0 %vm569_vm0, %v823_v10  ;;  %5442 = vmatmul.mubr.msk.f32.gmra.mxu1 %vm569_vm0, %v823_v10  ;;  %v7667_v10 = vld [vmem:[#allocation13 + $0x8] sm:$0xff] }
 0x1f5   : > { %1598 = vmatprep.subr.mxu1 %v1291_v13  ;;  %1555 = vmatprep.mubr.f32.mxu0 %v11064_v62  ;;  %v7669_v13 = vld [vmem:[#allocation13 + $0x18] sm:$0xff] }
 0x1f6   : > { %1599 = vmatpush1.msra.mxu1 %v1290_v20  ;;  %1632 = vmatprep.mubr.f32.mxu1 %v11064_v62  ;;  %11591 = vst [vmem:[#allocation27_spill] sm:$0xff] %v7669_v13  ;;  %v7673_v20 = vld [vmem:[#allocation13] sm:$0xff] }
 0x1f7   : > { %1720 = vmatprep.subr.mxu0 %v1413_v42  ;;  %1797 = vmatprep.subr.mxu1 %v1415_v14  ;;  %11592 = vst [vmem:[#allocation28_spill] sm:$0xff] %v7673_v20  ;;  %v7675_v42 = vld [vmem:[#allocation13 + $0x10] sm:$0xff]  ;;  %v7679_v14 = vld [vmem:[#allocation13 + $0x3e8] sm:$0xff] }
 0x1f8   : > { %1556 = vmatmul.mubr.f32.vlgmr.msra.gmra.mxu0 %v11064_v62  ;;  %1633 = vmatmul.mubr.f32.vlgmr.msra.gmra.mxu1 %v11064_v62  ;;  %11593 = vst [vmem:[#allocation29_spill] sm:$0xff] %v7675_v42  ;;  %11594 = vst [vmem:[#allocation30_spill] sm:$0xff] %v7679_v14 }
 0x1f9   : > { %1561 = vmatprep.mubr.f32.mxu0 %v11064_v62  ;;  %1638 = vmatprep.mubr.f32.mxu1 %v11064_v62 }
 0x1fa   : > { %1721 = vmatpush1.msra.mxu0 %v1412_v15  ;;  %1798 = vmatpush1.msra.mxu1 %v1414_v18  ;;  %v7681_v15 = vld [vmem:[#allocation13 + $0x3f8] sm:$0xff]  ;;  %v7685_v18 = vld [vmem:[#allocation13 + $0x3e0] sm:$0xff] }
 0x1fb   : > { %1722 = vmatprep.subr.mxu0 %v1409_v19  ;;  %1799 = vmatprep.subr.mxu1 %v1411_v22  ;;  %11595 = vst [vmem:[#allocation31_spill] sm:$0xff] %v7681_v15  ;;  %11596 = vst [vmem:[#allocation32_spill] sm:$0xff] %v7685_v18  ;;  %v7687_v19 = vld [vmem:[#allocation13 + $0x3f0] sm:$0xff]  ;;  %v7691_v22 = vld [vmem:[#allocation13 + $0x3c8] sm:$0xff] }
 0x1fc   : > { %1562 = vmatmul.mubr.f32.gmra.mxu0 %v11064_v62  ;;  %1639 = vmatmul.mubr.f32.gmra.mxu1 %v11064_v62  ;;  %11597 = vst [vmem:[#allocation33_spill] sm:$0xff] %v7687_v19  ;;  %11598 = vst [vmem:[#allocation34_spill] sm:$0xff] %v7691_v22 }
 0x1fd   : > { %1784 = vmatprep.mubr.f32.mxu0 %v11064_v62  ;;  %1861 = vmatprep.mubr.f32.mxu1 %v11064_v62  ;;  %v7747_v62 = vld [vmem:[#allocation13 + $0x350] sm:$0xff] }
 0x1fe   : > { %1723 = vmatpush1.msra.mxu0 %v1408_v16  ;;  %1800 = vmatpush1.msra.mxu1 %v1410_v26  ;;  %v7693_v16 = vld [vmem:[#allocation13 + $0x3d8] sm:$0xff]  ;;  %v7697_v26 = vld [vmem:[#allocation13 + $0x3c0] sm:$0xff]  ;;  %11617 = vst [vmem:[#allocation53_spill] sm:$0xff] %v7747_v62 }
 0x1ff   : > { %1724 = vmatprep.subr.mxu0 %v1405_v11  ;;  %1801 = vmatprep.subr.mxu1 %v1407_v54  ;;  %11599 = vst [vmem:[#allocation35_spill] sm:$0xff] %v7693_v16  ;;  %11600 = vst [vmem:[#allocation36_spill] sm:$0xff] %v7697_v26  ;;  %v7699_v11 = vld [vmem:[#allocation13 + $0x3d0] sm:$0xff]  ;;  %v7703_v54 = vld [vmem:[#allocation13 + $0x3a8] sm:$0xff] }
 0x200   : > { %1725 = vmatpush1.msra.mxu0 %v1404_v27  ;;  %1802 = vmatpush1.msra.mxu1 %v1406_v30  ;;  %11601 = vst [vmem:[#allocation37_spill] sm:$0xff] %v7699_v11  ;;  %11602 = vst [vmem:[#allocation38_spill] sm:$0xff] %v7703_v54  ;;  %v7705_v27 = vld [vmem:[#allocation13 + $0x3b8] sm:$0xff]  ;;  %v7709_v30 = vld [vmem:[#allocation13 + $0x3a0] sm:$0xff] }
 0x201   : > { %1726 = vmatprep.subr.mxu0 %v1401_v31  ;;  %1803 = vmatprep.subr.mxu1 %v1403_v32  ;;  %11603 = vst [vmem:[#allocation39_spill] sm:$0xff] %v7705_v27  ;;  %11604 = vst [vmem:[#allocation40_spill] sm:$0xff] %v7709_v30  ;;  %v7711_v31 = vld [vmem:[#allocation13 + $0x3b0] sm:$0xff]  ;;  %v7715_v32 = vld [vmem:[#allocation13 + $0x388] sm:$0xff] }
 0x202   : > { %1727 = vmatpush1.msra.mxu0 %v1400_v33  ;;  %1804 = vmatpush1.msra.mxu1 %v1402_v34  ;;  %11605 = vst [vmem:[#allocation41_spill] sm:$0xff] %v7711_v31  ;;  %11606 = vst [vmem:[#allocation42_spill] sm:$0xff] %v7715_v32  ;;  %v7717_v33 = vld [vmem:[#allocation13 + $0x398] sm:$0xff]  ;;  %v7721_v34 = vld [vmem:[#allocation13 + $0x380] sm:$0xff] }
 0x203   : > { %1728 = vmatprep.subr.mxu0 %v1397_v23  ;;  %1805 = vmatprep.subr.mxu1 %v1399_v38  ;;  %11607 = vst [vmem:[#allocation43_spill] sm:$0xff] %v7717_v33  ;;  %11608 = vst [vmem:[#allocation44_spill] sm:$0xff] %v7721_v34  ;;  %v7723_v23 = vld [vmem:[#allocation13 + $0x390] sm:$0xff]  ;;  %v7727_v38 = vld [vmem:[#allocation13 + $0x368] sm:$0xff] }
 0x204   : > { %1729 = vmatpush1.msra.mxu0 %v1396_v39  ;;  %1806 = vmatpush1.msra.mxu1 %v1398_v40  ;;  %11609 = vst [vmem:[#allocation45_spill] sm:$0xff] %v7723_v23  ;;  %11610 = vst [vmem:[#allocation46_spill] sm:$0xff] %v7727_v38  ;;  %v7729_v39 = vld [vmem:[#allocation13 + $0x378] sm:$0xff]  ;;  %v7733_v40 = vld [vmem:[#allocation13 + $0x360] sm:$0xff] }
 0x205   : > { %1730 = vmatprep.subr.mxu0 %v1393_v41  ;;  %1807 = vmatprep.subr.mxu1 %v1395_v43  ;;  %11611 = vst [vmem:[#allocation47_spill] sm:$0xff] %v7729_v39  ;;  %11612 = vst [vmem:[#allocation48_spill] sm:$0xff] %v7733_v40  ;;  %v7735_v41 = vld [vmem:[#allocation13 + $0x370] sm:$0xff]  ;;  %v7739_v43 = vld [vmem:[#allocation13 + $0x348] sm:$0xff] }
 0x206   : > { %1731 = vmatpush1.msra.mxu0 %v1392_v55  ;;  %1808 = vmatpush1.msra.mxu1 %v1394_v46  ;;  %11613 = vst [vmem:[#allocation49_spill] sm:$0xff] %v7735_v41  ;;  %11614 = vst [vmem:[#allocation50_spill] sm:$0xff] %v7739_v43  ;;  %v7741_v55 = vld [vmem:[#allocation13 + $0x358] sm:$0xff]  ;;  %v7745_v46 = vld [vmem:[#allocation13 + $0x340] sm:$0xff] }
 0x207   : > { %1732 = vmatprep.subr.mxu0 %v7559_v24  ;;  %1809 = vmatprep.subr.mxu1 %v7561_v17  ;;  %11615 = vst [vmem:[#allocation51_spill] sm:$0xff] %v7741_v55  ;;  %11616 = vst [vmem:[#allocation52_spill] sm:$0xff] %v7745_v46 }
 0x208   : > { %1733 = vmatpush1.msra.mxu0 %v7565_v48  ;;  %1810 = vmatpush1.msra.mxu1 %v7567_v49 }
 0x209   : > { %1734 = vmatprep.subr.mxu0 %v7571_v50  ;;  %1811 = vmatprep.subr.mxu1 %v7573_v51 }
 0x20a   : > { %1735 = vmatpush1.msra.mxu0 %v7577_v52  ;;  %1812 = vmatpush1.msra.mxu1 %v7579_v28 }
 0x20b   : > { %1736 = vmatprep.subr.mxu0 %v7583_v29  ;;  %1813 = vmatprep.subr.mxu1 %v7585_v35 }
 0x20c   : > { %1737 = vmatpush1.msra.mxu0 %v7589_v36  ;;  %1814 = vmatpush1.msra.mxu1 %v7591_v0 }
 0x20d   : > { %1738 = vmatprep.subr.mxu0 %v7595_v53  ;;  %1815 = vmatprep.subr.mxu1 %v7597_v56 }
 0x20e   : > { %1739 = vmatpush1.msra.mxu0 %v7601_v57  ;;  %1816 = vmatpush1.msra.mxu1 %v7603_v58 }
 0x20f   : > { %1740 = vmatprep.subr.mxu0 %v7607_v21  ;;  %1817 = vmatprep.subr.mxu1 %v7609_v59 }
 0x210   : > { %1741 = vmatpush1.msra.mxu0 %v7613_v60  ;;  %1818 = vmatpush1.msra.mxu1 %v7615_v61 }
 0x211   : > { %1742 = vmatprep.subr.mxu0 %v7619_v37  ;;  %1819 = vmatprep.subr.mxu1 %v7621_v44 }
 0x212   : > { %1743 = vmatpush1.msra.mxu0 %v7625_v63  ;;  %1820 = vmatpush1.msra.mxu1 %v7627_v1 }
 0x213   : > { %1744 = vmatprep.subr.mxu0 %v7631_v47  ;;  %1821 = vmatprep.subr.mxu1 %v7633_v2 }
 0x214   : > { %1745 = vmatpush1.msra.mxu0 %v7637_v3  ;;  %1822 = vmatpush1.msra.mxu1 %v7639_v4 }
 0x215   : > { %1746 = vmatprep.subr.mxu0 %v7643_v5  ;;  %1823 = vmatprep.subr.mxu1 %v7645_v6 }
 0x216   : > { %1747 = vmatpush1.msra.mxu0 %v7649_v7  ;;  %1824 = vmatpush1.msra.mxu1 %v7651_v25 }
 0x217   : > { %1748 = vmatprep.subr.mxu0 %v7655_v8  ;;  %1825 = vmatprep.subr.mxu1 %v7657_v45 }
 0x218   : > { %1749 = vmatpush1.msra.mxu0 %v7661_v9  ;;  %1826 = vmatpush1.msra.mxu1 %v7663_v12 }
 0x219   : > { %1750 = vmatprep.subr.mxu0 %v7667_v10  ;;  %1827 = vmatprep.subr.mxu1 %v7669_v13 }
 0x21a   : > { %1751 = vmatpush1.msra.mxu0 %v7673_v20  ;;  %1828 = vmatpush1.msra.mxu1 %v7675_v42 }
 0x21b   : > { %1752 = vmatprep.subr.mxu0 %v7679_v14  ;;  %1829 = vmatprep.subr.mxu1 %v7681_v15 }
 0x21c   : > { %1753 = vmatpush2.msra.mxu0 %v7685_v18  ;;  %1830 = vmatpush2.msra.mxu1 %v7687_v19 }
 0x21d   : > { %1754 = vmatprep.subr.mxu0 %v7691_v22  ;;  %1831 = vmatprep.subr.mxu1 %v7693_v16 }
 0x21e   : > { %1755 = vmatpush2.msra.mxu0 %v7697_v26  ;;  %1832 = vmatpush2.msra.mxu1 %v7699_v11 }
 0x21f   : > { %1756 = vmatprep.subr.mxu0 %v7703_v54  ;;  %1833 = vmatprep.subr.mxu1 %v7705_v27 }
 0x220   : > { %1757 = vmatpush2.msra.mxu0 %v7709_v30  ;;  %1834 = vmatpush2.msra.mxu1 %v7711_v31 }
 0x221   : > { %1758 = vmatprep.subr.mxu0 %v7715_v32  ;;  %1835 = vmatprep.subr.mxu1 %v7717_v33 }
 0x222   : > { %1759 = vmatpush2.msra.mxu0 %v7721_v34  ;;  %1836 = vmatpush2.msra.mxu1 %v7723_v23 }
 0x223   : > { %1760 = vmatprep.subr.mxu0 %v7727_v38  ;;  %1837 = vmatprep.subr.mxu1 %v7729_v39  ;;  %v7751_v39 = vld [vmem:[#allocation13 + $0x328] sm:$0xff]  ;;  %v7865_v38 = vld [vmem:[#allocation13 + $0x210] sm:$0xff] }
 0x224   : > { %1761 = vmatpush2.msra.mxu0 %v7733_v40  ;;  %1838 = vmatpush2.msra.mxu1 %v7735_v41  ;;  %11618 = vst [vmem:[#allocation54_spill] sm:$0xff] %v7751_v39  ;;  %v7753_v40 = vld [vmem:[#allocation13 + $0x338] sm:$0xff]  ;;  %v7757_v41 = vld [vmem:[#allocation13 + $0x320] sm:$0xff]  ;;  %11657 = vst [vmem:[#allocation93_spill] sm:$0xff] %v7865_v38 }
 0x225   : > { %1762 = vmatprep.subr.mxu0 %v7739_v43  ;;  %1839 = vmatprep.subr.mxu1 %v7741_v55  ;;  %11619 = vst [vmem:[#allocation55_spill] sm:$0xff] %v7753_v40  ;;  %11620 = vst [vmem:[#allocation56_spill] sm:$0xff] %v7757_v41  ;;  %v7759_v43 = vld [vmem:[#allocation13 + $0x330] sm:$0xff]  ;;  %v7763_v55 = vld [vmem:[#allocation13 + $0x308] sm:$0xff] }
 0x226   : > { %1763 = vmatpush2.msra.mxu0 %v7745_v46  ;;  %1840 = vmatpush2.msra.mxu1 %v7747_v62  ;;  %11621 = vst [vmem:[#allocation57_spill] sm:$0xff] %v7759_v43  ;;  %11622 = vst [vmem:[#allocation58_spill] sm:$0xff] %v7763_v55  ;;  %v7765_v46 = vld [vmem:[#allocation13 + $0x318] sm:$0xff]  ;;  %v7769_v62 = vld [vmem:[#allocation13 + $0x300] sm:$0xff] }
 0x227   : > { %1764 = vmatprep.subr.mxu0 %v7751_v39  ;;  %1841 = vmatprep.subr.mxu1 %v7753_v40  ;;  %11623 = vst [vmem:[#allocation59_spill] sm:$0xff] %v7765_v46  ;;  %11624 = vst [vmem:[#allocation60_spill] sm:$0xff] %v7769_v62  ;;  %v7771_v39 = vld [vmem:[#allocation13 + $0x310] sm:$0xff]  ;;  %v7775_v40 = vld [vmem:[#allocation13 + $0x2e8] sm:$0xff] }
 0x228   : > { %1765 = vmatpush2.msra.mxu0 %v7757_v41  ;;  %1842 = vmatpush2.msra.mxu1 %v7759_v43  ;;  %11625 = vst [vmem:[#allocation61_spill] sm:$0xff] %v7771_v39  ;;  %11626 = vst [vmem:[#allocation62_spill] sm:$0xff] %v7775_v40  ;;  %v7777_v41 = vld [vmem:[#allocation13 + $0x2f8] sm:$0xff]  ;;  %v7781_v43 = vld [vmem:[#allocation13 + $0x2e0] sm:$0xff] }
 0x229   : > { %1766 = vmatprep.subr.mxu0 %v7763_v55  ;;  %1843 = vmatprep.subr.mxu1 %v7765_v46  ;;  %11627 = vst [vmem:[#allocation63_spill] sm:$0xff] %v7777_v41  ;;  %11628 = vst [vmem:[#allocation64_spill] sm:$0xff] %v7781_v43  ;;  %v7783_v55 = vld [vmem:[#allocation13 + $0x2f0] sm:$0xff]  ;;  %v7787_v46 = vld [vmem:[#allocation13 + $0x2c8] sm:$0xff] }
 0x22a   : > { %1767 = vmatpush2.msra.mxu0 %v7769_v62  ;;  %1844 = vmatpush2.msra.mxu1 %v7771_v39  ;;  %11629 = vst [vmem:[#allocation65_spill] sm:$0xff] %v7783_v55  ;;  %11630 = vst [vmem:[#allocation66_spill] sm:$0xff] %v7787_v46  ;;  %v7789_v62 = vld [vmem:[#allocation13 + $0x2d8] sm:$0xff]  ;;  %v7793_v39 = vld [vmem:[#allocation13 + $0x2c0] sm:$0xff] }
 0x22b   : > { %1768 = vmatprep.subr.mxu0 %v7775_v40  ;;  %1845 = vmatprep.subr.mxu1 %v7777_v41  ;;  %11631 = vst [vmem:[#allocation67_spill] sm:$0xff] %v7789_v62  ;;  %11632 = vst [vmem:[#allocation68_spill] sm:$0xff] %v7793_v39  ;;  %v7795_v40 = vld [vmem:[#allocation13 + $0x2d0] sm:$0xff]  ;;  %v7799_v41 = vld [vmem:[#allocation13 + $0x2a8] sm:$0xff] }
 0x22c   : > { %1769 = vmatpush2.msra.mxu0 %v7781_v43  ;;  %1846 = vmatpush2.msra.mxu1 %v7783_v55  ;;  %11633 = vst [vmem:[#allocation69_spill] sm:$0xff] %v7795_v40  ;;  %11634 = vst [vmem:[#allocation70_spill] sm:$0xff] %v7799_v41  ;;  %v7801_v43 = vld [vmem:[#allocation13 + $0x2b8] sm:$0xff]  ;;  %v7805_v55 = vld [vmem:[#allocation13 + $0x2a0] sm:$0xff] }
 0x22d   : > { %1770 = vmatprep.subr.mxu0 %v7787_v46  ;;  %1847 = vmatprep.subr.mxu1 %v7789_v62  ;;  %11635 = vst [vmem:[#allocation71_spill] sm:$0xff] %v7801_v43  ;;  %11636 = vst [vmem:[#allocation72_spill] sm:$0xff] %v7805_v55  ;;  %v7807_v46 = vld [vmem:[#allocation13 + $0x2b0] sm:$0xff]  ;;  %v7811_v62 = vld [vmem:[#allocation13 + $0x288] sm:$0xff] }
 0x22e   : > { %1771 = vmatpush2.msra.mxu0 %v7793_v39  ;;  %1848 = vmatpush2.msra.mxu1 %v7795_v40  ;;  %11637 = vst [vmem:[#allocation73_spill] sm:$0xff] %v7807_v46  ;;  %11638 = vst [vmem:[#allocation74_spill] sm:$0xff] %v7811_v62  ;;  %v7813_v39 = vld [vmem:[#allocation13 + $0x298] sm:$0xff]  ;;  %v7817_v40 = vld [vmem:[#allocation13 + $0x280] sm:$0xff] }
 0x22f   : > { %1772 = vmatprep.subr.mxu0 %v7799_v41  ;;  %1849 = vmatprep.subr.mxu1 %v7801_v43  ;;  %11639 = vst [vmem:[#allocation75_spill] sm:$0xff] %v7813_v39  ;;  %11640 = vst [vmem:[#allocation76_spill] sm:$0xff] %v7817_v40  ;;  %v7819_v41 = vld [vmem:[#allocation13 + $0x290] sm:$0xff]  ;;  %v7823_v43 = vld [vmem:[#allocation13 + $0x268] sm:$0xff] }
 0x230   : > { %1773 = vmatpush2.msra.mxu0 %v7805_v55  ;;  %1850 = vmatpush2.msra.mxu1 %v7807_v46  ;;  %11641 = vst [vmem:[#allocation77_spill] sm:$0xff] %v7819_v41  ;;  %11642 = vst [vmem:[#allocation78_spill] sm:$0xff] %v7823_v43  ;;  %v7825_v55 = vld [vmem:[#allocation13 + $0x278] sm:$0xff]  ;;  %v7829_v46 = vld [vmem:[#allocation13 + $0x260] sm:$0xff] }
 0x231   : > { %1774 = vmatprep.subr.mxu0 %v7811_v62  ;;  %1851 = vmatprep.subr.mxu1 %v7813_v39  ;;  %11643 = vst [vmem:[#allocation79_spill] sm:$0xff] %v7825_v55  ;;  %11644 = vst [vmem:[#allocation80_spill] sm:$0xff] %v7829_v46  ;;  %v7831_v62 = vld [vmem:[#allocation13 + $0x270] sm:$0xff]  ;;  %v7835_v39 = vld [vmem:[#allocation13 + $0x248] sm:$0xff] }
 0x232   : > { %1775 = vmatpush2.msra.mxu0 %v7817_v40  ;;  %1852 = vmatpush2.msra.mxu1 %v7819_v41  ;;  %11645 = vst [vmem:[#allocation81_spill] sm:$0xff] %v7831_v62  ;;  %11646 = vst [vmem:[#allocation82_spill] sm:$0xff] %v7835_v39  ;;  %v7837_v40 = vld [vmem:[#allocation13 + $0x258] sm:$0xff]  ;;  %v7841_v41 = vld [vmem:[#allocation13 + $0x240] sm:$0xff] }
 0x233   : > { %1776 = vmatprep.subr.mxu0 %v7823_v43  ;;  %1853 = vmatprep.subr.mxu1 %v7825_v55  ;;  %11647 = vst [vmem:[#allocation83_spill] sm:$0xff] %v7837_v40  ;;  %11648 = vst [vmem:[#allocation84_spill] sm:$0xff] %v7841_v41  ;;  %v7843_v43 = vld [vmem:[#allocation13 + $0x250] sm:$0xff]  ;;  %v7847_v55 = vld [vmem:[#allocation13 + $0x228] sm:$0xff] }
 0x234   : > { %1777 = vmatpush2.msra.mxu0 %v7829_v46  ;;  %1854 = vmatpush2.msra.mxu1 %v7831_v62  ;;  %11649 = vst [vmem:[#allocation85_spill] sm:$0xff] %v7843_v43  ;;  %11650 = vst [vmem:[#allocation86_spill] sm:$0xff] %v7847_v55  ;;  %v7849_v46 = vld [vmem:[#allocation13 + $0x238] sm:$0xff]  ;;  %v7853_v62 = vld [vmem:[#allocation13 + $0x220] sm:$0xff] }
 0x235   : > { %1778 = vmatprep.subr.mxu0 %v7835_v39  ;;  %1855 = vmatprep.subr.mxu1 %v7837_v40  ;;  %11651 = vst [vmem:[#allocation87_spill] sm:$0xff] %v7849_v46  ;;  %11652 = vst [vmem:[#allocation88_spill] sm:$0xff] %v7853_v62  ;;  %v7855_v39 = vld [vmem:[#allocation13 + $0x230] sm:$0xff]  ;;  %v7857_v40 = vld [vmem:[#allocation13 + $0x208] sm:$0xff] }
 0x236   : > { %1779 = vmatpush2.msra.mxu0 %v7841_v41  ;;  %1856 = vmatpush2.msra.mxu1 %v7843_v43  ;;  %11653 = vst [vmem:[#allocation89_spill] sm:$0xff] %v7855_v39  ;;  %11654 = vst [vmem:[#allocation90_spill] sm:$0xff] %v7857_v40  ;;  %v7861_v41 = vld [vmem:[#allocation13 + $0x218] sm:$0xff]  ;;  %v7863_v43 = vld [vmem:[#allocation13 + $0x200] sm:$0xff] }
 0x237   : > { %1780 = vmatprep.subr.mxu0 %v7847_v55  ;;  %1857 = vmatprep.subr.mxu1 %v7849_v46  ;;  %11655 = vst [vmem:[#allocation91_spill] sm:$0xff] %v7861_v41  ;;  %11656 = vst [vmem:[#allocation92_spill] sm:$0xff] %v7863_v43  ;;  %v7871_v46 = vld [vmem:[#allocation12 + $0x1e8] sm:$0xff] }
 0x238   : > { %1781 = vmatpush2.msra.mxu0 %v7853_v62  ;;  %1858 = vmatpush2.msra.mxu1 %v7855_v39  ;;  %11658 = vst [vmem:[#allocation94_spill] sm:$0xff] %v7871_v46  ;;  %v7874_v62 = vld [vmem:[#allocation12 + $0x1f8] sm:$0xff]  ;;  %v834_v39 = vlaneseq }
 0x239   : > { %1782 = vmatprep.subr.mxu0 %v7857_v40  ;;  %1859 = vmatprep.subr.mxu1 %v7861_v41  ;;  %11659 = vst [vmem:[#allocation95_spill] sm:$0xff] %v7874_v62 }
 0x23a   : > { %1783 = vmatpush2.msra.mxu0 %v7863_v43  ;;  %1860 = vmatpush2.msra.mxu1 %v7865_v38  ;;  %v7877_v55 = vshrl.u32 %v834_v39, 7 }
 0x23b   : > { %1929 = vmatprep.subr.mxu0 %v7871_v46  ;;  %2006 = vmatprep.subr.mxu1 %v7874_v62  ;;  %v832_v46 = vld [vmem:[%s11045_s3] sm:$0xf] }
 0x23c   : > { %11660 = vst [vmem:[#allocation96_spill] sm:$0xff] %v7877_v55  ;;  %v11129_v38 = vsub.s32 0, %v7877_v55  ;;  %v11132_v34 = vsub.s32 2, %v7877_v55  ;;  %v11134_v33 = vsub.s32 1, %v7877_v55  ;;  %v11138_v32 = vsub.s32 3, %v7877_v55 }
 0x23e   : > { %v7904_v27 = vrot.slane %v832_v46, %v11129_v38  ;;  %v7908_v54 = vrot.slane %v832_v46, %v11132_v34  ;;  %v7912_v16 = vrot.slane %v832_v46, %v11134_v33  ;;  %v7916_v22 = vrot.slane %v832_v46, %v11138_v32 }
 0x278   : > { %v7879_v23 = vpop.f32.mrf.mxu0  ;;  %v7881_v40 = vpop.f32.mrf.mxu1 }
 0x27a   : > { %v7883_v41 = vpop.f32.mrf.mxu0  ;;  %v7885_v43 = vpop.f32.mrf.mxu1 }
 0x27c   : > { %v7892_v62 = vpop.f32.mrf.mxu0  ;;  %v7894_v39 = vpop.f32.mrf.mxu1 }
 0x27e   : > { %v7898_v31 = vpop.f32.mrf.mxu0  ;;  %v7900_v30 = vpop.f32.mrf.mxu1 }
 0x280   : > { %v980_v11 = vpop.f32.mrf.mxu0  ;;  %v1141_v26 = vpop.f32.mrf.mxu1 }
 0x281   : > { %v7919_v19 = vadd.f32 %v980_v11, %v7904_v27  ;;  %v7922_v38 = vadd.f32 %v1141_v26, %v7908_v54 }
 0x282   : > { %v982_v18 = vpop.f32.mrf.mxu0  ;;  %v1143_v15 = vpop.f32.mrf.mxu1 }
 0x283   : > { %11661 = vst [vmem:[#allocation97_spill] sm:$0xff] %v7919_v19  ;;  %11662 = vst [vmem:[#allocation98_spill] sm:$0xff] %v7922_v38  ;;  %v7925_v34 = vadd.f32 %v982_v18, %v7912_v16  ;;  %v7928_v14 = vadd.f32 %v1143_v15, %v7916_v22 }
 0x284   : > { %v986_v33 = vpop.f32.mrf.mxu0  ;;  %v1147_v42 = vpop.f32.mrf.mxu1 }
 0x285   : > { %11663 = vst [vmem:[#allocation99_spill] sm:$0xff] %v7925_v34  ;;  %11664 = vst [vmem:[#allocation100_spill] sm:$0xff] %v7928_v14  ;;  %v7931_v55 = vadd.f32 %v986_v33, %v7904_v27  ;;  %v7934_v46 = vadd.f32 %v1147_v42, %v7908_v54 }
 0x286   : > { %v988_v11 = vpop.f32.mrf.mxu0  ;;  %v1149_v32 = vpop.f32.mrf.mxu1 }
 0x287   : > { %11665 = vst [vmem:[#allocation101_spill] sm:$0xff] %v7931_v55  ;;  %11666 = vst [vmem:[#allocation102_spill] sm:$0xff] %v7934_v46  ;;  %v7937_v26 = vadd.f32 %v988_v11, %v7912_v16  ;;  %v7940_v38 = vadd.f32 %v1149_v32, %v7916_v22 }
 0x288   : > { %v992_v18 = vpop.f32.mrf.mxu0  ;;  %v1153_v34 = vpop.f32.mrf.mxu1 }
 0x289   : > { %11667 = vst [vmem:[#allocation103_spill] sm:$0xff] %v7937_v26  ;;  %11668 = vst [vmem:[#allocation104_spill] sm:$0xff] %v7940_v38  ;;  %v7943_v15 = vadd.f32 %v992_v18, %v7904_v27  ;;  %v7946_v14 = vadd.f32 %v1153_v34, %v7908_v54 }
 0x28a   : > { %v994_v33 = vpop.f32.mrf.mxu0  ;;  %v1155_v55 = vpop.f32.mrf.mxu1 }
 0x28b   : > { %11669 = vst [vmem:[#allocation105_spill] sm:$0xff] %v7943_v15  ;;  %11670 = vst [vmem:[#allocation106_spill] sm:$0xff] %v7946_v14  ;;  %v7949_v42 = vadd.f32 %v994_v33, %v7912_v16  ;;  %v7952_v46 = vadd.f32 %v1155_v55, %v7916_v22 }
 0x28c   : > { %v998_v11 = vpop.f32.mrf.mxu0  ;;  %v1159_v26 = vpop.f32.mrf.mxu1 }
 0x28d   : > { %11671 = vst [vmem:[#allocation107_spill] sm:$0xff] %v7949_v42  ;;  %11672 = vst [vmem:[#allocation108_spill] sm:$0xff] %v7952_v46  ;;  %v7955_v32 = vadd.f32 %v998_v11, %v7904_v27  ;;  %v7958_v38 = vadd.f32 %v1159_v26, %v7908_v54 }
 0x28e   : > { %v1000_v18 = vpop.f32.mrf.mxu0  ;;  %v1161_v15 = vpop.f32.mrf.mxu1 }
 0x28f   : > { %11673 = vst [vmem:[#allocation109_spill] sm:$0xff] %v7955_v32  ;;  %11674 = vst [vmem:[#allocation110_spill] sm:$0xff] %v7958_v38  ;;  %v7961_v34 = vadd.f32 %v1000_v18, %v7912_v16  ;;  %v7964_v14 = vadd.f32 %v1161_v15, %v7916_v22 }
 0x290   : > { %v1004_v33 = vpop.f32.mrf.mxu0  ;;  %v1165_v42 = vpop.f32.mrf.mxu1 }
 0x291   : > { %11675 = vst [vmem:[#allocation111_spill] sm:$0xff] %v7961_v34  ;;  %11676 = vst [vmem:[#allocation112_spill] sm:$0xff] %v7964_v14  ;;  %v7967_v55 = vadd.f32 %v1004_v33, %v7904_v27  ;;  %v7970_v46 = vadd.f32 %v1165_v42, %v7908_v54 }
 0x292   : > { %v1006_v11 = vpop.f32.mrf.mxu0  ;;  %v1167_v32 = vpop.f32.mrf.mxu1 }
 0x293   : > { %11677 = vst [vmem:[#allocation113_spill] sm:$0xff] %v7967_v55  ;;  %11678 = vst [vmem:[#allocation114_spill] sm:$0xff] %v7970_v46  ;;  %v7973_v26 = vadd.f32 %v1006_v11, %v7912_v16  ;;  %v7976_v38 = vadd.f32 %v1167_v32, %v7916_v22 }
 0x294   : > { %v1010_v18 = vpop.f32.mrf.mxu0  ;;  %v1171_v34 = vpop.f32.mrf.mxu1 }
 0x295   : > { %11679 = vst [vmem:[#allocation115_spill] sm:$0xff] %v7973_v26  ;;  %11680 = vst [vmem:[#allocation116_spill] sm:$0xff] %v7976_v38  ;;  %v7979_v15 = vadd.f32 %v1010_v18, %v7904_v27  ;;  %v7982_v14 = vadd.f32 %v1171_v34, %v7908_v54 }
 0x296   : > { %v1012_v33 = vpop.f32.mrf.mxu0  ;;  %v1173_v55 = vpop.f32.mrf.mxu1 }
 0x297   : > { %11681 = vst [vmem:[#allocation117_spill] sm:$0xff] %v7979_v15  ;;  %11682 = vst [vmem:[#allocation118_spill] sm:$0xff] %v7982_v14  ;;  %v7985_v42 = vadd.f32 %v1012_v33, %v7912_v16  ;;  %v7988_v46 = vadd.f32 %v1173_v55, %v7916_v22 }
 0x298   : > { %v1016_v11 = vpop.f32.mrf.mxu0  ;;  %v1177_v26 = vpop.f32.mrf.mxu1 }
 0x299   : > { %11683 = vst [vmem:[#allocation119_spill] sm:$0xff] %v7985_v42  ;;  %11684 = vst [vmem:[#allocation120_spill] sm:$0xff] %v7988_v46  ;;  %v7991_v32 = vadd.f32 %v1016_v11, %v7904_v27  ;;  %v7994_v38 = vadd.f32 %v1177_v26, %v7908_v54 }
 0x29a   : > { %v1018_v18 = vpop.f32.mrf.mxu0  ;;  %v1179_v15 = vpop.f32.mrf.mxu1 }
 0x29b   : > { %11685 = vst [vmem:[#allocation121_spill] sm:$0xff] %v7991_v32  ;;  %11686 = vst [vmem:[#allocation122_spill] sm:$0xff] %v7994_v38  ;;  %v7997_v34 = vadd.f32 %v1018_v18, %v7912_v16  ;;  %v8000_v14 = vadd.f32 %v1179_v15, %v7916_v22 }
 0x29c   : > { %v1022_v33 = vpop.f32.mrf.mxu0  ;;  %v1183_v42 = vpop.f32.mrf.mxu1 }
 0x29d   : > { %11687 = vst [vmem:[#allocation123_spill] sm:$0xff] %v7997_v34  ;;  %11688 = vst [vmem:[#allocation124_spill] sm:$0xff] %v8000_v14  ;;  %v8003_v55 = vadd.f32 %v1022_v33, %v7904_v27  ;;  %v8006_v46 = vadd.f32 %v1183_v42, %v7908_v54 }
 0x29e   : > { %v1024_v11 = vpop.f32.mrf.mxu0  ;;  %v1185_v32 = vpop.f32.mrf.mxu1 }
 0x29f   : > { %11689 = vst [vmem:[#allocation125_spill] sm:$0xff] %v8003_v55  ;;  %11690 = vst [vmem:[#allocation126_spill] sm:$0xff] %v8006_v46  ;;  %v8009_v26 = vadd.f32 %v1024_v11, %v7912_v16  ;;  %v8012_v38 = vadd.f32 %v1185_v32, %v7916_v22 }
 0x2a0   : > { %v1028_v18 = vpop.f32.mrf.mxu0  ;;  %v1189_v34 = vpop.f32.mrf.mxu1 }
 0x2a1   : > { %11691 = vst [vmem:[#allocation127_spill] sm:$0xff] %v8009_v26  ;;  %11692 = vst [vmem:[#allocation128_spill] sm:$0xff] %v8012_v38  ;;  %v8015_v15 = vadd.f32 %v1028_v18, %v7904_v27  ;;  %v8018_v14 = vadd.f32 %v1189_v34, %v7908_v54 }
 0x2a2   : > { %v1030_v33 = vpop.f32.mrf.mxu0  ;;  %v1191_v55 = vpop.f32.mrf.mxu1 }
 0x2a3   : > { %11693 = vst [vmem:[#allocation129_spill] sm:$0xff] %v8015_v15  ;;  %11694 = vst [vmem:[#allocation130_spill] sm:$0xff] %v8018_v14  ;;  %v8021_v42 = vadd.f32 %v1030_v33, %v7912_v16  ;;  %v8024_v46 = vadd.f32 %v1191_v55, %v7916_v22 }
 0x2a4   : > { %v1034_v11 = vpop.f32.mrf.mxu0  ;;  %v1195_v26 = vpop.f32.mrf.mxu1 }
 0x2a5   : > { %11695 = vst [vmem:[#allocation131_spill] sm:$0xff] %v8021_v42  ;;  %11696 = vst [vmem:[#allocation132_spill] sm:$0xff] %v8024_v46  ;;  %v8027_v32 = vadd.f32 %v1034_v11, %v7904_v27  ;;  %v8030_v38 = vadd.f32 %v1195_v26, %v7908_v54 }
 0x2a6   : > { %v1036_v18 = vpop.f32.mrf.mxu0  ;;  %v1197_v15 = vpop.f32.mrf.mxu1 }
 0x2a7   : > { %11697 = vst [vmem:[#allocation133_spill] sm:$0xff] %v8027_v32  ;;  %11698 = vst [vmem:[#allocation134_spill] sm:$0xff] %v8030_v38  ;;  %v8033_v34 = vadd.f32 %v1036_v18, %v7912_v16  ;;  %v8036_v14 = vadd.f32 %v1197_v15, %v7916_v22 }
 0x2a8   : > { %v1040_v33 = vpop.f32.mrf.mxu0  ;;  %v1201_v42 = vpop.f32.mrf.mxu1 }
 0x2a9   : > { %11699 = vst [vmem:[#allocation135_spill] sm:$0xff] %v8033_v34  ;;  %11700 = vst [vmem:[#allocation136_spill] sm:$0xff] %v8036_v14  ;;  %v8039_v55 = vadd.f32 %v1040_v33, %v7904_v27  ;;  %v8042_v46 = vadd.f32 %v1201_v42, %v7908_v54 }
 0x2aa   : > { %v1042_v11 = vpop.f32.mrf.mxu0  ;;  %v1203_v32 = vpop.f32.mrf.mxu1 }
 0x2ab   : > { %11701 = vst [vmem:[#allocation137_spill] sm:$0xff] %v8039_v55  ;;  %11702 = vst [vmem:[#allocation138_spill] sm:$0xff] %v8042_v46  ;;  %v8045_v26 = vadd.f32 %v1042_v11, %v7912_v16  ;;  %v8048_v38 = vadd.f32 %v1203_v32, %v7916_v22 }
 0x2ac   : > { %v1046_v18 = vpop.f32.mrf.mxu0  ;;  %v1207_v34 = vpop.f32.mrf.mxu1 }
 0x2ad   : > { %11703 = vst [vmem:[#allocation139_spill] sm:$0xff] %v8045_v26  ;;  %11704 = vst [vmem:[#allocation140_spill] sm:$0xff] %v8048_v38  ;;  %v8051_v15 = vadd.f32 %v1046_v18, %v7904_v27  ;;  %v8054_v14 = vadd.f32 %v1207_v34, %v7908_v54 }
 0x2ae   : > { %v1048_v33 = vpop.f32.mrf.mxu0  ;;  %v1209_v55 = vpop.f32.mrf.mxu1 }
 0x2af   : > { %11705 = vst [vmem:[#allocation141_spill] sm:$0xff] %v8051_v15  ;;  %11706 = vst [vmem:[#allocation142_spill] sm:$0xff] %v8054_v14  ;;  %v8057_v42 = vadd.f32 %v1048_v33, %v7912_v16  ;;  %v8060_v46 = vadd.f32 %v1209_v55, %v7916_v22 }
 0x2b0   : > { %v1052_v11 = vpop.f32.mrf.mxu0  ;;  %v1213_v26 = vpop.f32.mrf.mxu1 }
 0x2b1   : > { %11707 = vst [vmem:[#allocation143_spill] sm:$0xff] %v8057_v42  ;;  %11708 = vst [vmem:[#allocation144_spill] sm:$0xff] %v8060_v46  ;;  %v8063_v32 = vadd.f32 %v1052_v11, %v7904_v27  ;;  %v8066_v38 = vadd.f32 %v1213_v26, %v7908_v54  ;;  %v969_v26 = vadd.f32 %v7879_v23, %v7904_v27 }
 0x2b2   : > { %v1054_v18 = vpop.f32.mrf.mxu0  ;;  %v1215_v15 = vpop.f32.mrf.mxu1  ;;  %v1130_v23 = vadd.f32 %v7881_v40, %v7908_v54  ;;  %v1132_v40 = vadd.f32 %v7885_v43, %v7916_v22 }
 0x2b3   : > { %11709 = vst [vmem:[#allocation145_spill] sm:$0xff] %v8063_v32  ;;  %11710 = vst [vmem:[#allocation146_spill] sm:$0xff] %v8066_v38  ;;  %v8069_v34 = vadd.f32 %v1054_v18, %v7912_v16  ;;  %v8072_v14 = vadd.f32 %v1215_v15, %v7916_v22 }
 0x2b4   : > { %v1058_v33 = vpop.f32.mrf.mxu0  ;;  %v1219_v42 = vpop.f32.mrf.mxu1 }
 0x2b5   : > { %11711 = vst [vmem:[#allocation147_spill] sm:$0xff] %v8069_v34  ;;  %11712 = vst [vmem:[#allocation148_spill] sm:$0xff] %v8072_v14  ;;  %v8075_v55 = vadd.f32 %v1058_v33, %v7904_v27  ;;  %v8078_v46 = vadd.f32 %v1219_v42, %v7908_v54  ;;  %v971_v33 = vadd.f32 %v7883_v41, %v7912_v16 }
 0x2b6   : > { %v1060_v11 = vpop.f32.mrf.mxu0  ;;  %v1221_v32 = vpop.f32.mrf.mxu1 }
 0x2b7   : > { %11713 = vst [vmem:[#allocation149_spill] sm:$0xff] %v8075_v55  ;;  %11714 = vst [vmem:[#allocation150_spill] sm:$0xff] %v8078_v46  ;;  %v8083_v38 = vadd.f32 %v1060_v11, %v7912_v16  ;;  %v8086_v18 = vadd.f32 %v1221_v32, %v7916_v22  ;;  %v975_v46 = vadd.f32 %v7892_v62, %v7904_v27 }
 0x2b8   : > { %v1557_v15 = vpop.f32.mrf.mxu0  ;;  %v1634_v14 = vpop.f32.mrf.mxu1  ;;  %v977_v32 = vadd.f32 %v7898_v31, %v7912_v16 }
 0x2b9   : > { %11715 = vst [vmem:[#allocation151_spill] sm:$0xff] %v8083_v38  ;;  %11716 = vst [vmem:[#allocation152_spill] sm:$0xff] %v8086_v18  ;;  %v1645_v55 = vadd.f32 %v1557_v15, %v969_v26  ;;  %v1647_v13 = vadd.f32 %v1634_v14, %v1130_v23  ;;  %v1136_v15 = vadd.f32 %v7894_v39, %v7908_v54 }
 0x2ba   : > { %v1559_v34 = vpop.f32.mrf.mxu0  ;;  %v1636_v42 = vpop.f32.mrf.mxu1  ;;  %v1138_v14 = vadd.f32 %v7900_v30, %v7916_v22 }
 0x2bb   : > { %v1655_v19 = vmul.f32 0.5, %v1645_v55  ;;  %v1646_v20 = vadd.f32 %v1559_v34, %v971_v33 }
 0x2bc   : > { %v1563_v11 = vpop.f32.mrf.mxu0  ;;  %v1640_v41 = vpop.f32.mrf.mxu1 }
 0x2bd   : > { %5780 = vtanh.f32 %v1655_v19  ;;  %v1663_v18 = vmul.f32 0.5, %v1646_v20  ;;  %v1649_v38 = vadd.f32 %v1563_v11, %v975_v46  ;;  %v1651_v34 = vadd.f32 %v1640_v41, %v1136_v15 }
 0x2be   : > { %v1565_v26 = vpop.f32.mrf.mxu0  ;;  %v1648_v19 = vadd.f32 %v1636_v42, %v1132_v40  ;;  %v1642_v20 = vpop.f32.mrf.mxu1 }
 0x2bf   : > { %5782 = vtanh.f32 %v1663_v18  ;;  %v1656_v62 = vmul.f32 0.5, %v1649_v38  ;;  %v1650_v27 = vadd.f32 %v1565_v26, %v977_v32  ;;  %v1652_v16 = vadd.f32 %v1642_v20, %v1138_v14 }
 0x2c0   : > { %v1673_v31 = vmul.f32 0.5, %v1648_v19 }
 0x2c1   : > { %5784 = vtanh.f32 %v1656_v62  ;;  %v1664_v55 = vmul.f32 0.5, %v1650_v27  ;;  %v1674_v46 = vmul.f32 0.5, %v1652_v16 }
 0x2c2   : > { %5786 = vtanh.f32 %v1647_v13 }
 0x2c3   : > { %5788 = vtanh.f32 %v1664_v55 }
 0x2c4   : > { %5790 = vtanh.f32 %v1651_v34 }
 0x2c5   : > { %5792 = vtanh.f32 %v1673_v31 }
 0x2c6   : > { %5794 = vtanh.f32 %v1674_v46  ;;  %v8112_v46 = vld [vmem:[#allocation12 + $0x1e0] sm:$0xff] }
 0x2ca   : > { %v5781_v54 = vpop.eup %5780 }
 0x2cb   : > { %v1659_v39 = vmul.f32 0.5, %v5781_v54 }
 0x2cc   : > { %v5783_v38 = vpop.eup %5782 }
 0x2cd   : > { %v1661_v18 = vadd.f32 0.5, %v1659_v39  ;;  %v1667_v33 = vmul.f32 0.5, %v5783_v38 }
 0x2ce   : > { %v5785_v13 = vpop.eup %5784 }
 0x2cf   : > { %v5787_v23 = vpop.eup %5786  ;;  %v1669_v11 = vadd.f32 0.5, %v1667_v33  ;;  %v1660_v43 = vmul.f32 0.5, %v5785_v13  ;;  %v8118_v33 = vld [vmem:[#allocation12 + $0x1c8] sm:$0xff]  ;;  %v8121_v13 = vld [vmem:[#allocation12 + $0x1d8] sm:$0xff] }
 0x2d0   : > { %v5789_v32 = vpop.eup %5788  ;;  %v1683_v41 = vmul.f32 %v5787_v23, %v1661_v18  ;;  %v8115_v18 = vld [vmem:[#allocation12 + $0x1f0] sm:$0xff] }
 0x2d1   : > { %v1681_v42 = vmul.f32 0.0, %v1669_v11  ;;  %v1662_v26 = vadd.f32 0.5, %v1660_v43  ;;  %v1668_v15 = vmul.f32 0.5, %v5789_v32  ;;  %v5791_v22 = vpop.eup %5790  ;;  %v8126_v11 = vld [vmem:[#allocation12 + $0x1c0] sm:$0xff]  ;;  %v8129_v43 = vld [vmem:[#allocation12 + $0x1d0] sm:$0xff]  ;;  %v11717_v32 = vmov 0.0  }
 0x2d2   : > { %v5793_v40 = vpop.eup %5792 }
 0x2d3   : > { %v8102_v30 = vadd.f32 %v1683_v41, %v1681_v42  ;;  %v1670_v62 = vadd.f32 0.5, %v1668_v15  ;;  %v1684_v27 = vmul.f32 %v5791_v22, %v1662_v26  ;;  %v5795_v19 = vpop.eup %5794  ;;  %v1677_v20 = vmul.f32 0.5, %v5793_v40  ;;  %v8134_v42 = vld [vmem:[#allocation12 + $0x1a8] sm:$0xff]  ;;  %v8137_v41 = vld [vmem:[#allocation12 + $0x1b8] sm:$0xff]  ;;  %v8142_v26 = vld [vmem:[#allocation12 + $0x1a0] sm:$0xff] }
 0x2d4   : > { %v1678_v16 = vmul.f32 0.5, %v5795_v19  ;;  %v8145_v15 = vld [vmem:[#allocation12 + $0x1b0] sm:$0xff]  ;;  %v8148_v22 = vld [vmem:[#allocation12 + $0x188] sm:$0xff]  ;;  %v8163_v19 = vld [vmem:[#allocation12 + $0x178] sm:$0xff] }
 0x2d5   : > { %5796 = vtanh.f32 %v8102_v30  ;;  %v1682_v34 = vmul.f32 0.0, %v1670_v62  ;;  %v1679_v14 = vadd.f32 0.5, %v1677_v20  ;;  %v8151_v62 = vld [vmem:[#allocation12 + $0x198] sm:$0xff]  ;;  %v8160_v40 = vld [vmem:[#allocation12 + $0x168] sm:$0xff]  ;;  %v8166_v20 = vld [vmem:[#allocation12 + $0x160] sm:$0xff] }
 0x2d6   : > { %v1680_v39 = vadd.f32 0.5, %v1678_v16  ;;  %11718 = vst [vmem:[#allocation153_spill] sm:$0xff] %v8166_v20  ;;  %v8172_v16 = vld [vmem:[#allocation12 + $0x148] sm:$0xff] }
 0x2d7   : > { %v8105_v55 = vadd.f32 %v1684_v27, %v1682_v34  ;;  %v8154_v27 = vld [vmem:[#allocation12 + $0x180] sm:$0xff]  ;;  %v8157_v34 = vld [vmem:[#allocation12 + $0x190] sm:$0xff]  ;;  %11720 = vst [vmem:[#allocation155_spill] sm:$0xff] %v8172_v16 }
 0x2d9   : > { %5798 = vtanh.f32 %v8105_v55 }
 0x2e2   : > { %v5797_v31 = vpop.eup %5796 }
 0x2e3   : > { %v8108_v54 = vmul.f32 %v5797_v31, %v1679_v14  ;;  %v8169_v14 = vld [vmem:[#allocation12 + $0x170] sm:$0xff]  ;;  %v8175_v31 = vld [vmem:[#allocation12 + $0x158] sm:$0xff] }
 0x2e4   : > { %11719 = vst [vmem:[#allocation154_spill] sm:$0xff] %v8169_v14  ;;  %11721 = vst [vmem:[#allocation156_spill] sm:$0xff] %v8175_v31 }
 0x2e5   : > { %1785 = vmatmul.mubr.f32.vlgmr.msra.gmra.mxu0 %v8108_v54  ;;  %1862 = vmatmul.mubr.f32.vlgmr.msra.gmra.mxu1 %v8108_v54 }
 0x2e6   : > { %v5799_v38 = vpop.eup %5798  ;;  %1930 = vmatpush1.msra.mxu0 %v8112_v46  ;;  %2007 = vmatpush1.msra.mxu1 %v8115_v18 }
 0x2e7   : > { %1931 = vmatprep.subr.mxu0 %v8118_v33  ;;  %2008 = vmatprep.subr.mxu1 %v8121_v13  ;;  %v8124_v23 = vmul.f32 %v5799_v38, %v1680_v39  ;;  %v8178_v39 = vld [vmem:[#allocation12 + $0x140] sm:$0xff]  ;;  %v8181_v38 = vld [vmem:[#allocation12 + $0x150] sm:$0xff] }
 0x2e8   : > { %1932 = vmatpush1.msra.mxu0 %v8126_v11  ;;  %2009 = vmatpush1.msra.mxu1 %v8129_v43  ;;  %11722 = vst [vmem:[#allocation157_spill] sm:$0xff] %v8178_v39  ;;  %11723 = vst [vmem:[#allocation158_spill] sm:$0xff] %v8181_v38 }
 0x2e9   : > { %1790 = vmatprep.mubr.f32.mxu0 %v11717_v32  ;;  %1867 = vmatprep.mubr.f32.mxu1 %v11717_v32 }
 0x2ea   : > { %1933 = vmatprep.subr.mxu0 %v8134_v42  ;;  %2010 = vmatprep.subr.mxu1 %v8137_v41 }
 0x2eb   : > { %1791 = vmatmul.mubr.f32.gmra.mxu0 %v8124_v23  ;;  %1868 = vmatmul.mubr.f32.gmra.mxu1 %v8124_v23 }
 0x2ec   : > { %1934 = vmatpush1.msra.mxu0 %v8142_v26  ;;  %2011 = vmatpush1.msra.mxu1 %v8145_v15 }
 0x2ed   : > { %1935 = vmatprep.subr.mxu0 %v8148_v22  ;;  %2012 = vmatprep.subr.mxu1 %v8151_v62 }
 0x2ee   : > { %1936 = vmatpush1.msra.mxu0 %v8154_v27  ;;  %2013 = vmatpush1.msra.mxu1 %v8157_v34 }
 0x2ef   : > { %1937 = vmatprep.subr.mxu0 %v8160_v40  ;;  %2014 = vmatprep.subr.mxu1 %v8163_v19 }
 0x2f0   : > { %1938 = vmatpush1.msra.mxu0 %v8166_v20  ;;  %2015 = vmatpush1.msra.mxu1 %v8169_v14  ;;  %v8184_v20 = vld [vmem:[#allocation12 + $0x128] sm:$0xff]  ;;  %v8187_v14 = vld [vmem:[#allocation12 + $0x138] sm:$0xff] }
 0x2f1   : > { %1939 = vmatprep.subr.mxu0 %v8172_v16  ;;  %2016 = vmatprep.subr.mxu1 %v8175_v31  ;;  %11724 = vst [vmem:[#allocation159_spill] sm:$0xff] %v8184_v20  ;;  %11725 = vst [vmem:[#allocation160_spill] sm:$0xff] %v8187_v14  ;;  %v8190_v16 = vld [vmem:[#allocation12 + $0x120] sm:$0xff]  ;;  %v8193_v31 = vld [vmem:[#allocation12 + $0x130] sm:$0xff] }
 0x2f2   : > { %1940 = vmatpush1.msra.mxu0 %v8178_v39  ;;  %2017 = vmatpush1.msra.mxu1 %v8181_v38  ;;  %11726 = vst [vmem:[#allocation161_spill] sm:$0xff] %v8190_v16  ;;  %11727 = vst [vmem:[#allocation162_spill] sm:$0xff] %v8193_v31  ;;  %v8196_v39 = vld [vmem:[#allocation12 + $0x108] sm:$0xff]  ;;  %v8199_v38 = vld [vmem:[#allocation12 + $0x118] sm:$0xff] }
 0x2f3   : > { %1941 = vmatprep.subr.mxu0 %v8184_v20  ;;  %2018 = vmatprep.subr.mxu1 %v8187_v14  ;;  %11728 = vst [vmem:[#allocation163_spill] sm:$0xff] %v8196_v39  ;;  %11729 = vst [vmem:[#allocation164_spill] sm:$0xff] %v8199_v38  ;;  %v8202_v20 = vld [vmem:[#allocation12 + $0x100] sm:$0xff]  ;;  %v8205_v14 = vld [vmem:[#allocation12 + $0x110] sm:$0xff] }
 0x2f4   : > { %1942 = vmatpush1.msra.mxu0 %v8190_v16  ;;  %2019 = vmatpush1.msra.mxu1 %v8193_v31  ;;  %11730 = vst [vmem:[#allocation165_spill] sm:$0xff] %v8202_v20  ;;  %11731 = vst [vmem:[#allocation166_spill] sm:$0xff] %v8205_v14  ;;  %v8208_v16 = vld [vmem:[#allocation12 + $0xe8] sm:$0xff]  ;;  %v8211_v31 = vld [vmem:[#allocation12 + $0xf8] sm:$0xff] }
 0x2f5   : > { %1943 = vmatprep.subr.mxu0 %v8196_v39  ;;  %2020 = vmatprep.subr.mxu1 %v8199_v38  ;;  %11732 = vst [vmem:[#allocation167_spill] sm:$0xff] %v8208_v16  ;;  %11733 = vst [vmem:[#allocation168_spill] sm:$0xff] %v8211_v31  ;;  %v8214_v39 = vld [vmem:[#allocation12 + $0xe0] sm:$0xff]  ;;  %v8217_v38 = vld [vmem:[#allocation12 + $0xf0] sm:$0xff] }
 0x2f6   : > { %1944 = vmatpush1.msra.mxu0 %v8202_v20  ;;  %2021 = vmatpush1.msra.mxu1 %v8205_v14  ;;  %11734 = vst [vmem:[#allocation169_spill] sm:$0xff] %v8214_v39  ;;  %11735 = vst [vmem:[#allocation170_spill] sm:$0xff] %v8217_v38  ;;  %v8220_v20 = vld [vmem:[#allocation12 + $0xc8] sm:$0xff]  ;;  %v8223_v14 = vld [vmem:[#allocation12 + $0xd8] sm:$0xff] }
 0x2f7   : > { %1945 = vmatprep.subr.mxu0 %v8208_v16  ;;  %2022 = vmatprep.subr.mxu1 %v8211_v31  ;;  %11736 = vst [vmem:[#allocation171_spill] sm:$0xff] %v8220_v20  ;;  %11737 = vst [vmem:[#allocation172_spill] sm:$0xff] %v8223_v14  ;;  %v8226_v16 = vld [vmem:[#allocation12 + $0xc0] sm:$0xff]  ;;  %v8229_v31 = vld [vmem:[#allocation12 + $0xd0] sm:$0xff] }
 0x2f8   : > { %1946 = vmatpush1.msra.mxu0 %v8214_v39  ;;  %2023 = vmatpush1.msra.mxu1 %v8217_v38  ;;  %11738 = vst [vmem:[#allocation173_spill] sm:$0xff] %v8226_v16  ;;  %11739 = vst [vmem:[#allocation174_spill] sm:$0xff] %v8229_v31  ;;  %v8232_v39 = vld [vmem:[#allocation12 + $0xa8] sm:$0xff]  ;;  %v8235_v38 = vld [vmem:[#allocation12 + $0xb8] sm:$0xff] }
 0x2f9   : > { %1947 = vmatprep.subr.mxu0 %v8220_v20  ;;  %2024 = vmatprep.subr.mxu1 %v8223_v14  ;;  %11740 = vst [vmem:[#allocation175_spill] sm:$0xff] %v8232_v39  ;;  %11741 = vst [vmem:[#allocation176_spill] sm:$0xff] %v8235_v38  ;;  %v8238_v20 = vld [vmem:[#allocation12 + $0xa0] sm:$0xff]  ;;  %v8241_v14 = vld [vmem:[#allocation12 + $0xb0] sm:$0xff] }
 0x2fa   : > { %1948 = vmatpush1.msra.mxu0 %v8226_v16  ;;  %2025 = vmatpush1.msra.mxu1 %v8229_v31  ;;  %11742 = vst [vmem:[#allocation177_spill] sm:$0xff] %v8238_v20  ;;  %11743 = vst [vmem:[#allocation178_spill] sm:$0xff] %v8241_v14  ;;  %v8244_v16 = vld [vmem:[#allocation12 + $0x88] sm:$0xff]  ;;  %v8247_v31 = vld [vmem:[#allocation12 + $0x98] sm:$0xff] }
 0x2fb   : > { %1949 = vmatprep.subr.mxu0 %v8232_v39  ;;  %2026 = vmatprep.subr.mxu1 %v8235_v38  ;;  %11744 = vst [vmem:[#allocation179_spill] sm:$0xff] %v8244_v16  ;;  %11745 = vst [vmem:[#allocation180_spill] sm:$0xff] %v8247_v31  ;;  %v8250_v39 = vld [vmem:[#allocation12 + $0x80] sm:$0xff]  ;;  %v8253_v38 = vld [vmem:[#allocation12 + $0x90] sm:$0xff] }
 0x2fc   : > { %1950 = vmatpush1.msra.mxu0 %v8238_v20  ;;  %2027 = vmatpush1.msra.mxu1 %v8241_v14  ;;  %11746 = vst [vmem:[#allocation181_spill] sm:$0xff] %v8250_v39  ;;  %11747 = vst [vmem:[#allocation182_spill] sm:$0xff] %v8253_v38  ;;  %v8256_v20 = vld [vmem:[#allocation12 + $0x68] sm:$0xff]  ;;  %v8259_v14 = vld [vmem:[#allocation12 + $0x78] sm:$0xff] }
 0x2fd   : > { %1951 = vmatprep.subr.mxu0 %v8244_v16  ;;  %2028 = vmatprep.subr.mxu1 %v8247_v31  ;;  %11748 = vst [vmem:[#allocation183_spill] sm:$0xff] %v8256_v20  ;;  %11749 = vst [vmem:[#allocation184_spill] sm:$0xff] %v8259_v14  ;;  %v8262_v16 = vld [vmem:[#allocation12 + $0x60] sm:$0xff]  ;;  %v8265_v31 = vld [vmem:[#allocation12 + $0x70] sm:$0xff] }
 0x2fe   : > { %1952 = vmatpush1.msra.mxu0 %v8250_v39  ;;  %2029 = vmatpush1.msra.mxu1 %v8253_v38  ;;  %11750 = vst [vmem:[#allocation185_spill] sm:$0xff] %v8262_v16  ;;  %11751 = vst [vmem:[#allocation186_spill] sm:$0xff] %v8265_v31  ;;  %v8268_v39 = vld [vmem:[#allocation12 + $0x48] sm:$0xff]  ;;  %v8271_v38 = vld [vmem:[#allocation12 + $0x58] sm:$0xff] }
 0x2ff   : > { %1953 = vmatprep.subr.mxu0 %v8256_v20  ;;  %2030 = vmatprep.subr.mxu1 %v8259_v14  ;;  %11752 = vst [vmem:[#allocation187_spill] sm:$0xff] %v8268_v39  ;;  %11753 = vst [vmem:[#allocation188_spill] sm:$0xff] %v8271_v38  ;;  %v8274_v20 = vld [vmem:[#allocation12 + $0x40] sm:$0xff]  ;;  %v8277_v14 = vld [vmem:[#allocation12 + $0x50] sm:$0xff] }
 0x300   : > { %1954 = vmatpush1.msra.mxu0 %v8262_v16  ;;  %2031 = vmatpush1.msra.mxu1 %v8265_v31  ;;  %11754 = vst [vmem:[#allocation189_spill] sm:$0xff] %v8274_v20  ;;  %11755 = vst [vmem:[#allocation190_spill] sm:$0xff] %v8277_v14  ;;  %v8280_v16 = vld [vmem:[#allocation12 + $0x28] sm:$0xff]  ;;  %v8283_v31 = vld [vmem:[#allocation12 + $0x38] sm:$0xff] }
 0x301   : > { %1955 = vmatprep.subr.mxu0 %v8268_v39  ;;  %2032 = vmatprep.subr.mxu1 %v8271_v38  ;;  %11756 = vst [vmem:[#allocation191_spill] sm:$0xff] %v8280_v16  ;;  %11757 = vst [vmem:[#allocation192_spill] sm:$0xff] %v8283_v31  ;;  %v8286_v39 = vld [vmem:[#allocation12 + $0x20] sm:$0xff]  ;;  %v8289_v38 = vld [vmem:[#allocation12 + $0x30] sm:$0xff] }
 0x302   : > { %1956 = vmatpush1.msra.mxu0 %v8274_v20  ;;  %2033 = vmatpush1.msra.mxu1 %v8277_v14  ;;  %v8292_v20 = vld [vmem:[#allocation12 + $0x8] sm:$0xff]  ;;  %v8295_v14 = vld [vmem:[#allocation12 + $0x18] sm:$0xff] }
 0x303   : > { %1957 = vmatprep.subr.mxu0 %v8280_v16  ;;  %2034 = vmatprep.subr.mxu1 %v8283_v31  ;;  %11758 = vst [vmem:[#allocation193_spill] sm:$0xff] %v8292_v20  ;;  %11759 = vst [vmem:[#allocation194_spill] sm:$0xff] %v8295_v14  ;;  %v8298_v16 = vld [vmem:[#allocation12] sm:$0xff]  ;;  %v8302_v31 = vld [vmem:[#allocation12 + $0x10] sm:$0xff] }
 0x304   : > { %1958 = vmatpush1.msra.mxu0 %v8286_v39  ;;  %2035 = vmatpush1.msra.mxu1 %v8289_v38  ;;  %11760 = vst [vmem:[#allocation195_spill] sm:$0xff] %v8298_v16  ;;  %11761 = vst [vmem:[#allocation196_spill] sm:$0xff] %v8302_v31 }
 0x305   : > { %1959 = vmatprep.subr.mxu0 %v8292_v20  ;;  %2036 = vmatprep.subr.mxu1 %v8295_v14  ;;  %v8310_v14 = vld [vmem:[#allocation13 + $0x1e8] sm:$0xff]  ;;  %v8316_v20 = vld [vmem:[#allocation13 + $0x1e0] sm:$0xff] }
 0x306   : > { %1960 = vmatpush1.msra.mxu0 %v8298_v16  ;;  %1993 = vmatprep.mubr.f32.mxu0 %v11717_v32  ;;  %11762 = vst [vmem:[#allocation197_spill] sm:$0xff] %v8310_v14  ;;  %v8313_v16 = vld [vmem:[#allocation13 + $0x1f8] sm:$0xff]  ;;  %11764 = vst [vmem:[#allocation199_spill] sm:$0xff] %v8316_v20 }
 0x307   : > { %2037 = vmatpush1.msra.mxu1 %v8302_v31  ;;  %2070 = vmatprep.mubr.f32.mxu1 %v11717_v32  ;;  %11763 = vst [vmem:[#allocation198_spill] sm:$0xff] %v8313_v16  ;;  %v8319_v31 = vld [vmem:[#allocation13 + $0x1f0] sm:$0xff] }
 0x308   : > { %1994 = vmatmul.mubr.f32.vlgmr.msra.gmra.mxu0 %v8108_v54  ;;  %2071 = vmatmul.mubr.f32.vlgmr.msra.gmra.mxu1 %v8108_v54  ;;  %11765 = vst [vmem:[#allocation200_spill] sm:$0xff] %v8319_v31  ;;  %v8324_v54 = vld [vmem:[#allocation13 + $0x1c8] sm:$0xff] }
 0x309   : > { %1999 = vmatprep.mubr.f32.mxu0 %v11717_v32  ;;  %2076 = vmatprep.mubr.f32.mxu1 %v11717_v32  ;;  %11766 = vst [vmem:[#allocation201_spill] sm:$0xff] %v8324_v54 }
 0x30a   : > { %2137 = vmatprep.subr.mxu0 %v8310_v14  ;;  %2214 = vmatprep.subr.mxu1 %v8313_v16  ;;  %v8327_v14 = vld [vmem:[#allocation13 + $0x1d8] sm:$0xff]  ;;  %v8330_v16 = vld [vmem:[#allocation13 + $0x1c0] sm:$0xff] }
 0x30b   : > { %2138 = vmatpush1.msra.mxu0 %v8316_v20  ;;  %2215 = vmatpush1.msra.mxu1 %v8319_v31  ;;  %11767 = vst [vmem:[#allocation202_spill] sm:$0xff] %v8327_v14  ;;  %11768 = vst [vmem:[#allocation203_spill] sm:$0xff] %v8330_v16  ;;  %v8333_v20 = vld [vmem:[#allocation13 + $0x1d0] sm:$0xff]  ;;  %v8336_v31 = vld [vmem:[#allocation13 + $0x1a8] sm:$0xff] }
 0x30c   : > { %2000 = vmatmul.mubr.f32.gmra.mxu0 %v8124_v23  ;;  %2077 = vmatmul.mubr.f32.gmra.mxu1 %v8124_v23  ;;  %11769 = vst [vmem:[#allocation204_spill] sm:$0xff] %v8333_v20  ;;  %11770 = vst [vmem:[#allocation205_spill] sm:$0xff] %v8336_v31  ;;  %v8339_v23 = vld [vmem:[#allocation13 + $0x1b8] sm:$0xff] }
 0x30d   : > { %2139 = vmatprep.subr.mxu0 %v8324_v54  ;;  %2216 = vmatprep.subr.mxu1 %v8327_v14  ;;  %11771 = vst [vmem:[#allocation206_spill] sm:$0xff] %v8339_v23  ;;  %v8342_v54 = vld [vmem:[#allocation13 + $0x1a0] sm:$0xff]  ;;  %v8345_v14 = vld [vmem:[#allocation13 + $0x1b0] sm:$0xff] }
 0x30e   : > { %2140 = vmatpush1.msra.mxu0 %v8330_v16  ;;  %2217 = vmatpush1.msra.mxu1 %v8333_v20  ;;  %11772 = vst [vmem:[#allocation207_spill] sm:$0xff] %v8342_v54  ;;  %11773 = vst [vmem:[#allocation208_spill] sm:$0xff] %v8345_v14  ;;  %v8348_v16 = vld [vmem:[#allocation13 + $0x188] sm:$0xff]  ;;  %v8351_v20 = vld [vmem:[#allocation13 + $0x198] sm:$0xff] }
 0x30f   : > { %2141 = vmatprep.subr.mxu0 %v8336_v31  ;;  %2218 = vmatprep.subr.mxu1 %v8339_v23  ;;  %11774 = vst [vmem:[#allocation209_spill] sm:$0xff] %v8348_v16  ;;  %11775 = vst [vmem:[#allocation210_spill] sm:$0xff] %v8351_v20  ;;  %v8354_v31 = vld [vmem:[#allocation13 + $0x180] sm:$0xff]  ;;  %v8357_v23 = vld [vmem:[#allocation13 + $0x190] sm:$0xff] }
 0x310   : > { %2142 = vmatpush1.msra.mxu0 %v8342_v54  ;;  %2219 = vmatpush1.msra.mxu1 %v8345_v14  ;;  %11776 = vst [vmem:[#allocation211_spill] sm:$0xff] %v8354_v31  ;;  %11777 = vst [vmem:[#allocation212_spill] sm:$0xff] %v8357_v23  ;;  %v8360_v54 = vld [vmem:[#allocation13 + $0x168] sm:$0xff]  ;;  %v8363_v14 = vld [vmem:[#allocation13 + $0x178] sm:$0xff] }
 0x311   : > { %2143 = vmatprep.subr.mxu0 %v8348_v16  ;;  %2220 = vmatprep.subr.mxu1 %v8351_v20  ;;  %11778 = vst [vmem:[#allocation213_spill] sm:$0xff] %v8360_v54  ;;  %11779 = vst [vmem:[#allocation214_spill] sm:$0xff] %v8363_v14  ;;  %v8366_v16 = vld [vmem:[#allocation13 + $0x160] sm:$0xff]  ;;  %v8369_v20 = vld [vmem:[#allocation13 + $0x170] sm:$0xff] }
 0x312   : > { %2144 = vmatpush1.msra.mxu0 %v8354_v31  ;;  %2221 = vmatpush1.msra.mxu1 %v8357_v23  ;;  %v8372_v31 = vld [vmem:[#allocation13 + $0x148] sm:$0xff]  ;;  %v8375_v23 = vld [vmem:[#allocation13 + $0x158] sm:$0xff] }
 0x313   : > { %2145 = vmatprep.subr.mxu0 %v8360_v54  ;;  %2222 = vmatprep.subr.mxu1 %v8363_v14  ;;  %v8378_v54 = vld [vmem:[#allocation13 + $0x140] sm:$0xff]  ;;  %v8381_v14 = vld [vmem:[#allocation13 + $0x150] sm:$0xff] }
 0x314   : > { %2146 = vmatpush1.msra.mxu0 %v8366_v16  ;;  %2223 = vmatpush1.msra.mxu1 %v8369_v20 }
 0x315   : > { %2147 = vmatprep.subr.mxu0 %v8372_v31  ;;  %2224 = vmatprep.subr.mxu1 %v8375_v23 }
 0x316   : > { %2148 = vmatpush1.msra.mxu0 %v8378_v54  ;;  %2225 = vmatpush1.msra.mxu1 %v8381_v14 }
 0x317   : > { %2149 = vmatprep.subr.mxu0 %v7559_v24  ;;  %2226 = vmatprep.subr.mxu1 %v7561_v17  ;;  %v11780_v24 = vld [vmem:[#allocation27_spill] sm:$0xff]  ;;  %v11781_v17 = vld [vmem:[#allocation28_spill] sm:$0xff] }
 0x318   : > { %2150 = vmatpush1.msra.mxu0 %v7565_v48  ;;  %2227 = vmatpush1.msra.mxu1 %v7567_v49  ;;  %v11782_v48 = vld [vmem:[#allocation29_spill] sm:$0xff]  ;;  %v11783_v49 = vld [vmem:[#allocation30_spill] sm:$0xff] }
 0x319   : > { %2151 = vmatprep.subr.mxu0 %v7571_v50  ;;  %2228 = vmatprep.subr.mxu1 %v7573_v51  ;;  %v11784_v50 = vld [vmem:[#allocation31_spill] sm:$0xff]  ;;  %v11785_v51 = vld [vmem:[#allocation32_spill] sm:$0xff] }
 0x31a   : > { %2152 = vmatpush1.msra.mxu0 %v7577_v52  ;;  %2229 = vmatpush1.msra.mxu1 %v7579_v28  ;;  %v11786_v52 = vld [vmem:[#allocation33_spill] sm:$0xff]  ;;  %v11787_v28 = vld [vmem:[#allocation34_spill] sm:$0xff] }
 0x31b   : > { %2153 = vmatprep.subr.mxu0 %v7583_v29  ;;  %2230 = vmatprep.subr.mxu1 %v7585_v35  ;;  %v11788_v29 = vld [vmem:[#allocation35_spill] sm:$0xff]  ;;  %v11789_v35 = vld [vmem:[#allocation36_spill] sm:$0xff] }
 0x31c   : > { %2154 = vmatpush1.msra.mxu0 %v7589_v36  ;;  %2231 = vmatpush1.msra.mxu1 %v7591_v0  ;;  %v11790_v36 = vld [vmem:[#allocation37_spill] sm:$0xff]  ;;  %v11791_v0 = vld [vmem:[#allocation38_spill] sm:$0xff] }
 0x31d   : > { %2155 = vmatprep.subr.mxu0 %v7595_v53  ;;  %2232 = vmatprep.subr.mxu1 %v7597_v56  ;;  %v11792_v53 = vld [vmem:[#allocation39_spill] sm:$0xff]  ;;  %v11793_v56 = vld [vmem:[#allocation40_spill] sm:$0xff] }
 0x31e   : > { %2156 = vmatpush1.msra.mxu0 %v7601_v57  ;;  %2233 = vmatpush1.msra.mxu1 %v7603_v58  ;;  %v11794_v57 = vld [vmem:[#allocation41_spill] sm:$0xff]  ;;  %v11795_v58 = vld [vmem:[#allocation42_spill] sm:$0xff] }
 0x31f   : > { %2157 = vmatprep.subr.mxu0 %v7607_v21  ;;  %2234 = vmatprep.subr.mxu1 %v7609_v59  ;;  %v11796_v21 = vld [vmem:[#allocation43_spill] sm:$0xff]  ;;  %v11797_v59 = vld [vmem:[#allocation44_spill] sm:$0xff] }
 0x320   : > { %2158 = vmatpush1.msra.mxu0 %v7613_v60  ;;  %2235 = vmatpush1.msra.mxu1 %v7615_v61  ;;  %v11798_v60 = vld [vmem:[#allocation45_spill] sm:$0xff]  ;;  %v11799_v61 = vld [vmem:[#allocation46_spill] sm:$0xff] }
 0x321   : > { %2159 = vmatprep.subr.mxu0 %v7619_v37  ;;  %2236 = vmatprep.subr.mxu1 %v7621_v44  ;;  %v11800_v37 = vld [vmem:[#allocation47_spill] sm:$0xff]  ;;  %v11801_v44 = vld [vmem:[#allocation48_spill] sm:$0xff] }
 0x322   : > { %2160 = vmatpush1.msra.mxu0 %v7625_v63  ;;  %2237 = vmatpush1.msra.mxu1 %v7627_v1  ;;  %v11802_v63 = vld [vmem:[#allocation49_spill] sm:$0xff]  ;;  %v11803_v1 = vld [vmem:[#allocation50_spill] sm:$0xff] }
 0x323   : > { %2161 = vmatprep.subr.mxu0 %v7631_v47  ;;  %2238 = vmatprep.subr.mxu1 %v7633_v2  ;;  %v11804_v47 = vld [vmem:[#allocation51_spill] sm:$0xff]  ;;  %v11805_v2 = vld [vmem:[#allocation52_spill] sm:$0xff] }
 0x324   : > { %2162 = vmatpush1.msra.mxu0 %v7637_v3  ;;  %2239 = vmatpush1.msra.mxu1 %v7639_v4  ;;  %v11806_v3 = vld [vmem:[#allocation53_spill] sm:$0xff]  ;;  %v11807_v4 = vld [vmem:[#allocation54_spill] sm:$0xff] }
 0x325   : > { %2163 = vmatprep.subr.mxu0 %v7643_v5  ;;  %2240 = vmatprep.subr.mxu1 %v7645_v6  ;;  %v11808_v5 = vld [vmem:[#allocation55_spill] sm:$0xff]  ;;  %v11809_v6 = vld [vmem:[#allocation56_spill] sm:$0xff] }
 0x326   : > { %2164 = vmatpush1.msra.mxu0 %v7649_v7  ;;  %2241 = vmatpush1.msra.mxu1 %v7651_v25  ;;  %v11810_v7 = vld [vmem:[#allocation57_spill] sm:$0xff]  ;;  %v11811_v25 = vld [vmem:[#allocation58_spill] sm:$0xff] }
 0x327   : > { %2165 = vmatprep.subr.mxu0 %v7655_v8  ;;  %2242 = vmatprep.subr.mxu1 %v7657_v45  ;;  %v11812_v8 = vld [vmem:[#allocation59_spill] sm:$0xff]  ;;  %v11813_v45 = vld [vmem:[#allocation60_spill] sm:$0xff] }
 0x328   : > { %2166 = vmatpush1.msra.mxu0 %v7661_v9  ;;  %2243 = vmatpush1.msra.mxu1 %v7663_v12  ;;  %v11814_v9 = vld [vmem:[#allocation61_spill] sm:$0xff]  ;;  %v11815_v12 = vld [vmem:[#allocation62_spill] sm:$0xff] }
 0x329   : > { %2167 = vmatprep.subr.mxu0 %v7667_v10  ;;  %2244 = vmatprep.subr.mxu1 %v11780_v24  ;;  %v11816_v10 = vld [vmem:[#allocation63_spill] sm:$0xff]  ;;  %v11817_v24 = vld [vmem:[#allocation64_spill] sm:$0xff] }
 0x32a   : > { %2168 = vmatpush1.msra.mxu0 %v11781_v17  ;;  %2245 = vmatpush1.msra.mxu1 %v11782_v48  ;;  %v11818_v17 = vld [vmem:[#allocation65_spill] sm:$0xff]  ;;  %v11819_v48 = vld [vmem:[#allocation66_spill] sm:$0xff] }
 0x32b   : > { %2169 = vmatprep.subr.mxu0 %v11783_v49  ;;  %2246 = vmatprep.subr.mxu1 %v11784_v50  ;;  %v11820_v49 = vld [vmem:[#allocation67_spill] sm:$0xff]  ;;  %v11821_v50 = vld [vmem:[#allocation68_spill] sm:$0xff] }
 0x32c   : > { %2170 = vmatpush2.msra.mxu0 %v11785_v51  ;;  %2247 = vmatpush2.msra.mxu1 %v11786_v52  ;;  %v11822_v51 = vld [vmem:[#allocation69_spill] sm:$0xff]  ;;  %v11823_v52 = vld [vmem:[#allocation70_spill] sm:$0xff] }
 0x32d   : > { %2171 = vmatprep.subr.mxu0 %v11787_v28  ;;  %2248 = vmatprep.subr.mxu1 %v11788_v29  ;;  %v11824_v28 = vld [vmem:[#allocation71_spill] sm:$0xff]  ;;  %v11825_v29 = vld [vmem:[#allocation72_spill] sm:$0xff] }
 0x32e   : > { %2172 = vmatpush2.msra.mxu0 %v11789_v35  ;;  %2249 = vmatpush2.msra.mxu1 %v11790_v36  ;;  %v11826_v35 = vld [vmem:[#allocation73_spill] sm:$0xff]  ;;  %v11827_v36 = vld [vmem:[#allocation74_spill] sm:$0xff] }
 0x32f   : > { %2173 = vmatprep.subr.mxu0 %v11791_v0  ;;  %2250 = vmatprep.subr.mxu1 %v11792_v53  ;;  %v11828_v0 = vld [vmem:[#allocation75_spill] sm:$0xff]  ;;  %v11829_v53 = vld [vmem:[#allocation76_spill] sm:$0xff] }
 0x330   : > { %2174 = vmatpush2.msra.mxu0 %v11793_v56  ;;  %2251 = vmatpush2.msra.mxu1 %v11794_v57  ;;  %v11830_v56 = vld [vmem:[#allocation77_spill] sm:$0xff]  ;;  %v11831_v57 = vld [vmem:[#allocation78_spill] sm:$0xff] }
 0x331   : > { %2175 = vmatprep.subr.mxu0 %v11795_v58  ;;  %2252 = vmatprep.subr.mxu1 %v11796_v21  ;;  %v11832_v58 = vld [vmem:[#allocation79_spill] sm:$0xff]  ;;  %v11833_v21 = vld [vmem:[#allocation80_spill] sm:$0xff] }
 0x332   : > { %2176 = vmatpush2.msra.mxu0 %v11797_v59  ;;  %2253 = vmatpush2.msra.mxu1 %v11798_v60  ;;  %v11834_v59 = vld [vmem:[#allocation81_spill] sm:$0xff]  ;;  %v11835_v60 = vld [vmem:[#allocation82_spill] sm:$0xff] }
 0x333   : > { %2177 = vmatprep.subr.mxu0 %v11799_v61  ;;  %2254 = vmatprep.subr.mxu1 %v11800_v37  ;;  %v11836_v61 = vld [vmem:[#allocation83_spill] sm:$0xff]  ;;  %v11837_v37 = vld [vmem:[#allocation84_spill] sm:$0xff] }
 0x334   : > { %2178 = vmatpush2.msra.mxu0 %v11801_v44  ;;  %2255 = vmatpush2.msra.mxu1 %v11802_v63  ;;  %v11838_v44 = vld [vmem:[#allocation85_spill] sm:$0xff]  ;;  %v11839_v63 = vld [vmem:[#allocation86_spill] sm:$0xff] }
 0x335   : > { %2179 = vmatprep.subr.mxu0 %v11803_v1  ;;  %2256 = vmatprep.subr.mxu1 %v11804_v47  ;;  %v11840_v1 = vld [vmem:[#allocation87_spill] sm:$0xff]  ;;  %v11841_v47 = vld [vmem:[#allocation88_spill] sm:$0xff] }
 0x336   : > { %2180 = vmatpush2.msra.mxu0 %v11805_v2  ;;  %2257 = vmatpush2.msra.mxu1 %v11806_v3  ;;  %v11842_v2 = vld [vmem:[#allocation89_spill] sm:$0xff]  ;;  %v11843_v3 = vld [vmem:[#allocation90_spill] sm:$0xff] }
 0x337   : > { %2181 = vmatprep.subr.mxu0 %v11807_v4  ;;  %2258 = vmatprep.subr.mxu1 %v11808_v5  ;;  %v11844_v4 = vld [vmem:[#allocation91_spill] sm:$0xff]  ;;  %v11845_v5 = vld [vmem:[#allocation92_spill] sm:$0xff] }
 0x338   : > { %2182 = vmatpush2.msra.mxu0 %v11809_v6  ;;  %2259 = vmatpush2.msra.mxu1 %v11810_v7  ;;  %v11846_v6 = vld [vmem:[#allocation93_spill] sm:$0xff]  ;;  %v11847_v7 = vld [vmem:[#allocation94_spill] sm:$0xff] }
 0x339   : > { %2183 = vmatprep.subr.mxu0 %v11811_v25  ;;  %2260 = vmatprep.subr.mxu1 %v11812_v8  ;;  %v11848_v25 = vld [vmem:[#allocation95_spill] sm:$0xff] }
 0x33a   : > { %2184 = vmatpush2.msra.mxu0 %v11813_v45  ;;  %2261 = vmatpush2.msra.mxu1 %v11814_v9  ;;  %v1480_v8 = vld [vmem:[%s11047_s5] sm:$0xf]  ;;  %v11849_v45 = vld [vmem:[#allocation96_spill] sm:$0xff] }
 0x33b   : > { %2185 = vmatprep.subr.mxu0 %v11815_v12  ;;  %2262 = vmatprep.subr.mxu1 %v11816_v10  ;;  %v11850_v9 = vsub.s32 0, %v11849_v45  ;;  %v11852_v10 = vsub.s32 1, %v11849_v45 }
 0x33c   : > { %2186 = vmatpush2.msra.mxu0 %v11817_v24  ;;  %2263 = vmatpush2.msra.mxu1 %v11818_v17 }
 0x33d   : > { %2187 = vmatprep.subr.mxu0 %v11819_v48  ;;  %2264 = vmatprep.subr.mxu1 %v11820_v49  ;;  %v8495_v12 = vrot.slane %v1480_v8, %v11850_v9  ;;  %v8499_v24 = vrot.slane %v1480_v8, %v11852_v10 }
 0x33e   : > { %2188 = vmatpush2.msra.mxu0 %v11821_v50  ;;  %2265 = vmatpush2.msra.mxu1 %v11822_v51  ;;  %v11854_v51 = vsub.s32 2, %v11849_v45 }
 0x33f   : > { %2189 = vmatprep.subr.mxu0 %v11823_v52  ;;  %2266 = vmatprep.subr.mxu1 %v11824_v28  ;;  %11851 = vst [vmem:[#allocation27_spill] sm:$0xff] %v8495_v12  ;;  %11853 = vst [vmem:[#allocation28_spill] sm:$0xff] %v8499_v24 }
 0x340   : > { %2190 = vmatpush2.msra.mxu0 %v11825_v29  ;;  %2267 = vmatpush2.msra.mxu1 %v11826_v35  ;;  %v8504_v52 = vrot.slane %v1480_v8, %v11854_v51 }
 0x341   : > { %2191 = vmatprep.subr.mxu0 %v11827_v36  ;;  %2268 = vmatprep.subr.mxu1 %v11828_v0  ;;  %v11855_v0 = vsub.s32 3, %v11849_v45 }
 0x342   : > { %2192 = vmatpush2.msra.mxu0 %v11829_v53  ;;  %2269 = vmatpush2.msra.mxu1 %v11830_v56 }
 0x343   : > { %2193 = vmatprep.subr.mxu0 %v11831_v57  ;;  %2270 = vmatprep.subr.mxu1 %v11832_v58  ;;  %v8510_v53 = vrot.slane %v1480_v8, %v11855_v0 }
 0x344   : > { %2194 = vmatpush2.msra.mxu0 %v11833_v21  ;;  %2271 = vmatpush2.msra.mxu1 %v11834_v59 }
 0x345   : > { %2195 = vmatprep.subr.mxu0 %v11835_v60  ;;  %2272 = vmatprep.subr.mxu1 %v11836_v61 }
 0x346   : > { %2196 = vmatpush2.msra.mxu0 %v11837_v37  ;;  %2273 = vmatpush2.msra.mxu1 %v11838_v44 }
 0x347   : > { %2197 = vmatprep.subr.mxu0 %v11839_v63  ;;  %2274 = vmatprep.subr.mxu1 %v11840_v1 }
 0x348   : > { %2198 = vmatpush2.msra.mxu0 %v11841_v47  ;;  %2275 = vmatpush2.msra.mxu1 %v11842_v2 }
 0x349   : > { %2199 = vmatprep.subr.mxu0 %v11843_v3  ;;  %2276 = vmatprep.subr.mxu1 %v11844_v4 }
 0x34a   : > { %2200 = vmatpush2.msra.mxu0 %v11845_v5  ;;  %2277 = vmatpush2.msra.mxu1 %v11846_v6 }
 0x34b   : > { %2347 = vmatprep.subr.mxu0 %v11847_v7  ;;  %2424 = vmatprep.subr.mxu1 %v11848_v25 }
 0x3a5   : > { %v1786_v17 = vpop.f32.mrf.mxu0  ;;  %v1863_v29 = vpop.f32.mrf.mxu1 }
 0x3a6   : > { %v1787_v48 = vadd.f32 %v1786_v17, %v8495_v12  ;;  %v1864_v36 = vadd.f32 %v1863_v29, %v8504_v52 }
 0x3a7   : > { %v1788_v49 = vpop.f32.mrf.mxu0  ;;  %v1865_v56 = vpop.f32.mrf.mxu1 }
 0x3a8   : > { %v1876_v50 = vmul.f32 0.5, %v1787_v48  ;;  %v1789_v28 = vadd.f32 %v1788_v49, %v8499_v24  ;;  %v1866_v57 = vadd.f32 %v1865_v56, %v8510_v53  ;;  %v11856_v48 = vld [vmem:[#allocation97_spill] sm:$0xff]  ;;  %v11858_v56 = vld [vmem:[#allocation98_spill] sm:$0xff] }
 0x3aa   : > { %5800 = vtanh.f32 %v1876_v50  ;;  %v1884_v35 = vmul.f32 0.5, %v1789_v28  ;;  %v1894_v21 = vmul.f32 0.5, %v1866_v57 }
 0x3ab   : > { %v1792_v58 = vpop.f32.mrf.mxu0  ;;  %v1869_v8 = vpop.f32.mrf.mxu1 }
 0x3ac   : > { %5802 = vtanh.f32 %v1884_v35  ;;  %v1793_v5 = vadd.f32 %v1792_v58, %v8495_v12  ;;  %v1870_v51 = vadd.f32 %v1869_v8, %v8504_v52 }
 0x3ad   : > { %5804 = vtanh.f32 %v1864_v36  ;;  %v1794_v37 = vpop.f32.mrf.mxu0  ;;  %v1871_v45 = vpop.f32.mrf.mxu1  ;;  %v11857_v36 = vld [vmem:[#allocation99_spill] sm:$0xff] }
 0x3ae   : > { %5806 = vtanh.f32 %v1894_v21  ;;  %v1795_v47 = vadd.f32 %v1794_v37, %v8499_v24  ;;  %v1877_v25 = vmul.f32 0.5, %v1793_v5  ;;  %v11862_v5 = vld [vmem:[#allocation102_spill] sm:$0xff] }
 0x3b0   : > { %v1885_v7 = vmul.f32 0.5, %v1795_v47  ;;  %v11860_v47 = vld [vmem:[#allocation103_spill] sm:$0xff] }
 0x3b7   : > { %v5801_v59 = vpop.eup %5800 }
 0x3b8   : > { %v1880_v60 = vmul.f32 0.5, %v5801_v59  ;;  %v11859_v59 = vld [vmem:[#allocation101_spill] sm:$0xff] }
 0x3b9   : > { %v5803_v61 = vpop.eup %5802 }
 0x3ba   : > { %v1882_v44 = vadd.f32 0.5, %v1880_v60  ;;  %v1888_v63 = vmul.f32 0.5, %v5803_v61  ;;  %v5805_v2 = vpop.eup %5804 }
 0x3bb   : > { %v5807_v9 = vpop.eup %5806 }
 0x3bc   : > { %v1890_v1 = vadd.f32 0.5, %v1888_v63  ;;  %v1904_v4 = vmul.f32 %v5805_v2, %v1882_v44  ;;  %v1898_v50 = vmul.f32 0.5, %v5807_v9 }
 0x3be   : > { %v1902_v3 = vmul.f32 0.0, %v1890_v1  ;;  %v1900_v61 = vadd.f32 0.5, %v1898_v50  ;;  %v1872_v50 = vadd.f32 %v1871_v45, %v8510_v53 }
 0x3c0   : > { %v8515_v6 = vadd.f32 %v1904_v4, %v1902_v3 }
 0x3c2   : > { %5808 = vtanh.f32 %v8515_v6 }
 0x3c3   : > { %5810 = vtanh.f32 %v1885_v7 }
 0x3c4   : > { %5812 = vtanh.f32 %v1877_v25 }
 0x3c8   : > { %v1995_v10 = vpop.f32.mrf.mxu0  ;;  %v2072_v17 = vpop.f32.mrf.mxu1 }
 0x3c9   : > { %v2083_v49 = vadd.f32 %v1995_v10, %v11856_v48  ;;  %v2085_v57 = vadd.f32 %v2072_v17, %v11858_v56  ;;  %v11863_v10 = vld [vmem:[#allocation100_spill] sm:$0xff] }
 0x3ca   : > { %v1997_v28 = vpop.f32.mrf.mxu0  ;;  %v2074_v29 = vpop.f32.mrf.mxu1 }
 0x3cb   : > { %v2093_v35 = vmul.f32 0.5, %v2083_v49  ;;  %v2084_v0 = vadd.f32 %v1997_v28, %v11857_v36  ;;  %v2086_v17 = vadd.f32 %v2074_v29, %v11863_v10 }
 0x3cc   : > { %v2001_v58 = vpop.f32.mrf.mxu0  ;;  %v2078_v37 = vpop.f32.mrf.mxu1 }
 0x3cd   : > { %5814 = vtanh.f32 %v2093_v35  ;;  %v2101_v21 = vmul.f32 0.5, %v2084_v0  ;;  %v2087_v60 = vadd.f32 %v2001_v58, %v11859_v59  ;;  %v2089_v7 = vadd.f32 %v2078_v37, %v11862_v5  ;;  %v11864_v35 = vld [vmem:[#allocation104_spill] sm:$0xff] }
 0x3ce   : > { %5816 = vtanh.f32 %v1870_v51  ;;  %v2003_v44 = vpop.f32.mrf.mxu0  ;;  %v2080_v49 = vpop.f32.mrf.mxu1  ;;  %v2111_v28 = vmul.f32 0.5, %v2086_v17  ;;  %v1895_v58 = vmul.f32 0.5, %v1872_v50 }
 0x3cf   : > { %v5809_v63 = vpop.eup %5808  ;;  %5818 = vtanh.f32 %v2101_v21  ;;  %v2094_v1 = vmul.f32 0.5, %v2087_v60  ;;  %v2088_v2 = vadd.f32 %v2003_v44, %v11860_v47  ;;  %v2090_v36 = vadd.f32 %v2080_v49, %v11864_v35 }
 0x3d0   : > { %5820 = vtanh.f32 %v2085_v57  ;;  %v8524_v3 = vmul.f32 %v5809_v63, %v1900_v61  ;;  %v5811_v4 = vpop.eup %5810 }
 0x3d1   : > { %5822 = vtanh.f32 %v2094_v1  ;;  %v2102_v25 = vmul.f32 0.5, %v2088_v2  ;;  %v5813_v8 = vpop.eup %5812  ;;  %v1889_v9 = vmul.f32 0.5, %v5811_v4  ;;  %v2112_v29 = vmul.f32 0.5, %v2090_v36 }
 0x3d2   : > { %11861 = vst [vmem:[#allocation29_spill] sm:$0xff] %v8524_v3  ;;  %2201 = vmatprep.mubr.f32.mxu0 %v8524_v3  ;;  %2278 = vmatprep.mubr.f32.mxu1 %v8524_v3  ;;  %v1881_v48 = vmul.f32 0.5, %v5813_v8  ;;  %v8811_v3 = vld [vmem:[#allocation13 + $0x380] sm:$0xff] }
 0x3d3   : > { %5824 = vtanh.f32 %v2102_v25  ;;  %v1891_v51 = vadd.f32 0.5, %v1889_v9  ;;  %11947 = vst [vmem:[#allocation50_spill] sm:$0xff] %v8811_v3 }
 0x3d4   : > { %5826 = vtanh.f32 %v2089_v7  ;;  %v1883_v56 = vadd.f32 0.5, %v1881_v48 }
 0x3d5   : > { %v1903_v60 = vmul.f32 0.0, %v1891_v51  ;;  %5828 = vtanh.f32 %v2111_v28 }
 0x3d6   : > { %5830 = vtanh.f32 %v1895_v58 }
 0x3d7   : > { %5832 = vtanh.f32 %v2112_v29  ;;  %v11883_v29 = vld [vmem:[#allocation170_spill] sm:$0xff] }
 0x3da   : > { %v5815_v0 = vpop.eup %5814 }
 0x3db   : > { %v5817_v57 = vpop.eup %5816  ;;  %v2097_v21 = vmul.f32 0.5, %v5815_v0 }
 0x3dc   : > { %v5819_v59 = vpop.eup %5818  ;;  %v1905_v1 = vmul.f32 %v5817_v57, %v1883_v56 }
 0x3dd   : > { %v5821_v61 = vpop.eup %5820  ;;  %v2099_v37 = vadd.f32 0.5, %v2097_v21  ;;  %v2105_v44 = vmul.f32 0.5, %v5819_v59 }
 0x3de   : > { %v5823_v63 = vpop.eup %5822  ;;  %v8532_v5 = vadd.f32 %v1905_v1, %v1903_v60  ;;  %v11885_v1 = vld [vmem:[#allocation172_spill] sm:$0xff] }
 0x3df   : > { %v2107_v45 = vadd.f32 0.5, %v2105_v44  ;;  %v2121_v47 = vmul.f32 %v5821_v61, %v2099_v37  ;;  %v2098_v2 = vmul.f32 0.5, %v5823_v63  ;;  %v11882_v44 = vld [vmem:[#allocation169_spill] sm:$0xff]  ;;  %v11884_v63 = vld [vmem:[#allocation171_spill] sm:$0xff] }
 0x3e0   : > { %v5825_v4 = vpop.eup %5824  ;;  %5834 = vtanh.f32 %v8532_v5 }
 0x3e1   : > { %v2119_v7 = vmul.f32 %v2107_v45, %v8102_v30  ;;  %v2100_v25 = vadd.f32 0.5, %v2098_v2  ;;  %v2106_v8 = vmul.f32 0.5, %v5825_v4  ;;  %v5827_v9 = vpop.eup %5826  ;;  %v11886_v45 = vld [vmem:[#allocation173_spill] sm:$0xff]  ;;  %v11888_v2 = vld [vmem:[#allocation175_spill] sm:$0xff]  ;;  %v11889_v4 = vld [vmem:[#allocation176_spill] sm:$0xff] }
 0x3e2   : > { %v5829_v51 = vpop.eup %5828 }
 0x3e3   : > { %v8535_v10 = vadd.f32 %v2121_v47, %v2119_v7  ;;  %v2108_v17 = vadd.f32 0.5, %v2106_v8  ;;  %v2122_v48 = vmul.f32 %v5827_v9, %v2100_v25  ;;  %v5831_v30 = vpop.eup %5830  ;;  %v2115_v28 = vmul.f32 0.5, %v5829_v51  ;;  %v11887_v47 = vld [vmem:[#allocation174_spill] sm:$0xff]  ;;  %v11890_v7 = vld [vmem:[#allocation177_spill] sm:$0xff]  ;;  %v11892_v8 = vld [vmem:[#allocation179_spill] sm:$0xff] }
 0x3e4   : > { %v5833_v35 = vpop.eup %5832  ;;  %v1899_v36 = vmul.f32 0.5, %v5831_v30  ;;  %v11891_v25 = vld [vmem:[#allocation178_spill] sm:$0xff]  ;;  %v11893_v9 = vld [vmem:[#allocation180_spill] sm:$0xff]  ;;  %v11898_v30 = vld [vmem:[#allocation185_spill] sm:$0xff] }
 0x3e5   : > { %5836 = vtanh.f32 %v8535_v10  ;;  %v2120_v49 = vmul.f32 %v2108_v17, %v8105_v55  ;;  %v2117_v56 = vadd.f32 0.5, %v2115_v28  ;;  %v2116_v57 = vmul.f32 0.5, %v5833_v35  ;;  %v11894_v17 = vld [vmem:[#allocation181_spill] sm:$0xff]  ;;  %v11897_v51 = vld [vmem:[#allocation184_spill] sm:$0xff]  ;;  %v11899_v28 = vld [vmem:[#allocation186_spill] sm:$0xff] }
 0x3e6   : > { %v1901_v21 = vadd.f32 0.5, %v1899_v36  ;;  %v11900_v35 = vld [vmem:[#allocation187_spill] sm:$0xff]  ;;  %v11901_v36 = vld [vmem:[#allocation188_spill] sm:$0xff] }
 0x3e7   : > { %v8540_v50 = vadd.f32 %v2122_v48, %v2120_v49  ;;  %v2118_v60 = vadd.f32 0.5, %v2116_v57  ;;  %v11895_v48 = vld [vmem:[#allocation182_spill] sm:$0xff]  ;;  %v11896_v49 = vld [vmem:[#allocation183_spill] sm:$0xff] }
 0x3e8   : > { %v11904_v57 = vld [vmem:[#allocation191_spill] sm:$0xff] }
 0x3e9   : > { %5838 = vtanh.f32 %v8540_v50 }
 0x3ed   : > { %v5835_v0 = vpop.eup %5834 }
 0x3ee   : > { %v8547_v55 = vmul.f32 %v5835_v0, %v1901_v21  ;;  %v11902_v0 = vld [vmem:[#allocation189_spill] sm:$0xff] }
 0x3ef   : > { %v11906_v21 = vld [vmem:[#allocation193_spill] sm:$0xff] }
 0x3f0   : > { %11865 = vst [vmem:[#allocation30_spill] sm:$0xff] %v8547_v55 }
 0x3f2   : > { %v5837_v58 = vpop.eup %5836 }
 0x3f3   : > { %v8543_v59 = vmul.f32 %v5837_v58, %v2117_v56  ;;  %v11903_v56 = vld [vmem:[#allocation190_spill] sm:$0xff]  ;;  %v11905_v58 = vld [vmem:[#allocation192_spill] sm:$0xff] }
 0x3f5   : > { %2202 = vmatmul.mubr.f32.vlgmr.msra.gmra.mxu0 %v8543_v59  ;;  %2279 = vmatmul.mubr.f32.vlgmr.msra.gmra.mxu1 %v8543_v59 }
 0x3f6   : > { %v5839_v61 = vpop.eup %5838  ;;  %2348 = vmatpush1.msra.mxu0 %v8112_v46  ;;  %2425 = vmatpush1.msra.mxu1 %v8115_v18  ;;  %v11866_v46 = vld [vmem:[#allocation153_spill] sm:$0xff]  ;;  %v11867_v18 = vld [vmem:[#allocation154_spill] sm:$0xff] }
 0x3f7   : > { %2207 = vmatprep.mubr.f32.mxu0 %v8547_v55  ;;  %2284 = vmatprep.mubr.f32.mxu1 %v8547_v55  ;;  %v8553_v37 = vmul.f32 %v5839_v61, %v2118_v60  ;;  %v11907_v60 = vld [vmem:[#allocation194_spill] sm:$0xff]  ;;  %v11908_v61 = vld [vmem:[#allocation195_spill] sm:$0xff] }
 0x3f8   : > { %2349 = vmatprep.subr.mxu0 %v8118_v33  ;;  %2426 = vmatprep.subr.mxu1 %v8121_v13  ;;  %v11868_v33 = vld [vmem:[#allocation155_spill] sm:$0xff]  ;;  %v11869_v13 = vld [vmem:[#allocation156_spill] sm:$0xff]  ;;  %v8808_v55 = vld [vmem:[#allocation13 + $0x398] sm:$0xff] }
 0x3f9   : > { %2350 = vmatpush1.msra.mxu0 %v8126_v11  ;;  %2427 = vmatpush1.msra.mxu1 %v8129_v43  ;;  %v11870_v11 = vld [vmem:[#allocation157_spill] sm:$0xff]  ;;  %v11871_v43 = vld [vmem:[#allocation158_spill] sm:$0xff]  ;;  %11946 = vst [vmem:[#allocation49_spill] sm:$0xff] %v8808_v55 }
 0x3fa   : > { %2351 = vmatprep.subr.mxu0 %v8134_v42  ;;  %2428 = vmatprep.subr.mxu1 %v8137_v41  ;;  %v11872_v42 = vld [vmem:[#allocation159_spill] sm:$0xff]  ;;  %v11873_v41 = vld [vmem:[#allocation160_spill] sm:$0xff] }
 0x3fb   : > { %2208 = vmatmul.mubr.f32.gmra.mxu0 %v8553_v37  ;;  %2285 = vmatmul.mubr.f32.gmra.mxu1 %v8553_v37 }
 0x3fc   : > { %2352 = vmatpush1.msra.mxu0 %v8142_v26  ;;  %2429 = vmatpush1.msra.mxu1 %v8145_v15  ;;  %v11874_v26 = vld [vmem:[#allocation161_spill] sm:$0xff]  ;;  %v11875_v15 = vld [vmem:[#allocation162_spill] sm:$0xff] }
 0x3fd   : > { %2353 = vmatprep.subr.mxu0 %v8148_v22  ;;  %2430 = vmatprep.subr.mxu1 %v8151_v62  ;;  %v11876_v22 = vld [vmem:[#allocation163_spill] sm:$0xff]  ;;  %v11877_v62 = vld [vmem:[#allocation164_spill] sm:$0xff] }
 0x3fe   : > { %2354 = vmatpush1.msra.mxu0 %v8154_v27  ;;  %2431 = vmatpush1.msra.mxu1 %v8157_v34  ;;  %v11878_v27 = vld [vmem:[#allocation165_spill] sm:$0xff]  ;;  %v11879_v34 = vld [vmem:[#allocation166_spill] sm:$0xff] }
 0x3ff   : > { %2355 = vmatprep.subr.mxu0 %v8160_v40  ;;  %2432 = vmatprep.subr.mxu1 %v8163_v19  ;;  %v11880_v40 = vld [vmem:[#allocation167_spill] sm:$0xff]  ;;  %v11881_v19 = vld [vmem:[#allocation168_spill] sm:$0xff] }
 0x400   : > { %2356 = vmatpush1.msra.mxu0 %v11866_v46  ;;  %2433 = vmatpush1.msra.mxu1 %v11867_v18  ;;  %v11909_v46 = vld [vmem:[#allocation196_spill] sm:$0xff]  ;;  %v11912_v18 = vld [vmem:[#allocation199_spill] sm:$0xff] }
 0x401   : > { %2357 = vmatprep.subr.mxu0 %v11868_v33  ;;  %2434 = vmatprep.subr.mxu1 %v11869_v13  ;;  %v11913_v33 = vld [vmem:[#allocation200_spill] sm:$0xff]  ;;  %v11914_v13 = vld [vmem:[#allocation201_spill] sm:$0xff] }
 0x402   : > { %2358 = vmatpush1.msra.mxu0 %v11870_v11  ;;  %2435 = vmatpush1.msra.mxu1 %v11871_v43  ;;  %v11915_v11 = vld [vmem:[#allocation202_spill] sm:$0xff]  ;;  %v11917_v43 = vld [vmem:[#allocation204_spill] sm:$0xff] }
 0x403   : > { %2359 = vmatprep.subr.mxu0 %v11872_v42  ;;  %2436 = vmatprep.subr.mxu1 %v11873_v41  ;;  %v11918_v42 = vld [vmem:[#allocation205_spill] sm:$0xff]  ;;  %v11919_v41 = vld [vmem:[#allocation206_spill] sm:$0xff] }
 0x404   : > { %2360 = vmatpush1.msra.mxu0 %v11874_v26  ;;  %2437 = vmatpush1.msra.mxu1 %v11875_v15  ;;  %v11920_v26 = vld [vmem:[#allocation207_spill] sm:$0xff]  ;;  %v11921_v15 = vld [vmem:[#allocation208_spill] sm:$0xff] }
 0x405   : > { %2361 = vmatprep.subr.mxu0 %v11876_v22  ;;  %2438 = vmatprep.subr.mxu1 %v11877_v62  ;;  %v11922_v22 = vld [vmem:[#allocation209_spill] sm:$0xff]  ;;  %v11923_v62 = vld [vmem:[#allocation210_spill] sm:$0xff] }
 0x406   : > { %2362 = vmatpush1.msra.mxu0 %v11878_v27  ;;  %2439 = vmatpush1.msra.mxu1 %v11879_v34  ;;  %v11925_v27 = vld [vmem:[#allocation212_spill] sm:$0xff]  ;;  %v11926_v34 = vld [vmem:[#allocation213_spill] sm:$0xff] }
 0x407   : > { %2363 = vmatprep.subr.mxu0 %v11880_v40  ;;  %2440 = vmatprep.subr.mxu1 %v11881_v19  ;;  %v11927_v40 = vld [vmem:[#allocation214_spill] sm:$0xff]  ;;  %v8649_v19 = vld [vmem:[#allocation13 + $0x128] sm:$0xff] }
 0x408   : > { %2364 = vmatpush1.msra.mxu0 %v11882_v44  ;;  %2441 = vmatpush1.msra.mxu1 %v11883_v29  ;;  %v8652_v44 = vld [vmem:[#allocation13 + $0x138] sm:$0xff]  ;;  %v8655_v29 = vld [vmem:[#allocation13 + $0x120] sm:$0xff] }
 0x409   : > { %2365 = vmatprep.subr.mxu0 %v11884_v63  ;;  %2442 = vmatprep.subr.mxu1 %v11885_v1  ;;  %v8676_v63 = vld [vmem:[#allocation13 + $0xf8] sm:$0xff]  ;;  %v8679_v1 = vld [vmem:[#allocation13 + $0xe0] sm:$0xff] }
 0x40a   : > { %2366 = vmatpush1.msra.mxu0 %v11886_v45  ;;  %2443 = vmatpush1.msra.mxu1 %v11887_v47  ;;  %v8682_v45 = vld [vmem:[#allocation13 + $0xf0] sm:$0xff]  ;;  %v8685_v47 = vld [vmem:[#allocation13 + $0xc8] sm:$0xff] }
 0x40b   : > { %2367 = vmatprep.subr.mxu0 %v11888_v2  ;;  %2444 = vmatprep.subr.mxu1 %v11889_v4  ;;  %v8688_v2 = vld [vmem:[#allocation13 + $0xd8] sm:$0xff]  ;;  %v8691_v4 = vld [vmem:[#allocation13 + $0xc0] sm:$0xff] }
 0x40c   : > { %2368 = vmatpush1.msra.mxu0 %v11890_v7  ;;  %2445 = vmatpush1.msra.mxu1 %v11891_v25  ;;  %v8694_v7 = vld [vmem:[#allocation13 + $0xd0] sm:$0xff]  ;;  %v8697_v25 = vld [vmem:[#allocation13 + $0xa8] sm:$0xff] }
 0x40d   : > { %2369 = vmatprep.subr.mxu0 %v11892_v8  ;;  %2446 = vmatprep.subr.mxu1 %v11893_v9  ;;  %v8700_v8 = vld [vmem:[#allocation13 + $0xb8] sm:$0xff]  ;;  %v8703_v9 = vld [vmem:[#allocation13 + $0xa0] sm:$0xff] }
 0x40e   : > { %2370 = vmatpush1.msra.mxu0 %v11894_v17  ;;  %2447 = vmatpush1.msra.mxu1 %v11895_v48  ;;  %v8706_v17 = vld [vmem:[#allocation13 + $0xb0] sm:$0xff]  ;;  %v8709_v48 = vld [vmem:[#allocation13 + $0x88] sm:$0xff] }
 0x40f   : > { %2371 = vmatprep.subr.mxu0 %v11896_v49  ;;  %2448 = vmatprep.subr.mxu1 %v11897_v51  ;;  %v8712_v49 = vld [vmem:[#allocation13 + $0x98] sm:$0xff]  ;;  %v8715_v51 = vld [vmem:[#allocation13 + $0x80] sm:$0xff] }
 0x410   : > { %2372 = vmatpush1.msra.mxu0 %v11898_v30  ;;  %2449 = vmatpush1.msra.mxu1 %v11899_v28  ;;  %v8718_v30 = vld [vmem:[#allocation13 + $0x90] sm:$0xff]  ;;  %v8721_v28 = vld [vmem:[#allocation13 + $0x68] sm:$0xff] }
 0x411   : > { %2373 = vmatprep.subr.mxu0 %v11900_v35  ;;  %2450 = vmatprep.subr.mxu1 %v11901_v36  ;;  %v8724_v35 = vld [vmem:[#allocation13 + $0x78] sm:$0xff]  ;;  %v8727_v36 = vld [vmem:[#allocation13 + $0x60] sm:$0xff] }
 0x412   : > { %2374 = vmatpush1.msra.mxu0 %v11902_v0  ;;  %2451 = vmatpush1.msra.mxu1 %v11903_v56  ;;  %v8730_v0 = vld [vmem:[#allocation13 + $0x70] sm:$0xff]  ;;  %v8733_v56 = vld [vmem:[#allocation13 + $0x48] sm:$0xff] }
 0x413   : > { %2375 = vmatprep.subr.mxu0 %v11904_v57  ;;  %2452 = vmatprep.subr.mxu1 %v11905_v58  ;;  %v8736_v57 = vld [vmem:[#allocation13 + $0x58] sm:$0xff]  ;;  %v8739_v58 = vld [vmem:[#allocation13 + $0x40] sm:$0xff] }
 0x414   : > { %2376 = vmatpush1.msra.mxu0 %v8286_v39  ;;  %2453 = vmatpush1.msra.mxu1 %v8289_v38  ;;  %v11910_v39 = vld [vmem:[#allocation197_spill] sm:$0xff]  ;;  %v11911_v38 = vld [vmem:[#allocation198_spill] sm:$0xff] }
 0x415   : > { %2377 = vmatprep.subr.mxu0 %v11906_v21  ;;  %2454 = vmatprep.subr.mxu1 %v11907_v60  ;;  %v8742_v21 = vld [vmem:[#allocation13 + $0x50] sm:$0xff]  ;;  %v8745_v60 = vld [vmem:[#allocation13 + $0x28] sm:$0xff] }
 0x416   : > { %2378 = vmatpush1.msra.mxu0 %v11908_v61  ;;  %2411 = vmatprep.mubr.f32.mxu0 %v11717_v32  ;;  %v8748_v61 = vld [vmem:[#allocation13 + $0x38] sm:$0xff] }
 0x417   : > { %2455 = vmatpush1.msra.mxu1 %v11909_v46  ;;  %2488 = vmatprep.mubr.f32.mxu1 %v11717_v32  ;;  %v8751_v46 = vld [vmem:[#allocation13 + $0x20] sm:$0xff] }
 0x418   : > { %2412 = vmatmul.mubr.f32.vlgmr.msra.gmra.mxu0 %v8543_v59  ;;  %2489 = vmatmul.mubr.f32.vlgmr.msra.gmra.mxu1 %v8543_v59  ;;  %v11916_v59 = vld [vmem:[#allocation203_spill] sm:$0xff] }
 0x419   : > { %2417 = vmatprep.mubr.f32.mxu0 %v11717_v32  ;;  %2494 = vmatprep.mubr.f32.mxu1 %v11717_v32 }
 0x41a   : > { %2555 = vmatprep.subr.mxu0 %v11910_v39  ;;  %2632 = vmatprep.subr.mxu1 %v11911_v38  ;;  %v8754_v39 = vld [vmem:[#allocation13 + $0x30] sm:$0xff]  ;;  %v8757_v38 = vld [vmem:[#allocation13 + $0x8] sm:$0xff] }
 0x41b   : > { %2556 = vmatpush1.msra.mxu0 %v11912_v18  ;;  %2633 = vmatpush1.msra.mxu1 %v11913_v33  ;;  %11928 = vst [vmem:[#allocation31_spill] sm:$0xff] %v8754_v39  ;;  %11929 = vst [vmem:[#allocation32_spill] sm:$0xff] %v8757_v38  ;;  %v8760_v18 = vld [vmem:[#allocation13 + $0x18] sm:$0xff]  ;;  %v8763_v33 = vld [vmem:[#allocation13] sm:$0xff] }
 0x41c   : > { %2418 = vmatmul.mubr.f32.gmra.mxu0 %v8553_v37  ;;  %2495 = vmatmul.mubr.f32.gmra.mxu1 %v8553_v37  ;;  %v11924_v37 = vld [vmem:[#allocation211_spill] sm:$0xff]  ;;  %11930 = vst [vmem:[#allocation33_spill] sm:$0xff] %v8760_v18  ;;  %11931 = vst [vmem:[#allocation34_spill] sm:$0xff] %v8763_v33 }
 0x41d   : > { %2557 = vmatprep.subr.mxu0 %v11914_v13  ;;  %2634 = vmatprep.subr.mxu1 %v11915_v11  ;;  %v8766_v13 = vld [vmem:[#allocation13 + $0x10] sm:$0xff]  ;;  %v8769_v11 = vld [vmem:[#allocation13 + $0x3e8] sm:$0xff] }
 0x41e   : > { %2558 = vmatpush1.msra.mxu0 %v11916_v59  ;;  %2635 = vmatpush1.msra.mxu1 %v11917_v43  ;;  %11932 = vst [vmem:[#allocation35_spill] sm:$0xff] %v8766_v13  ;;  %11933 = vst [vmem:[#allocation36_spill] sm:$0xff] %v8769_v11  ;;  %v8772_v59 = vld [vmem:[#allocation13 + $0x3f8] sm:$0xff]  ;;  %v8775_v43 = vld [vmem:[#allocation13 + $0x3e0] sm:$0xff] }
 0x41f   : > { %2559 = vmatprep.subr.mxu0 %v11918_v42  ;;  %2636 = vmatprep.subr.mxu1 %v11919_v41  ;;  %11934 = vst [vmem:[#allocation37_spill] sm:$0xff] %v8772_v59  ;;  %11935 = vst [vmem:[#allocation38_spill] sm:$0xff] %v8775_v43  ;;  %v8778_v42 = vld [vmem:[#allocation13 + $0x3f0] sm:$0xff]  ;;  %v8781_v41 = vld [vmem:[#allocation13 + $0x3c8] sm:$0xff] }
 0x420   : > { %2560 = vmatpush1.msra.mxu0 %v11920_v26  ;;  %2637 = vmatpush1.msra.mxu1 %v11921_v15  ;;  %11936 = vst [vmem:[#allocation39_spill] sm:$0xff] %v8778_v42  ;;  %11937 = vst [vmem:[#allocation40_spill] sm:$0xff] %v8781_v41  ;;  %v8784_v26 = vld [vmem:[#allocation13 + $0x3d8] sm:$0xff]  ;;  %v8787_v15 = vld [vmem:[#allocation13 + $0x3c0] sm:$0xff] }
 0x421   : > { %2561 = vmatprep.subr.mxu0 %v11922_v22  ;;  %2638 = vmatprep.subr.mxu1 %v11923_v62  ;;  %11938 = vst [vmem:[#allocation41_spill] sm:$0xff] %v8784_v26  ;;  %11939 = vst [vmem:[#allocation42_spill] sm:$0xff] %v8787_v15  ;;  %v8790_v22 = vld [vmem:[#allocation13 + $0x3d0] sm:$0xff]  ;;  %v8793_v62 = vld [vmem:[#allocation13 + $0x3a8] sm:$0xff] }
 0x422   : > { %2562 = vmatpush1.msra.mxu0 %v11924_v37  ;;  %2639 = vmatpush1.msra.mxu1 %v11925_v27  ;;  %11940 = vst [vmem:[#allocation43_spill] sm:$0xff] %v8790_v22  ;;  %11941 = vst [vmem:[#allocation44_spill] sm:$0xff] %v8793_v62  ;;  %v8796_v37 = vld [vmem:[#allocation13 + $0x3b8] sm:$0xff]  ;;  %v8799_v27 = vld [vmem:[#allocation13 + $0x3a0] sm:$0xff] }
 0x423   : > { %2563 = vmatprep.subr.mxu0 %v11926_v34  ;;  %2640 = vmatprep.subr.mxu1 %v11927_v40  ;;  %11942 = vst [vmem:[#allocation45_spill] sm:$0xff] %v8796_v37  ;;  %11943 = vst [vmem:[#allocation46_spill] sm:$0xff] %v8799_v27  ;;  %v8802_v34 = vld [vmem:[#allocation13 + $0x3b0] sm:$0xff]  ;;  %v8805_v40 = vld [vmem:[#allocation13 + $0x388] sm:$0xff] }
 0x424   : > { %2564 = vmatpush1.msra.mxu0 %v8366_v16  ;;  %2641 = vmatpush1.msra.mxu1 %v8369_v20  ;;  %v8658_v20 = vld [vmem:[#allocation13 + $0x130] sm:$0xff]  ;;  %v8661_v16 = vld [vmem:[#allocation13 + $0x108] sm:$0xff]  ;;  %11944 = vst [vmem:[#allocation47_spill] sm:$0xff] %v8802_v34  ;;  %11945 = vst [vmem:[#allocation48_spill] sm:$0xff] %v8805_v40 }
 0x425   : > { %2565 = vmatprep.subr.mxu0 %v8372_v31  ;;  %2642 = vmatprep.subr.mxu1 %v8375_v23  ;;  %v8667_v31 = vld [vmem:[#allocation13 + $0x100] sm:$0xff]  ;;  %v8673_v23 = vld [vmem:[#allocation13 + $0xe8] sm:$0xff] }
 0x426   : > { %2566 = vmatpush1.msra.mxu0 %v8378_v54  ;;  %2643 = vmatpush1.msra.mxu1 %v8381_v14  ;;  %v8664_v14 = vld [vmem:[#allocation13 + $0x118] sm:$0xff]  ;;  %v8670_v54 = vld [vmem:[#allocation13 + $0x110] sm:$0xff] }
 0x427   : > { %2567 = vmatprep.subr.mxu0 %v8649_v19  ;;  %2644 = vmatprep.subr.mxu1 %v8652_v44 }
 0x428   : > { %2568 = vmatpush1.msra.mxu0 %v8655_v29  ;;  %2645 = vmatpush1.msra.mxu1 %v8658_v20 }
 0x429   : > { %2569 = vmatprep.subr.mxu0 %v8661_v16  ;;  %2646 = vmatprep.subr.mxu1 %v8664_v14 }
 0x42a   : > { %2570 = vmatpush1.msra.mxu0 %v8667_v31  ;;  %2647 = vmatpush1.msra.mxu1 %v8670_v54 }
 0x42b   : > { %2571 = vmatprep.subr.mxu0 %v8673_v23  ;;  %2648 = vmatprep.subr.mxu1 %v8676_v63 }
 0x42c   : > { %2572 = vmatpush1.msra.mxu0 %v8679_v1  ;;  %2649 = vmatpush1.msra.mxu1 %v8682_v45 }
 0x42d   : > { %2573 = vmatprep.subr.mxu0 %v8685_v47  ;;  %2650 = vmatprep.subr.mxu1 %v8688_v2 }
 0x42e   : > { %2574 = vmatpush1.msra.mxu0 %v8691_v4  ;;  %2651 = vmatpush1.msra.mxu1 %v8694_v7 }
 0x42f   : > { %2575 = vmatprep.subr.mxu0 %v8697_v25  ;;  %2652 = vmatprep.subr.mxu1 %v8700_v8 }
 0x430   : > { %2576 = vmatpush1.msra.mxu0 %v8703_v9  ;;  %2653 = vmatpush1.msra.mxu1 %v8706_v17 }
 0x431   : > { %2577 = vmatprep.subr.mxu0 %v8709_v48  ;;  %2654 = vmatprep.subr.mxu1 %v8712_v49 }
 0x432   : > { %2578 = vmatpush1.msra.mxu0 %v8715_v51  ;;  %2655 = vmatpush1.msra.mxu1 %v8718_v30 }
 0x433   : > { %2579 = vmatprep.subr.mxu0 %v8721_v28  ;;  %2656 = vmatprep.subr.mxu1 %v8724_v35 }
 0x434   : > { %2580 = vmatpush1.msra.mxu0 %v8727_v36  ;;  %2657 = vmatpush1.msra.mxu1 %v8730_v0 }
 0x435   : > { %2581 = vmatprep.subr.mxu0 %v8733_v56  ;;  %2658 = vmatprep.subr.mxu1 %v8736_v57 }
 0x436   : > { %2582 = vmatpush1.msra.mxu0 %v8739_v58  ;;  %2659 = vmatpush1.msra.mxu1 %v8742_v21 }
 0x437   : > { %2583 = vmatprep.subr.mxu0 %v8745_v60  ;;  %2660 = vmatprep.subr.mxu1 %v8748_v61 }
 0x438   : > { %2584 = vmatpush1.msra.mxu0 %v8751_v46  ;;  %2661 = vmatpush1.msra.mxu1 %v8754_v39 }
 0x439   : > { %2585 = vmatprep.subr.mxu0 %v8757_v38  ;;  %2662 = vmatprep.subr.mxu1 %v8760_v18 }
 0x43a   : > { %2586 = vmatpush1.msra.mxu0 %v8763_v33  ;;  %2663 = vmatpush1.msra.mxu1 %v8766_v13 }
 0x43b   : > { %2587 = vmatprep.subr.mxu0 %v8769_v11  ;;  %2664 = vmatprep.subr.mxu1 %v8772_v59 }
 0x43c   : > { %2588 = vmatpush2.msra.mxu0 %v8775_v43  ;;  %2665 = vmatpush2.msra.mxu1 %v8778_v42 }
 0x43d   : > { %2589 = vmatprep.subr.mxu0 %v8781_v41  ;;  %2666 = vmatprep.subr.mxu1 %v8784_v26 }
 0x43e   : > { %2590 = vmatpush2.msra.mxu0 %v8787_v15  ;;  %2667 = vmatpush2.msra.mxu1 %v8790_v22 }
 0x43f   : > { %2591 = vmatprep.subr.mxu0 %v8793_v62  ;;  %2668 = vmatprep.subr.mxu1 %v8796_v37  ;;  %v8814_v37 = vld [vmem:[#allocation13 + $0x390] sm:$0xff] }
 0x440   : > { %2592 = vmatpush2.msra.mxu0 %v8799_v27  ;;  %2669 = vmatpush2.msra.mxu1 %v8802_v34  ;;  %11948 = vst [vmem:[#allocation51_spill] sm:$0xff] %v8814_v37  ;;  %v8817_v27 = vld [vmem:[#allocation13 + $0x368] sm:$0xff]  ;;  %v8820_v34 = vld [vmem:[#allocation13 + $0x378] sm:$0xff] }
 0x441   : > { %2593 = vmatprep.subr.mxu0 %v8805_v40  ;;  %2670 = vmatprep.subr.mxu1 %v8808_v55  ;;  %11949 = vst [vmem:[#allocation52_spill] sm:$0xff] %v8817_v27  ;;  %11950 = vst [vmem:[#allocation53_spill] sm:$0xff] %v8820_v34  ;;  %v8823_v40 = vld [vmem:[#allocation13 + $0x360] sm:$0xff]  ;;  %v8826_v55 = vld [vmem:[#allocation13 + $0x370] sm:$0xff] }
 0x442   : > { %2594 = vmatpush2.msra.mxu0 %v8811_v3  ;;  %2671 = vmatpush2.msra.mxu1 %v8814_v37  ;;  %11951 = vst [vmem:[#allocation54_spill] sm:$0xff] %v8823_v40  ;;  %11952 = vst [vmem:[#allocation55_spill] sm:$0xff] %v8826_v55  ;;  %v8829_v3 = vld [vmem:[#allocation13 + $0x348] sm:$0xff]  ;;  %v8832_v37 = vld [vmem:[#allocation13 + $0x358] sm:$0xff] }
 0x443   : > { %2595 = vmatprep.subr.mxu0 %v8817_v27  ;;  %2672 = vmatprep.subr.mxu1 %v8820_v34  ;;  %11953 = vst [vmem:[#allocation56_spill] sm:$0xff] %v8829_v3  ;;  %11954 = vst [vmem:[#allocation57_spill] sm:$0xff] %v8832_v37  ;;  %v8835_v27 = vld [vmem:[#allocation13 + $0x340] sm:$0xff]  ;;  %v8838_v34 = vld [vmem:[#allocation13 + $0x350] sm:$0xff] }
 0x444   : > { %2596 = vmatpush2.msra.mxu0 %v8823_v40  ;;  %2673 = vmatpush2.msra.mxu1 %v8826_v55  ;;  %11955 = vst [vmem:[#allocation58_spill] sm:$0xff] %v8835_v27  ;;  %11956 = vst [vmem:[#allocation59_spill] sm:$0xff] %v8838_v34  ;;  %v8841_v40 = vld [vmem:[#allocation13 + $0x328] sm:$0xff]  ;;  %v8844_v55 = vld [vmem:[#allocation13 + $0x338] sm:$0xff] }
 0x445   : > { %2597 = vmatprep.subr.mxu0 %v8829_v3  ;;  %2674 = vmatprep.subr.mxu1 %v8832_v37  ;;  %11957 = vst [vmem:[#allocation60_spill] sm:$0xff] %v8841_v40  ;;  %11958 = vst [vmem:[#allocation61_spill] sm:$0xff] %v8844_v55  ;;  %v8847_v3 = vld [vmem:[#allocation13 + $0x320] sm:$0xff]  ;;  %v8850_v37 = vld [vmem:[#allocation13 + $0x330] sm:$0xff] }
 0x446   : > { %2598 = vmatpush2.msra.mxu0 %v8835_v27  ;;  %2675 = vmatpush2.msra.mxu1 %v8838_v34  ;;  %11959 = vst [vmem:[#allocation62_spill] sm:$0xff] %v8847_v3  ;;  %11960 = vst [vmem:[#allocation63_spill] sm:$0xff] %v8850_v37  ;;  %v8853_v27 = vld [vmem:[#allocation13 + $0x308] sm:$0xff]  ;;  %v8856_v34 = vld [vmem:[#allocation13 + $0x318] sm:$0xff] }
 0x447   : > { %2599 = vmatprep.subr.mxu0 %v8841_v40  ;;  %2676 = vmatprep.subr.mxu1 %v8844_v55  ;;  %11961 = vst [vmem:[#allocation64_spill] sm:$0xff] %v8853_v27  ;;  %11962 = vst [vmem:[#allocation65_spill] sm:$0xff] %v8856_v34  ;;  %v8859_v40 = vld [vmem:[#allocation13 + $0x300] sm:$0xff]  ;;  %v8862_v55 = vld [vmem:[#allocation13 + $0x310] sm:$0xff] }
 0x448   : > { %2600 = vmatpush2.msra.mxu0 %v8847_v3  ;;  %2677 = vmatpush2.msra.mxu1 %v8850_v37  ;;  %11963 = vst [vmem:[#allocation66_spill] sm:$0xff] %v8859_v40  ;;  %11964 = vst [vmem:[#allocation67_spill] sm:$0xff] %v8862_v55  ;;  %v8865_v3 = vld [vmem:[#allocation13 + $0x2e8] sm:$0xff]  ;;  %v8868_v37 = vld [vmem:[#allocation13 + $0x2f8] sm:$0xff] }
 0x449   : > { %2601 = vmatprep.subr.mxu0 %v8853_v27  ;;  %2678 = vmatprep.subr.mxu1 %v8856_v34  ;;  %11965 = vst [vmem:[#allocation68_spill] sm:$0xff] %v8865_v3  ;;  %11966 = vst [vmem:[#allocation69_spill] sm:$0xff] %v8868_v37  ;;  %v8871_v27 = vld [vmem:[#allocation13 + $0x2e0] sm:$0xff]  ;;  %v8874_v34 = vld [vmem:[#allocation13 + $0x2f0] sm:$0xff] }
 0x44a   : > { %2602 = vmatpush2.msra.mxu0 %v8859_v40  ;;  %2679 = vmatpush2.msra.mxu1 %v8862_v55  ;;  %11967 = vst [vmem:[#allocation70_spill] sm:$0xff] %v8871_v27  ;;  %11968 = vst [vmem:[#allocation71_spill] sm:$0xff] %v8874_v34  ;;  %v8877_v40 = vld [vmem:[#allocation13 + $0x2c8] sm:$0xff]  ;;  %v8880_v55 = vld [vmem:[#allocation13 + $0x2d8] sm:$0xff] }
 0x44b   : > { %2603 = vmatprep.subr.mxu0 %v8865_v3  ;;  %2680 = vmatprep.subr.mxu1 %v8868_v37  ;;  %11969 = vst [vmem:[#allocation72_spill] sm:$0xff] %v8877_v40  ;;  %11970 = vst [vmem:[#allocation73_spill] sm:$0xff] %v8880_v55  ;;  %v8883_v3 = vld [vmem:[#allocation13 + $0x2c0] sm:$0xff]  ;;  %v8886_v37 = vld [vmem:[#allocation13 + $0x2d0] sm:$0xff] }
 0x44c   : > { %2604 = vmatpush2.msra.mxu0 %v8871_v27  ;;  %2681 = vmatpush2.msra.mxu1 %v8874_v34  ;;  %11971 = vst [vmem:[#allocation74_spill] sm:$0xff] %v8883_v3  ;;  %11972 = vst [vmem:[#allocation75_spill] sm:$0xff] %v8886_v37  ;;  %v8889_v27 = vld [vmem:[#allocation13 + $0x2a8] sm:$0xff]  ;;  %v8892_v34 = vld [vmem:[#allocation13 + $0x2b8] sm:$0xff] }
 0x44d   : > { %2605 = vmatprep.subr.mxu0 %v8877_v40  ;;  %2682 = vmatprep.subr.mxu1 %v8880_v55  ;;  %11973 = vst [vmem:[#allocation76_spill] sm:$0xff] %v8889_v27  ;;  %11974 = vst [vmem:[#allocation77_spill] sm:$0xff] %v8892_v34  ;;  %v8895_v40 = vld [vmem:[#allocation13 + $0x2a0] sm:$0xff]  ;;  %v8898_v55 = vld [vmem:[#allocation13 + $0x2b0] sm:$0xff] }
 0x44e   : > { %2606 = vmatpush2.msra.mxu0 %v8883_v3  ;;  %2683 = vmatpush2.msra.mxu1 %v8886_v37  ;;  %11975 = vst [vmem:[#allocation78_spill] sm:$0xff] %v8895_v40  ;;  %11976 = vst [vmem:[#allocation79_spill] sm:$0xff] %v8898_v55  ;;  %v8901_v3 = vld [vmem:[#allocation13 + $0x288] sm:$0xff]  ;;  %v8904_v37 = vld [vmem:[#allocation13 + $0x298] sm:$0xff] }
 0x44f   : > { %2607 = vmatprep.subr.mxu0 %v8889_v27  ;;  %2684 = vmatprep.subr.mxu1 %v8892_v34  ;;  %11977 = vst [vmem:[#allocation80_spill] sm:$0xff] %v8901_v3  ;;  %11978 = vst [vmem:[#allocation81_spill] sm:$0xff] %v8904_v37  ;;  %v8907_v27 = vld [vmem:[#allocation13 + $0x280] sm:$0xff]  ;;  %v8910_v34 = vld [vmem:[#allocation13 + $0x290] sm:$0xff] }
 0x450   : > { %2608 = vmatpush2.msra.mxu0 %v8895_v40  ;;  %2685 = vmatpush2.msra.mxu1 %v8898_v55  ;;  %11979 = vst [vmem:[#allocation82_spill] sm:$0xff] %v8907_v27  ;;  %11980 = vst [vmem:[#allocation83_spill] sm:$0xff] %v8910_v34  ;;  %v8913_v40 = vld [vmem:[#allocation13 + $0x268] sm:$0xff]  ;;  %v8916_v55 = vld [vmem:[#allocation13 + $0x278] sm:$0xff] }
 0x451   : > { %2609 = vmatprep.subr.mxu0 %v8901_v3  ;;  %2686 = vmatprep.subr.mxu1 %v8904_v37  ;;  %11981 = vst [vmem:[#allocation84_spill] sm:$0xff] %v8913_v40  ;;  %11982 = vst [vmem:[#allocation85_spill] sm:$0xff] %v8916_v55  ;;  %v8919_v3 = vld [vmem:[#allocation13 + $0x260] sm:$0xff]  ;;  %v8922_v37 = vld [vmem:[#allocation13 + $0x270] sm:$0xff] }
 0x452   : > { %2610 = vmatpush2.msra.mxu0 %v8907_v27  ;;  %2687 = vmatpush2.msra.mxu1 %v8910_v34  ;;  %11983 = vst [vmem:[#allocation86_spill] sm:$0xff] %v8919_v3  ;;  %11984 = vst [vmem:[#allocation87_spill] sm:$0xff] %v8922_v37  ;;  %v8925_v27 = vld [vmem:[#allocation13 + $0x248] sm:$0xff]  ;;  %v8928_v34 = vld [vmem:[#allocation13 + $0x258] sm:$0xff] }
 0x453   : > { %2611 = vmatprep.subr.mxu0 %v8913_v40  ;;  %2688 = vmatprep.subr.mxu1 %v8916_v55  ;;  %11985 = vst [vmem:[#allocation88_spill] sm:$0xff] %v8925_v27  ;;  %11986 = vst [vmem:[#allocation89_spill] sm:$0xff] %v8928_v34  ;;  %v8931_v40 = vld [vmem:[#allocation13 + $0x240] sm:$0xff]  ;;  %v8934_v55 = vld [vmem:[#allocation13 + $0x250] sm:$0xff] }
 0x454   : > { %2612 = vmatpush2.msra.mxu0 %v8919_v3  ;;  %2689 = vmatpush2.msra.mxu1 %v8922_v37  ;;  %11987 = vst [vmem:[#allocation90_spill] sm:$0xff] %v8931_v40  ;;  %11988 = vst [vmem:[#allocation91_spill] sm:$0xff] %v8934_v55  ;;  %v8937_v3 = vld [vmem:[#allocation13 + $0x228] sm:$0xff]  ;;  %v8940_v37 = vld [vmem:[#allocation13 + $0x238] sm:$0xff] }
 0x455   : > { %2613 = vmatprep.subr.mxu0 %v8925_v27  ;;  %2690 = vmatprep.subr.mxu1 %v8928_v34  ;;  %11989 = vst [vmem:[#allocation92_spill] sm:$0xff] %v8937_v3  ;;  %11990 = vst [vmem:[#allocation93_spill] sm:$0xff] %v8940_v37  ;;  %v8943_v27 = vld [vmem:[#allocation13 + $0x220] sm:$0xff]  ;;  %v8946_v34 = vld [vmem:[#allocation13 + $0x230] sm:$0xff] }
 0x456   : > { %2614 = vmatpush2.msra.mxu0 %v8931_v40  ;;  %2691 = vmatpush2.msra.mxu1 %v8934_v55  ;;  %11991 = vst [vmem:[#allocation94_spill] sm:$0xff] %v8943_v27  ;;  %11992 = vst [vmem:[#allocation95_spill] sm:$0xff] %v8946_v34  ;;  %v8949_v40 = vld [vmem:[#allocation13 + $0x208] sm:$0xff]  ;;  %v8952_v55 = vld [vmem:[#allocation13 + $0x218] sm:$0xff] }
 0x457   : > { %2615 = vmatprep.subr.mxu0 %v8937_v3  ;;  %2692 = vmatprep.subr.mxu1 %v8940_v37  ;;  %11993 = vst [vmem:[#allocation96_spill] sm:$0xff] %v8949_v40  ;;  %11994 = vst [vmem:[#allocation97_spill] sm:$0xff] %v8952_v55  ;;  %v8955_v3 = vld [vmem:[#allocation13 + $0x200] sm:$0xff]  ;;  %v8958_v37 = vld [vmem:[#allocation13 + $0x210] sm:$0xff] }
 0x458   : > { %2616 = vmatpush2.msra.mxu0 %v8943_v27  ;;  %2693 = vmatpush2.msra.mxu1 %v8946_v34  ;;  %11995 = vst [vmem:[#allocation99_spill] sm:$0xff] %v8955_v3  ;;  %11996 = vst [vmem:[#allocation98_spill] sm:$0xff] %v8958_v37  ;;  %v8961_v27 = vld [vmem:[#allocation12 + $0x1e8] sm:$0xff]  ;;  %v8964_v34 = vld [vmem:[#allocation12 + $0x1f8] sm:$0xff] }
 0x459   : > { %2617 = vmatprep.subr.mxu0 %v8949_v40  ;;  %2694 = vmatprep.subr.mxu1 %v8952_v55  ;;  %11997 = vst [vmem:[#allocation101_spill] sm:$0xff] %v8961_v27  ;;  %11998 = vst [vmem:[#allocation103_spill] sm:$0xff] %v8964_v34 }
 0x45a   : > { %2618 = vmatpush2.msra.mxu0 %v8955_v3  ;;  %2695 = vmatpush2.msra.mxu1 %v8958_v37 }
 0x45b   : > { %2765 = vmatprep.subr.mxu0 %v8961_v27  ;;  %2842 = vmatprep.subr.mxu1 %v8964_v34 }
 0x4b5   : > { %v2203_v40 = vpop.f32.mrf.mxu0  ;;  %v2280_v3 = vpop.f32.mrf.mxu1 }
 0x4b6   : > { %v2204_v62 = vadd.f32 %v2203_v40, %v8495_v12  ;;  %v2281_v37 = vadd.f32 %v2280_v3, %v8504_v52 }
 0x4b7   : > { %v2205_v55 = vpop.f32.mrf.mxu0  ;;  %v2282_v41 = vpop.f32.mrf.mxu1 }
 0x4b8   : > { %v2293_v22 = vmul.f32 0.5, %v2204_v62  ;;  %v2206_v15 = vadd.f32 %v2205_v55, %v8499_v24  ;;  %v2283_v27 = vadd.f32 %v2282_v41, %v8510_v53 }
 0x4ba   : > { %5840 = vtanh.f32 %v2293_v22  ;;  %v2301_v26 = vmul.f32 0.5, %v2206_v15  ;;  %v2311_v43 = vmul.f32 0.5, %v2283_v27 }
 0x4bb   : > { %v2209_v42 = vpop.f32.mrf.mxu0 }
 0x4bc   : > { %5842 = vtanh.f32 %v2301_v26 }
 0x4bd   : > { %5844 = vtanh.f32 %v2281_v37  ;;  %v2211_v40 = vpop.f32.mrf.mxu0  ;;  %v2210_v37 = vadd.f32 %v2209_v42, %v8495_v12 }
 0x4be   : > { %5846 = vtanh.f32 %v2311_v43  ;;  %v2212_v22 = vadd.f32 %v2211_v40, %v8499_v24  ;;  %v12000_v40 = vld [vmem:[#allocation105_spill] sm:$0xff] }
 0x4bf   : > { %v2294_v27 = vmul.f32 0.5, %v2210_v37 }
 0x4c0   : > { %v2302_v41 = vmul.f32 0.5, %v2212_v22 }
 0x4c7   : > { %v5841_v34 = vpop.eup %5840 }
 0x4c8   : > { %v2297_v59 = vmul.f32 0.5, %v5841_v34  ;;  %v2286_v34 = vpop.f32.mrf.mxu1 }
 0x4c9   : > { %v5843_v11 = vpop.eup %5842 }
 0x4ca   : > { %v2299_v13 = vadd.f32 0.5, %v2297_v59  ;;  %v2305_v62 = vmul.f32 0.5, %v5843_v11  ;;  %v5845_v15 = vpop.eup %5844  ;;  %v2288_v11 = vpop.f32.mrf.mxu1 }
 0x4cb   : > { %v5847_v59 = vpop.eup %5846 }
 0x4cc   : > { %v2307_v55 = vadd.f32 0.5, %v2305_v62  ;;  %v2321_v26 = vmul.f32 %v5845_v15, %v2299_v13  ;;  %v2315_v18 = vmul.f32 0.5, %v5847_v59  ;;  %v12001_v15 = vld [vmem:[#allocation107_spill] sm:$0xff] }
 0x4ce   : > { %v2319_v3 = vmul.f32 %v2307_v55, %v8515_v6  ;;  %v2287_v6 = vadd.f32 %v2286_v34, %v8504_v52  ;;  %v2317_v12 = vadd.f32 0.5, %v2315_v18  ;;  %v12004_v34 = vld [vmem:[#allocation111_spill] sm:$0xff] }
 0x4d0   : > { %v8974_v33 = vadd.f32 %v2321_v26, %v2319_v3  ;;  %v12002_v3 = vld [vmem:[#allocation106_spill] sm:$0xff] }
 0x4d2   : > { %11999 = vst [vmem:[#allocation102_spill] sm:$0xff] %v8974_v33  ;;  %5848 = vtanh.f32 %v8974_v33 }
 0x4d3   : > { %5850 = vtanh.f32 %v2302_v41 }
 0x4d4   : > { %5852 = vtanh.f32 %v2294_v27  ;;  %v12003_v27 = vld [vmem:[#allocation109_spill] sm:$0xff] }
 0x4d8   : > { %v2413_v43 = vpop.f32.mrf.mxu0  ;;  %v2490_v62 = vpop.f32.mrf.mxu1 }
 0x4d9   : > { %v2501_v24 = vadd.f32 %v2413_v43, %v12000_v40  ;;  %v2503_v26 = vadd.f32 %v2490_v62, %v12002_v3  ;;  %v12006_v62 = vld [vmem:[#allocation110_spill] sm:$0xff] }
 0x4da   : > { %v2415_v13 = vpop.f32.mrf.mxu0  ;;  %v2492_v42 = vpop.f32.mrf.mxu1 }
 0x4db   : > { %v2511_v55 = vmul.f32 0.5, %v2501_v24  ;;  %v2502_v22 = vadd.f32 %v2415_v13, %v12001_v15 }
 0x4dc   : > { %v2419_v37 = vpop.f32.mrf.mxu0  ;;  %v2496_v38 = vpop.f32.mrf.mxu1 }
 0x4dd   : > { %5854 = vtanh.f32 %v2511_v55  ;;  %v2519_v41 = vmul.f32 0.5, %v2502_v22  ;;  %v2505_v33 = vadd.f32 %v2419_v37, %v12003_v27  ;;  %v2507_v15 = vadd.f32 %v2496_v38, %v12006_v62  ;;  %v12007_v22 = vld [vmem:[#allocation108_spill] sm:$0xff] }
 0x4de   : > { %5856 = vtanh.f32 %v2287_v6  ;;  %v2421_v39 = vpop.f32.mrf.mxu0  ;;  %v2504_v3 = vadd.f32 %v2492_v42, %v12007_v22 }
 0x4df   : > { %v5849_v43 = vpop.eup %5848  ;;  %5858 = vtanh.f32 %v2519_v41  ;;  %v2512_v59 = vmul.f32 0.5, %v2505_v33  ;;  %v2506_v40 = vadd.f32 %v2421_v39, %v12004_v34  ;;  %v2498_v39 = vpop.f32.mrf.mxu1  ;;  %v12008_v41 = vld [vmem:[#allocation112_spill] sm:$0xff] }
 0x4e0   : > { %5860 = vtanh.f32 %v2503_v26  ;;  %v8983_v24 = vmul.f32 %v5849_v43, %v2317_v12  ;;  %v5851_v13 = vpop.eup %5850  ;;  %v2289_v12 = vadd.f32 %v2288_v11, %v8510_v53  ;;  %v2529_v37 = vmul.f32 0.5, %v2504_v3 }
 0x4e1   : > { %5862 = vtanh.f32 %v2512_v59  ;;  %v2520_v55 = vmul.f32 0.5, %v2506_v40  ;;  %v5853_v18 = vpop.eup %5852  ;;  %v2306_v6 = vmul.f32 0.5, %v5851_v13  ;;  %v2508_v27 = vadd.f32 %v2498_v39, %v12008_v41 }
 0x4e2   : > { %12005 = vst [vmem:[#allocation100_spill] sm:$0xff] %v8983_v24  ;;  %2619 = vmatprep.mubr.f32.mxu0 %v8983_v24  ;;  %2696 = vmatprep.mubr.f32.mxu1 %v8983_v24  ;;  %v2298_v33 = vmul.f32 0.5, %v5853_v18  ;;  %v2312_v34 = vmul.f32 0.5, %v2289_v12 }
 0x4e3   : > { %5864 = vtanh.f32 %v2520_v55  ;;  %v2308_v26 = vadd.f32 0.5, %v2306_v6 }
 0x4e4   : > { %5866 = vtanh.f32 %v2507_v15  ;;  %v2300_v43 = vadd.f32 0.5, %v2298_v33  ;;  %v2530_v15 = vmul.f32 0.5, %v2508_v27 }
 0x4e5   : > { %v2320_v55 = vmul.f32 %v2308_v26, %v8532_v5  ;;  %5868 = vtanh.f32 %v2529_v37 }
 0x4e6   : > { %5870 = vtanh.f32 %v2312_v34 }
 0x4e7   : > { %5872 = vtanh.f32 %v2530_v15 }
 0x4ea   : > { %v5855_v38 = vpop.eup %5854 }
 0x4eb   : > { %v5857_v59 = vpop.eup %5856  ;;  %v2515_v40 = vmul.f32 0.5, %v5855_v38 }
 0x4ec   : > { %v5859_v62 = vpop.eup %5858  ;;  %v2322_v22 = vmul.f32 %v5857_v59, %v2300_v43 }
 0x4ed   : > { %v5861_v13 = vpop.eup %5860  ;;  %v2517_v24 = vadd.f32 0.5, %v2515_v40  ;;  %v2523_v42 = vmul.f32 0.5, %v5859_v62 }
 0x4ee   : > { %v5863_v18 = vpop.eup %5862  ;;  %v8992_v41 = vadd.f32 %v2322_v22, %v2320_v55 }
 0x4ef   : > { %v2525_v11 = vadd.f32 0.5, %v2523_v42  ;;  %v2539_v6 = vmul.f32 %v5861_v13, %v2517_v24  ;;  %v2516_v3 = vmul.f32 0.5, %v5863_v18 }
 0x4f0   : > { %v5865_v39 = vpop.eup %5864  ;;  %5874 = vtanh.f32 %v8992_v41 }
 0x4f1   : > { %v2537_v33 = vmul.f32 %v2525_v11, %v8535_v10  ;;  %v2518_v12 = vadd.f32 0.5, %v2516_v3  ;;  %v2524_v38 = vmul.f32 0.5, %v5865_v39  ;;  %v5867_v5 = vpop.eup %5866  ;;  %v9009_v3 = vld [vmem:[#allocation12 + $0x1e0] sm:$0xff]  ;;  %v9012_v39 = vld [vmem:[#allocation12 + $0x1f0] sm:$0xff] }
 0x4f2   : > { %v5869_v43 = vpop.eup %5868 }
 0x4f3   : > { %v8995_v26 = vadd.f32 %v2539_v6, %v2537_v33  ;;  %v2526_v40 = vadd.f32 0.5, %v2524_v38  ;;  %v2540_v37 = vmul.f32 %v5867_v5, %v2518_v12  ;;  %v5871_v10 = vpop.eup %5870  ;;  %v2533_v59 = vmul.f32 0.5, %v5869_v43  ;;  %v9019_v12 = vld [vmem:[#allocation12 + $0x1c8] sm:$0xff]  ;;  %v9022_v38 = vld [vmem:[#allocation12 + $0x1d8] sm:$0xff]  ;;  %v9025_v5 = vld [vmem:[#allocation12 + $0x1c0] sm:$0xff] }
 0x4f4   : > { %v5873_v34 = vpop.eup %5872  ;;  %v2316_v62 = vmul.f32 0.5, %v5871_v10  ;;  %v9039_v43 = vld [vmem:[#allocation12 + $0x1a0] sm:$0xff]  ;;  %v9042_v10 = vld [vmem:[#allocation12 + $0x1b0] sm:$0xff] }
 0x4f5   : > { %5876 = vtanh.f32 %v8995_v26  ;;  %v2538_v24 = vmul.f32 %v2526_v40, %v8540_v50  ;;  %v2535_v13 = vadd.f32 0.5, %v2533_v59  ;;  %v2534_v42 = vmul.f32 0.5, %v5873_v34  ;;  %v9028_v40 = vld [vmem:[#allocation12 + $0x1d0] sm:$0xff]  ;;  %v9045_v59 = vld [vmem:[#allocation12 + $0x188] sm:$0xff]  ;;  %v9048_v34 = vld [vmem:[#allocation12 + $0x198] sm:$0xff] }
 0x4f6   : > { %v2318_v18 = vadd.f32 0.5, %v2316_v62  ;;  %v9051_v62 = vld [vmem:[#allocation12 + $0x180] sm:$0xff] }
 0x4f7   : > { %v9000_v27 = vadd.f32 %v2540_v37, %v2538_v24  ;;  %v2536_v11 = vadd.f32 0.5, %v2534_v42  ;;  %v9031_v37 = vld [vmem:[#allocation12 + $0x1a8] sm:$0xff]  ;;  %v9034_v24 = vld [vmem:[#allocation12 + $0x1b8] sm:$0xff] }
 0x4f8   : > { %v9060_v42 = vld [vmem:[#allocation12 + $0x178] sm:$0xff] }
 0x4f9   : > { %5878 = vtanh.f32 %v9000_v27  ;;  %12010 = vst [vmem:[#allocation153_spill] sm:$0xff] %v9060_v42 }
 0x4fd   : > { %v5875_v55 = vpop.eup %5874 }
 0x4fe   : > { %v9007_v50 = vmul.f32 %v5875_v55, %v2318_v18  ;;  %v9054_v55 = vld [vmem:[#allocation12 + $0x190] sm:$0xff] }
 0x4ff   : > { %v9066_v18 = vld [vmem:[#allocation12 + $0x170] sm:$0xff] }
 0x500   : > { %12009 = vst [vmem:[#allocation104_spill] sm:$0xff] %v9007_v50  ;;  %12012 = vst [vmem:[#allocation155_spill] sm:$0xff] %v9066_v18 }
 0x502   : > { %v5877_v15 = vpop.eup %5876 }
 0x503   : > { %v9003_v22 = vmul.f32 %v5877_v15, %v2535_v13  ;;  %v9057_v13 = vld [vmem:[#allocation12 + $0x168] sm:$0xff]  ;;  %v9063_v15 = vld [vmem:[#allocation12 + $0x160] sm:$0xff] }
 0x504   : > { %12011 = vst [vmem:[#allocation154_spill] sm:$0xff] %v9063_v15 }
 0x505   : > { %2620 = vmatmul.mubr.f32.vlgmr.msra.gmra.mxu0 %v9003_v22  ;;  %2697 = vmatmul.mubr.f32.vlgmr.msra.gmra.mxu1 %v9003_v22 }
 0x506   : > { %v5879_v6 = vpop.eup %5878  ;;  %2766 = vmatpush1.msra.mxu0 %v9009_v3  ;;  %2843 = vmatpush1.msra.mxu1 %v9012_v39 }
 0x507   : > { %2625 = vmatprep.mubr.f32.mxu0 %v9007_v50  ;;  %2702 = vmatprep.mubr.f32.mxu1 %v9007_v50  ;;  %v9017_v33 = vmul.f32 %v5879_v6, %v2536_v11  ;;  %v9069_v11 = vld [vmem:[#allocation12 + $0x148] sm:$0xff]  ;;  %v9072_v6 = vld [vmem:[#allocation12 + $0x158] sm:$0xff]  ;;  %v9075_v50 = vld [vmem:[#allocation12 + $0x140] sm:$0xff] }
 0x508   : > { %2767 = vmatprep.subr.mxu0 %v9019_v12  ;;  %2844 = vmatprep.subr.mxu1 %v9022_v38  ;;  %12013 = vst [vmem:[#allocation156_spill] sm:$0xff] %v9069_v11  ;;  %12014 = vst [vmem:[#allocation157_spill] sm:$0xff] %v9072_v6 }
 0x509   : > { %2768 = vmatpush1.msra.mxu0 %v9025_v5  ;;  %2845 = vmatpush1.msra.mxu1 %v9028_v40  ;;  %12015 = vst [vmem:[#allocation158_spill] sm:$0xff] %v9075_v50 }
 0x50a   : > { %2769 = vmatprep.subr.mxu0 %v9031_v37  ;;  %2846 = vmatprep.subr.mxu1 %v9034_v24 }
 0x50b   : > { %2626 = vmatmul.mubr.f32.gmra.mxu0 %v9017_v33  ;;  %2703 = vmatmul.mubr.f32.gmra.mxu1 %v9017_v33 }
 0x50c   : > { %2770 = vmatpush1.msra.mxu0 %v9039_v43  ;;  %2847 = vmatpush1.msra.mxu1 %v9042_v10 }
 0x50d   : > { %2771 = vmatprep.subr.mxu0 %v9045_v59  ;;  %2848 = vmatprep.subr.mxu1 %v9048_v34 }
 0x50e   : > { %2772 = vmatpush1.msra.mxu0 %v9051_v62  ;;  %2849 = vmatpush1.msra.mxu1 %v9054_v55 }
 0x50f   : > { %2773 = vmatprep.subr.mxu0 %v9057_v13  ;;  %2850 = vmatprep.subr.mxu1 %v9060_v42  ;;  %v9078_v42 = vld [vmem:[#allocation12 + $0x150] sm:$0xff] }
 0x510   : > { %2774 = vmatpush1.msra.mxu0 %v9063_v15  ;;  %2851 = vmatpush1.msra.mxu1 %v9066_v18  ;;  %12016 = vst [vmem:[#allocation159_spill] sm:$0xff] %v9078_v42  ;;  %v9081_v15 = vld [vmem:[#allocation12 + $0x128] sm:$0xff]  ;;  %v9084_v18 = vld [vmem:[#allocation12 + $0x138] sm:$0xff] }
 0x511   : > { %2775 = vmatprep.subr.mxu0 %v9069_v11  ;;  %2852 = vmatprep.subr.mxu1 %v9072_v6  ;;  %12017 = vst [vmem:[#allocation160_spill] sm:$0xff] %v9081_v15  ;;  %12018 = vst [vmem:[#allocation161_spill] sm:$0xff] %v9084_v18  ;;  %v9087_v11 = vld [vmem:[#allocation12 + $0x120] sm:$0xff]  ;;  %v9090_v6 = vld [vmem:[#allocation12 + $0x130] sm:$0xff] }
 0x512   : > { %2776 = vmatpush1.msra.mxu0 %v9075_v50  ;;  %2853 = vmatpush1.msra.mxu1 %v9078_v42  ;;  %12019 = vst [vmem:[#allocation162_spill] sm:$0xff] %v9087_v11  ;;  %12020 = vst [vmem:[#allocation163_spill] sm:$0xff] %v9090_v6  ;;  %v9093_v50 = vld [vmem:[#allocation12 + $0x108] sm:$0xff]  ;;  %v9096_v42 = vld [vmem:[#allocation12 + $0x118] sm:$0xff] }
 0x513   : > { %2777 = vmatprep.subr.mxu0 %v9081_v15  ;;  %2854 = vmatprep.subr.mxu1 %v9084_v18  ;;  %12021 = vst [vmem:[#allocation164_spill] sm:$0xff] %v9093_v50  ;;  %12022 = vst [vmem:[#allocation165_spill] sm:$0xff] %v9096_v42  ;;  %v9099_v15 = vld [vmem:[#allocation12 + $0x100] sm:$0xff]  ;;  %v9102_v18 = vld [vmem:[#allocation12 + $0x110] sm:$0xff] }
 0x514   : > { %2778 = vmatpush1.msra.mxu0 %v9087_v11  ;;  %2855 = vmatpush1.msra.mxu1 %v9090_v6  ;;  %12023 = vst [vmem:[#allocation166_spill] sm:$0xff] %v9099_v15  ;;  %12024 = vst [vmem:[#allocation167_spill] sm:$0xff] %v9102_v18  ;;  %v9105_v11 = vld [vmem:[#allocation12 + $0xe8] sm:$0xff]  ;;  %v9108_v6 = vld [vmem:[#allocation12 + $0xf8] sm:$0xff] }
 0x515   : > { %2779 = vmatprep.subr.mxu0 %v9093_v50  ;;  %2856 = vmatprep.subr.mxu1 %v9096_v42  ;;  %12025 = vst [vmem:[#allocation168_spill] sm:$0xff] %v9105_v11  ;;  %12026 = vst [vmem:[#allocation169_spill] sm:$0xff] %v9108_v6  ;;  %v9111_v50 = vld [vmem:[#allocation12 + $0xe0] sm:$0xff]  ;;  %v9114_v42 = vld [vmem:[#allocation12 + $0xf0] sm:$0xff] }
 0x516   : > { %2780 = vmatpush1.msra.mxu0 %v9099_v15  ;;  %2857 = vmatpush1.msra.mxu1 %v9102_v18  ;;  %12027 = vst [vmem:[#allocation170_spill] sm:$0xff] %v9111_v50  ;;  %12028 = vst [vmem:[#allocation171_spill] sm:$0xff] %v9114_v42  ;;  %v9117_v15 = vld [vmem:[#allocation12 + $0xc8] sm:$0xff]  ;;  %v9120_v18 = vld [vmem:[#allocation12 + $0xd8] sm:$0xff] }
 0x517   : > { %2781 = vmatprep.subr.mxu0 %v9105_v11  ;;  %2858 = vmatprep.subr.mxu1 %v9108_v6  ;;  %12029 = vst [vmem:[#allocation172_spill] sm:$0xff] %v9117_v15  ;;  %12030 = vst [vmem:[#allocation173_spill] sm:$0xff] %v9120_v18  ;;  %v9123_v11 = vld [vmem:[#allocation12 + $0xc0] sm:$0xff]  ;;  %v9126_v6 = vld [vmem:[#allocation12 + $0xd0] sm:$0xff] }
 0x518   : > { %2782 = vmatpush1.msra.mxu0 %v9111_v50  ;;  %2859 = vmatpush1.msra.mxu1 %v9114_v42  ;;  %12031 = vst [vmem:[#allocation174_spill] sm:$0xff] %v9123_v11  ;;  %12032 = vst [vmem:[#allocation175_spill] sm:$0xff] %v9126_v6  ;;  %v9129_v50 = vld [vmem:[#allocation12 + $0xa8] sm:$0xff]  ;;  %v9132_v42 = vld [vmem:[#allocation12 + $0xb8] sm:$0xff] }
 0x519   : > { %2783 = vmatprep.subr.mxu0 %v9117_v15  ;;  %2860 = vmatprep.subr.mxu1 %v9120_v18  ;;  %12033 = vst [vmem:[#allocation176_spill] sm:$0xff] %v9129_v50  ;;  %12034 = vst [vmem:[#allocation177_spill] sm:$0xff] %v9132_v42  ;;  %v9135_v15 = vld [vmem:[#allocation12 + $0xa0] sm:$0xff]  ;;  %v9138_v18 = vld [vmem:[#allocation12 + $0xb0] sm:$0xff] }
 0x51a   : > { %2784 = vmatpush1.msra.mxu0 %v9123_v11  ;;  %2861 = vmatpush1.msra.mxu1 %v9126_v6  ;;  %12035 = vst [vmem:[#allocation178_spill] sm:$0xff] %v9135_v15  ;;  %12036 = vst [vmem:[#allocation179_spill] sm:$0xff] %v9138_v18  ;;  %v9141_v11 = vld [vmem:[#allocation12 + $0x88] sm:$0xff]  ;;  %v9144_v6 = vld [vmem:[#allocation12 + $0x98] sm:$0xff] }
 0x51b   : > { %2785 = vmatprep.subr.mxu0 %v9129_v50  ;;  %2862 = vmatprep.subr.mxu1 %v9132_v42  ;;  %12037 = vst [vmem:[#allocation180_spill] sm:$0xff] %v9141_v11  ;;  %12038 = vst [vmem:[#allocation181_spill] sm:$0xff] %v9144_v6  ;;  %v9147_v50 = vld [vmem:[#allocation12 + $0x80] sm:$0xff]  ;;  %v9150_v42 = vld [vmem:[#allocation12 + $0x90] sm:$0xff] }
 0x51c   : > { %2786 = vmatpush1.msra.mxu0 %v9135_v15  ;;  %2863 = vmatpush1.msra.mxu1 %v9138_v18  ;;  %12039 = vst [vmem:[#allocation182_spill] sm:$0xff] %v9147_v50  ;;  %12040 = vst [vmem:[#allocation183_spill] sm:$0xff] %v9150_v42  ;;  %v9153_v15 = vld [vmem:[#allocation12 + $0x68] sm:$0xff]  ;;  %v9156_v18 = vld [vmem:[#allocation12 + $0x78] sm:$0xff] }
 0x51d   : > { %2787 = vmatprep.subr.mxu0 %v9141_v11  ;;  %2864 = vmatprep.subr.mxu1 %v9144_v6  ;;  %12041 = vst [vmem:[#allocation184_spill] sm:$0xff] %v9153_v15  ;;  %12042 = vst [vmem:[#allocation185_spill] sm:$0xff] %v9156_v18  ;;  %v9159_v11 = vld [vmem:[#allocation12 + $0x60] sm:$0xff]  ;;  %v9162_v6 = vld [vmem:[#allocation12 + $0x70] sm:$0xff] }
 0x51e   : > { %2788 = vmatpush1.msra.mxu0 %v9147_v50  ;;  %2865 = vmatpush1.msra.mxu1 %v9150_v42  ;;  %12043 = vst [vmem:[#allocation186_spill] sm:$0xff] %v9159_v11  ;;  %12044 = vst [vmem:[#allocation187_spill] sm:$0xff] %v9162_v6  ;;  %v9165_v50 = vld [vmem:[#allocation12 + $0x48] sm:$0xff]  ;;  %v9168_v42 = vld [vmem:[#allocation12 + $0x58] sm:$0xff] }
 0x51f   : > { %2789 = vmatprep.subr.mxu0 %v9153_v15  ;;  %2866 = vmatprep.subr.mxu1 %v9156_v18  ;;  %12045 = vst [vmem:[#allocation188_spill] sm:$0xff] %v9165_v50  ;;  %12046 = vst [vmem:[#allocation189_spill] sm:$0xff] %v9168_v42  ;;  %v9171_v15 = vld [vmem:[#allocation12 + $0x40] sm:$0xff]  ;;  %v9174_v18 = vld [vmem:[#allocation12 + $0x50] sm:$0xff] }
 0x520   : > { %2790 = vmatpush1.msra.mxu0 %v9159_v11  ;;  %2867 = vmatpush1.msra.mxu1 %v9162_v6  ;;  %12047 = vst [vmem:[#allocation190_spill] sm:$0xff] %v9171_v15  ;;  %12048 = vst [vmem:[#allocation191_spill] sm:$0xff] %v9174_v18  ;;  %v9177_v11 = vld [vmem:[#allocation12 + $0x28] sm:$0xff]  ;;  %v9180_v6 = vld [vmem:[#allocation12 + $0x38] sm:$0xff] }
 0x521   : > { %2791 = vmatprep.subr.mxu0 %v9165_v50  ;;  %2868 = vmatprep.subr.mxu1 %v9168_v42  ;;  %12049 = vst [vmem:[#allocation192_spill] sm:$0xff] %v9177_v11  ;;  %12050 = vst [vmem:[#allocation193_spill] sm:$0xff] %v9180_v6  ;;  %v9183_v50 = vld [vmem:[#allocation12 + $0x20] sm:$0xff]  ;;  %v9186_v42 = vld [vmem:[#allocation12 + $0x30] sm:$0xff] }
 0x522   : > { %2792 = vmatpush1.msra.mxu0 %v9171_v15  ;;  %2869 = vmatpush1.msra.mxu1 %v9174_v18  ;;  %v9189_v15 = vld [vmem:[#allocation12 + $0x8] sm:$0xff]  ;;  %v9192_v18 = vld [vmem:[#allocation12 + $0x18] sm:$0xff] }
 0x523   : > { %2793 = vmatprep.subr.mxu0 %v9177_v11  ;;  %2870 = vmatprep.subr.mxu1 %v9180_v6  ;;  %12051 = vst [vmem:[#allocation194_spill] sm:$0xff] %v9189_v15  ;;  %12052 = vst [vmem:[#allocation195_spill] sm:$0xff] %v9192_v18  ;;  %v9195_v11 = vld [vmem:[#allocation12] sm:$0xff]  ;;  %v9199_v6 = vld [vmem:[#allocation12 + $0x10] sm:$0xff] }
 0x524   : > { %2794 = vmatpush1.msra.mxu0 %v9183_v50  ;;  %2871 = vmatpush1.msra.mxu1 %v9186_v42  ;;  %12053 = vst [vmem:[#allocation196_spill] sm:$0xff] %v9195_v11  ;;  %12054 = vst [vmem:[#allocation197_spill] sm:$0xff] %v9199_v6 }
 0x525   : > { %2795 = vmatprep.subr.mxu0 %v9189_v15  ;;  %2872 = vmatprep.subr.mxu1 %v9192_v18  ;;  %v9207_v18 = vld [vmem:[#allocation13 + $0x1e8] sm:$0xff]  ;;  %v9213_v15 = vld [vmem:[#allocation13 + $0x1e0] sm:$0xff] }
 0x526   : > { %2796 = vmatpush1.msra.mxu0 %v9195_v11  ;;  %2829 = vmatprep.mubr.f32.mxu0 %v11717_v32  ;;  %12055 = vst [vmem:[#allocation198_spill] sm:$0xff] %v9207_v18  ;;  %v9210_v11 = vld [vmem:[#allocation13 + $0x1f8] sm:$0xff]  ;;  %12057 = vst [vmem:[#allocation200_spill] sm:$0xff] %v9213_v15 }
 0x527   : > { %2873 = vmatpush1.msra.mxu1 %v9199_v6  ;;  %2906 = vmatprep.mubr.f32.mxu1 %v11717_v32  ;;  %12056 = vst [vmem:[#allocation199_spill] sm:$0xff] %v9210_v11  ;;  %v9216_v6 = vld [vmem:[#allocation13 + $0x1f0] sm:$0xff] }
 0x528   : > { %2830 = vmatmul.mubr.f32.vlgmr.msra.gmra.mxu0 %v9003_v22  ;;  %2907 = vmatmul.mubr.f32.vlgmr.msra.gmra.mxu1 %v9003_v22  ;;  %12058 = vst [vmem:[#allocation201_spill] sm:$0xff] %v9216_v6  ;;  %v9221_v22 = vld [vmem:[#allocation13 + $0x1c8] sm:$0xff] }
 0x529   : > { %2835 = vmatprep.mubr.f32.mxu0 %v11717_v32  ;;  %2912 = vmatprep.mubr.f32.mxu1 %v11717_v32  ;;  %12059 = vst [vmem:[#allocation202_spill] sm:$0xff] %v9221_v22 }
 0x52a   : > { %2973 = vmatprep.subr.mxu0 %v9207_v18  ;;  %3050 = vmatprep.subr.mxu1 %v9210_v11  ;;  %v9224_v18 = vld [vmem:[#allocation13 + $0x1d8] sm:$0xff]  ;;  %v9227_v11 = vld [vmem:[#allocation13 + $0x1c0] sm:$0xff] }
 0x52b   : > { %2974 = vmatpush1.msra.mxu0 %v9213_v15  ;;  %3051 = vmatpush1.msra.mxu1 %v9216_v6  ;;  %12060 = vst [vmem:[#allocation203_spill] sm:$0xff] %v9224_v18  ;;  %12061 = vst [vmem:[#allocation204_spill] sm:$0xff] %v9227_v11  ;;  %v9230_v15 = vld [vmem:[#allocation13 + $0x1d0] sm:$0xff]  ;;  %v9233_v6 = vld [vmem:[#allocation13 + $0x1a8] sm:$0xff] }
 0x52c   : > { %2836 = vmatmul.mubr.f32.gmra.mxu0 %v9017_v33  ;;  %2913 = vmatmul.mubr.f32.gmra.mxu1 %v9017_v33  ;;  %12062 = vst [vmem:[#allocation205_spill] sm:$0xff] %v9230_v15  ;;  %12063 = vst [vmem:[#allocation206_spill] sm:$0xff] %v9233_v6  ;;  %v9236_v33 = vld [vmem:[#allocation13 + $0x1b8] sm:$0xff] }
 0x52d   : > { %2975 = vmatprep.subr.mxu0 %v9221_v22  ;;  %3052 = vmatprep.subr.mxu1 %v9224_v18  ;;  %12064 = vst [vmem:[#allocation207_spill] sm:$0xff] %v9236_v33  ;;  %v9239_v22 = vld [vmem:[#allocation13 + $0x1a0] sm:$0xff]  ;;  %v9242_v18 = vld [vmem:[#allocation13 + $0x1b0] sm:$0xff] }
 0x52e   : > { %2976 = vmatpush1.msra.mxu0 %v9227_v11  ;;  %3053 = vmatpush1.msra.mxu1 %v9230_v15  ;;  %12065 = vst [vmem:[#allocation208_spill] sm:$0xff] %v9239_v22  ;;  %12066 = vst [vmem:[#allocation209_spill] sm:$0xff] %v9242_v18  ;;  %v9245_v11 = vld [vmem:[#allocation13 + $0x188] sm:$0xff]  ;;  %v9248_v15 = vld [vmem:[#allocation13 + $0x198] sm:$0xff] }
 0x52f   : > { %2977 = vmatprep.subr.mxu0 %v9233_v6  ;;  %3054 = vmatprep.subr.mxu1 %v9236_v33  ;;  %12067 = vst [vmem:[#allocation210_spill] sm:$0xff] %v9245_v11  ;;  %12068 = vst [vmem:[#allocation211_spill] sm:$0xff] %v9248_v15  ;;  %v9251_v6 = vld [vmem:[#allocation13 + $0x180] sm:$0xff]  ;;  %v9254_v33 = vld [vmem:[#allocation13 + $0x190] sm:$0xff] }
 0x530   : > { %2978 = vmatpush1.msra.mxu0 %v9239_v22  ;;  %3055 = vmatpush1.msra.mxu1 %v9242_v18  ;;  %12069 = vst [vmem:[#allocation212_spill] sm:$0xff] %v9251_v6  ;;  %12070 = vst [vmem:[#allocation213_spill] sm:$0xff] %v9254_v33  ;;  %v9257_v22 = vld [vmem:[#allocation13 + $0x168] sm:$0xff]  ;;  %v9260_v18 = vld [vmem:[#allocation13 + $0x178] sm:$0xff] }
 0x531   : > { %2979 = vmatprep.subr.mxu0 %v9245_v11  ;;  %3056 = vmatprep.subr.mxu1 %v9248_v15  ;;  %12071 = vst [vmem:[#allocation214_spill] sm:$0xff] %v9257_v22  ;;  %12072 = vst [vmem:[#allocation105_spill] sm:$0xff] %v9260_v18  ;;  %v9263_v11 = vld [vmem:[#allocation13 + $0x160] sm:$0xff]  ;;  %v9266_v15 = vld [vmem:[#allocation13 + $0x170] sm:$0xff] }
 0x532   : > { %2980 = vmatpush1.msra.mxu0 %v9251_v6  ;;  %3057 = vmatpush1.msra.mxu1 %v9254_v33  ;;  %v9269_v6 = vld [vmem:[#allocation13 + $0x148] sm:$0xff]  ;;  %v9272_v33 = vld [vmem:[#allocation13 + $0x158] sm:$0xff] }
 0x533   : > { %2981 = vmatprep.subr.mxu0 %v9257_v22  ;;  %3058 = vmatprep.subr.mxu1 %v9260_v18  ;;  %v9275_v22 = vld [vmem:[#allocation13 + $0x140] sm:$0xff]  ;;  %v9278_v18 = vld [vmem:[#allocation13 + $0x150] sm:$0xff] }
 0x534   : > { %2982 = vmatpush1.msra.mxu0 %v9263_v11  ;;  %3059 = vmatpush1.msra.mxu1 %v9266_v15 }
 0x535   : > { %2983 = vmatprep.subr.mxu0 %v9269_v6  ;;  %3060 = vmatprep.subr.mxu1 %v9272_v33 }
 0x536   : > { %2984 = vmatpush1.msra.mxu0 %v9275_v22  ;;  %3061 = vmatpush1.msra.mxu1 %v9278_v18 }
 0x537   : > { %2985 = vmatprep.subr.mxu0 %v8649_v19  ;;  %3062 = vmatprep.subr.mxu1 %v8652_v44  ;;  %v12073_v19 = vld [vmem:[#allocation31_spill] sm:$0xff]  ;;  %v12074_v44 = vld [vmem:[#allocation32_spill] sm:$0xff] }
 0x538   : > { %2986 = vmatpush1.msra.mxu0 %v8655_v29  ;;  %3063 = vmatpush1.msra.mxu1 %v8658_v20  ;;  %v12075_v29 = vld [vmem:[#allocation33_spill] sm:$0xff]  ;;  %v12076_v20 = vld [vmem:[#allocation34_spill] sm:$0xff] }
 0x539   : > { %2987 = vmatprep.subr.mxu0 %v8661_v16  ;;  %3064 = vmatprep.subr.mxu1 %v8664_v14  ;;  %v12077_v16 = vld [vmem:[#allocation35_spill] sm:$0xff]  ;;  %v12078_v14 = vld [vmem:[#allocation36_spill] sm:$0xff] }
 0x53a   : > { %2988 = vmatpush1.msra.mxu0 %v8667_v31  ;;  %3065 = vmatpush1.msra.mxu1 %v8670_v54  ;;  %v12079_v31 = vld [vmem:[#allocation37_spill] sm:$0xff]  ;;  %v12080_v54 = vld [vmem:[#allocation38_spill] sm:$0xff] }
 0x53b   : > { %2989 = vmatprep.subr.mxu0 %v8673_v23  ;;  %3066 = vmatprep.subr.mxu1 %v8676_v63  ;;  %v12081_v23 = vld [vmem:[#allocation39_spill] sm:$0xff]  ;;  %v12082_v63 = vld [vmem:[#allocation40_spill] sm:$0xff] }
 0x53c   : > { %2990 = vmatpush1.msra.mxu0 %v8679_v1  ;;  %3067 = vmatpush1.msra.mxu1 %v8682_v45  ;;  %v12083_v1 = vld [vmem:[#allocation41_spill] sm:$0xff]  ;;  %v12084_v45 = vld [vmem:[#allocation42_spill] sm:$0xff] }
 0x53d   : > { %2991 = vmatprep.subr.mxu0 %v8685_v47  ;;  %3068 = vmatprep.subr.mxu1 %v8688_v2  ;;  %v12085_v47 = vld [vmem:[#allocation43_spill] sm:$0xff]  ;;  %v12086_v2 = vld [vmem:[#allocation44_spill] sm:$0xff] }
 0x53e   : > { %2992 = vmatpush1.msra.mxu0 %v8691_v4  ;;  %3069 = vmatpush1.msra.mxu1 %v8694_v7  ;;  %v12087_v4 = vld [vmem:[#allocation45_spill] sm:$0xff]  ;;  %v12088_v7 = vld [vmem:[#allocation46_spill] sm:$0xff] }
 0x53f   : > { %2993 = vmatprep.subr.mxu0 %v8697_v25  ;;  %3070 = vmatprep.subr.mxu1 %v8700_v8  ;;  %v12089_v25 = vld [vmem:[#allocation47_spill] sm:$0xff]  ;;  %v12090_v8 = vld [vmem:[#allocation48_spill] sm:$0xff] }
 0x540   : > { %2994 = vmatpush1.msra.mxu0 %v8703_v9  ;;  %3071 = vmatpush1.msra.mxu1 %v8706_v17  ;;  %v12091_v9 = vld [vmem:[#allocation49_spill] sm:$0xff]  ;;  %v12092_v17 = vld [vmem:[#allocation50_spill] sm:$0xff] }
 0x541   : > { %2995 = vmatprep.subr.mxu0 %v8709_v48  ;;  %3072 = vmatprep.subr.mxu1 %v8712_v49  ;;  %v12093_v48 = vld [vmem:[#allocation51_spill] sm:$0xff]  ;;  %v12094_v49 = vld [vmem:[#allocation52_spill] sm:$0xff] }
 0x542   : > { %2996 = vmatpush1.msra.mxu0 %v8715_v51  ;;  %3073 = vmatpush1.msra.mxu1 %v8718_v30  ;;  %v12095_v51 = vld [vmem:[#allocation53_spill] sm:$0xff]  ;;  %v12096_v30 = vld [vmem:[#allocation54_spill] sm:$0xff] }
 0x543   : > { %2997 = vmatprep.subr.mxu0 %v8721_v28  ;;  %3074 = vmatprep.subr.mxu1 %v8724_v35  ;;  %v12097_v28 = vld [vmem:[#allocation55_spill] sm:$0xff]  ;;  %v12098_v35 = vld [vmem:[#allocation56_spill] sm:$0xff] }
 0x544   : > { %2998 = vmatpush1.msra.mxu0 %v8727_v36  ;;  %3075 = vmatpush1.msra.mxu1 %v8730_v0  ;;  %v12099_v36 = vld [vmem:[#allocation57_spill] sm:$0xff]  ;;  %v12100_v0 = vld [vmem:[#allocation58_spill] sm:$0xff] }
 0x545   : > { %2999 = vmatprep.subr.mxu0 %v8733_v56  ;;  %3076 = vmatprep.subr.mxu1 %v8736_v57  ;;  %v12101_v56 = vld [vmem:[#allocation59_spill] sm:$0xff]  ;;  %v12102_v57 = vld [vmem:[#allocation60_spill] sm:$0xff] }
 0x546   : > { %3000 = vmatpush1.msra.mxu0 %v8739_v58  ;;  %3077 = vmatpush1.msra.mxu1 %v8742_v21  ;;  %v12103_v58 = vld [vmem:[#allocation61_spill] sm:$0xff]  ;;  %v12104_v21 = vld [vmem:[#allocation62_spill] sm:$0xff] }
 0x547   : > { %3001 = vmatprep.subr.mxu0 %v8745_v60  ;;  %3078 = vmatprep.subr.mxu1 %v8748_v61  ;;  %v12105_v60 = vld [vmem:[#allocation63_spill] sm:$0xff]  ;;  %v12106_v61 = vld [vmem:[#allocation64_spill] sm:$0xff] }
 0x548   : > { %3002 = vmatpush1.msra.mxu0 %v8751_v46  ;;  %3079 = vmatpush1.msra.mxu1 %v12073_v19  ;;  %v12107_v46 = vld [vmem:[#allocation65_spill] sm:$0xff]  ;;  %v12108_v19 = vld [vmem:[#allocation66_spill] sm:$0xff] }
 0x549   : > { %3003 = vmatprep.subr.mxu0 %v12074_v44  ;;  %3080 = vmatprep.subr.mxu1 %v12075_v29  ;;  %v12109_v44 = vld [vmem:[#allocation67_spill] sm:$0xff]  ;;  %v12110_v29 = vld [vmem:[#allocation68_spill] sm:$0xff] }
 0x54a   : > { %3004 = vmatpush1.msra.mxu0 %v12076_v20  ;;  %3081 = vmatpush1.msra.mxu1 %v12077_v16  ;;  %v12111_v20 = vld [vmem:[#allocation69_spill] sm:$0xff]  ;;  %v12112_v16 = vld [vmem:[#allocation70_spill] sm:$0xff] }
 0x54b   : > { %3005 = vmatprep.subr.mxu0 %v12078_v14  ;;  %3082 = vmatprep.subr.mxu1 %v12079_v31  ;;  %v12113_v14 = vld [vmem:[#allocation71_spill] sm:$0xff]  ;;  %v12114_v31 = vld [vmem:[#allocation72_spill] sm:$0xff] }
 0x54c   : > { %3006 = vmatpush2.msra.mxu0 %v12080_v54  ;;  %3083 = vmatpush2.msra.mxu1 %v12081_v23  ;;  %v12115_v54 = vld [vmem:[#allocation73_spill] sm:$0xff]  ;;  %v12116_v23 = vld [vmem:[#allocation74_spill] sm:$0xff] }
 0x54d   : > { %3007 = vmatprep.subr.mxu0 %v12082_v63  ;;  %3084 = vmatprep.subr.mxu1 %v12083_v1  ;;  %v12117_v63 = vld [vmem:[#allocation75_spill] sm:$0xff]  ;;  %v12118_v1 = vld [vmem:[#allocation76_spill] sm:$0xff] }
 0x54e   : > { %3008 = vmatpush2.msra.mxu0 %v12084_v45  ;;  %3085 = vmatpush2.msra.mxu1 %v12085_v47  ;;  %v12119_v45 = vld [vmem:[#allocation77_spill] sm:$0xff]  ;;  %v12120_v47 = vld [vmem:[#allocation78_spill] sm:$0xff] }
 0x54f   : > { %3009 = vmatprep.subr.mxu0 %v12086_v2  ;;  %3086 = vmatprep.subr.mxu1 %v12087_v4  ;;  %v12121_v2 = vld [vmem:[#allocation79_spill] sm:$0xff]  ;;  %v12122_v4 = vld [vmem:[#allocation80_spill] sm:$0xff] }
 0x550   : > { %3010 = vmatpush2.msra.mxu0 %v12088_v7  ;;  %3087 = vmatpush2.msra.mxu1 %v12089_v25  ;;  %v12123_v7 = vld [vmem:[#allocation81_spill] sm:$0xff]  ;;  %v12124_v25 = vld [vmem:[#allocation82_spill] sm:$0xff] }
 0x551   : > { %3011 = vmatprep.subr.mxu0 %v12090_v8  ;;  %3088 = vmatprep.subr.mxu1 %v12091_v9  ;;  %v12125_v8 = vld [vmem:[#allocation83_spill] sm:$0xff]  ;;  %v12126_v9 = vld [vmem:[#allocation84_spill] sm:$0xff] }
 0x552   : > { %3012 = vmatpush2.msra.mxu0 %v12092_v17  ;;  %3089 = vmatpush2.msra.mxu1 %v12093_v48  ;;  %v12127_v17 = vld [vmem:[#allocation85_spill] sm:$0xff]  ;;  %v12128_v48 = vld [vmem:[#allocation86_spill] sm:$0xff] }
 0x553   : > { %3013 = vmatprep.subr.mxu0 %v12094_v49  ;;  %3090 = vmatprep.subr.mxu1 %v12095_v51  ;;  %v12129_v49 = vld [vmem:[#allocation87_spill] sm:$0xff]  ;;  %v12130_v51 = vld [vmem:[#allocation88_spill] sm:$0xff] }
 0x554   : > { %3014 = vmatpush2.msra.mxu0 %v12096_v30  ;;  %3091 = vmatpush2.msra.mxu1 %v12097_v28  ;;  %v12131_v30 = vld [vmem:[#allocation89_spill] sm:$0xff]  ;;  %v12132_v28 = vld [vmem:[#allocation90_spill] sm:$0xff] }
 0x555   : > { %3015 = vmatprep.subr.mxu0 %v12098_v35  ;;  %3092 = vmatprep.subr.mxu1 %v12099_v36  ;;  %v12133_v35 = vld [vmem:[#allocation91_spill] sm:$0xff]  ;;  %v12134_v36 = vld [vmem:[#allocation92_spill] sm:$0xff] }
 0x556   : > { %3016 = vmatpush2.msra.mxu0 %v12100_v0  ;;  %3093 = vmatpush2.msra.mxu1 %v12101_v56  ;;  %v12135_v0 = vld [vmem:[#allocation93_spill] sm:$0xff]  ;;  %v12136_v56 = vld [vmem:[#allocation94_spill] sm:$0xff] }
 0x557   : > { %3017 = vmatprep.subr.mxu0 %v12102_v57  ;;  %3094 = vmatprep.subr.mxu1 %v12103_v58  ;;  %v12137_v57 = vld [vmem:[#allocation95_spill] sm:$0xff]  ;;  %v12138_v58 = vld [vmem:[#allocation96_spill] sm:$0xff] }
 0x558   : > { %3018 = vmatpush2.msra.mxu0 %v12104_v21  ;;  %3095 = vmatpush2.msra.mxu1 %v12105_v60  ;;  %v12139_v21 = vld [vmem:[#allocation97_spill] sm:$0xff]  ;;  %v12140_v60 = vld [vmem:[#allocation99_spill] sm:$0xff] }
 0x559   : > { %3019 = vmatprep.subr.mxu0 %v12106_v61  ;;  %3096 = vmatprep.subr.mxu1 %v12107_v46  ;;  %v12141_v61 = vld [vmem:[#allocation98_spill] sm:$0xff]  ;;  %v12142_v46 = vld [vmem:[#allocation101_spill] sm:$0xff] }
 0x55a   : > { %3020 = vmatpush2.msra.mxu0 %v12108_v19  ;;  %3097 = vmatpush2.msra.mxu1 %v12109_v44  ;;  %v12143_v19 = vld [vmem:[#allocation103_spill] sm:$0xff] }
 0x55b   : > { %3021 = vmatprep.subr.mxu0 %v12110_v29  ;;  %3098 = vmatprep.subr.mxu1 %v12111_v20  ;;  %v12144_v29 = vld [vmem:[#allocation27_spill] sm:$0xff] }
 0x55c   : > { %3022 = vmatpush2.msra.mxu0 %v12112_v16  ;;  %3099 = vmatpush2.msra.mxu1 %v12113_v14 }
 0x55d   : > { %3023 = vmatprep.subr.mxu0 %v12114_v31  ;;  %3100 = vmatprep.subr.mxu1 %v12115_v54  ;;  %v12145_v31 = vld [vmem:[#allocation28_spill] sm:$0xff] }
 0x55e   : > { %3024 = vmatpush2.msra.mxu0 %v12116_v23  ;;  %3101 = vmatpush2.msra.mxu1 %v12117_v63 }
 0x55f   : > { %3025 = vmatprep.subr.mxu0 %v12118_v1  ;;  %3102 = vmatprep.subr.mxu1 %v12119_v45 }
 0x560   : > { %3026 = vmatpush2.msra.mxu0 %v12120_v47  ;;  %3103 = vmatpush2.msra.mxu1 %v12121_v2 }
 0x561   : > { %3027 = vmatprep.subr.mxu0 %v12122_v4  ;;  %3104 = vmatprep.subr.mxu1 %v12123_v7 }
 0x562   : > { %3028 = vmatpush2.msra.mxu0 %v12124_v25  ;;  %3105 = vmatpush2.msra.mxu1 %v12125_v8 }
 0x563   : > { %3029 = vmatprep.subr.mxu0 %v12126_v9  ;;  %3106 = vmatprep.subr.mxu1 %v12127_v17 }
 0x564   : > { %3030 = vmatpush2.msra.mxu0 %v12128_v48  ;;  %3107 = vmatpush2.msra.mxu1 %v12129_v49 }
 0x565   : > { %3031 = vmatprep.subr.mxu0 %v12130_v51  ;;  %3108 = vmatprep.subr.mxu1 %v12131_v30 }
 0x566   : > { %3032 = vmatpush2.msra.mxu0 %v12132_v28  ;;  %3109 = vmatpush2.msra.mxu1 %v12133_v35  ;;  %v12146_v28 = vld [vmem:[#allocation102_spill] sm:$0xff] }
 0x567   : > { %3033 = vmatprep.subr.mxu0 %v12134_v36  ;;  %3110 = vmatprep.subr.mxu1 %v12135_v0 }
 0x568   : > { %3034 = vmatpush2.msra.mxu0 %v12136_v56  ;;  %3111 = vmatpush2.msra.mxu1 %v12137_v57 }
 0x569   : > { %3035 = vmatprep.subr.mxu0 %v12138_v58  ;;  %3112 = vmatprep.subr.mxu1 %v12139_v21 }
 0x56a   : > { %3036 = vmatpush2.msra.mxu0 %v12140_v60  ;;  %3113 = vmatpush2.msra.mxu1 %v12141_v61 }
 0x56b   : > { %3183 = vmatprep.subr.mxu0 %v12142_v46  ;;  %3260 = vmatprep.subr.mxu1 %v12143_v19 }
 0x5c5   : > { %v2621_v44 = vpop.f32.mrf.mxu0  ;;  %v2698_v23 = vpop.f32.mrf.mxu1 }
 0x5c6   : > { %v2622_v20 = vadd.f32 %v2621_v44, %v12144_v29  ;;  %v2699_v1 = vadd.f32 %v2698_v23, %v8504_v52  ;;  %v12147_v44 = vld [vmem:[#allocation113_spill] sm:$0xff] }
 0x5c7   : > { %v2623_v16 = vpop.f32.mrf.mxu0  ;;  %v2700_v45 = vpop.f32.mrf.mxu1 }
 0x5c8   : > { %v2711_v14 = vmul.f32 0.5, %v2622_v20  ;;  %v2624_v54 = vadd.f32 %v2623_v16, %v12145_v31  ;;  %v2701_v47 = vadd.f32 %v2700_v45, %v8510_v53 }
 0x5ca   : > { %5880 = vtanh.f32 %v2711_v14  ;;  %v2719_v63 = vmul.f32 0.5, %v2624_v54  ;;  %v2729_v4 = vmul.f32 0.5, %v2701_v47  ;;  %v12149_v47 = vld [vmem:[#allocation114_spill] sm:$0xff] }
 0x5cb   : > { %v2627_v2 = vpop.f32.mrf.mxu0  ;;  %v2704_v21 = vpop.f32.mrf.mxu1 }
 0x5cc   : > { %5882 = vtanh.f32 %v2719_v63  ;;  %v2628_v0 = vadd.f32 %v2627_v2, %v12144_v29  ;;  %v2705_v14 = vadd.f32 %v2704_v21, %v8504_v52 }
 0x5cd   : > { %5884 = vtanh.f32 %v2699_v1  ;;  %v2629_v9 = vpop.f32.mrf.mxu0  ;;  %v2706_v60 = vpop.f32.mrf.mxu1  ;;  %v12148_v1 = vld [vmem:[#allocation115_spill] sm:$0xff] }
 0x5ce   : > { %5886 = vtanh.f32 %v2729_v4  ;;  %v2630_v51 = vadd.f32 %v2629_v9, %v12145_v31  ;;  %v2712_v58 = vmul.f32 0.5, %v2628_v0  ;;  %v12153_v0 = vld [vmem:[#allocation118_spill] sm:$0xff] }
 0x5d0   : > { %v2720_v57 = vmul.f32 0.5, %v2630_v51 }
 0x5d7   : > { %v5881_v7 = vpop.eup %5880 }
 0x5d8   : > { %v2715_v25 = vmul.f32 0.5, %v5881_v7 }
 0x5d9   : > { %v5883_v8 = vpop.eup %5882 }
 0x5da   : > { %v2717_v17 = vadd.f32 0.5, %v2715_v25  ;;  %v2723_v48 = vmul.f32 0.5, %v5883_v8  ;;  %v5885_v30 = vpop.eup %5884  ;;  %v12150_v25 = vld [vmem:[#allocation117_spill] sm:$0xff] }
 0x5db   : > { %v5887_v61 = vpop.eup %5886 }
 0x5dc   : > { %v2725_v49 = vadd.f32 0.5, %v2723_v48  ;;  %v2739_v36 = vmul.f32 %v5885_v30, %v2717_v17  ;;  %v2733_v16 = vmul.f32 0.5, %v5887_v61  ;;  %v12151_v30 = vld [vmem:[#allocation119_spill] sm:$0xff] }
 0x5de   : > { %v2737_v35 = vmul.f32 %v2725_v49, %v12146_v28  ;;  %v2735_v9 = vadd.f32 0.5, %v2733_v16  ;;  %v2707_v16 = vadd.f32 %v2706_v60, %v8510_v53 }
 0x5e0   : > { %v9394_v56 = vadd.f32 %v2739_v36, %v2737_v35 }
 0x5e2   : > { %5888 = vtanh.f32 %v9394_v56 }
 0x5e3   : > { %5890 = vtanh.f32 %v2720_v57 }
 0x5e4   : > { %5892 = vtanh.f32 %v2712_v58 }
 0x5e8   : > { %v2831_v46 = vpop.f32.mrf.mxu0  ;;  %v2908_v19 = vpop.f32.mrf.mxu1 }
 0x5e9   : > { %v2919_v20 = vadd.f32 %v2831_v46, %v12147_v44  ;;  %v2921_v2 = vadd.f32 %v2908_v19, %v12149_v47  ;;  %v12154_v46 = vld [vmem:[#allocation116_spill] sm:$0xff] }
 0x5ea   : > { %v2833_v54 = vpop.f32.mrf.mxu0  ;;  %v2910_v23 = vpop.f32.mrf.mxu1 }
 0x5eb   : > { %v2929_v63 = vmul.f32 0.5, %v2919_v20  ;;  %v2920_v45 = vadd.f32 %v2833_v54, %v12148_v1  ;;  %v2922_v19 = vadd.f32 %v2910_v23, %v12154_v46 }
 0x5ec   : > { %v2837_v4 = vpop.f32.mrf.mxu0  ;;  %v2914_v17 = vpop.f32.mrf.mxu1 }
 0x5ed   : > { %5894 = vtanh.f32 %v2929_v63  ;;  %v2937_v7 = vmul.f32 0.5, %v2920_v45  ;;  %v2923_v8 = vadd.f32 %v2837_v4, %v12150_v25  ;;  %v2925_v57 = vadd.f32 %v2914_v17, %v12153_v0  ;;  %v12155_v63 = vld [vmem:[#allocation120_spill] sm:$0xff] }
 0x5ee   : > { %5896 = vtanh.f32 %v2705_v14  ;;  %v2839_v48 = vpop.f32.mrf.mxu0  ;;  %v2916_v20 = vpop.f32.mrf.mxu1  ;;  %v2947_v54 = vmul.f32 0.5, %v2922_v19  ;;  %v2730_v4 = vmul.f32 0.5, %v2707_v16 }
 0x5ef   : > { %v5889_v49 = vpop.eup %5888  ;;  %5898 = vtanh.f32 %v2937_v7  ;;  %v2930_v51 = vmul.f32 0.5, %v2923_v8  ;;  %v2924_v28 = vadd.f32 %v2839_v48, %v12151_v30  ;;  %v2926_v1 = vadd.f32 %v2916_v20, %v12155_v63 }
 0x5f0   : > { %5900 = vtanh.f32 %v2921_v2  ;;  %v9403_v35 = vmul.f32 %v5889_v49, %v2735_v9  ;;  %v5891_v36 = vpop.eup %5890 }
 0x5f1   : > { %5902 = vtanh.f32 %v2930_v51  ;;  %v2938_v58 = vmul.f32 0.5, %v2924_v28  ;;  %v5893_v21 = vpop.eup %5892  ;;  %v2724_v61 = vmul.f32 0.5, %v5891_v36  ;;  %v2948_v48 = vmul.f32 0.5, %v2926_v1 }
 0x5f2   : > { %12152 = vst [vmem:[#allocation107_spill] sm:$0xff] %v9403_v35  ;;  %3037 = vmatprep.mubr.f32.mxu0 %v9403_v35  ;;  %3114 = vmatprep.mubr.f32.mxu1 %v9403_v35  ;;  %v2716_v44 = vmul.f32 0.5, %v5893_v21  ;;  %v9691_v35 = vld [vmem:[#allocation13 + $0x380] sm:$0xff] }
 0x5f3   : > { %5904 = vtanh.f32 %v2938_v58  ;;  %v2726_v14 = vadd.f32 0.5, %v2724_v61  ;;  %12239 = vst [vmem:[#allocation45_spill] sm:$0xff] %v9691_v35 }
 0x5f4   : > { %5906 = vtanh.f32 %v2925_v57  ;;  %v2718_v47 = vadd.f32 0.5, %v2716_v44 }
 0x5f5   : > { %v2738_v8 = vmul.f32 %v2726_v14, %v8992_v41  ;;  %5908 = vtanh.f32 %v2947_v54 }
 0x5f6   : > { %5910 = vtanh.f32 %v2730_v4 }
 0x5f7   : > { %5912 = vtanh.f32 %v2948_v48  ;;  %v12174_v48 = vld [vmem:[#allocation170_spill] sm:$0xff] }
 0x5fa   : > { %v5895_v45 = vpop.eup %5894 }
 0x5fb   : > { %v5897_v2 = vpop.eup %5896  ;;  %v2933_v7 = vmul.f32 0.5, %v5895_v45 }
 0x5fc   : > { %v5899_v25 = vpop.eup %5898  ;;  %v2740_v51 = vmul.f32 %v5897_v2, %v2718_v47 }
 0x5fd   : > { %v5901_v9 = vpop.eup %5900  ;;  %v2935_v17 = vadd.f32 0.5, %v2933_v7  ;;  %v2941_v23 = vmul.f32 0.5, %v5899_v25 }
 0x5fe   : > { %v5903_v49 = vpop.eup %5902  ;;  %v9412_v0 = vadd.f32 %v2740_v51, %v2738_v8  ;;  %v12176_v51 = vld [vmem:[#allocation172_spill] sm:$0xff] }
 0x5ff   : > { %v2943_v60 = vadd.f32 0.5, %v2941_v23  ;;  %v2957_v30 = vmul.f32 %v5901_v9, %v2935_v17  ;;  %v2934_v28 = vmul.f32 0.5, %v5903_v49  ;;  %v12172_v17 = vld [vmem:[#allocation168_spill] sm:$0xff]  ;;  %v12173_v23 = vld [vmem:[#allocation169_spill] sm:$0xff]  ;;  %v12175_v49 = vld [vmem:[#allocation171_spill] sm:$0xff] }
 0x600   : > { %v5905_v36 = vpop.eup %5904  ;;  %5914 = vtanh.f32 %v9412_v0 }
 0x601   : > { %v2955_v57 = vmul.f32 %v2943_v60, %v8995_v26  ;;  %v2936_v58 = vadd.f32 0.5, %v2934_v28  ;;  %v2942_v21 = vmul.f32 0.5, %v5905_v36  ;;  %v5907_v41 = vpop.eup %5906  ;;  %v12177_v60 = vld [vmem:[#allocation173_spill] sm:$0xff]  ;;  %v12179_v28 = vld [vmem:[#allocation175_spill] sm:$0xff]  ;;  %v12180_v36 = vld [vmem:[#allocation176_spill] sm:$0xff] }
 0x602   : > { %v5909_v16 = vpop.eup %5908 }
 0x603   : > { %v9415_v61 = vadd.f32 %v2957_v30, %v2955_v57  ;;  %v2944_v46 = vadd.f32 0.5, %v2942_v21  ;;  %v2958_v19 = vmul.f32 %v5907_v41, %v2936_v58  ;;  %v5911_v26 = vpop.eup %5910  ;;  %v2951_v14 = vmul.f32 0.5, %v5909_v16  ;;  %v12178_v30 = vld [vmem:[#allocation174_spill] sm:$0xff]  ;;  %v12181_v57 = vld [vmem:[#allocation177_spill] sm:$0xff]  ;;  %v12183_v21 = vld [vmem:[#allocation179_spill] sm:$0xff] }
 0x604   : > { %v5913_v54 = vpop.eup %5912  ;;  %v2734_v63 = vmul.f32 0.5, %v5911_v26  ;;  %v12182_v58 = vld [vmem:[#allocation178_spill] sm:$0xff]  ;;  %v12184_v41 = vld [vmem:[#allocation180_spill] sm:$0xff]  ;;  %v12189_v26 = vld [vmem:[#allocation185_spill] sm:$0xff] }
 0x605   : > { %5916 = vtanh.f32 %v9415_v61  ;;  %v2956_v44 = vmul.f32 %v2944_v46, %v9000_v27  ;;  %v2953_v45 = vadd.f32 0.5, %v2951_v14  ;;  %v2952_v47 = vmul.f32 0.5, %v5913_v54  ;;  %v12185_v46 = vld [vmem:[#allocation181_spill] sm:$0xff]  ;;  %v12188_v16 = vld [vmem:[#allocation184_spill] sm:$0xff]  ;;  %v12190_v14 = vld [vmem:[#allocation186_spill] sm:$0xff] }
 0x606   : > { %v2736_v4 = vadd.f32 0.5, %v2734_v63  ;;  %v12191_v54 = vld [vmem:[#allocation187_spill] sm:$0xff]  ;;  %v12192_v63 = vld [vmem:[#allocation188_spill] sm:$0xff] }
 0x607   : > { %v9420_v20 = vadd.f32 %v2958_v19, %v2956_v44  ;;  %v2954_v25 = vadd.f32 0.5, %v2952_v47  ;;  %v12186_v19 = vld [vmem:[#allocation182_spill] sm:$0xff]  ;;  %v12187_v44 = vld [vmem:[#allocation183_spill] sm:$0xff] }
 0x608   : > { %v12195_v47 = vld [vmem:[#allocation191_spill] sm:$0xff] }
 0x609   : > { %5918 = vtanh.f32 %v9420_v20 }
 0x60d   : > { %v5915_v1 = vpop.eup %5914 }
 0x60e   : > { %v9427_v27 = vmul.f32 %v5915_v1, %v2736_v4  ;;  %v12193_v1 = vld [vmem:[#allocation189_spill] sm:$0xff] }
 0x60f   : > { %v12197_v4 = vld [vmem:[#allocation193_spill] sm:$0xff] }
 0x610   : > { %12156 = vst [vmem:[#allocation106_spill] sm:$0xff] %v9427_v27 }
 0x612   : > { %v5917_v2 = vpop.eup %5916 }
 0x613   : > { %v9423_v7 = vmul.f32 %v5917_v2, %v2953_v45  ;;  %v12194_v45 = vld [vmem:[#allocation190_spill] sm:$0xff]  ;;  %v12196_v2 = vld [vmem:[#allocation192_spill] sm:$0xff] }
 0x615   : > { %3038 = vmatmul.mubr.f32.vlgmr.msra.gmra.mxu0 %v9423_v7  ;;  %3115 = vmatmul.mubr.f32.vlgmr.msra.gmra.mxu1 %v9423_v7 }
 0x616   : > { %v5919_v8 = vpop.eup %5918  ;;  %3184 = vmatpush1.msra.mxu0 %v9009_v3  ;;  %3261 = vmatpush1.msra.mxu1 %v9012_v39  ;;  %v12157_v3 = vld [vmem:[#allocation153_spill] sm:$0xff]  ;;  %v12158_v39 = vld [vmem:[#allocation154_spill] sm:$0xff] }
 0x617   : > { %3043 = vmatprep.mubr.f32.mxu0 %v9427_v27  ;;  %3120 = vmatprep.mubr.f32.mxu1 %v9427_v27  ;;  %v9433_v9 = vmul.f32 %v5919_v8, %v2954_v25  ;;  %v12198_v25 = vld [vmem:[#allocation194_spill] sm:$0xff]  ;;  %v12199_v8 = vld [vmem:[#allocation195_spill] sm:$0xff] }
 0x618   : > { %3185 = vmatprep.subr.mxu0 %v9019_v12  ;;  %3262 = vmatprep.subr.mxu1 %v9022_v38  ;;  %v12159_v12 = vld [vmem:[#allocation155_spill] sm:$0xff]  ;;  %v12160_v38 = vld [vmem:[#allocation156_spill] sm:$0xff]  ;;  %v9688_v27 = vld [vmem:[#allocation13 + $0x398] sm:$0xff] }
 0x619   : > { %3186 = vmatpush1.msra.mxu0 %v9025_v5  ;;  %3263 = vmatpush1.msra.mxu1 %v9028_v40  ;;  %v12161_v5 = vld [vmem:[#allocation157_spill] sm:$0xff]  ;;  %v12162_v40 = vld [vmem:[#allocation158_spill] sm:$0xff]  ;;  %12238 = vst [vmem:[#allocation44_spill] sm:$0xff] %v9688_v27 }
 0x61a   : > { %3187 = vmatprep.subr.mxu0 %v9031_v37  ;;  %3264 = vmatprep.subr.mxu1 %v9034_v24  ;;  %v12163_v37 = vld [vmem:[#allocation159_spill] sm:$0xff]  ;;  %v12164_v24 = vld [vmem:[#allocation160_spill] sm:$0xff] }
 0x61b   : > { %3044 = vmatmul.mubr.f32.gmra.mxu0 %v9433_v9  ;;  %3121 = vmatmul.mubr.f32.gmra.mxu1 %v9433_v9 }
 0x61c   : > { %3188 = vmatpush1.msra.mxu0 %v9039_v43  ;;  %3265 = vmatpush1.msra.mxu1 %v9042_v10  ;;  %v12165_v43 = vld [vmem:[#allocation161_spill] sm:$0xff]  ;;  %v12166_v10 = vld [vmem:[#allocation162_spill] sm:$0xff] }
 0x61d   : > { %3189 = vmatprep.subr.mxu0 %v9045_v59  ;;  %3266 = vmatprep.subr.mxu1 %v9048_v34  ;;  %v12167_v59 = vld [vmem:[#allocation163_spill] sm:$0xff]  ;;  %v12168_v34 = vld [vmem:[#allocation164_spill] sm:$0xff] }
 0x61e   : > { %3190 = vmatpush1.msra.mxu0 %v9051_v62  ;;  %3267 = vmatpush1.msra.mxu1 %v9054_v55  ;;  %v12169_v62 = vld [vmem:[#allocation165_spill] sm:$0xff]  ;;  %v12170_v55 = vld [vmem:[#allocation166_spill] sm:$0xff] }
 0x61f   : > { %3191 = vmatprep.subr.mxu0 %v9057_v13  ;;  %3268 = vmatprep.subr.mxu1 %v12157_v3  ;;  %v12171_v13 = vld [vmem:[#allocation167_spill] sm:$0xff]  ;;  %v12200_v3 = vld [vmem:[#allocation196_spill] sm:$0xff] }
 0x620   : > { %3192 = vmatpush1.msra.mxu0 %v12158_v39  ;;  %3269 = vmatpush1.msra.mxu1 %v12159_v12  ;;  %v12201_v39 = vld [vmem:[#allocation197_spill] sm:$0xff]  ;;  %v12204_v12 = vld [vmem:[#allocation200_spill] sm:$0xff] }
 0x621   : > { %3193 = vmatprep.subr.mxu0 %v12160_v38  ;;  %3270 = vmatprep.subr.mxu1 %v12161_v5  ;;  %v12205_v38 = vld [vmem:[#allocation201_spill] sm:$0xff]  ;;  %v12206_v5 = vld [vmem:[#allocation202_spill] sm:$0xff] }
 0x622   : > { %3194 = vmatpush1.msra.mxu0 %v12162_v40  ;;  %3271 = vmatpush1.msra.mxu1 %v12163_v37  ;;  %v12207_v40 = vld [vmem:[#allocation203_spill] sm:$0xff]  ;;  %v12209_v37 = vld [vmem:[#allocation205_spill] sm:$0xff] }
 0x623   : > { %3195 = vmatprep.subr.mxu0 %v12164_v24  ;;  %3272 = vmatprep.subr.mxu1 %v12165_v43  ;;  %v12210_v24 = vld [vmem:[#allocation206_spill] sm:$0xff]  ;;  %v12211_v43 = vld [vmem:[#allocation207_spill] sm:$0xff] }
 0x624   : > { %3196 = vmatpush1.msra.mxu0 %v12166_v10  ;;  %3273 = vmatpush1.msra.mxu1 %v12167_v59  ;;  %v12212_v10 = vld [vmem:[#allocation208_spill] sm:$0xff]  ;;  %v12213_v59 = vld [vmem:[#allocation209_spill] sm:$0xff] }
 0x625   : > { %3197 = vmatprep.subr.mxu0 %v12168_v34  ;;  %3274 = vmatprep.subr.mxu1 %v12169_v62  ;;  %v12214_v34 = vld [vmem:[#allocation210_spill] sm:$0xff]  ;;  %v12215_v62 = vld [vmem:[#allocation211_spill] sm:$0xff] }
 0x626   : > { %3198 = vmatpush1.msra.mxu0 %v12170_v55  ;;  %3275 = vmatpush1.msra.mxu1 %v12171_v13  ;;  %v12217_v55 = vld [vmem:[#allocation213_spill] sm:$0xff]  ;;  %v12218_v13 = vld [vmem:[#allocation214_spill] sm:$0xff] }
 0x627   : > { %3199 = vmatprep.subr.mxu0 %v12172_v17  ;;  %3276 = vmatprep.subr.mxu1 %v12173_v23  ;;  %v12219_v17 = vld [vmem:[#allocation105_spill] sm:$0xff]  ;;  %v9529_v23 = vld [vmem:[#allocation13 + $0x128] sm:$0xff] }
 0x628   : > { %3200 = vmatpush1.msra.mxu0 %v12174_v48  ;;  %3277 = vmatpush1.msra.mxu1 %v12175_v49  ;;  %v9532_v48 = vld [vmem:[#allocation13 + $0x138] sm:$0xff]  ;;  %v9535_v49 = vld [vmem:[#allocation13 + $0x120] sm:$0xff] }
 0x629   : > { %3201 = vmatprep.subr.mxu0 %v12176_v51  ;;  %3278 = vmatprep.subr.mxu1 %v12177_v60  ;;  %v9556_v51 = vld [vmem:[#allocation13 + $0xf8] sm:$0xff]  ;;  %v9559_v60 = vld [vmem:[#allocation13 + $0xe0] sm:$0xff] }
 0x62a   : > { %3202 = vmatpush1.msra.mxu0 %v12178_v30  ;;  %3279 = vmatpush1.msra.mxu1 %v12179_v28  ;;  %v9562_v30 = vld [vmem:[#allocation13 + $0xf0] sm:$0xff]  ;;  %v9565_v28 = vld [vmem:[#allocation13 + $0xc8] sm:$0xff] }
 0x62b   : > { %3203 = vmatprep.subr.mxu0 %v12180_v36  ;;  %3280 = vmatprep.subr.mxu1 %v12181_v57  ;;  %v9568_v36 = vld [vmem:[#allocation13 + $0xd8] sm:$0xff]  ;;  %v9571_v57 = vld [vmem:[#allocation13 + $0xc0] sm:$0xff] }
 0x62c   : > { %3204 = vmatpush1.msra.mxu0 %v12182_v58  ;;  %3281 = vmatpush1.msra.mxu1 %v12183_v21  ;;  %v9574_v58 = vld [vmem:[#allocation13 + $0xd0] sm:$0xff]  ;;  %v9577_v21 = vld [vmem:[#allocation13 + $0xa8] sm:$0xff] }
 0x62d   : > { %3205 = vmatprep.subr.mxu0 %v12184_v41  ;;  %3282 = vmatprep.subr.mxu1 %v12185_v46  ;;  %v9580_v41 = vld [vmem:[#allocation13 + $0xb8] sm:$0xff]  ;;  %v9583_v46 = vld [vmem:[#allocation13 + $0xa0] sm:$0xff] }
 0x62e   : > { %3206 = vmatpush1.msra.mxu0 %v12186_v19  ;;  %3283 = vmatpush1.msra.mxu1 %v12187_v44  ;;  %v9586_v19 = vld [vmem:[#allocation13 + $0xb0] sm:$0xff]  ;;  %v9589_v44 = vld [vmem:[#allocation13 + $0x88] sm:$0xff] }
 0x62f   : > { %3207 = vmatprep.subr.mxu0 %v12188_v16  ;;  %3284 = vmatprep.subr.mxu1 %v12189_v26  ;;  %v9592_v16 = vld [vmem:[#allocation13 + $0x98] sm:$0xff]  ;;  %v9595_v26 = vld [vmem:[#allocation13 + $0x80] sm:$0xff] }
 0x630   : > { %3208 = vmatpush1.msra.mxu0 %v12190_v14  ;;  %3285 = vmatpush1.msra.mxu1 %v12191_v54  ;;  %v9598_v14 = vld [vmem:[#allocation13 + $0x90] sm:$0xff]  ;;  %v9601_v54 = vld [vmem:[#allocation13 + $0x68] sm:$0xff] }
 0x631   : > { %3209 = vmatprep.subr.mxu0 %v12192_v63  ;;  %3286 = vmatprep.subr.mxu1 %v12193_v1  ;;  %v9604_v63 = vld [vmem:[#allocation13 + $0x78] sm:$0xff]  ;;  %v9607_v1 = vld [vmem:[#allocation13 + $0x60] sm:$0xff] }
 0x632   : > { %3210 = vmatpush1.msra.mxu0 %v12194_v45  ;;  %3287 = vmatpush1.msra.mxu1 %v12195_v47  ;;  %v9610_v45 = vld [vmem:[#allocation13 + $0x70] sm:$0xff]  ;;  %v9613_v47 = vld [vmem:[#allocation13 + $0x48] sm:$0xff] }
 0x633   : > { %3211 = vmatprep.subr.mxu0 %v12196_v2  ;;  %3288 = vmatprep.subr.mxu1 %v12197_v4  ;;  %v9616_v2 = vld [vmem:[#allocation13 + $0x58] sm:$0xff]  ;;  %v9619_v4 = vld [vmem:[#allocation13 + $0x40] sm:$0xff] }
 0x634   : > { %3212 = vmatpush1.msra.mxu0 %v9183_v50  ;;  %3289 = vmatpush1.msra.mxu1 %v9186_v42  ;;  %v12202_v50 = vld [vmem:[#allocation198_spill] sm:$0xff]  ;;  %v12203_v42 = vld [vmem:[#allocation199_spill] sm:$0xff] }
 0x635   : > { %3213 = vmatprep.subr.mxu0 %v12198_v25  ;;  %3290 = vmatprep.subr.mxu1 %v12199_v8  ;;  %v9622_v25 = vld [vmem:[#allocation13 + $0x50] sm:$0xff]  ;;  %v9625_v8 = vld [vmem:[#allocation13 + $0x28] sm:$0xff] }
 0x636   : > { %3214 = vmatpush1.msra.mxu0 %v12200_v3  ;;  %3247 = vmatprep.mubr.f32.mxu0 %v11717_v32  ;;  %v9628_v3 = vld [vmem:[#allocation13 + $0x38] sm:$0xff] }
 0x637   : > { %3291 = vmatpush1.msra.mxu1 %v12201_v39  ;;  %3324 = vmatprep.mubr.f32.mxu1 %v11717_v32  ;;  %v9631_v39 = vld [vmem:[#allocation13 + $0x20] sm:$0xff] }
 0x638   : > { %3248 = vmatmul.mubr.f32.vlgmr.msra.gmra.mxu0 %v9423_v7  ;;  %3325 = vmatmul.mubr.f32.vlgmr.msra.gmra.mxu1 %v9423_v7  ;;  %v12208_v7 = vld [vmem:[#allocation204_spill] sm:$0xff] }
 0x639   : > { %3253 = vmatprep.mubr.f32.mxu0 %v11717_v32  ;;  %3330 = vmatprep.mubr.f32.mxu1 %v11717_v32 }
 0x63a   : > { %3391 = vmatprep.subr.mxu0 %v12202_v50  ;;  %3468 = vmatprep.subr.mxu1 %v12203_v42  ;;  %v9634_v50 = vld [vmem:[#allocation13 + $0x30] sm:$0xff]  ;;  %v9637_v42 = vld [vmem:[#allocation13 + $0x8] sm:$0xff] }
 0x63b   : > { %3392 = vmatpush1.msra.mxu0 %v12204_v12  ;;  %3469 = vmatpush1.msra.mxu1 %v12205_v38  ;;  %12220 = vst [vmem:[#allocation109_spill] sm:$0xff] %v9634_v50  ;;  %12221 = vst [vmem:[#allocation111_spill] sm:$0xff] %v9637_v42  ;;  %v9640_v12 = vld [vmem:[#allocation13 + $0x18] sm:$0xff]  ;;  %v9643_v38 = vld [vmem:[#allocation13] sm:$0xff] }
 0x63c   : > { %3254 = vmatmul.mubr.f32.gmra.mxu0 %v9433_v9  ;;  %3331 = vmatmul.mubr.f32.gmra.mxu1 %v9433_v9  ;;  %v12216_v9 = vld [vmem:[#allocation212_spill] sm:$0xff]  ;;  %12222 = vst [vmem:[#allocation110_spill] sm:$0xff] %v9640_v12  ;;  %12223 = vst [vmem:[#allocation108_spill] sm:$0xff] %v9643_v38 }
 0x63d   : > { %3393 = vmatprep.subr.mxu0 %v12206_v5  ;;  %3470 = vmatprep.subr.mxu1 %v12207_v40  ;;  %v9646_v5 = vld [vmem:[#allocation13 + $0x10] sm:$0xff]  ;;  %v9649_v40 = vld [vmem:[#allocation13 + $0x3e8] sm:$0xff] }
 0x63e   : > { %3394 = vmatpush1.msra.mxu0 %v12208_v7  ;;  %3471 = vmatpush1.msra.mxu1 %v12209_v37  ;;  %12224 = vst [vmem:[#allocation112_spill] sm:$0xff] %v9646_v5  ;;  %12225 = vst [vmem:[#allocation31_spill] sm:$0xff] %v9649_v40  ;;  %v9652_v7 = vld [vmem:[#allocation13 + $0x3f8] sm:$0xff]  ;;  %v9655_v37 = vld [vmem:[#allocation13 + $0x3e0] sm:$0xff] }
 0x63f   : > { %3395 = vmatprep.subr.mxu0 %v12210_v24  ;;  %3472 = vmatprep.subr.mxu1 %v12211_v43  ;;  %12226 = vst [vmem:[#allocation32_spill] sm:$0xff] %v9652_v7  ;;  %12227 = vst [vmem:[#allocation33_spill] sm:$0xff] %v9655_v37  ;;  %v9658_v24 = vld [vmem:[#allocation13 + $0x3f0] sm:$0xff]  ;;  %v9661_v43 = vld [vmem:[#allocation13 + $0x3c8] sm:$0xff] }
 0x640   : > { %3396 = vmatpush1.msra.mxu0 %v12212_v10  ;;  %3473 = vmatpush1.msra.mxu1 %v12213_v59  ;;  %12228 = vst [vmem:[#allocation34_spill] sm:$0xff] %v9658_v24  ;;  %12229 = vst [vmem:[#allocation35_spill] sm:$0xff] %v9661_v43  ;;  %v9664_v10 = vld [vmem:[#allocation13 + $0x3d8] sm:$0xff]  ;;  %v9667_v59 = vld [vmem:[#allocation13 + $0x3c0] sm:$0xff] }
 0x641   : > { %3397 = vmatprep.subr.mxu0 %v12214_v34  ;;  %3474 = vmatprep.subr.mxu1 %v12215_v62  ;;  %12230 = vst [vmem:[#allocation36_spill] sm:$0xff] %v9664_v10  ;;  %12231 = vst [vmem:[#allocation37_spill] sm:$0xff] %v9667_v59  ;;  %v9670_v34 = vld [vmem:[#allocation13 + $0x3d0] sm:$0xff]  ;;  %v9673_v62 = vld [vmem:[#allocation13 + $0x3a8] sm:$0xff] }
 0x642   : > { %3398 = vmatpush1.msra.mxu0 %v12216_v9  ;;  %3475 = vmatpush1.msra.mxu1 %v12217_v55  ;;  %12232 = vst [vmem:[#allocation38_spill] sm:$0xff] %v9670_v34  ;;  %12233 = vst [vmem:[#allocation39_spill] sm:$0xff] %v9673_v62  ;;  %v9676_v9 = vld [vmem:[#allocation13 + $0x3b8] sm:$0xff]  ;;  %v9679_v55 = vld [vmem:[#allocation13 + $0x3a0] sm:$0xff] }
 0x643   : > { %3399 = vmatprep.subr.mxu0 %v12218_v13  ;;  %3476 = vmatprep.subr.mxu1 %v12219_v17  ;;  %12234 = vst [vmem:[#allocation40_spill] sm:$0xff] %v9676_v9  ;;  %12235 = vst [vmem:[#allocation41_spill] sm:$0xff] %v9679_v55  ;;  %v9682_v13 = vld [vmem:[#allocation13 + $0x3b0] sm:$0xff]  ;;  %v9685_v17 = vld [vmem:[#allocation13 + $0x388] sm:$0xff] }
 0x644   : > { %3400 = vmatpush1.msra.mxu0 %v9263_v11  ;;  %3477 = vmatpush1.msra.mxu1 %v9266_v15  ;;  %v9538_v15 = vld [vmem:[#allocation13 + $0x130] sm:$0xff]  ;;  %v9541_v11 = vld [vmem:[#allocation13 + $0x108] sm:$0xff]  ;;  %12236 = vst [vmem:[#allocation42_spill] sm:$0xff] %v9682_v13  ;;  %12237 = vst [vmem:[#allocation43_spill] sm:$0xff] %v9685_v17 }
 0x645   : > { %3401 = vmatprep.subr.mxu0 %v9269_v6  ;;  %3478 = vmatprep.subr.mxu1 %v9272_v33  ;;  %v9547_v6 = vld [vmem:[#allocation13 + $0x100] sm:$0xff]  ;;  %v9553_v33 = vld [vmem:[#allocation13 + $0xe8] sm:$0xff] }
 0x646   : > { %3402 = vmatpush1.msra.mxu0 %v9275_v22  ;;  %3479 = vmatpush1.msra.mxu1 %v9278_v18  ;;  %v9544_v18 = vld [vmem:[#allocation13 + $0x118] sm:$0xff]  ;;  %v9550_v22 = vld [vmem:[#allocation13 + $0x110] sm:$0xff] }
 0x647   : > { %3403 = vmatprep.subr.mxu0 %v9529_v23  ;;  %3480 = vmatprep.subr.mxu1 %v9532_v48 }
 0x648   : > { %3404 = vmatpush1.msra.mxu0 %v9535_v49  ;;  %3481 = vmatpush1.msra.mxu1 %v9538_v15 }
 0x649   : > { %3405 = vmatprep.subr.mxu0 %v9541_v11  ;;  %3482 = vmatprep.subr.mxu1 %v9544_v18 }
 0x64a   : > { %3406 = vmatpush1.msra.mxu0 %v9547_v6  ;;  %3483 = vmatpush1.msra.mxu1 %v9550_v22 }
 0x64b   : > { %3407 = vmatprep.subr.mxu0 %v9553_v33  ;;  %3484 = vmatprep.subr.mxu1 %v9556_v51 }
 0x64c   : > { %3408 = vmatpush1.msra.mxu0 %v9559_v60  ;;  %3485 = vmatpush1.msra.mxu1 %v9562_v30 }
 0x64d   : > { %3409 = vmatprep.subr.mxu0 %v9565_v28  ;;  %3486 = vmatprep.subr.mxu1 %v9568_v36 }
 0x64e   : > { %3410 = vmatpush1.msra.mxu0 %v9571_v57  ;;  %3487 = vmatpush1.msra.mxu1 %v9574_v58 }
 0x64f   : > { %3411 = vmatprep.subr.mxu0 %v9577_v21  ;;  %3488 = vmatprep.subr.mxu1 %v9580_v41 }
 0x650   : > { %3412 = vmatpush1.msra.mxu0 %v9583_v46  ;;  %3489 = vmatpush1.msra.mxu1 %v9586_v19 }
 0x651   : > { %3413 = vmatprep.subr.mxu0 %v9589_v44  ;;  %3490 = vmatprep.subr.mxu1 %v9592_v16 }
 0x652   : > { %3414 = vmatpush1.msra.mxu0 %v9595_v26  ;;  %3491 = vmatpush1.msra.mxu1 %v9598_v14 }
 0x653   : > { %3415 = vmatprep.subr.mxu0 %v9601_v54  ;;  %3492 = vmatprep.subr.mxu1 %v9604_v63 }
 0x654   : > { %3416 = vmatpush1.msra.mxu0 %v9607_v1  ;;  %3493 = vmatpush1.msra.mxu1 %v9610_v45 }
 0x655   : > { %3417 = vmatprep.subr.mxu0 %v9613_v47  ;;  %3494 = vmatprep.subr.mxu1 %v9616_v2 }
 0x656   : > { %3418 = vmatpush1.msra.mxu0 %v9619_v4  ;;  %3495 = vmatpush1.msra.mxu1 %v9622_v25 }
 0x657   : > { %3419 = vmatprep.subr.mxu0 %v9625_v8  ;;  %3496 = vmatprep.subr.mxu1 %v9628_v3 }
 0x658   : > { %3420 = vmatpush1.msra.mxu0 %v9631_v39  ;;  %3497 = vmatpush1.msra.mxu1 %v9634_v50 }
 0x659   : > { %3421 = vmatprep.subr.mxu0 %v9637_v42  ;;  %3498 = vmatprep.subr.mxu1 %v9640_v12 }
 0x65a   : > { %3422 = vmatpush1.msra.mxu0 %v9643_v38  ;;  %3499 = vmatpush1.msra.mxu1 %v9646_v5 }
 0x65b   : > { %3423 = vmatprep.subr.mxu0 %v9649_v40  ;;  %3500 = vmatprep.subr.mxu1 %v9652_v7 }
 0x65c   : > { %3424 = vmatpush2.msra.mxu0 %v9655_v37  ;;  %3501 = vmatpush2.msra.mxu1 %v9658_v24 }
 0x65d   : > { %3425 = vmatprep.subr.mxu0 %v9661_v43  ;;  %3502 = vmatprep.subr.mxu1 %v9664_v10 }
 0x65e   : > { %3426 = vmatpush2.msra.mxu0 %v9667_v59  ;;  %3503 = vmatpush2.msra.mxu1 %v9670_v34 }
 0x65f   : > { %3427 = vmatprep.subr.mxu0 %v9673_v62  ;;  %3504 = vmatprep.subr.mxu1 %v9676_v9  ;;  %v9694_v9 = vld [vmem:[#allocation13 + $0x390] sm:$0xff] }
 0x660   : > { %3428 = vmatpush2.msra.mxu0 %v9679_v55  ;;  %3505 = vmatpush2.msra.mxu1 %v9682_v13  ;;  %12240 = vst [vmem:[#allocation46_spill] sm:$0xff] %v9694_v9  ;;  %v9697_v55 = vld [vmem:[#allocation13 + $0x368] sm:$0xff]  ;;  %v9700_v13 = vld [vmem:[#allocation13 + $0x378] sm:$0xff] }
 0x661   : > { %3429 = vmatprep.subr.mxu0 %v9685_v17  ;;  %3506 = vmatprep.subr.mxu1 %v9688_v27  ;;  %12241 = vst [vmem:[#allocation47_spill] sm:$0xff] %v9697_v55  ;;  %12242 = vst [vmem:[#allocation48_spill] sm:$0xff] %v9700_v13  ;;  %v9703_v17 = vld [vmem:[#allocation13 + $0x360] sm:$0xff]  ;;  %v9706_v27 = vld [vmem:[#allocation13 + $0x370] sm:$0xff] }
 0x662   : > { %3430 = vmatpush2.msra.mxu0 %v9691_v35  ;;  %3507 = vmatpush2.msra.mxu1 %v9694_v9  ;;  %12243 = vst [vmem:[#allocation49_spill] sm:$0xff] %v9703_v17  ;;  %12244 = vst [vmem:[#allocation50_spill] sm:$0xff] %v9706_v27  ;;  %v9709_v35 = vld [vmem:[#allocation13 + $0x348] sm:$0xff]  ;;  %v9712_v9 = vld [vmem:[#allocation13 + $0x358] sm:$0xff] }
 0x663   : > { %3431 = vmatprep.subr.mxu0 %v9697_v55  ;;  %3508 = vmatprep.subr.mxu1 %v9700_v13  ;;  %12245 = vst [vmem:[#allocation51_spill] sm:$0xff] %v9709_v35  ;;  %12246 = vst [vmem:[#allocation52_spill] sm:$0xff] %v9712_v9  ;;  %v9715_v55 = vld [vmem:[#allocation13 + $0x340] sm:$0xff]  ;;  %v9718_v13 = vld [vmem:[#allocation13 + $0x350] sm:$0xff] }
 0x664   : > { %3432 = vmatpush2.msra.mxu0 %v9703_v17  ;;  %3509 = vmatpush2.msra.mxu1 %v9706_v27  ;;  %12247 = vst [vmem:[#allocation53_spill] sm:$0xff] %v9715_v55  ;;  %12248 = vst [vmem:[#allocation54_spill] sm:$0xff] %v9718_v13  ;;  %v9721_v17 = vld [vmem:[#allocation13 + $0x328] sm:$0xff]  ;;  %v9724_v27 = vld [vmem:[#allocation13 + $0x338] sm:$0xff] }
 0x665   : > { %3433 = vmatprep.subr.mxu0 %v9709_v35  ;;  %3510 = vmatprep.subr.mxu1 %v9712_v9  ;;  %12249 = vst [vmem:[#allocation55_spill] sm:$0xff] %v9721_v17  ;;  %12250 = vst [vmem:[#allocation56_spill] sm:$0xff] %v9724_v27  ;;  %v9727_v35 = vld [vmem:[#allocation13 + $0x320] sm:$0xff]  ;;  %v9730_v9 = vld [vmem:[#allocation13 + $0x330] sm:$0xff] }
 0x666   : > { %3434 = vmatpush2.msra.mxu0 %v9715_v55  ;;  %3511 = vmatpush2.msra.mxu1 %v9718_v13  ;;  %12251 = vst [vmem:[#allocation57_spill] sm:$0xff] %v9727_v35  ;;  %12252 = vst [vmem:[#allocation58_spill] sm:$0xff] %v9730_v9  ;;  %v9733_v55 = vld [vmem:[#allocation13 + $0x308] sm:$0xff]  ;;  %v9736_v13 = vld [vmem:[#allocation13 + $0x318] sm:$0xff] }
 0x667   : > { %3435 = vmatprep.subr.mxu0 %v9721_v17  ;;  %3512 = vmatprep.subr.mxu1 %v9724_v27  ;;  %12253 = vst [vmem:[#allocation59_spill] sm:$0xff] %v9733_v55  ;;  %12254 = vst [vmem:[#allocation60_spill] sm:$0xff] %v9736_v13  ;;  %v9739_v17 = vld [vmem:[#allocation13 + $0x300] sm:$0xff]  ;;  %v9742_v27 = vld [vmem:[#allocation13 + $0x310] sm:$0xff] }
 0x668   : > { %3436 = vmatpush2.msra.mxu0 %v9727_v35  ;;  %3513 = vmatpush2.msra.mxu1 %v9730_v9  ;;  %12255 = vst [vmem:[#allocation61_spill] sm:$0xff] %v9739_v17  ;;  %12256 = vst [vmem:[#allocation62_spill] sm:$0xff] %v9742_v27  ;;  %v9745_v35 = vld [vmem:[#allocation13 + $0x2e8] sm:$0xff]  ;;  %v9748_v9 = vld [vmem:[#allocation13 + $0x2f8] sm:$0xff] }
 0x669   : > { %3437 = vmatprep.subr.mxu0 %v9733_v55  ;;  %3514 = vmatprep.subr.mxu1 %v9736_v13  ;;  %12257 = vst [vmem:[#allocation63_spill] sm:$0xff] %v9745_v35  ;;  %12258 = vst [vmem:[#allocation64_spill] sm:$0xff] %v9748_v9  ;;  %v9751_v55 = vld [vmem:[#allocation13 + $0x2e0] sm:$0xff]  ;;  %v9754_v13 = vld [vmem:[#allocation13 + $0x2f0] sm:$0xff] }
 0x66a   : > { %3438 = vmatpush2.msra.mxu0 %v9739_v17  ;;  %3515 = vmatpush2.msra.mxu1 %v9742_v27  ;;  %12259 = vst [vmem:[#allocation65_spill] sm:$0xff] %v9751_v55  ;;  %12260 = vst [vmem:[#allocation66_spill] sm:$0xff] %v9754_v13  ;;  %v9757_v17 = vld [vmem:[#allocation13 + $0x2c8] sm:$0xff]  ;;  %v9760_v27 = vld [vmem:[#allocation13 + $0x2d8] sm:$0xff] }
 0x66b   : > { %3439 = vmatprep.subr.mxu0 %v9745_v35  ;;  %3516 = vmatprep.subr.mxu1 %v9748_v9  ;;  %12261 = vst [vmem:[#allocation67_spill] sm:$0xff] %v9757_v17  ;;  %12262 = vst [vmem:[#allocation68_spill] sm:$0xff] %v9760_v27  ;;  %v9763_v35 = vld [vmem:[#allocation13 + $0x2c0] sm:$0xff]  ;;  %v9766_v9 = vld [vmem:[#allocation13 + $0x2d0] sm:$0xff] }
 0x66c   : > { %3440 = vmatpush2.msra.mxu0 %v9751_v55  ;;  %3517 = vmatpush2.msra.mxu1 %v9754_v13  ;;  %12263 = vst [vmem:[#allocation69_spill] sm:$0xff] %v9763_v35  ;;  %12264 = vst [vmem:[#allocation70_spill] sm:$0xff] %v9766_v9  ;;  %v9769_v55 = vld [vmem:[#allocation13 + $0x2a8] sm:$0xff]  ;;  %v9772_v13 = vld [vmem:[#allocation13 + $0x2b8] sm:$0xff] }
 0x66d   : > { %3441 = vmatprep.subr.mxu0 %v9757_v17  ;;  %3518 = vmatprep.subr.mxu1 %v9760_v27  ;;  %12265 = vst [vmem:[#allocation71_spill] sm:$0xff] %v9769_v55  ;;  %12266 = vst [vmem:[#allocation72_spill] sm:$0xff] %v9772_v13  ;;  %v9775_v17 = vld [vmem:[#allocation13 + $0x2a0] sm:$0xff]  ;;  %v9778_v27 = vld [vmem:[#allocation13 + $0x2b0] sm:$0xff] }
 0x66e   : > { %3442 = vmatpush2.msra.mxu0 %v9763_v35  ;;  %3519 = vmatpush2.msra.mxu1 %v9766_v9  ;;  %12267 = vst [vmem:[#allocation73_spill] sm:$0xff] %v9775_v17  ;;  %12268 = vst [vmem:[#allocation74_spill] sm:$0xff] %v9778_v27  ;;  %v9781_v35 = vld [vmem:[#allocation13 + $0x288] sm:$0xff]  ;;  %v9784_v9 = vld [vmem:[#allocation13 + $0x298] sm:$0xff] }
 0x66f   : > { %3443 = vmatprep.subr.mxu0 %v9769_v55  ;;  %3520 = vmatprep.subr.mxu1 %v9772_v13  ;;  %12269 = vst [vmem:[#allocation75_spill] sm:$0xff] %v9781_v35  ;;  %12270 = vst [vmem:[#allocation76_spill] sm:$0xff] %v9784_v9  ;;  %v9787_v55 = vld [vmem:[#allocation13 + $0x280] sm:$0xff]  ;;  %v9790_v13 = vld [vmem:[#allocation13 + $0x290] sm:$0xff] }
 0x670   : > { %3444 = vmatpush2.msra.mxu0 %v9775_v17  ;;  %3521 = vmatpush2.msra.mxu1 %v9778_v27  ;;  %12271 = vst [vmem:[#allocation77_spill] sm:$0xff] %v9787_v55  ;;  %12272 = vst [vmem:[#allocation78_spill] sm:$0xff] %v9790_v13  ;;  %v9793_v17 = vld [vmem:[#allocation13 + $0x268] sm:$0xff]  ;;  %v9796_v27 = vld [vmem:[#allocation13 + $0x278] sm:$0xff] }
 0x671   : > { %3445 = vmatprep.subr.mxu0 %v9781_v35  ;;  %3522 = vmatprep.subr.mxu1 %v9784_v9  ;;  %12273 = vst [vmem:[#allocation79_spill] sm:$0xff] %v9793_v17  ;;  %12274 = vst [vmem:[#allocation80_spill] sm:$0xff] %v9796_v27  ;;  %v9799_v35 = vld [vmem:[#allocation13 + $0x260] sm:$0xff]  ;;  %v9802_v9 = vld [vmem:[#allocation13 + $0x270] sm:$0xff] }
 0x672   : > { %3446 = vmatpush2.msra.mxu0 %v9787_v55  ;;  %3523 = vmatpush2.msra.mxu1 %v9790_v13  ;;  %12275 = vst [vmem:[#allocation81_spill] sm:$0xff] %v9799_v35  ;;  %12276 = vst [vmem:[#allocation82_spill] sm:$0xff] %v9802_v9  ;;  %v9805_v55 = vld [vmem:[#allocation13 + $0x248] sm:$0xff]  ;;  %v9808_v13 = vld [vmem:[#allocation13 + $0x258] sm:$0xff] }
 0x673   : > { %3447 = vmatprep.subr.mxu0 %v9793_v17  ;;  %3524 = vmatprep.subr.mxu1 %v9796_v27  ;;  %12277 = vst [vmem:[#allocation83_spill] sm:$0xff] %v9805_v55  ;;  %12278 = vst [vmem:[#allocation84_spill] sm:$0xff] %v9808_v13  ;;  %v9811_v17 = vld [vmem:[#allocation13 + $0x240] sm:$0xff]  ;;  %v9814_v27 = vld [vmem:[#allocation13 + $0x250] sm:$0xff] }
 0x674   : > { %3448 = vmatpush2.msra.mxu0 %v9799_v35  ;;  %3525 = vmatpush2.msra.mxu1 %v9802_v9  ;;  %12279 = vst [vmem:[#allocation85_spill] sm:$0xff] %v9811_v17  ;;  %12280 = vst [vmem:[#allocation86_spill] sm:$0xff] %v9814_v27  ;;  %v9817_v35 = vld [vmem:[#allocation13 + $0x228] sm:$0xff]  ;;  %v9820_v9 = vld [vmem:[#allocation13 + $0x238] sm:$0xff] }
 0x675   : > { %3449 = vmatprep.subr.mxu0 %v9805_v55  ;;  %3526 = vmatprep.subr.mxu1 %v9808_v13  ;;  %12281 = vst [vmem:[#allocation87_spill] sm:$0xff] %v9817_v35  ;;  %12282 = vst [vmem:[#allocation88_spill] sm:$0xff] %v9820_v9  ;;  %v9823_v55 = vld [vmem:[#allocation13 + $0x220] sm:$0xff]  ;;  %v9826_v13 = vld [vmem:[#allocation13 + $0x230] sm:$0xff] }
 0x676   : > { %3450 = vmatpush2.msra.mxu0 %v9811_v17  ;;  %3527 = vmatpush2.msra.mxu1 %v9814_v27  ;;  %12283 = vst [vmem:[#allocation89_spill] sm:$0xff] %v9823_v55  ;;  %12284 = vst [vmem:[#allocation90_spill] sm:$0xff] %v9826_v13  ;;  %v9829_v17 = vld [vmem:[#allocation13 + $0x208] sm:$0xff]  ;;  %v9832_v27 = vld [vmem:[#allocation13 + $0x218] sm:$0xff] }
 0x677   : > { %3451 = vmatprep.subr.mxu0 %v9817_v35  ;;  %3528 = vmatprep.subr.mxu1 %v9820_v9  ;;  %12285 = vst [vmem:[#allocation91_spill] sm:$0xff] %v9829_v17  ;;  %12286 = vst [vmem:[#allocation92_spill] sm:$0xff] %v9832_v27  ;;  %v9835_v35 = vld [vmem:[#allocation13 + $0x200] sm:$0xff]  ;;  %v9838_v9 = vld [vmem:[#allocation13 + $0x210] sm:$0xff] }
 0x678   : > { %3452 = vmatpush2.msra.mxu0 %v9823_v55  ;;  %3529 = vmatpush2.msra.mxu1 %v9826_v13  ;;  %12287 = vst [vmem:[#allocation93_spill] sm:$0xff] %v9835_v35  ;;  %12288 = vst [vmem:[#allocation94_spill] sm:$0xff] %v9838_v9  ;;  %v9841_v55 = vld [vmem:[#allocation12 + $0x1e8] sm:$0xff]  ;;  %v9844_v13 = vld [vmem:[#allocation12 + $0x1f8] sm:$0xff] }
 0x679   : > { %3453 = vmatprep.subr.mxu0 %v9829_v17  ;;  %3530 = vmatprep.subr.mxu1 %v9832_v27  ;;  %12289 = vst [vmem:[#allocation95_spill] sm:$0xff] %v9841_v55  ;;  %12290 = vst [vmem:[#allocation96_spill] sm:$0xff] %v9844_v13 }
 0x67a   : > { %3454 = vmatpush2.msra.mxu0 %v9835_v35  ;;  %3531 = vmatpush2.msra.mxu1 %v9838_v9 }
 0x67b   : > { %3601 = vmatprep.subr.mxu0 %v9841_v55  ;;  %3678 = vmatprep.subr.mxu1 %v9844_v13 }
 0x6d5   : > { %v3039_v17 = vpop.f32.mrf.mxu0  ;;  %v3116_v35 = vpop.f32.mrf.mxu1 }
 0x6d6   : > { %v3040_v62 = vadd.f32 %v3039_v17, %v12144_v29  ;;  %v3117_v9 = vadd.f32 %v3116_v35, %v8504_v52 }
 0x6d7   : > { %v3041_v27 = vpop.f32.mrf.mxu0  ;;  %v3118_v43 = vpop.f32.mrf.mxu1 }
 0x6d8   : > { %v3129_v34 = vmul.f32 0.5, %v3040_v62  ;;  %v3042_v59 = vadd.f32 %v3041_v27, %v12145_v31  ;;  %v3119_v55 = vadd.f32 %v3118_v43, %v8510_v53 }
 0x6da   : > { %5920 = vtanh.f32 %v3129_v34  ;;  %v3137_v10 = vmul.f32 0.5, %v3042_v59  ;;  %v3147_v37 = vmul.f32 0.5, %v3119_v55 }
 0x6db   : > { %v3045_v24 = vpop.f32.mrf.mxu0 }
 0x6dc   : > { %5922 = vtanh.f32 %v3137_v10 }
 0x6dd   : > { %5924 = vtanh.f32 %v3117_v9  ;;  %v3047_v17 = vpop.f32.mrf.mxu0  ;;  %v3046_v9 = vadd.f32 %v3045_v24, %v12144_v29 }
 0x6de   : > { %5926 = vtanh.f32 %v3147_v37  ;;  %v3048_v34 = vadd.f32 %v3047_v17, %v12145_v31  ;;  %v12292_v17 = vld [vmem:[#allocation121_spill] sm:$0xff] }
 0x6df   : > { %v3130_v55 = vmul.f32 0.5, %v3046_v9 }
 0x6e0   : > { %v3138_v43 = vmul.f32 0.5, %v3048_v34 }
 0x6e7   : > { %v5921_v13 = vpop.eup %5920 }
 0x6e8   : > { %v3133_v7 = vmul.f32 0.5, %v5921_v13  ;;  %v3122_v13 = vpop.f32.mrf.mxu1 }
 0x6e9   : > { %v5923_v40 = vpop.eup %5922 }
 0x6ea   : > { %v3135_v5 = vadd.f32 0.5, %v3133_v7  ;;  %v3141_v62 = vmul.f32 0.5, %v5923_v40  ;;  %v5925_v59 = vpop.eup %5924  ;;  %v3124_v40 = vpop.f32.mrf.mxu1 }
 0x6eb   : > { %v5927_v7 = vpop.eup %5926 }
 0x6ec   : > { %v3143_v27 = vadd.f32 0.5, %v3141_v62  ;;  %v3157_v10 = vmul.f32 %v5925_v59, %v3135_v5  ;;  %v3151_v12 = vmul.f32 0.5, %v5927_v7  ;;  %v12293_v59 = vld [vmem:[#allocation123_spill] sm:$0xff] }
 0x6ee   : > { %v3155_v35 = vmul.f32 %v3143_v27, %v9394_v56  ;;  %v3123_v56 = vadd.f32 %v3122_v13, %v8504_v52  ;;  %v3153_v29 = vadd.f32 0.5, %v3151_v12  ;;  %v12296_v13 = vld [vmem:[#allocation127_spill] sm:$0xff] }
 0x6f0   : > { %v9854_v38 = vadd.f32 %v3157_v10, %v3155_v35  ;;  %v12294_v35 = vld [vmem:[#allocation122_spill] sm:$0xff] }
 0x6f2   : > { %12291 = vst [vmem:[#allocation97_spill] sm:$0xff] %v9854_v38  ;;  %5928 = vtanh.f32 %v9854_v38 }
 0x6f3   : > { %5930 = vtanh.f32 %v3138_v43 }
 0x6f4   : > { %5932 = vtanh.f32 %v3130_v55  ;;  %v12295_v55 = vld [vmem:[#allocation125_spill] sm:$0xff] }
 0x6f8   : > { %v3249_v37 = vpop.f32.mrf.mxu0  ;;  %v3326_v62 = vpop.f32.mrf.mxu1 }
 0x6f9   : > { %v3337_v31 = vadd.f32 %v3249_v37, %v12292_v17  ;;  %v3339_v10 = vadd.f32 %v3326_v62, %v12294_v35  ;;  %v12298_v62 = vld [vmem:[#allocation126_spill] sm:$0xff] }
 0x6fa   : > { %v3251_v5 = vpop.f32.mrf.mxu0  ;;  %v3328_v24 = vpop.f32.mrf.mxu1 }
 0x6fb   : > { %v3347_v27 = vmul.f32 0.5, %v3337_v31  ;;  %v3338_v34 = vadd.f32 %v3251_v5, %v12293_v59 }
 0x6fc   : > { %v3255_v9 = vpop.f32.mrf.mxu0  ;;  %v3332_v42 = vpop.f32.mrf.mxu1 }
 0x6fd   : > { %5934 = vtanh.f32 %v3347_v27  ;;  %v3355_v43 = vmul.f32 0.5, %v3338_v34  ;;  %v3341_v38 = vadd.f32 %v3255_v9, %v12295_v55  ;;  %v3343_v59 = vadd.f32 %v3332_v42, %v12298_v62  ;;  %v12299_v34 = vld [vmem:[#allocation124_spill] sm:$0xff] }
 0x6fe   : > { %5936 = vtanh.f32 %v3123_v56  ;;  %v3257_v50 = vpop.f32.mrf.mxu0  ;;  %v3340_v35 = vadd.f32 %v3328_v24, %v12299_v34 }
 0x6ff   : > { %v5929_v37 = vpop.eup %5928  ;;  %5938 = vtanh.f32 %v3355_v43  ;;  %v3348_v7 = vmul.f32 0.5, %v3341_v38  ;;  %v3342_v17 = vadd.f32 %v3257_v50, %v12296_v13  ;;  %v3334_v50 = vpop.f32.mrf.mxu1  ;;  %v12300_v43 = vld [vmem:[#allocation128_spill] sm:$0xff] }
 0x700   : > { %5940 = vtanh.f32 %v3339_v10  ;;  %v9863_v31 = vmul.f32 %v5929_v37, %v3153_v29  ;;  %v5931_v5 = vpop.eup %5930  ;;  %v3125_v29 = vadd.f32 %v3124_v40, %v8510_v53  ;;  %v3365_v9 = vmul.f32 0.5, %v3340_v35 }
 0x701   : > { %5942 = vtanh.f32 %v3348_v7  ;;  %v3356_v27 = vmul.f32 0.5, %v3342_v17  ;;  %v5933_v12 = vpop.eup %5932  ;;  %v3142_v56 = vmul.f32 0.5, %v5931_v5  ;;  %v3344_v55 = vadd.f32 %v3334_v50, %v12300_v43 }
 0x702   : > { %12297 = vst [vmem:[#allocation99_spill] sm:$0xff] %v9863_v31  ;;  %3455 = vmatprep.mubr.f32.mxu0 %v9863_v31  ;;  %3532 = vmatprep.mubr.f32.mxu1 %v9863_v31  ;;  %v3134_v38 = vmul.f32 0.5, %v5933_v12  ;;  %v3148_v13 = vmul.f32 0.5, %v3125_v29 }
 0x703   : > { %5944 = vtanh.f32 %v3356_v27  ;;  %v3144_v10 = vadd.f32 0.5, %v3142_v56 }
 0x704   : > { %5946 = vtanh.f32 %v3343_v59  ;;  %v3136_v37 = vadd.f32 0.5, %v3134_v38  ;;  %v3366_v59 = vmul.f32 0.5, %v3344_v55 }
 0x705   : > { %v3156_v27 = vmul.f32 %v3144_v10, %v9412_v0  ;;  %5948 = vtanh.f32 %v3365_v9 }
 0x706   : > { %5950 = vtanh.f32 %v3148_v13 }
 0x707   : > { %5952 = vtanh.f32 %v3366_v59 }
 0x70a   : > { %v5935_v42 = vpop.eup %5934 }
 0x70b   : > { %v5937_v7 = vpop.eup %5936  ;;  %v3351_v17 = vmul.f32 0.5, %v5935_v42 }
 0x70c   : > { %v5939_v62 = vpop.eup %5938  ;;  %v3158_v34 = vmul.f32 %v5937_v7, %v3136_v37 }
 0x70d   : > { %v5941_v5 = vpop.eup %5940  ;;  %v3353_v31 = vadd.f32 0.5, %v3351_v17  ;;  %v3359_v24 = vmul.f32 0.5, %v5939_v62 }
 0x70e   : > { %v5943_v12 = vpop.eup %5942  ;;  %v9872_v43 = vadd.f32 %v3158_v34, %v3156_v27 }
 0x70f   : > { %v3361_v40 = vadd.f32 0.5, %v3359_v24  ;;  %v3375_v56 = vmul.f32 %v5941_v5, %v3353_v31  ;;  %v3352_v35 = vmul.f32 0.5, %v5943_v12 }
 0x710   : > { %v5945_v50 = vpop.eup %5944  ;;  %5954 = vtanh.f32 %v9872_v43 }
 0x711   : > { %v3373_v38 = vmul.f32 %v3361_v40, %v9415_v61  ;;  %v3354_v29 = vadd.f32 0.5, %v3352_v35  ;;  %v3360_v42 = vmul.f32 0.5, %v5945_v50  ;;  %v5947_v0 = vpop.eup %5946  ;;  %v9889_v35 = vld [vmem:[#allocation12 + $0x1e0] sm:$0xff]  ;;  %v9892_v50 = vld [vmem:[#allocation12 + $0x1f0] sm:$0xff] }
 0x712   : > { %v5949_v37 = vpop.eup %5948 }
 0x713   : > { %v9875_v10 = vadd.f32 %v3375_v56, %v3373_v38  ;;  %v3362_v17 = vadd.f32 0.5, %v3360_v42  ;;  %v3376_v9 = vmul.f32 %v5947_v0, %v3354_v29  ;;  %v5951_v61 = vpop.eup %5950  ;;  %v3369_v7 = vmul.f32 0.5, %v5949_v37  ;;  %v9899_v29 = vld [vmem:[#allocation12 + $0x1c8] sm:$0xff]  ;;  %v9902_v42 = vld [vmem:[#allocation12 + $0x1d8] sm:$0xff]  ;;  %v9905_v0 = vld [vmem:[#allocation12 + $0x1c0] sm:$0xff] }
 0x714   : > { %v5953_v13 = vpop.eup %5952  ;;  %v3152_v62 = vmul.f32 0.5, %v5951_v61  ;;  %v9919_v37 = vld [vmem:[#allocation12 + $0x1a0] sm:$0xff]  ;;  %v9922_v61 = vld [vmem:[#allocation12 + $0x1b0] sm:$0xff] }
 0x715   : > { %5956 = vtanh.f32 %v9875_v10  ;;  %v3374_v31 = vmul.f32 %v3362_v17, %v9420_v20  ;;  %v3371_v5 = vadd.f32 0.5, %v3369_v7  ;;  %v3370_v24 = vmul.f32 0.5, %v5953_v13  ;;  %v9908_v17 = vld [vmem:[#allocation12 + $0x1d0] sm:$0xff]  ;;  %v9925_v7 = vld [vmem:[#allocation12 + $0x188] sm:$0xff]  ;;  %v9928_v13 = vld [vmem:[#allocation12 + $0x198] sm:$0xff] }
 0x716   : > { %v3154_v12 = vadd.f32 0.5, %v3152_v62  ;;  %v9931_v62 = vld [vmem:[#allocation12 + $0x180] sm:$0xff] }
 0x717   : > { %v9880_v55 = vadd.f32 %v3376_v9, %v3374_v31  ;;  %v3372_v40 = vadd.f32 0.5, %v3370_v24  ;;  %v9911_v9 = vld [vmem:[#allocation12 + $0x1a8] sm:$0xff]  ;;  %v9914_v31 = vld [vmem:[#allocation12 + $0x1b8] sm:$0xff] }
 0x718   : > { %v9940_v24 = vld [vmem:[#allocation12 + $0x178] sm:$0xff] }
 0x719   : > { %5958 = vtanh.f32 %v9880_v55  ;;  %12302 = vst [vmem:[#allocation101_spill] sm:$0xff] %v9940_v24 }
 0x71d   : > { %v5955_v27 = vpop.eup %5954 }
 0x71e   : > { %v9887_v20 = vmul.f32 %v5955_v27, %v3154_v12  ;;  %v9934_v27 = vld [vmem:[#allocation12 + $0x190] sm:$0xff] }
 0x71f   : > { %v9946_v12 = vld [vmem:[#allocation12 + $0x170] sm:$0xff] }
 0x720   : > { %12301 = vst [vmem:[#allocation98_spill] sm:$0xff] %v9887_v20  ;;  %12304 = vst [vmem:[#allocation102_spill] sm:$0xff] %v9946_v12 }
 0x722   : > { %v5957_v59 = vpop.eup %5956 }
 0x723   : > { %v9883_v34 = vmul.f32 %v5957_v59, %v3371_v5  ;;  %v9937_v5 = vld [vmem:[#allocation12 + $0x168] sm:$0xff]  ;;  %v9943_v59 = vld [vmem:[#allocation12 + $0x160] sm:$0xff] }
 0x724   : > { %12303 = vst [vmem:[#allocation103_spill] sm:$0xff] %v9943_v59 }
 0x725   : > { %3456 = vmatmul.mubr.f32.vlgmr.msra.gmra.mxu0 %v9883_v34  ;;  %3533 = vmatmul.mubr.f32.vlgmr.msra.gmra.mxu1 %v9883_v34 }
 0x726   : > { %v5959_v56 = vpop.eup %5958  ;;  %3602 = vmatpush1.msra.mxu0 %v9889_v35  ;;  %3679 = vmatpush1.msra.mxu1 %v9892_v50 }
 0x727   : > { %3461 = vmatprep.mubr.f32.mxu0 %v9887_v20  ;;  %3538 = vmatprep.mubr.f32.mxu1 %v9887_v20  ;;  %v9897_v38 = vmul.f32 %v5959_v56, %v3372_v40  ;;  %v9949_v40 = vld [vmem:[#allocation12 + $0x148] sm:$0xff]  ;;  %v9952_v56 = vld [vmem:[#allocation12 + $0x158] sm:$0xff]  ;;  %v9955_v20 = vld [vmem:[#allocation12 + $0x140] sm:$0xff] }
 0x728   : > { %3603 = vmatprep.subr.mxu0 %v9899_v29  ;;  %3680 = vmatprep.subr.mxu1 %v9902_v42  ;;  %12305 = vst [vmem:[#allocation113_spill] sm:$0xff] %v9949_v40  ;;  %12306 = vst [vmem:[#allocation115_spill] sm:$0xff] %v9952_v56 }
 0x729   : > { %3604 = vmatpush1.msra.mxu0 %v9905_v0  ;;  %3681 = vmatpush1.msra.mxu1 %v9908_v17  ;;  %12307 = vst [vmem:[#allocation114_spill] sm:$0xff] %v9955_v20 }
 0x72a   : > { %3605 = vmatprep.subr.mxu0 %v9911_v9  ;;  %3682 = vmatprep.subr.mxu1 %v9914_v31 }
 0x72b   : > { %3462 = vmatmul.mubr.f32.gmra.mxu0 %v9897_v38  ;;  %3539 = vmatmul.mubr.f32.gmra.mxu1 %v9897_v38 }
 0x72c   : > { %3606 = vmatpush1.msra.mxu0 %v9919_v37  ;;  %3683 = vmatpush1.msra.mxu1 %v9922_v61 }
 0x72d   : > { %3607 = vmatprep.subr.mxu0 %v9925_v7  ;;  %3684 = vmatprep.subr.mxu1 %v9928_v13 }
 0x72e   : > { %3608 = vmatpush1.msra.mxu0 %v9931_v62  ;;  %3685 = vmatpush1.msra.mxu1 %v9934_v27 }
 0x72f   : > { %3609 = vmatprep.subr.mxu0 %v9937_v5  ;;  %3686 = vmatprep.subr.mxu1 %v9940_v24  ;;  %v9958_v24 = vld [vmem:[#allocation12 + $0x150] sm:$0xff] }
 0x730   : > { %3610 = vmatpush1.msra.mxu0 %v9943_v59  ;;  %3687 = vmatpush1.msra.mxu1 %v9946_v12  ;;  %12308 = vst [vmem:[#allocation117_spill] sm:$0xff] %v9958_v24  ;;  %v9961_v59 = vld [vmem:[#allocation12 + $0x128] sm:$0xff]  ;;  %v9964_v12 = vld [vmem:[#allocation12 + $0x138] sm:$0xff] }
 0x731   : > { %3611 = vmatprep.subr.mxu0 %v9949_v40  ;;  %3688 = vmatprep.subr.mxu1 %v9952_v56  ;;  %12309 = vst [vmem:[#allocation119_spill] sm:$0xff] %v9961_v59  ;;  %12310 = vst [vmem:[#allocation118_spill] sm:$0xff] %v9964_v12  ;;  %v9967_v40 = vld [vmem:[#allocation12 + $0x120] sm:$0xff]  ;;  %v9970_v56 = vld [vmem:[#allocation12 + $0x130] sm:$0xff] }
 0x732   : > { %3612 = vmatpush1.msra.mxu0 %v9955_v20  ;;  %3689 = vmatpush1.msra.mxu1 %v9958_v24  ;;  %12311 = vst [vmem:[#allocation116_spill] sm:$0xff] %v9967_v40  ;;  %12312 = vst [vmem:[#allocation120_spill] sm:$0xff] %v9970_v56  ;;  %v9973_v20 = vld [vmem:[#allocation12 + $0x108] sm:$0xff]  ;;  %v9976_v24 = vld [vmem:[#allocation12 + $0x118] sm:$0xff] }
 0x733   : > { %3613 = vmatprep.subr.mxu0 %v9961_v59  ;;  %3690 = vmatprep.subr.mxu1 %v9964_v12  ;;  %12313 = vst [vmem:[#allocation153_spill] sm:$0xff] %v9973_v20  ;;  %12314 = vst [vmem:[#allocation154_spill] sm:$0xff] %v9976_v24  ;;  %v9979_v59 = vld [vmem:[#allocation12 + $0x100] sm:$0xff]  ;;  %v9982_v12 = vld [vmem:[#allocation12 + $0x110] sm:$0xff] }
 0x734   : > { %3614 = vmatpush1.msra.mxu0 %v9967_v40  ;;  %3691 = vmatpush1.msra.mxu1 %v9970_v56  ;;  %12315 = vst [vmem:[#allocation155_spill] sm:$0xff] %v9979_v59  ;;  %12316 = vst [vmem:[#allocation156_spill] sm:$0xff] %v9982_v12  ;;  %v9985_v40 = vld [vmem:[#allocation12 + $0xe8] sm:$0xff]  ;;  %v9988_v56 = vld [vmem:[#allocation12 + $0xf8] sm:$0xff] }
 0x735   : > { %3615 = vmatprep.subr.mxu0 %v9973_v20  ;;  %3692 = vmatprep.subr.mxu1 %v9976_v24  ;;  %12317 = vst [vmem:[#allocation157_spill] sm:$0xff] %v9985_v40  ;;  %12318 = vst [vmem:[#allocation158_spill] sm:$0xff] %v9988_v56  ;;  %v9991_v20 = vld [vmem:[#allocation12 + $0xe0] sm:$0xff]  ;;  %v9994_v24 = vld [vmem:[#allocation12 + $0xf0] sm:$0xff] }
 0x736   : > { %3616 = vmatpush1.msra.mxu0 %v9979_v59  ;;  %3693 = vmatpush1.msra.mxu1 %v9982_v12  ;;  %12319 = vst [vmem:[#allocation159_spill] sm:$0xff] %v9991_v20  ;;  %12320 = vst [vmem:[#allocation160_spill] sm:$0xff] %v9994_v24  ;;  %v9997_v59 = vld [vmem:[#allocation12 + $0xc8] sm:$0xff]  ;;  %v10000_v12 = vld [vmem:[#allocation12 + $0xd8] sm:$0xff] }
 0x737   : > { %3617 = vmatprep.subr.mxu0 %v9985_v40  ;;  %3694 = vmatprep.subr.mxu1 %v9988_v56  ;;  %12321 = vst [vmem:[#allocation161_spill] sm:$0xff] %v9997_v59  ;;  %12322 = vst [vmem:[#allocation162_spill] sm:$0xff] %v10000_v12  ;;  %v10003_v40 = vld [vmem:[#allocation12 + $0xc0] sm:$0xff]  ;;  %v10006_v56 = vld [vmem:[#allocation12 + $0xd0] sm:$0xff] }
 0x738   : > { %3618 = vmatpush1.msra.mxu0 %v9991_v20  ;;  %3695 = vmatpush1.msra.mxu1 %v9994_v24  ;;  %12323 = vst [vmem:[#allocation163_spill] sm:$0xff] %v10003_v40  ;;  %12324 = vst [vmem:[#allocation164_spill] sm:$0xff] %v10006_v56  ;;  %v10009_v20 = vld [vmem:[#allocation12 + $0xa8] sm:$0xff]  ;;  %v10012_v24 = vld [vmem:[#allocation12 + $0xb8] sm:$0xff] }
 0x739   : > { %3619 = vmatprep.subr.mxu0 %v9997_v59  ;;  %3696 = vmatprep.subr.mxu1 %v10000_v12  ;;  %12325 = vst [vmem:[#allocation165_spill] sm:$0xff] %v10009_v20  ;;  %12326 = vst [vmem:[#allocation166_spill] sm:$0xff] %v10012_v24  ;;  %v10015_v59 = vld [vmem:[#allocation12 + $0xa0] sm:$0xff]  ;;  %v10018_v12 = vld [vmem:[#allocation12 + $0xb0] sm:$0xff] }
 0x73a   : > { %3620 = vmatpush1.msra.mxu0 %v10003_v40  ;;  %3697 = vmatpush1.msra.mxu1 %v10006_v56  ;;  %12327 = vst [vmem:[#allocation167_spill] sm:$0xff] %v10015_v59  ;;  %12328 = vst [vmem:[#allocation168_spill] sm:$0xff] %v10018_v12  ;;  %v10021_v40 = vld [vmem:[#allocation12 + $0x88] sm:$0xff]  ;;  %v10024_v56 = vld [vmem:[#allocation12 + $0x98] sm:$0xff] }
 0x73b   : > { %3621 = vmatprep.subr.mxu0 %v10009_v20  ;;  %3698 = vmatprep.subr.mxu1 %v10012_v24  ;;  %12329 = vst [vmem:[#allocation169_spill] sm:$0xff] %v10021_v40  ;;  %12330 = vst [vmem:[#allocation170_spill] sm:$0xff] %v10024_v56  ;;  %v10027_v20 = vld [vmem:[#allocation12 + $0x80] sm:$0xff]  ;;  %v10030_v24 = vld [vmem:[#allocation12 + $0x90] sm:$0xff] }
 0x73c   : > { %3622 = vmatpush1.msra.mxu0 %v10015_v59  ;;  %3699 = vmatpush1.msra.mxu1 %v10018_v12  ;;  %12331 = vst [vmem:[#allocation171_spill] sm:$0xff] %v10027_v20  ;;  %12332 = vst [vmem:[#allocation172_spill] sm:$0xff] %v10030_v24  ;;  %v10033_v59 = vld [vmem:[#allocation12 + $0x68] sm:$0xff]  ;;  %v10036_v12 = vld [vmem:[#allocation12 + $0x78] sm:$0xff] }
 0x73d   : > { %3623 = vmatprep.subr.mxu0 %v10021_v40  ;;  %3700 = vmatprep.subr.mxu1 %v10024_v56  ;;  %12333 = vst [vmem:[#allocation173_spill] sm:$0xff] %v10033_v59  ;;  %12334 = vst [vmem:[#allocation174_spill] sm:$0xff] %v10036_v12  ;;  %v10039_v40 = vld [vmem:[#allocation12 + $0x60] sm:$0xff]  ;;  %v10042_v56 = vld [vmem:[#allocation12 + $0x70] sm:$0xff] }
 0x73e   : > { %3624 = vmatpush1.msra.mxu0 %v10027_v20  ;;  %3701 = vmatpush1.msra.mxu1 %v10030_v24  ;;  %12335 = vst [vmem:[#allocation175_spill] sm:$0xff] %v10039_v40  ;;  %12336 = vst [vmem:[#allocation176_spill] sm:$0xff] %v10042_v56  ;;  %v10045_v20 = vld [vmem:[#allocation12 + $0x48] sm:$0xff]  ;;  %v10048_v24 = vld [vmem:[#allocation12 + $0x58] sm:$0xff] }
 0x73f   : > { %3625 = vmatprep.subr.mxu0 %v10033_v59  ;;  %3702 = vmatprep.subr.mxu1 %v10036_v12  ;;  %12337 = vst [vmem:[#allocation177_spill] sm:$0xff] %v10045_v20  ;;  %12338 = vst [vmem:[#allocation178_spill] sm:$0xff] %v10048_v24  ;;  %v10051_v59 = vld [vmem:[#allocation12 + $0x40] sm:$0xff]  ;;  %v10054_v12 = vld [vmem:[#allocation12 + $0x50] sm:$0xff] }
 0x740   : > { %3626 = vmatpush1.msra.mxu0 %v10039_v40  ;;  %3703 = vmatpush1.msra.mxu1 %v10042_v56  ;;  %12339 = vst [vmem:[#allocation179_spill] sm:$0xff] %v10051_v59  ;;  %12340 = vst [vmem:[#allocation180_spill] sm:$0xff] %v10054_v12  ;;  %v10057_v40 = vld [vmem:[#allocation12 + $0x28] sm:$0xff]  ;;  %v10060_v56 = vld [vmem:[#allocation12 + $0x38] sm:$0xff] }
 0x741   : > { %3627 = vmatprep.subr.mxu0 %v10045_v20  ;;  %3704 = vmatprep.subr.mxu1 %v10048_v24  ;;  %12341 = vst [vmem:[#allocation181_spill] sm:$0xff] %v10057_v40  ;;  %12342 = vst [vmem:[#allocation182_spill] sm:$0xff] %v10060_v56  ;;  %v10063_v20 = vld [vmem:[#allocation12 + $0x20] sm:$0xff]  ;;  %v10066_v24 = vld [vmem:[#allocation12 + $0x30] sm:$0xff] }
 0x742   : > { %3628 = vmatpush1.msra.mxu0 %v10051_v59  ;;  %3705 = vmatpush1.msra.mxu1 %v10054_v12  ;;  %v10069_v59 = vld [vmem:[#allocation12 + $0x8] sm:$0xff]  ;;  %v10072_v12 = vld [vmem:[#allocation12 + $0x18] sm:$0xff] }
 0x743   : > { %3629 = vmatprep.subr.mxu0 %v10057_v40  ;;  %3706 = vmatprep.subr.mxu1 %v10060_v56  ;;  %12343 = vst [vmem:[#allocation183_spill] sm:$0xff] %v10069_v59  ;;  %12344 = vst [vmem:[#allocation184_spill] sm:$0xff] %v10072_v12  ;;  %v10075_v40 = vld [vmem:[#allocation12] sm:$0xff]  ;;  %v10079_v56 = vld [vmem:[#allocation12 + $0x10] sm:$0xff] }
 0x744   : > { %3630 = vmatpush1.msra.mxu0 %v10063_v20  ;;  %3707 = vmatpush1.msra.mxu1 %v10066_v24  ;;  %12345 = vst [vmem:[#allocation185_spill] sm:$0xff] %v10075_v40  ;;  %12346 = vst [vmem:[#allocation186_spill] sm:$0xff] %v10079_v56 }
 0x745   : > { %3631 = vmatprep.subr.mxu0 %v10069_v59  ;;  %3708 = vmatprep.subr.mxu1 %v10072_v12  ;;  %v10087_v12 = vld [vmem:[#allocation13 + $0x1e8] sm:$0xff]  ;;  %v10093_v59 = vld [vmem:[#allocation13 + $0x1e0] sm:$0xff] }
 0x746   : > { %3632 = vmatpush1.msra.mxu0 %v10075_v40  ;;  %3665 = vmatprep.mubr.f32.mxu0 %v11717_v32  ;;  %12347 = vst [vmem:[#allocation187_spill] sm:$0xff] %v10087_v12  ;;  %v10090_v40 = vld [vmem:[#allocation13 + $0x1f8] sm:$0xff]  ;;  %12349 = vst [vmem:[#allocation189_spill] sm:$0xff] %v10093_v59 }
 0x747   : > { %3709 = vmatpush1.msra.mxu1 %v10079_v56  ;;  %3742 = vmatprep.mubr.f32.mxu1 %v11717_v32  ;;  %12348 = vst [vmem:[#allocation188_spill] sm:$0xff] %v10090_v40  ;;  %v10096_v56 = vld [vmem:[#allocation13 + $0x1f0] sm:$0xff] }
 0x748   : > { %3666 = vmatmul.mubr.f32.vlgmr.msra.gmra.mxu0 %v9883_v34  ;;  %3743 = vmatmul.mubr.f32.vlgmr.msra.gmra.mxu1 %v9883_v34  ;;  %12350 = vst [vmem:[#allocation190_spill] sm:$0xff] %v10096_v56  ;;  %v10101_v34 = vld [vmem:[#allocation13 + $0x1c8] sm:$0xff] }
 0x749   : > { %3671 = vmatprep.mubr.f32.mxu0 %v11717_v32  ;;  %3748 = vmatprep.mubr.f32.mxu1 %v11717_v32  ;;  %12351 = vst [vmem:[#allocation191_spill] sm:$0xff] %v10101_v34 }
 0x74a   : > { %3809 = vmatprep.subr.mxu0 %v10087_v12  ;;  %3886 = vmatprep.subr.mxu1 %v10090_v40  ;;  %v10104_v12 = vld [vmem:[#allocation13 + $0x1d8] sm:$0xff]  ;;  %v10107_v40 = vld [vmem:[#allocation13 + $0x1c0] sm:$0xff] }
 0x74b   : > { %3810 = vmatpush1.msra.mxu0 %v10093_v59  ;;  %3887 = vmatpush1.msra.mxu1 %v10096_v56  ;;  %12352 = vst [vmem:[#allocation192_spill] sm:$0xff] %v10104_v12  ;;  %12353 = vst [vmem:[#allocation193_spill] sm:$0xff] %v10107_v40  ;;  %v10110_v59 = vld [vmem:[#allocation13 + $0x1d0] sm:$0xff]  ;;  %v10113_v56 = vld [vmem:[#allocation13 + $0x1a8] sm:$0xff] }
 0x74c   : > { %3672 = vmatmul.mubr.f32.gmra.mxu0 %v9897_v38  ;;  %3749 = vmatmul.mubr.f32.gmra.mxu1 %v9897_v38  ;;  %12354 = vst [vmem:[#allocation194_spill] sm:$0xff] %v10110_v59  ;;  %12355 = vst [vmem:[#allocation195_spill] sm:$0xff] %v10113_v56  ;;  %v10116_v38 = vld [vmem:[#allocation13 + $0x1b8] sm:$0xff] }
 0x74d   : > { %3811 = vmatprep.subr.mxu0 %v10101_v34  ;;  %3888 = vmatprep.subr.mxu1 %v10104_v12  ;;  %12356 = vst [vmem:[#allocation196_spill] sm:$0xff] %v10116_v38  ;;  %v10119_v34 = vld [vmem:[#allocation13 + $0x1a0] sm:$0xff]  ;;  %v10122_v12 = vld [vmem:[#allocation13 + $0x1b0] sm:$0xff] }
 0x74e   : > { %3812 = vmatpush1.msra.mxu0 %v10107_v40  ;;  %3889 = vmatpush1.msra.mxu1 %v10110_v59  ;;  %12357 = vst [vmem:[#allocation197_spill] sm:$0xff] %v10119_v34  ;;  %12358 = vst [vmem:[#allocation198_spill] sm:$0xff] %v10122_v12  ;;  %v10125_v40 = vld [vmem:[#allocation13 + $0x188] sm:$0xff]  ;;  %v10128_v59 = vld [vmem:[#allocation13 + $0x198] sm:$0xff] }
 0x74f   : > { %3813 = vmatprep.subr.mxu0 %v10113_v56  ;;  %3890 = vmatprep.subr.mxu1 %v10116_v38  ;;  %12359 = vst [vmem:[#allocation199_spill] sm:$0xff] %v10125_v40  ;;  %12360 = vst [vmem:[#allocation200_spill] sm:$0xff] %v10128_v59  ;;  %v10131_v56 = vld [vmem:[#allocation13 + $0x180] sm:$0xff]  ;;  %v10134_v38 = vld [vmem:[#allocation13 + $0x190] sm:$0xff] }
 0x750   : > { %3814 = vmatpush1.msra.mxu0 %v10119_v34  ;;  %3891 = vmatpush1.msra.mxu1 %v10122_v12  ;;  %12361 = vst [vmem:[#allocation201_spill] sm:$0xff] %v10131_v56  ;;  %12362 = vst [vmem:[#allocation202_spill] sm:$0xff] %v10134_v38  ;;  %v10137_v34 = vld [vmem:[#allocation13 + $0x168] sm:$0xff]  ;;  %v10140_v12 = vld [vmem:[#allocation13 + $0x178] sm:$0xff] }
 0x751   : > { %3815 = vmatprep.subr.mxu0 %v10125_v40  ;;  %3892 = vmatprep.subr.mxu1 %v10128_v59  ;;  %12363 = vst [vmem:[#allocation203_spill] sm:$0xff] %v10137_v34  ;;  %12364 = vst [vmem:[#allocation204_spill] sm:$0xff] %v10140_v12  ;;  %v10143_v40 = vld [vmem:[#allocation13 + $0x160] sm:$0xff]  ;;  %v10146_v59 = vld [vmem:[#allocation13 + $0x170] sm:$0xff] }
 0x752   : > { %3816 = vmatpush1.msra.mxu0 %v10131_v56  ;;  %3893 = vmatpush1.msra.mxu1 %v10134_v38  ;;  %v10149_v56 = vld [vmem:[#allocation13 + $0x148] sm:$0xff]  ;;  %v10152_v38 = vld [vmem:[#allocation13 + $0x158] sm:$0xff] }
 0x753   : > { %3817 = vmatprep.subr.mxu0 %v10137_v34  ;;  %3894 = vmatprep.subr.mxu1 %v10140_v12  ;;  %v10155_v34 = vld [vmem:[#allocation13 + $0x140] sm:$0xff]  ;;  %v10158_v12 = vld [vmem:[#allocation13 + $0x150] sm:$0xff] }
 0x754   : > { %3818 = vmatpush1.msra.mxu0 %v10143_v40  ;;  %3895 = vmatpush1.msra.mxu1 %v10146_v59 }
 0x755   : > { %3819 = vmatprep.subr.mxu0 %v10149_v56  ;;  %3896 = vmatprep.subr.mxu1 %v10152_v38 }
 0x756   : > { %3820 = vmatpush1.msra.mxu0 %v10155_v34  ;;  %3897 = vmatpush1.msra.mxu1 %v10158_v12 }
 0x757   : > { %3821 = vmatprep.subr.mxu0 %v9529_v23  ;;  %3898 = vmatprep.subr.mxu1 %v9532_v48  ;;  %v12365_v23 = vld [vmem:[#allocation109_spill] sm:$0xff]  ;;  %v12366_v48 = vld [vmem:[#allocation111_spill] sm:$0xff] }
 0x758   : > { %3822 = vmatpush1.msra.mxu0 %v9535_v49  ;;  %3899 = vmatpush1.msra.mxu1 %v9538_v15  ;;  %v12367_v49 = vld [vmem:[#allocation110_spill] sm:$0xff]  ;;  %v12368_v15 = vld [vmem:[#allocation108_spill] sm:$0xff] }
 0x759   : > { %3823 = vmatprep.subr.mxu0 %v9541_v11  ;;  %3900 = vmatprep.subr.mxu1 %v9544_v18  ;;  %v12369_v11 = vld [vmem:[#allocation112_spill] sm:$0xff]  ;;  %v12370_v18 = vld [vmem:[#allocation31_spill] sm:$0xff] }
 0x75a   : > { %3824 = vmatpush1.msra.mxu0 %v9547_v6  ;;  %3901 = vmatpush1.msra.mxu1 %v9550_v22  ;;  %v12371_v6 = vld [vmem:[#allocation32_spill] sm:$0xff]  ;;  %v12372_v22 = vld [vmem:[#allocation33_spill] sm:$0xff] }
 0x75b   : > { %3825 = vmatprep.subr.mxu0 %v9553_v33  ;;  %3902 = vmatprep.subr.mxu1 %v9556_v51  ;;  %v12373_v33 = vld [vmem:[#allocation34_spill] sm:$0xff]  ;;  %v12374_v51 = vld [vmem:[#allocation35_spill] sm:$0xff] }
 0x75c   : > { %3826 = vmatpush1.msra.mxu0 %v9559_v60  ;;  %3903 = vmatpush1.msra.mxu1 %v9562_v30  ;;  %v12375_v60 = vld [vmem:[#allocation36_spill] sm:$0xff]  ;;  %v12376_v30 = vld [vmem:[#allocation37_spill] sm:$0xff] }
 0x75d   : > { %3827 = vmatprep.subr.mxu0 %v9565_v28  ;;  %3904 = vmatprep.subr.mxu1 %v9568_v36  ;;  %v12377_v28 = vld [vmem:[#allocation38_spill] sm:$0xff]  ;;  %v12378_v36 = vld [vmem:[#allocation39_spill] sm:$0xff] }
 0x75e   : > { %3828 = vmatpush1.msra.mxu0 %v9571_v57  ;;  %3905 = vmatpush1.msra.mxu1 %v9574_v58  ;;  %v12379_v57 = vld [vmem:[#allocation40_spill] sm:$0xff]  ;;  %v12380_v58 = vld [vmem:[#allocation41_spill] sm:$0xff] }
 0x75f   : > { %3829 = vmatprep.subr.mxu0 %v9577_v21  ;;  %3906 = vmatprep.subr.mxu1 %v9580_v41  ;;  %v12381_v21 = vld [vmem:[#allocation42_spill] sm:$0xff]  ;;  %v12382_v41 = vld [vmem:[#allocation43_spill] sm:$0xff] }
 0x760   : > { %3830 = vmatpush1.msra.mxu0 %v9583_v46  ;;  %3907 = vmatpush1.msra.mxu1 %v9586_v19  ;;  %v12383_v46 = vld [vmem:[#allocation44_spill] sm:$0xff]  ;;  %v12384_v19 = vld [vmem:[#allocation45_spill] sm:$0xff] }
 0x761   : > { %3831 = vmatprep.subr.mxu0 %v9589_v44  ;;  %3908 = vmatprep.subr.mxu1 %v9592_v16  ;;  %v12385_v44 = vld [vmem:[#allocation46_spill] sm:$0xff]  ;;  %v12386_v16 = vld [vmem:[#allocation47_spill] sm:$0xff] }
 0x762   : > { %3832 = vmatpush1.msra.mxu0 %v9595_v26  ;;  %3909 = vmatpush1.msra.mxu1 %v9598_v14  ;;  %v12387_v26 = vld [vmem:[#allocation48_spill] sm:$0xff]  ;;  %v12388_v14 = vld [vmem:[#allocation49_spill] sm:$0xff] }
 0x763   : > { %3833 = vmatprep.subr.mxu0 %v9601_v54  ;;  %3910 = vmatprep.subr.mxu1 %v9604_v63  ;;  %v12389_v54 = vld [vmem:[#allocation50_spill] sm:$0xff]  ;;  %v12390_v63 = vld [vmem:[#allocation51_spill] sm:$0xff] }
 0x764   : > { %3834 = vmatpush1.msra.mxu0 %v9607_v1  ;;  %3911 = vmatpush1.msra.mxu1 %v9610_v45  ;;  %v12391_v1 = vld [vmem:[#allocation52_spill] sm:$0xff]  ;;  %v12392_v45 = vld [vmem:[#allocation53_spill] sm:$0xff] }
 0x765   : > { %3835 = vmatprep.subr.mxu0 %v9613_v47  ;;  %3912 = vmatprep.subr.mxu1 %v9616_v2  ;;  %v12393_v47 = vld [vmem:[#allocation54_spill] sm:$0xff]  ;;  %v12394_v2 = vld [vmem:[#allocation55_spill] sm:$0xff] }
 0x766   : > { %3836 = vmatpush1.msra.mxu0 %v9619_v4  ;;  %3913 = vmatpush1.msra.mxu1 %v9622_v25  ;;  %v12395_v4 = vld [vmem:[#allocation56_spill] sm:$0xff]  ;;  %v12396_v25 = vld [vmem:[#allocation57_spill] sm:$0xff] }
 0x767   : > { %3837 = vmatprep.subr.mxu0 %v9625_v8  ;;  %3914 = vmatprep.subr.mxu1 %v9628_v3  ;;  %v12397_v8 = vld [vmem:[#allocation58_spill] sm:$0xff]  ;;  %v12398_v3 = vld [vmem:[#allocation59_spill] sm:$0xff] }
 0x768   : > { %3838 = vmatpush1.msra.mxu0 %v9631_v39  ;;  %3915 = vmatpush1.msra.mxu1 %v12365_v23  ;;  %v12399_v39 = vld [vmem:[#allocation60_spill] sm:$0xff]  ;;  %v12400_v23 = vld [vmem:[#allocation61_spill] sm:$0xff] }
 0x769   : > { %3839 = vmatprep.subr.mxu0 %v12366_v48  ;;  %3916 = vmatprep.subr.mxu1 %v12367_v49  ;;  %v12401_v48 = vld [vmem:[#allocation62_spill] sm:$0xff]  ;;  %v12402_v49 = vld [vmem:[#allocation63_spill] sm:$0xff] }
 0x76a   : > { %3840 = vmatpush1.msra.mxu0 %v12368_v15  ;;  %3917 = vmatpush1.msra.mxu1 %v12369_v11  ;;  %v12403_v15 = vld [vmem:[#allocation64_spill] sm:$0xff]  ;;  %v12404_v11 = vld [vmem:[#allocation65_spill] sm:$0xff] }
 0x76b   : > { %3841 = vmatprep.subr.mxu0 %v12370_v18  ;;  %3918 = vmatprep.subr.mxu1 %v12371_v6  ;;  %v12405_v18 = vld [vmem:[#allocation66_spill] sm:$0xff]  ;;  %v12406_v6 = vld [vmem:[#allocation67_spill] sm:$0xff] }
 0x76c   : > { %3842 = vmatpush2.msra.mxu0 %v12372_v22  ;;  %3919 = vmatpush2.msra.mxu1 %v12373_v33  ;;  %v12407_v22 = vld [vmem:[#allocation68_spill] sm:$0xff]  ;;  %v12408_v33 = vld [vmem:[#allocation69_spill] sm:$0xff] }
 0x76d   : > { %3843 = vmatprep.subr.mxu0 %v12374_v51  ;;  %3920 = vmatprep.subr.mxu1 %v12375_v60  ;;  %v12409_v51 = vld [vmem:[#allocation70_spill] sm:$0xff]  ;;  %v12410_v60 = vld [vmem:[#allocation71_spill] sm:$0xff] }
 0x76e   : > { %3844 = vmatpush2.msra.mxu0 %v12376_v30  ;;  %3921 = vmatpush2.msra.mxu1 %v12377_v28  ;;  %v12411_v30 = vld [vmem:[#allocation72_spill] sm:$0xff]  ;;  %v12412_v28 = vld [vmem:[#allocation73_spill] sm:$0xff] }
 0x76f   : > { %3845 = vmatprep.subr.mxu0 %v12378_v36  ;;  %3922 = vmatprep.subr.mxu1 %v12379_v57  ;;  %v12413_v36 = vld [vmem:[#allocation74_spill] sm:$0xff]  ;;  %v12414_v57 = vld [vmem:[#allocation75_spill] sm:$0xff] }
 0x770   : > { %3846 = vmatpush2.msra.mxu0 %v12380_v58  ;;  %3923 = vmatpush2.msra.mxu1 %v12381_v21  ;;  %v12415_v58 = vld [vmem:[#allocation76_spill] sm:$0xff]  ;;  %v12416_v21 = vld [vmem:[#allocation77_spill] sm:$0xff] }
 0x771   : > { %3847 = vmatprep.subr.mxu0 %v12382_v41  ;;  %3924 = vmatprep.subr.mxu1 %v12383_v46  ;;  %v12417_v41 = vld [vmem:[#allocation78_spill] sm:$0xff]  ;;  %v12418_v46 = vld [vmem:[#allocation79_spill] sm:$0xff] }
 0x772   : > { %3848 = vmatpush2.msra.mxu0 %v12384_v19  ;;  %3925 = vmatpush2.msra.mxu1 %v12385_v44  ;;  %v12419_v19 = vld [vmem:[#allocation80_spill] sm:$0xff]  ;;  %v12420_v44 = vld [vmem:[#allocation81_spill] sm:$0xff] }
 0x773   : > { %3849 = vmatprep.subr.mxu0 %v12386_v16  ;;  %3926 = vmatprep.subr.mxu1 %v12387_v26  ;;  %v12421_v16 = vld [vmem:[#allocation82_spill] sm:$0xff]  ;;  %v12422_v26 = vld [vmem:[#allocation83_spill] sm:$0xff] }
 0x774   : > { %3850 = vmatpush2.msra.mxu0 %v12388_v14  ;;  %3927 = vmatpush2.msra.mxu1 %v12389_v54  ;;  %v12423_v14 = vld [vmem:[#allocation84_spill] sm:$0xff]  ;;  %v12424_v54 = vld [vmem:[#allocation85_spill] sm:$0xff] }
 0x775   : > { %3851 = vmatprep.subr.mxu0 %v12390_v63  ;;  %3928 = vmatprep.subr.mxu1 %v12391_v1  ;;  %v12425_v63 = vld [vmem:[#allocation86_spill] sm:$0xff]  ;;  %v12426_v1 = vld [vmem:[#allocation87_spill] sm:$0xff] }
 0x776   : > { %3852 = vmatpush2.msra.mxu0 %v12392_v45  ;;  %3929 = vmatpush2.msra.mxu1 %v12393_v47  ;;  %v12427_v45 = vld [vmem:[#allocation88_spill] sm:$0xff]  ;;  %v12428_v47 = vld [vmem:[#allocation89_spill] sm:$0xff] }
 0x777   : > { %3853 = vmatprep.subr.mxu0 %v12394_v2  ;;  %3930 = vmatprep.subr.mxu1 %v12395_v4  ;;  %v12429_v2 = vld [vmem:[#allocation90_spill] sm:$0xff]  ;;  %v12430_v4 = vld [vmem:[#allocation91_spill] sm:$0xff] }
 0x778   : > { %3854 = vmatpush2.msra.mxu0 %v12396_v25  ;;  %3931 = vmatpush2.msra.mxu1 %v12397_v8  ;;  %v12431_v25 = vld [vmem:[#allocation92_spill] sm:$0xff]  ;;  %v12432_v8 = vld [vmem:[#allocation93_spill] sm:$0xff] }
 0x779   : > { %3855 = vmatprep.subr.mxu0 %v12398_v3  ;;  %3932 = vmatprep.subr.mxu1 %v12399_v39  ;;  %v12433_v3 = vld [vmem:[#allocation94_spill] sm:$0xff]  ;;  %v12434_v39 = vld [vmem:[#allocation95_spill] sm:$0xff] }
 0x77a   : > { %3856 = vmatpush2.msra.mxu0 %v12400_v23  ;;  %3933 = vmatpush2.msra.mxu1 %v12401_v48  ;;  %v12435_v23 = vld [vmem:[#allocation96_spill] sm:$0xff] }
 0x77b   : > { %3857 = vmatprep.subr.mxu0 %v12402_v49  ;;  %3934 = vmatprep.subr.mxu1 %v12403_v15  ;;  %v12436_v49 = vld [vmem:[#allocation27_spill] sm:$0xff] }
 0x77c   : > { %3858 = vmatpush2.msra.mxu0 %v12404_v11  ;;  %3935 = vmatpush2.msra.mxu1 %v12405_v18 }
 0x77d   : > { %3859 = vmatprep.subr.mxu0 %v12406_v6  ;;  %3936 = vmatprep.subr.mxu1 %v12407_v22  ;;  %v12437_v6 = vld [vmem:[#allocation28_spill] sm:$0xff] }
 0x77e   : > { %3860 = vmatpush2.msra.mxu0 %v12408_v33  ;;  %3937 = vmatpush2.msra.mxu1 %v12409_v51 }
 0x77f   : > { %3861 = vmatprep.subr.mxu0 %v12410_v60  ;;  %3938 = vmatprep.subr.mxu1 %v12411_v30 }
 0x780   : > { %3862 = vmatpush2.msra.mxu0 %v12412_v28  ;;  %3939 = vmatpush2.msra.mxu1 %v12413_v36 }
 0x781   : > { %3863 = vmatprep.subr.mxu0 %v12414_v57  ;;  %3940 = vmatprep.subr.mxu1 %v12415_v58 }
 0x782   : > { %3864 = vmatpush2.msra.mxu0 %v12416_v21  ;;  %3941 = vmatpush2.msra.mxu1 %v12417_v41 }
 0x783   : > { %3865 = vmatprep.subr.mxu0 %v12418_v46  ;;  %3942 = vmatprep.subr.mxu1 %v12419_v19 }
 0x784   : > { %3866 = vmatpush2.msra.mxu0 %v12420_v44  ;;  %3943 = vmatpush2.msra.mxu1 %v12421_v16 }
 0x785   : > { %3867 = vmatprep.subr.mxu0 %v12422_v26  ;;  %3944 = vmatprep.subr.mxu1 %v12423_v14 }
 0x786   : > { %3868 = vmatpush2.msra.mxu0 %v12424_v54  ;;  %3945 = vmatpush2.msra.mxu1 %v12425_v63  ;;  %v12438_v54 = vld [vmem:[#allocation97_spill] sm:$0xff] }
 0x787   : > { %3869 = vmatprep.subr.mxu0 %v12426_v1  ;;  %3946 = vmatprep.subr.mxu1 %v12427_v45 }
 0x788   : > { %3870 = vmatpush2.msra.mxu0 %v12428_v47  ;;  %3947 = vmatpush2.msra.mxu1 %v12429_v2 }
 0x789   : > { %3871 = vmatprep.subr.mxu0 %v12430_v4  ;;  %3948 = vmatprep.subr.mxu1 %v12431_v25 }
 0x78a   : > { %3872 = vmatpush2.msra.mxu0 %v12432_v8  ;;  %3949 = vmatpush2.msra.mxu1 %v12433_v3 }
 0x78b   : > { %4019 = vmatprep.subr.mxu0 %v12434_v39  ;;  %4096 = vmatprep.subr.mxu1 %v12435_v23 }
 0x7e5   : > { %v3457_v48 = vpop.f32.mrf.mxu0  ;;  %v3534_v33 = vpop.f32.mrf.mxu1 }
 0x7e6   : > { %v3458_v15 = vadd.f32 %v3457_v48, %v12436_v49  ;;  %v3535_v60 = vadd.f32 %v3534_v33, %v8504_v52  ;;  %v12439_v48 = vld [vmem:[#allocation129_spill] sm:$0xff] }
 0x7e7   : > { %v3459_v11 = vpop.f32.mrf.mxu0  ;;  %v3536_v30 = vpop.f32.mrf.mxu1 }
 0x7e8   : > { %v3547_v18 = vmul.f32 0.5, %v3458_v15  ;;  %v3460_v22 = vadd.f32 %v3459_v11, %v12437_v6  ;;  %v3537_v28 = vadd.f32 %v3536_v30, %v8510_v53 }
 0x7ea   : > { %5960 = vtanh.f32 %v3547_v18  ;;  %v3555_v51 = vmul.f32 0.5, %v3460_v22  ;;  %v3565_v57 = vmul.f32 0.5, %v3537_v28  ;;  %v12441_v28 = vld [vmem:[#allocation130_spill] sm:$0xff] }
 0x7eb   : > { %v3463_v36 = vpop.f32.mrf.mxu0  ;;  %v3540_v25 = vpop.f32.mrf.mxu1 }
 0x7ec   : > { %5962 = vtanh.f32 %v3555_v51  ;;  %v3464_v45 = vadd.f32 %v3463_v36, %v12436_v49  ;;  %v3541_v18 = vadd.f32 %v3540_v25, %v8504_v52 }
 0x7ed   : > { %5964 = vtanh.f32 %v3535_v60  ;;  %v3465_v46 = vpop.f32.mrf.mxu0  ;;  %v3542_v8 = vpop.f32.mrf.mxu1  ;;  %v12440_v60 = vld [vmem:[#allocation131_spill] sm:$0xff] }
 0x7ee   : > { %5966 = vtanh.f32 %v3565_v57  ;;  %v3466_v26 = vadd.f32 %v3465_v46, %v12437_v6  ;;  %v3548_v4 = vmul.f32 0.5, %v3464_v45  ;;  %v12445_v45 = vld [vmem:[#allocation134_spill] sm:$0xff] }
 0x7f0   : > { %v3556_v2 = vmul.f32 0.5, %v3466_v26 }
 0x7f7   : > { %v5961_v58 = vpop.eup %5960 }
 0x7f8   : > { %v3551_v21 = vmul.f32 0.5, %v5961_v58 }
 0x7f9   : > { %v5963_v41 = vpop.eup %5962 }
 0x7fa   : > { %v3553_v19 = vadd.f32 0.5, %v3551_v21  ;;  %v3559_v44 = vmul.f32 0.5, %v5963_v41  ;;  %v5965_v14 = vpop.eup %5964  ;;  %v12442_v21 = vld [vmem:[#allocation133_spill] sm:$0xff] }
 0x7fb   : > { %v5967_v3 = vpop.eup %5966 }
 0x7fc   : > { %v3561_v16 = vadd.f32 0.5, %v3559_v44  ;;  %v3575_v1 = vmul.f32 %v5965_v14, %v3553_v19  ;;  %v3569_v11 = vmul.f32 0.5, %v5967_v3  ;;  %v12443_v14 = vld [vmem:[#allocation135_spill] sm:$0xff] }
 0x7fe   : > { %v3573_v63 = vmul.f32 %v3561_v16, %v12438_v54  ;;  %v3571_v46 = vadd.f32 0.5, %v3569_v11  ;;  %v3543_v11 = vadd.f32 %v3542_v8, %v8510_v53 }
 0x800   : > { %v10274_v47 = vadd.f32 %v3575_v1, %v3573_v63 }
 0x802   : > { %5968 = vtanh.f32 %v10274_v47 }
 0x803   : > { %5970 = vtanh.f32 %v3556_v2 }
 0x804   : > { %5972 = vtanh.f32 %v3548_v4 }
 0x808   : > { %v3667_v39 = vpop.f32.mrf.mxu0  ;;  %v3744_v23 = vpop.f32.mrf.mxu1 }
 0x809   : > { %v3755_v15 = vadd.f32 %v3667_v39, %v12439_v48  ;;  %v3757_v36 = vadd.f32 %v3744_v23, %v12441_v28  ;;  %v12446_v39 = vld [vmem:[#allocation132_spill] sm:$0xff] }
 0x80a   : > { %v3669_v22 = vpop.f32.mrf.mxu0  ;;  %v3746_v33 = vpop.f32.mrf.mxu1 }
 0x80b   : > { %v3765_v51 = vmul.f32 0.5, %v3755_v15  ;;  %v3756_v30 = vadd.f32 %v3669_v22, %v12440_v60  ;;  %v3758_v23 = vadd.f32 %v3746_v33, %v12446_v39 }
 0x80c   : > { %v3673_v57 = vpop.f32.mrf.mxu0  ;;  %v3750_v19 = vpop.f32.mrf.mxu1 }
 0x80d   : > { %5974 = vtanh.f32 %v3765_v51  ;;  %v3773_v58 = vmul.f32 0.5, %v3756_v30  ;;  %v3759_v41 = vadd.f32 %v3673_v57, %v12442_v21  ;;  %v3761_v2 = vadd.f32 %v3750_v19, %v12445_v45  ;;  %v12447_v51 = vld [vmem:[#allocation136_spill] sm:$0xff] }
 0x80e   : > { %5976 = vtanh.f32 %v3541_v18  ;;  %v3675_v44 = vpop.f32.mrf.mxu0  ;;  %v3752_v15 = vpop.f32.mrf.mxu1  ;;  %v3783_v22 = vmul.f32 0.5, %v3758_v23  ;;  %v3566_v57 = vmul.f32 0.5, %v3543_v11 }
 0x80f   : > { %v5969_v16 = vpop.eup %5968  ;;  %5978 = vtanh.f32 %v3773_v58  ;;  %v3766_v26 = vmul.f32 0.5, %v3759_v41  ;;  %v3760_v54 = vadd.f32 %v3675_v44, %v12443_v14  ;;  %v3762_v60 = vadd.f32 %v3752_v15, %v12447_v51 }
 0x810   : > { %5980 = vtanh.f32 %v3757_v36  ;;  %v10283_v63 = vmul.f32 %v5969_v16, %v3571_v46  ;;  %v5971_v1 = vpop.eup %5970 }
 0x811   : > { %5982 = vtanh.f32 %v3766_v26  ;;  %v3774_v4 = vmul.f32 0.5, %v3760_v54  ;;  %v5973_v25 = vpop.eup %5972  ;;  %v3560_v3 = vmul.f32 0.5, %v5971_v1  ;;  %v3784_v44 = vmul.f32 0.5, %v3762_v60 }
 0x812   : > { %12444 = vst [vmem:[#allocation205_spill] sm:$0xff] %v10283_v63  ;;  %3873 = vmatprep.mubr.f32.mxu0 %v10283_v63  ;;  %3950 = vmatprep.mubr.f32.mxu1 %v10283_v63  ;;  %v3552_v48 = vmul.f32 0.5, %v5973_v25  ;;  %v10571_v63 = vld [vmem:[#allocation13 + $0x380] sm:$0xff] }
 0x813   : > { %5984 = vtanh.f32 %v3774_v4  ;;  %v3562_v18 = vadd.f32 0.5, %v3560_v3  ;;  %12531 = vst [vmem:[#allocation110_spill] sm:$0xff] %v10571_v63 }
 0x814   : > { %5986 = vtanh.f32 %v3761_v2  ;;  %v3554_v28 = vadd.f32 0.5, %v3552_v48 }
 0x815   : > { %v3574_v41 = vmul.f32 %v3562_v18, %v9872_v43  ;;  %5988 = vtanh.f32 %v3783_v22 }
 0x816   : > { %5990 = vtanh.f32 %v3566_v57 }
 0x817   : > { %5992 = vtanh.f32 %v3784_v44  ;;  %v12466_v44 = vld [vmem:[#allocation159_spill] sm:$0xff] }
 0x81a   : > { %v5975_v30 = vpop.eup %5974 }
 0x81b   : > { %v5977_v36 = vpop.eup %5976  ;;  %v3769_v58 = vmul.f32 0.5, %v5975_v30 }
 0x81c   : > { %v5979_v21 = vpop.eup %5978  ;;  %v3576_v26 = vmul.f32 %v5977_v36, %v3554_v28 }
 0x81d   : > { %v5981_v46 = vpop.eup %5980  ;;  %v3771_v19 = vadd.f32 0.5, %v3769_v58  ;;  %v3777_v33 = vmul.f32 0.5, %v5979_v21 }
 0x81e   : > { %v5983_v16 = vpop.eup %5982  ;;  %v10292_v45 = vadd.f32 %v3576_v26, %v3574_v41  ;;  %v12468_v26 = vld [vmem:[#allocation161_spill] sm:$0xff] }
 0x81f   : > { %v3779_v8 = vadd.f32 0.5, %v3777_v33  ;;  %v3793_v14 = vmul.f32 %v5981_v46, %v3771_v19  ;;  %v3770_v54 = vmul.f32 0.5, %v5983_v16  ;;  %v12464_v19 = vld [vmem:[#allocation157_spill] sm:$0xff]  ;;  %v12465_v33 = vld [vmem:[#allocation158_spill] sm:$0xff]  ;;  %v12467_v16 = vld [vmem:[#allocation160_spill] sm:$0xff] }
 0x820   : > { %v5985_v1 = vpop.eup %5984  ;;  %5994 = vtanh.f32 %v10292_v45 }
 0x821   : > { %v3791_v2 = vmul.f32 %v3779_v8, %v9875_v10  ;;  %v3772_v4 = vadd.f32 0.5, %v3770_v54  ;;  %v3778_v25 = vmul.f32 0.5, %v5985_v1  ;;  %v5987_v43 = vpop.eup %5986  ;;  %v12469_v8 = vld [vmem:[#allocation162_spill] sm:$0xff]  ;;  %v12471_v54 = vld [vmem:[#allocation164_spill] sm:$0xff]  ;;  %v12472_v1 = vld [vmem:[#allocation165_spill] sm:$0xff] }
 0x822   : > { %v5989_v11 = vpop.eup %5988 }
 0x823   : > { %v10295_v3 = vadd.f32 %v3793_v14, %v3791_v2  ;;  %v3780_v39 = vadd.f32 0.5, %v3778_v25  ;;  %v3794_v23 = vmul.f32 %v5987_v43, %v3772_v4  ;;  %v5991_v10 = vpop.eup %5990  ;;  %v3787_v18 = vmul.f32 0.5, %v5989_v11  ;;  %v12470_v14 = vld [vmem:[#allocation163_spill] sm:$0xff]  ;;  %v12473_v2 = vld [vmem:[#allocation166_spill] sm:$0xff]  ;;  %v12475_v25 = vld [vmem:[#allocation168_spill] sm:$0xff] }
 0x824   : > { %v5993_v22 = vpop.eup %5992  ;;  %v3570_v51 = vmul.f32 0.5, %v5991_v10  ;;  %v12474_v4 = vld [vmem:[#allocation167_spill] sm:$0xff]  ;;  %v12476_v43 = vld [vmem:[#allocation169_spill] sm:$0xff]  ;;  %v12481_v10 = vld [vmem:[#allocation174_spill] sm:$0xff] }
 0x825   : > { %5996 = vtanh.f32 %v10295_v3  ;;  %v3792_v48 = vmul.f32 %v3780_v39, %v9880_v55  ;;  %v3789_v30 = vadd.f32 0.5, %v3787_v18  ;;  %v3788_v28 = vmul.f32 0.5, %v5993_v22  ;;  %v12477_v39 = vld [vmem:[#allocation170_spill] sm:$0xff]  ;;  %v12480_v11 = vld [vmem:[#allocation173_spill] sm:$0xff]  ;;  %v12482_v18 = vld [vmem:[#allocation175_spill] sm:$0xff] }
 0x826   : > { %v3572_v57 = vadd.f32 0.5, %v3570_v51  ;;  %v12483_v22 = vld [vmem:[#allocation176_spill] sm:$0xff]  ;;  %v12484_v51 = vld [vmem:[#allocation177_spill] sm:$0xff] }
 0x827   : > { %v10300_v15 = vadd.f32 %v3794_v23, %v3792_v48  ;;  %v3790_v21 = vadd.f32 0.5, %v3788_v28  ;;  %v12478_v23 = vld [vmem:[#allocation171_spill] sm:$0xff]  ;;  %v12479_v48 = vld [vmem:[#allocation172_spill] sm:$0xff] }
 0x828   : > { %v12487_v28 = vld [vmem:[#allocation180_spill] sm:$0xff] }
 0x829   : > { %5998 = vtanh.f32 %v10300_v15 }
 0x82d   : > { %v5995_v60 = vpop.eup %5994 }
 0x82e   : > { %v10307_v55 = vmul.f32 %v5995_v60, %v3572_v57  ;;  %v12485_v60 = vld [vmem:[#allocation178_spill] sm:$0xff] }
 0x82f   : > { %v12489_v57 = vld [vmem:[#allocation182_spill] sm:$0xff] }
 0x830   : > { %12448 = vst [vmem:[#allocation206_spill] sm:$0xff] %v10307_v55 }
 0x832   : > { %v5997_v36 = vpop.eup %5996 }
 0x833   : > { %v10303_v58 = vmul.f32 %v5997_v36, %v3789_v30  ;;  %v12486_v30 = vld [vmem:[#allocation179_spill] sm:$0xff]  ;;  %v12488_v36 = vld [vmem:[#allocation181_spill] sm:$0xff] }
 0x835   : > { %3874 = vmatmul.mubr.f32.vlgmr.msra.gmra.mxu0 %v10303_v58  ;;  %3951 = vmatmul.mubr.f32.vlgmr.msra.gmra.mxu1 %v10303_v58 }
 0x836   : > { %v5999_v41 = vpop.eup %5998  ;;  %4020 = vmatpush1.msra.mxu0 %v9889_v35  ;;  %4097 = vmatpush1.msra.mxu1 %v9892_v50  ;;  %v12449_v35 = vld [vmem:[#allocation101_spill] sm:$0xff]  ;;  %v12450_v50 = vld [vmem:[#allocation103_spill] sm:$0xff] }
 0x837   : > { %3879 = vmatprep.mubr.f32.mxu0 %v10307_v55  ;;  %3956 = vmatprep.mubr.f32.mxu1 %v10307_v55  ;;  %v10313_v46 = vmul.f32 %v5999_v41, %v3790_v21  ;;  %v12490_v21 = vld [vmem:[#allocation183_spill] sm:$0xff]  ;;  %v12491_v41 = vld [vmem:[#allocation184_spill] sm:$0xff]  ;;  %v10568_v55 = vld [vmem:[#allocation13 + $0x398] sm:$0xff] }
 0x838   : > { %4021 = vmatprep.subr.mxu0 %v9899_v29  ;;  %4098 = vmatprep.subr.mxu1 %v9902_v42  ;;  %v12451_v29 = vld [vmem:[#allocation102_spill] sm:$0xff]  ;;  %v12452_v42 = vld [vmem:[#allocation113_spill] sm:$0xff]  ;;  %12530 = vst [vmem:[#allocation111_spill] sm:$0xff] %v10568_v55 }
 0x839   : > { %4022 = vmatpush1.msra.mxu0 %v9905_v0  ;;  %4099 = vmatpush1.msra.mxu1 %v9908_v17  ;;  %v12453_v0 = vld [vmem:[#allocation115_spill] sm:$0xff]  ;;  %v12454_v17 = vld [vmem:[#allocation114_spill] sm:$0xff] }
 0x83a   : > { %4023 = vmatprep.subr.mxu0 %v9911_v9  ;;  %4100 = vmatprep.subr.mxu1 %v9914_v31  ;;  %v12455_v9 = vld [vmem:[#allocation117_spill] sm:$0xff]  ;;  %v12456_v31 = vld [vmem:[#allocation119_spill] sm:$0xff] }
 0x83b   : > { %3880 = vmatmul.mubr.f32.gmra.mxu0 %v10313_v46  ;;  %3957 = vmatmul.mubr.f32.gmra.mxu1 %v10313_v46 }
 0x83c   : > { %4024 = vmatpush1.msra.mxu0 %v9919_v37  ;;  %4101 = vmatpush1.msra.mxu1 %v9922_v61  ;;  %v12457_v37 = vld [vmem:[#allocation118_spill] sm:$0xff]  ;;  %v12458_v61 = vld [vmem:[#allocation116_spill] sm:$0xff] }
 0x83d   : > { %4025 = vmatprep.subr.mxu0 %v9925_v7  ;;  %4102 = vmatprep.subr.mxu1 %v9928_v13  ;;  %v12459_v7 = vld [vmem:[#allocation120_spill] sm:$0xff]  ;;  %v12460_v13 = vld [vmem:[#allocation153_spill] sm:$0xff] }
 0x83e   : > { %4026 = vmatpush1.msra.mxu0 %v9931_v62  ;;  %4103 = vmatpush1.msra.mxu1 %v9934_v27  ;;  %v12461_v62 = vld [vmem:[#allocation154_spill] sm:$0xff]  ;;  %v12462_v27 = vld [vmem:[#allocation155_spill] sm:$0xff] }
 0x83f   : > { %4027 = vmatprep.subr.mxu0 %v9937_v5  ;;  %4104 = vmatprep.subr.mxu1 %v12449_v35  ;;  %v12463_v5 = vld [vmem:[#allocation156_spill] sm:$0xff]  ;;  %v12492_v35 = vld [vmem:[#allocation185_spill] sm:$0xff] }
 0x840   : > { %4028 = vmatpush1.msra.mxu0 %v12450_v50  ;;  %4105 = vmatpush1.msra.mxu1 %v12451_v29  ;;  %v12493_v50 = vld [vmem:[#allocation186_spill] sm:$0xff]  ;;  %v12496_v29 = vld [vmem:[#allocation189_spill] sm:$0xff] }
 0x841   : > { %4029 = vmatprep.subr.mxu0 %v12452_v42  ;;  %4106 = vmatprep.subr.mxu1 %v12453_v0  ;;  %v12497_v42 = vld [vmem:[#allocation190_spill] sm:$0xff]  ;;  %v12498_v0 = vld [vmem:[#allocation191_spill] sm:$0xff] }
 0x842   : > { %4030 = vmatpush1.msra.mxu0 %v12454_v17  ;;  %4107 = vmatpush1.msra.mxu1 %v12455_v9  ;;  %v12499_v17 = vld [vmem:[#allocation192_spill] sm:$0xff]  ;;  %v12501_v9 = vld [vmem:[#allocation194_spill] sm:$0xff] }
 0x843   : > { %4031 = vmatprep.subr.mxu0 %v12456_v31  ;;  %4108 = vmatprep.subr.mxu1 %v12457_v37  ;;  %v12502_v31 = vld [vmem:[#allocation195_spill] sm:$0xff]  ;;  %v12503_v37 = vld [vmem:[#allocation196_spill] sm:$0xff] }
 0x844   : > { %4032 = vmatpush1.msra.mxu0 %v12458_v61  ;;  %4109 = vmatpush1.msra.mxu1 %v12459_v7  ;;  %v12504_v61 = vld [vmem:[#allocation197_spill] sm:$0xff]  ;;  %v12505_v7 = vld [vmem:[#allocation198_spill] sm:$0xff] }
 0x845   : > { %4033 = vmatprep.subr.mxu0 %v12460_v13  ;;  %4110 = vmatprep.subr.mxu1 %v12461_v62  ;;  %v12506_v13 = vld [vmem:[#allocation199_spill] sm:$0xff]  ;;  %v12507_v62 = vld [vmem:[#allocation200_spill] sm:$0xff] }
 0x846   : > { %4034 = vmatpush1.msra.mxu0 %v12462_v27  ;;  %4111 = vmatpush1.msra.mxu1 %v12463_v5  ;;  %v12509_v27 = vld [vmem:[#allocation202_spill] sm:$0xff]  ;;  %v12510_v5 = vld [vmem:[#allocation203_spill] sm:$0xff] }
 0x847   : > { %4035 = vmatprep.subr.mxu0 %v12464_v19  ;;  %4112 = vmatprep.subr.mxu1 %v12465_v33  ;;  %v12511_v19 = vld [vmem:[#allocation204_spill] sm:$0xff] }
 0x848   : > { %4036 = vmatpush1.msra.mxu0 %v12466_v44  ;;  %4113 = vmatpush1.msra.mxu1 %v12467_v16  ;;  %v10409_v33 = vld [vmem:[#allocation13 + $0x128] sm:$0xff]  ;;  %v10412_v44 = vld [vmem:[#allocation13 + $0x138] sm:$0xff]  ;;  %v10415_v16 = vld [vmem:[#allocation13 + $0x120] sm:$0xff] }
 0x849   : > { %4037 = vmatprep.subr.mxu0 %v12468_v26  ;;  %4114 = vmatprep.subr.mxu1 %v12469_v8  ;;  %v10436_v26 = vld [vmem:[#allocation13 + $0xf8] sm:$0xff]  ;;  %v10439_v8 = vld [vmem:[#allocation13 + $0xe0] sm:$0xff] }
 0x84a   : > { %4038 = vmatpush1.msra.mxu0 %v12470_v14  ;;  %4115 = vmatpush1.msra.mxu1 %v12471_v54  ;;  %v10442_v14 = vld [vmem:[#allocation13 + $0xf0] sm:$0xff]  ;;  %v10445_v54 = vld [vmem:[#allocation13 + $0xc8] sm:$0xff] }
 0x84b   : > { %4039 = vmatprep.subr.mxu0 %v12472_v1  ;;  %4116 = vmatprep.subr.mxu1 %v12473_v2  ;;  %v10448_v1 = vld [vmem:[#allocation13 + $0xd8] sm:$0xff]  ;;  %v10451_v2 = vld [vmem:[#allocation13 + $0xc0] sm:$0xff] }
 0x84c   : > { %4040 = vmatpush1.msra.mxu0 %v12474_v4  ;;  %4117 = vmatpush1.msra.mxu1 %v12475_v25  ;;  %v10454_v4 = vld [vmem:[#allocation13 + $0xd0] sm:$0xff]  ;;  %v10457_v25 = vld [vmem:[#allocation13 + $0xa8] sm:$0xff] }
 0x84d   : > { %4041 = vmatprep.subr.mxu0 %v12476_v43  ;;  %4118 = vmatprep.subr.mxu1 %v12477_v39  ;;  %v10460_v43 = vld [vmem:[#allocation13 + $0xb8] sm:$0xff]  ;;  %v10463_v39 = vld [vmem:[#allocation13 + $0xa0] sm:$0xff] }
 0x84e   : > { %4042 = vmatpush1.msra.mxu0 %v12478_v23  ;;  %4119 = vmatpush1.msra.mxu1 %v12479_v48  ;;  %v10466_v23 = vld [vmem:[#allocation13 + $0xb0] sm:$0xff]  ;;  %v10469_v48 = vld [vmem:[#allocation13 + $0x88] sm:$0xff] }
 0x84f   : > { %4043 = vmatprep.subr.mxu0 %v12480_v11  ;;  %4120 = vmatprep.subr.mxu1 %v12481_v10  ;;  %v10472_v11 = vld [vmem:[#allocation13 + $0x98] sm:$0xff]  ;;  %v10475_v10 = vld [vmem:[#allocation13 + $0x80] sm:$0xff] }
 0x850   : > { %4044 = vmatpush1.msra.mxu0 %v12482_v18  ;;  %4121 = vmatpush1.msra.mxu1 %v12483_v22  ;;  %v10478_v18 = vld [vmem:[#allocation13 + $0x90] sm:$0xff]  ;;  %v10481_v22 = vld [vmem:[#allocation13 + $0x68] sm:$0xff] }
 0x851   : > { %4045 = vmatprep.subr.mxu0 %v12484_v51  ;;  %4122 = vmatprep.subr.mxu1 %v12485_v60  ;;  %v10484_v51 = vld [vmem:[#allocation13 + $0x78] sm:$0xff]  ;;  %v10487_v60 = vld [vmem:[#allocation13 + $0x60] sm:$0xff] }
 0x852   : > { %4046 = vmatpush1.msra.mxu0 %v12486_v30  ;;  %4123 = vmatpush1.msra.mxu1 %v12487_v28  ;;  %v10490_v30 = vld [vmem:[#allocation13 + $0x70] sm:$0xff]  ;;  %v10493_v28 = vld [vmem:[#allocation13 + $0x48] sm:$0xff] }
 0x853   : > { %4047 = vmatprep.subr.mxu0 %v12488_v36  ;;  %4124 = vmatprep.subr.mxu1 %v12489_v57  ;;  %v10496_v36 = vld [vmem:[#allocation13 + $0x58] sm:$0xff]  ;;  %v10499_v57 = vld [vmem:[#allocation13 + $0x40] sm:$0xff] }
 0x854   : > { %4048 = vmatpush1.msra.mxu0 %v10063_v20  ;;  %4125 = vmatpush1.msra.mxu1 %v10066_v24  ;;  %v12494_v20 = vld [vmem:[#allocation187_spill] sm:$0xff]  ;;  %v12495_v24 = vld [vmem:[#allocation188_spill] sm:$0xff] }
 0x855   : > { %4049 = vmatprep.subr.mxu0 %v12490_v21  ;;  %4126 = vmatprep.subr.mxu1 %v12491_v41  ;;  %v10502_v21 = vld [vmem:[#allocation13 + $0x50] sm:$0xff]  ;;  %v10505_v41 = vld [vmem:[#allocation13 + $0x28] sm:$0xff] }
 0x856   : > { %4050 = vmatpush1.msra.mxu0 %v12492_v35  ;;  %4083 = vmatprep.mubr.f32.mxu0 %v11717_v32  ;;  %v10508_v35 = vld [vmem:[#allocation13 + $0x38] sm:$0xff] }
 0x857   : > { %4127 = vmatpush1.msra.mxu1 %v12493_v50  ;;  %4160 = vmatprep.mubr.f32.mxu1 %v11717_v32  ;;  %v10511_v50 = vld [vmem:[#allocation13 + $0x20] sm:$0xff] }
 0x858   : > { %4084 = vmatmul.mubr.f32.vlgmr.msra.gmra.mxu0 %v10303_v58  ;;  %4161 = vmatmul.mubr.f32.vlgmr.msra.gmra.mxu1 %v10303_v58  ;;  %v12500_v58 = vld [vmem:[#allocation193_spill] sm:$0xff] }
 0x859   : > { %4089 = vmatprep.mubr.f32.mxu0 %v11717_v32  ;;  %4166 = vmatprep.mubr.f32.mxu1 %v11717_v32 }
 0x85a   : > { %4227 = vmatprep.subr.mxu0 %v12494_v20  ;;  %4304 = vmatprep.subr.mxu1 %v12495_v24  ;;  %v10514_v20 = vld [vmem:[#allocation13 + $0x30] sm:$0xff]  ;;  %v10517_v24 = vld [vmem:[#allocation13 + $0x8] sm:$0xff] }
 0x85b   : > { %4228 = vmatpush1.msra.mxu0 %v12496_v29  ;;  %4305 = vmatpush1.msra.mxu1 %v12497_v42  ;;  %12512 = vst [vmem:[#allocation207_spill] sm:$0xff] %v10514_v20  ;;  %12513 = vst [vmem:[#allocation208_spill] sm:$0xff] %v10517_v24  ;;  %v10520_v29 = vld [vmem:[#allocation13 + $0x18] sm:$0xff]  ;;  %v10523_v42 = vld [vmem:[#allocation13] sm:$0xff] }
 0x85c   : > { %4090 = vmatmul.mubr.f32.gmra.mxu0 %v10313_v46  ;;  %4167 = vmatmul.mubr.f32.gmra.mxu1 %v10313_v46  ;;  %v12508_v46 = vld [vmem:[#allocation201_spill] sm:$0xff]  ;;  %12514 = vst [vmem:[#allocation209_spill] sm:$0xff] %v10520_v29  ;;  %12515 = vst [vmem:[#allocation210_spill] sm:$0xff] %v10523_v42 }
 0x85d   : > { %4229 = vmatprep.subr.mxu0 %v12498_v0  ;;  %4306 = vmatprep.subr.mxu1 %v12499_v17  ;;  %v10526_v0 = vld [vmem:[#allocation13 + $0x10] sm:$0xff]  ;;  %v10529_v17 = vld [vmem:[#allocation13 + $0x3e8] sm:$0xff] }
 0x85e   : > { %4230 = vmatpush1.msra.mxu0 %v12500_v58  ;;  %4307 = vmatpush1.msra.mxu1 %v12501_v9  ;;  %12516 = vst [vmem:[#allocation211_spill] sm:$0xff] %v10526_v0  ;;  %12517 = vst [vmem:[#allocation212_spill] sm:$0xff] %v10529_v17  ;;  %v10532_v58 = vld [vmem:[#allocation13 + $0x3f8] sm:$0xff]  ;;  %v10535_v9 = vld [vmem:[#allocation13 + $0x3e0] sm:$0xff] }
 0x85f   : > { %4231 = vmatprep.subr.mxu0 %v12502_v31  ;;  %4308 = vmatprep.subr.mxu1 %v12503_v37  ;;  %12518 = vst [vmem:[#allocation213_spill] sm:$0xff] %v10532_v58  ;;  %12519 = vst [vmem:[#allocation214_spill] sm:$0xff] %v10535_v9  ;;  %v10538_v31 = vld [vmem:[#allocation13 + $0x3f0] sm:$0xff]  ;;  %v10541_v37 = vld [vmem:[#allocation13 + $0x3c8] sm:$0xff] }
 0x860   : > { %4232 = vmatpush1.msra.mxu0 %v12504_v61  ;;  %4309 = vmatpush1.msra.mxu1 %v12505_v7  ;;  %12520 = vst [vmem:[#allocation105_spill] sm:$0xff] %v10538_v31  ;;  %12521 = vst [vmem:[#allocation121_spill] sm:$0xff] %v10541_v37  ;;  %v10544_v61 = vld [vmem:[#allocation13 + $0x3d8] sm:$0xff]  ;;  %v10547_v7 = vld [vmem:[#allocation13 + $0x3c0] sm:$0xff] }
 0x861   : > { %4233 = vmatprep.subr.mxu0 %v12506_v13  ;;  %4310 = vmatprep.subr.mxu1 %v12507_v62  ;;  %12522 = vst [vmem:[#allocation123_spill] sm:$0xff] %v10544_v61  ;;  %12523 = vst [vmem:[#allocation122_spill] sm:$0xff] %v10547_v7  ;;  %v10550_v13 = vld [vmem:[#allocation13 + $0x3d0] sm:$0xff]  ;;  %v10553_v62 = vld [vmem:[#allocation13 + $0x3a8] sm:$0xff] }
 0x862   : > { %4234 = vmatpush1.msra.mxu0 %v12508_v46  ;;  %4311 = vmatpush1.msra.mxu1 %v12509_v27  ;;  %12524 = vst [vmem:[#allocation125_spill] sm:$0xff] %v10550_v13  ;;  %12525 = vst [vmem:[#allocation127_spill] sm:$0xff] %v10553_v62  ;;  %v10556_v46 = vld [vmem:[#allocation13 + $0x3b8] sm:$0xff]  ;;  %v10559_v27 = vld [vmem:[#allocation13 + $0x3a0] sm:$0xff] }
 0x863   : > { %4235 = vmatprep.subr.mxu0 %v12510_v5  ;;  %4312 = vmatprep.subr.mxu1 %v12511_v19  ;;  %12526 = vst [vmem:[#allocation126_spill] sm:$0xff] %v10556_v46  ;;  %12527 = vst [vmem:[#allocation124_spill] sm:$0xff] %v10559_v27  ;;  %v10562_v5 = vld [vmem:[#allocation13 + $0x3b0] sm:$0xff]  ;;  %v10565_v19 = vld [vmem:[#allocation13 + $0x388] sm:$0xff] }
 0x864   : > { %4236 = vmatpush1.msra.mxu0 %v10143_v40  ;;  %4313 = vmatpush1.msra.mxu1 %v10146_v59  ;;  %v10418_v59 = vld [vmem:[#allocation13 + $0x130] sm:$0xff]  ;;  %v10421_v40 = vld [vmem:[#allocation13 + $0x108] sm:$0xff]  ;;  %12528 = vst [vmem:[#allocation128_spill] sm:$0xff] %v10562_v5  ;;  %12529 = vst [vmem:[#allocation109_spill] sm:$0xff] %v10565_v19 }
 0x865   : > { %4237 = vmatprep.subr.mxu0 %v10149_v56  ;;  %4314 = vmatprep.subr.mxu1 %v10152_v38  ;;  %v10427_v56 = vld [vmem:[#allocation13 + $0x100] sm:$0xff]  ;;  %v10433_v38 = vld [vmem:[#allocation13 + $0xe8] sm:$0xff] }
 0x866   : > { %4238 = vmatpush1.msra.mxu0 %v10155_v34  ;;  %4315 = vmatpush1.msra.mxu1 %v10158_v12  ;;  %v10424_v12 = vld [vmem:[#allocation13 + $0x118] sm:$0xff]  ;;  %v10430_v34 = vld [vmem:[#allocation13 + $0x110] sm:$0xff] }
 0x867   : > { %4239 = vmatprep.subr.mxu0 %v10409_v33  ;;  %4316 = vmatprep.subr.mxu1 %v10412_v44 }
 0x868   : > { %4240 = vmatpush1.msra.mxu0 %v10415_v16  ;;  %4317 = vmatpush1.msra.mxu1 %v10418_v59 }
 0x869   : > { %4241 = vmatprep.subr.mxu0 %v10421_v40  ;;  %4318 = vmatprep.subr.mxu1 %v10424_v12 }
 0x86a   : > { %4242 = vmatpush1.msra.mxu0 %v10427_v56  ;;  %4319 = vmatpush1.msra.mxu1 %v10430_v34 }
 0x86b   : > { %4243 = vmatprep.subr.mxu0 %v10433_v38  ;;  %4320 = vmatprep.subr.mxu1 %v10436_v26 }
 0x86c   : > { %4244 = vmatpush1.msra.mxu0 %v10439_v8  ;;  %4321 = vmatpush1.msra.mxu1 %v10442_v14 }
 0x86d   : > { %4245 = vmatprep.subr.mxu0 %v10445_v54  ;;  %4322 = vmatprep.subr.mxu1 %v10448_v1 }
 0x86e   : > { %4246 = vmatpush1.msra.mxu0 %v10451_v2  ;;  %4323 = vmatpush1.msra.mxu1 %v10454_v4 }
 0x86f   : > { %4247 = vmatprep.subr.mxu0 %v10457_v25  ;;  %4324 = vmatprep.subr.mxu1 %v10460_v43 }
 0x870   : > { %4248 = vmatpush1.msra.mxu0 %v10463_v39  ;;  %4325 = vmatpush1.msra.mxu1 %v10466_v23 }
 0x871   : > { %4249 = vmatprep.subr.mxu0 %v10469_v48  ;;  %4326 = vmatprep.subr.mxu1 %v10472_v11 }
 0x872   : > { %4250 = vmatpush1.msra.mxu0 %v10475_v10  ;;  %4327 = vmatpush1.msra.mxu1 %v10478_v18 }
 0x873   : > { %4251 = vmatprep.subr.mxu0 %v10481_v22  ;;  %4328 = vmatprep.subr.mxu1 %v10484_v51 }
 0x874   : > { %4252 = vmatpush1.msra.mxu0 %v10487_v60  ;;  %4329 = vmatpush1.msra.mxu1 %v10490_v30 }
 0x875   : > { %4253 = vmatprep.subr.mxu0 %v10493_v28  ;;  %4330 = vmatprep.subr.mxu1 %v10496_v36 }
 0x876   : > { %4254 = vmatpush1.msra.mxu0 %v10499_v57  ;;  %4331 = vmatpush1.msra.mxu1 %v10502_v21 }
 0x877   : > { %4255 = vmatprep.subr.mxu0 %v10505_v41  ;;  %4332 = vmatprep.subr.mxu1 %v10508_v35 }
 0x878   : > { %4256 = vmatpush1.msra.mxu0 %v10511_v50  ;;  %4333 = vmatpush1.msra.mxu1 %v10514_v20 }
 0x879   : > { %4257 = vmatprep.subr.mxu0 %v10517_v24  ;;  %4334 = vmatprep.subr.mxu1 %v10520_v29 }
 0x87a   : > { %4258 = vmatpush1.msra.mxu0 %v10523_v42  ;;  %4335 = vmatpush1.msra.mxu1 %v10526_v0 }
 0x87b   : > { %4259 = vmatprep.subr.mxu0 %v10529_v17  ;;  %4336 = vmatprep.subr.mxu1 %v10532_v58 }
 0x87c   : > { %4260 = vmatpush2.msra.mxu0 %v10535_v9  ;;  %4337 = vmatpush2.msra.mxu1 %v10538_v31 }
 0x87d   : > { %4261 = vmatprep.subr.mxu0 %v10541_v37  ;;  %4338 = vmatprep.subr.mxu1 %v10544_v61 }
 0x87e   : > { %4262 = vmatpush2.msra.mxu0 %v10547_v7  ;;  %4339 = vmatpush2.msra.mxu1 %v10550_v13 }
 0x87f   : > { %4263 = vmatprep.subr.mxu0 %v10553_v62  ;;  %4340 = vmatprep.subr.mxu1 %v10556_v46  ;;  %v10574_v46 = vld [vmem:[#allocation13 + $0x390] sm:$0xff]  ;;  %v6677_v62 = vld [vmem:[#allocation12 + $0x1f8] sm:$0xff] }
 0x880   : > { %4264 = vmatpush2.msra.mxu0 %v10559_v27  ;;  %4341 = vmatpush2.msra.mxu1 %v10562_v5  ;;  %12532 = vst [vmem:[#allocation108_spill] sm:$0xff] %v10574_v46  ;;  %v10577_v27 = vld [vmem:[#allocation13 + $0x368] sm:$0xff]  ;;  %v10580_v5 = vld [vmem:[#allocation13 + $0x378] sm:$0xff] }
 0x881   : > { %4265 = vmatprep.subr.mxu0 %v10565_v19  ;;  %4342 = vmatprep.subr.mxu1 %v10568_v55  ;;  %12533 = vst [vmem:[#allocation112_spill] sm:$0xff] %v10577_v27  ;;  %12534 = vst [vmem:[#allocation31_spill] sm:$0xff] %v10580_v5  ;;  %v10583_v19 = vld [vmem:[#allocation13 + $0x360] sm:$0xff]  ;;  %v10586_v55 = vld [vmem:[#allocation13 + $0x370] sm:$0xff] }
 0x882   : > { %4266 = vmatpush2.msra.mxu0 %v10571_v63  ;;  %4343 = vmatpush2.msra.mxu1 %v10574_v46  ;;  %12535 = vst [vmem:[#allocation32_spill] sm:$0xff] %v10583_v19  ;;  %12536 = vst [vmem:[#allocation33_spill] sm:$0xff] %v10586_v55  ;;  %v10589_v63 = vld [vmem:[#allocation13 + $0x348] sm:$0xff]  ;;  %v10592_v46 = vld [vmem:[#allocation13 + $0x358] sm:$0xff] }
 0x883   : > { %4267 = vmatprep.subr.mxu0 %v10577_v27  ;;  %4344 = vmatprep.subr.mxu1 %v10580_v5  ;;  %12537 = vst [vmem:[#allocation34_spill] sm:$0xff] %v10589_v63  ;;  %12538 = vst [vmem:[#allocation35_spill] sm:$0xff] %v10592_v46  ;;  %v10595_v27 = vld [vmem:[#allocation13 + $0x340] sm:$0xff]  ;;  %v10598_v5 = vld [vmem:[#allocation13 + $0x350] sm:$0xff] }
 0x884   : > { %4268 = vmatpush2.msra.mxu0 %v10583_v19  ;;  %4345 = vmatpush2.msra.mxu1 %v10586_v55  ;;  %12539 = vst [vmem:[#allocation36_spill] sm:$0xff] %v10595_v27  ;;  %12540 = vst [vmem:[#allocation37_spill] sm:$0xff] %v10598_v5  ;;  %v10601_v19 = vld [vmem:[#allocation13 + $0x328] sm:$0xff]  ;;  %v10604_v55 = vld [vmem:[#allocation13 + $0x338] sm:$0xff] }
 0x885   : > { %4269 = vmatprep.subr.mxu0 %v10589_v63  ;;  %4346 = vmatprep.subr.mxu1 %v10592_v46  ;;  %12541 = vst [vmem:[#allocation38_spill] sm:$0xff] %v10601_v19  ;;  %12542 = vst [vmem:[#allocation39_spill] sm:$0xff] %v10604_v55  ;;  %v10607_v63 = vld [vmem:[#allocation13 + $0x320] sm:$0xff]  ;;  %v10610_v46 = vld [vmem:[#allocation13 + $0x330] sm:$0xff] }
 0x886   : > { %4270 = vmatpush2.msra.mxu0 %v10595_v27  ;;  %4347 = vmatpush2.msra.mxu1 %v10598_v5  ;;  %12543 = vst [vmem:[#allocation40_spill] sm:$0xff] %v10607_v63  ;;  %12544 = vst [vmem:[#allocation41_spill] sm:$0xff] %v10610_v46  ;;  %v10613_v27 = vld [vmem:[#allocation13 + $0x308] sm:$0xff]  ;;  %v10616_v5 = vld [vmem:[#allocation13 + $0x318] sm:$0xff] }
 0x887   : > { %4271 = vmatprep.subr.mxu0 %v10601_v19  ;;  %4348 = vmatprep.subr.mxu1 %v10604_v55  ;;  %12545 = vst [vmem:[#allocation42_spill] sm:$0xff] %v10613_v27  ;;  %12546 = vst [vmem:[#allocation43_spill] sm:$0xff] %v10616_v5  ;;  %v10619_v19 = vld [vmem:[#allocation13 + $0x300] sm:$0xff]  ;;  %v10622_v55 = vld [vmem:[#allocation13 + $0x310] sm:$0xff] }
 0x888   : > { %4272 = vmatpush2.msra.mxu0 %v10607_v63  ;;  %4349 = vmatpush2.msra.mxu1 %v10610_v46  ;;  %12547 = vst [vmem:[#allocation44_spill] sm:$0xff] %v10619_v19  ;;  %12548 = vst [vmem:[#allocation45_spill] sm:$0xff] %v10622_v55  ;;  %v10625_v63 = vld [vmem:[#allocation13 + $0x2e8] sm:$0xff]  ;;  %v10628_v46 = vld [vmem:[#allocation13 + $0x2f8] sm:$0xff] }
 0x889   : > { %4273 = vmatprep.subr.mxu0 %v10613_v27  ;;  %4350 = vmatprep.subr.mxu1 %v10616_v5  ;;  %12549 = vst [vmem:[#allocation46_spill] sm:$0xff] %v10625_v63  ;;  %12550 = vst [vmem:[#allocation47_spill] sm:$0xff] %v10628_v46  ;;  %v10631_v27 = vld [vmem:[#allocation13 + $0x2e0] sm:$0xff]  ;;  %v10634_v5 = vld [vmem:[#allocation13 + $0x2f0] sm:$0xff] }
 0x88a   : > { %4274 = vmatpush2.msra.mxu0 %v10619_v19  ;;  %4351 = vmatpush2.msra.mxu1 %v10622_v55  ;;  %12551 = vst [vmem:[#allocation48_spill] sm:$0xff] %v10631_v27  ;;  %12552 = vst [vmem:[#allocation49_spill] sm:$0xff] %v10634_v5  ;;  %v10637_v19 = vld [vmem:[#allocation13 + $0x2c8] sm:$0xff]  ;;  %v10640_v55 = vld [vmem:[#allocation13 + $0x2d8] sm:$0xff] }
 0x88b   : > { %4275 = vmatprep.subr.mxu0 %v10625_v63  ;;  %4352 = vmatprep.subr.mxu1 %v10628_v46  ;;  %12553 = vst [vmem:[#allocation50_spill] sm:$0xff] %v10637_v19  ;;  %12554 = vst [vmem:[#allocation51_spill] sm:$0xff] %v10640_v55  ;;  %v10643_v63 = vld [vmem:[#allocation13 + $0x2c0] sm:$0xff]  ;;  %v10646_v46 = vld [vmem:[#allocation13 + $0x2d0] sm:$0xff] }
 0x88c   : > { %4276 = vmatpush2.msra.mxu0 %v10631_v27  ;;  %4353 = vmatpush2.msra.mxu1 %v10634_v5  ;;  %12555 = vst [vmem:[#allocation52_spill] sm:$0xff] %v10643_v63  ;;  %12556 = vst [vmem:[#allocation53_spill] sm:$0xff] %v10646_v46  ;;  %v10649_v27 = vld [vmem:[#allocation13 + $0x2a8] sm:$0xff]  ;;  %v10652_v5 = vld [vmem:[#allocation13 + $0x2b8] sm:$0xff] }
 0x88d   : > { %4277 = vmatprep.subr.mxu0 %v10637_v19  ;;  %4354 = vmatprep.subr.mxu1 %v10640_v55  ;;  %12557 = vst [vmem:[#allocation54_spill] sm:$0xff] %v10649_v27  ;;  %12558 = vst [vmem:[#allocation55_spill] sm:$0xff] %v10652_v5  ;;  %v10655_v19 = vld [vmem:[#allocation13 + $0x2a0] sm:$0xff]  ;;  %v10658_v55 = vld [vmem:[#allocation13 + $0x2b0] sm:$0xff] }
 0x88e   : > { %4278 = vmatpush2.msra.mxu0 %v10643_v63  ;;  %4355 = vmatpush2.msra.mxu1 %v10646_v46  ;;  %12559 = vst [vmem:[#allocation56_spill] sm:$0xff] %v10655_v19  ;;  %12560 = vst [vmem:[#allocation57_spill] sm:$0xff] %v10658_v55  ;;  %v10661_v63 = vld [vmem:[#allocation13 + $0x288] sm:$0xff]  ;;  %v10664_v46 = vld [vmem:[#allocation13 + $0x298] sm:$0xff] }
 0x88f   : > { %4279 = vmatprep.subr.mxu0 %v10649_v27  ;;  %4356 = vmatprep.subr.mxu1 %v10652_v5  ;;  %12561 = vst [vmem:[#allocation58_spill] sm:$0xff] %v10661_v63  ;;  %12562 = vst [vmem:[#allocation59_spill] sm:$0xff] %v10664_v46  ;;  %v10667_v27 = vld [vmem:[#allocation13 + $0x280] sm:$0xff]  ;;  %v10670_v5 = vld [vmem:[#allocation13 + $0x290] sm:$0xff] }
 0x890   : > { %4280 = vmatpush2.msra.mxu0 %v10655_v19  ;;  %4357 = vmatpush2.msra.mxu1 %v10658_v55  ;;  %12563 = vst [vmem:[#allocation60_spill] sm:$0xff] %v10667_v27  ;;  %12564 = vst [vmem:[#allocation61_spill] sm:$0xff] %v10670_v5  ;;  %v10673_v19 = vld [vmem:[#allocation13 + $0x268] sm:$0xff]  ;;  %v10676_v55 = vld [vmem:[#allocation13 + $0x278] sm:$0xff] }
 0x891   : > { %4281 = vmatprep.subr.mxu0 %v10661_v63  ;;  %4358 = vmatprep.subr.mxu1 %v10664_v46  ;;  %12565 = vst [vmem:[#allocation62_spill] sm:$0xff] %v10673_v19  ;;  %12566 = vst [vmem:[#allocation63_spill] sm:$0xff] %v10676_v55  ;;  %v10679_v63 = vld [vmem:[#allocation13 + $0x260] sm:$0xff]  ;;  %v10682_v46 = vld [vmem:[#allocation13 + $0x270] sm:$0xff] }
 0x892   : > { %4282 = vmatpush2.msra.mxu0 %v10667_v27  ;;  %4359 = vmatpush2.msra.mxu1 %v10670_v5  ;;  %12567 = vst [vmem:[#allocation64_spill] sm:$0xff] %v10679_v63  ;;  %12568 = vst [vmem:[#allocation65_spill] sm:$0xff] %v10682_v46  ;;  %v10685_v27 = vld [vmem:[#allocation13 + $0x248] sm:$0xff]  ;;  %v10688_v5 = vld [vmem:[#allocation13 + $0x258] sm:$0xff] }
 0x893   : > { %4283 = vmatprep.subr.mxu0 %v10673_v19  ;;  %4360 = vmatprep.subr.mxu1 %v10676_v55  ;;  %12569 = vst [vmem:[#allocation66_spill] sm:$0xff] %v10685_v27  ;;  %12570 = vst [vmem:[#allocation67_spill] sm:$0xff] %v10688_v5  ;;  %v10691_v19 = vld [vmem:[#allocation13 + $0x240] sm:$0xff]  ;;  %v10694_v55 = vld [vmem:[#allocation13 + $0x250] sm:$0xff] }
 0x894   : > { %4284 = vmatpush2.msra.mxu0 %v10679_v63  ;;  %4361 = vmatpush2.msra.mxu1 %v10682_v46  ;;  %12571 = vst [vmem:[#allocation68_spill] sm:$0xff] %v10691_v19  ;;  %12572 = vst [vmem:[#allocation69_spill] sm:$0xff] %v10694_v55  ;;  %v10697_v63 = vld [vmem:[#allocation13 + $0x228] sm:$0xff]  ;;  %v10700_v46 = vld [vmem:[#allocation13 + $0x238] sm:$0xff] }
 0x895   : > { %4285 = vmatprep.subr.mxu0 %v10685_v27  ;;  %4362 = vmatprep.subr.mxu1 %v10688_v5  ;;  %12573 = vst [vmem:[#allocation70_spill] sm:$0xff] %v10697_v63  ;;  %12574 = vst [vmem:[#allocation71_spill] sm:$0xff] %v10700_v46  ;;  %v10703_v27 = vld [vmem:[#allocation13 + $0x220] sm:$0xff]  ;;  %v10706_v5 = vld [vmem:[#allocation13 + $0x230] sm:$0xff] }
 0x896   : > { %4286 = vmatpush2.msra.mxu0 %v10691_v19  ;;  %4363 = vmatpush2.msra.mxu1 %v10694_v55  ;;  %12575 = vst [vmem:[#allocation72_spill] sm:$0xff] %v10703_v27  ;;  %12576 = vst [vmem:[#allocation73_spill] sm:$0xff] %v10706_v5  ;;  %v10709_v19 = vld [vmem:[#allocation13 + $0x208] sm:$0xff]  ;;  %v10712_v55 = vld [vmem:[#allocation13 + $0x218] sm:$0xff] }
 0x897   : > { %4287 = vmatprep.subr.mxu0 %v10697_v63  ;;  %4364 = vmatprep.subr.mxu1 %v10700_v46  ;;  %12577 = vst [vmem:[#allocation74_spill] sm:$0xff] %v10709_v19  ;;  %12578 = vst [vmem:[#allocation75_spill] sm:$0xff] %v10712_v55  ;;  %v10715_v63 = vld [vmem:[#allocation13 + $0x200] sm:$0xff]  ;;  %v10718_v46 = vld [vmem:[#allocation13 + $0x210] sm:$0xff] }
 0x898   : > { %4288 = vmatpush2.msra.mxu0 %v10703_v27  ;;  %4365 = vmatpush2.msra.mxu1 %v10706_v5  ;;  %12579 = vst [vmem:[#allocation76_spill] sm:$0xff] %v10715_v63  ;;  %12580 = vst [vmem:[#allocation77_spill] sm:$0xff] %v10718_v46  ;;  %v6676_v27 = vld [vmem:[#allocation12 + $0x1e8] sm:$0xff] }
 0x899   : > { %4289 = vmatprep.subr.mxu0 %v10709_v19  ;;  %4366 = vmatprep.subr.mxu1 %v10712_v55 }
 0x89a   : > { %4290 = vmatpush2.msra.mxu0 %v10715_v63  ;;  %4367 = vmatpush2.msra.mxu1 %v10718_v46 }
 0x89b   : > { %4437 = vmatprep.subr.mxu0 %v6676_v27  ;;  %4514 = vmatprep.subr.mxu1 %v6677_v62 }
 0x8f5   : > { %v3875_v5 = vpop.f32.mrf.mxu0  ;;  %v3952_v55 = vpop.f32.mrf.mxu1 }
 0x8f6   : > { %v3876_v13 = vadd.f32 %v3875_v5, %v12436_v49  ;;  %v3953_v63 = vadd.f32 %v3952_v55, %v8504_v52 }
 0x8f7   : > { %v3877_v19 = vpop.f32.mrf.mxu0  ;;  %v3954_v31 = vpop.f32.mrf.mxu1 }
 0x8f8   : > { %v3965_v7 = vmul.f32 0.5, %v3876_v13  ;;  %v3878_v61 = vadd.f32 %v3877_v19, %v12437_v6  ;;  %v3955_v46 = vadd.f32 %v3954_v31, %v8510_v53 }
 0x8fa   : > { %6000 = vtanh.f32 %v3965_v7  ;;  %v3973_v37 = vmul.f32 0.5, %v3878_v61  ;;  %v3983_v9 = vmul.f32 0.5, %v3955_v46 }
 0x8fb   : > { %v3881_v27 = vpop.f32.mrf.mxu0 }
 0x8fc   : > { %6002 = vtanh.f32 %v3973_v37 }
 0x8fd   : > { %6004 = vtanh.f32 %v3953_v63  ;;  %v3883_v5 = vpop.f32.mrf.mxu0  ;;  %v3882_v63 = vadd.f32 %v3881_v27, %v12436_v49 }
 0x8fe   : > { %6006 = vtanh.f32 %v3983_v9  ;;  %v3884_v7 = vadd.f32 %v3883_v5, %v12437_v6  ;;  %v12582_v5 = vld [vmem:[#allocation137_spill] sm:$0xff] }
 0x8ff   : > { %v3966_v46 = vmul.f32 0.5, %v3882_v63 }
 0x900   : > { %v3974_v31 = vmul.f32 0.5, %v3884_v7 }
 0x907   : > { %v6001_v62 = vpop.eup %6000 }
 0x908   : > { %v3969_v58 = vmul.f32 0.5, %v6001_v62  ;;  %v3958_v62 = vpop.f32.mrf.mxu1 }
 0x909   : > { %v6003_v17 = vpop.eup %6002 }
 0x90a   : > { %v3971_v0 = vadd.f32 0.5, %v3969_v58  ;;  %v3977_v13 = vmul.f32 0.5, %v6003_v17  ;;  %v6005_v61 = vpop.eup %6004  ;;  %v3960_v17 = vpop.f32.mrf.mxu1 }
 0x90b   : > { %v6007_v58 = vpop.eup %6006 }
 0x90c   : > { %v3979_v19 = vadd.f32 0.5, %v3977_v13  ;;  %v3993_v37 = vmul.f32 %v6005_v61, %v3971_v0  ;;  %v3987_v29 = vmul.f32 0.5, %v6007_v58  ;;  %v12583_v61 = vld [vmem:[#allocation139_spill] sm:$0xff] }
 0x90e   : > { %v3991_v55 = vmul.f32 %v3979_v19, %v10274_v47  ;;  %v3959_v47 = vadd.f32 %v3958_v62, %v8504_v52  ;;  %v3989_v49 = vadd.f32 0.5, %v3987_v29  ;;  %v12586_v62 = vld [vmem:[#allocation143_spill] sm:$0xff] }
 0x910   : > { %v10728_v42 = vadd.f32 %v3993_v37, %v3991_v55  ;;  %v12584_v55 = vld [vmem:[#allocation138_spill] sm:$0xff] }
 0x912   : > { %12581 = vst [vmem:[#allocation78_spill] sm:$0xff] %v10728_v42  ;;  %6008 = vtanh.f32 %v10728_v42 }
 0x913   : > { %6010 = vtanh.f32 %v3974_v31 }
 0x914   : > { %6012 = vtanh.f32 %v3966_v46  ;;  %v12585_v46 = vld [vmem:[#allocation141_spill] sm:$0xff] }
 0x918   : > { %v4085_v9 = vpop.f32.mrf.mxu0  ;;  %v4162_v13 = vpop.f32.mrf.mxu1 }
 0x919   : > { %v4173_v6 = vadd.f32 %v4085_v9, %v12582_v5  ;;  %v4175_v37 = vadd.f32 %v4162_v13, %v12584_v55  ;;  %v12588_v13 = vld [vmem:[#allocation142_spill] sm:$0xff] }
 0x91a   : > { %v4087_v0 = vpop.f32.mrf.mxu0  ;;  %v4164_v27 = vpop.f32.mrf.mxu1 }
 0x91b   : > { %v4183_v19 = vmul.f32 0.5, %v4173_v6  ;;  %v4174_v7 = vadd.f32 %v4087_v0, %v12583_v61 }
 0x91c   : > { %v4091_v63 = vpop.f32.mrf.mxu0  ;;  %v4168_v24 = vpop.f32.mrf.mxu1 }
 0x91d   : > { %6014 = vtanh.f32 %v4183_v19  ;;  %v4191_v31 = vmul.f32 0.5, %v4174_v7  ;;  %v4177_v42 = vadd.f32 %v4091_v63, %v12585_v46  ;;  %v4179_v61 = vadd.f32 %v4168_v24, %v12588_v13  ;;  %v12589_v7 = vld [vmem:[#allocation140_spill] sm:$0xff] }
 0x91e   : > { %6016 = vtanh.f32 %v3959_v47  ;;  %v4093_v20 = vpop.f32.mrf.mxu0  ;;  %v4176_v55 = vadd.f32 %v4164_v27, %v12589_v7 }
 0x91f   : > { %v6009_v9 = vpop.eup %6008  ;;  %6018 = vtanh.f32 %v4191_v31  ;;  %v4184_v58 = vmul.f32 0.5, %v4177_v42  ;;  %v4178_v5 = vadd.f32 %v4093_v20, %v12586_v62  ;;  %v4170_v20 = vpop.f32.mrf.mxu1  ;;  %v12590_v31 = vld [vmem:[#allocation144_spill] sm:$0xff] }
 0x920   : > { %6020 = vtanh.f32 %v4175_v37  ;;  %v10737_v6 = vmul.f32 %v6009_v9, %v3989_v49  ;;  %v6011_v0 = vpop.eup %6010  ;;  %v3961_v49 = vadd.f32 %v3960_v17, %v8510_v53  ;;  %v4201_v63 = vmul.f32 0.5, %v4176_v55 }
 0x921   : > { %6022 = vtanh.f32 %v4184_v58  ;;  %v4192_v19 = vmul.f32 0.5, %v4178_v5  ;;  %v6013_v29 = vpop.eup %6012  ;;  %v3978_v47 = vmul.f32 0.5, %v6011_v0  ;;  %v4180_v46 = vadd.f32 %v4170_v20, %v12590_v31 }
 0x922   : > { %12587 = vst [vmem:[#allocation79_spill] sm:$0xff] %v10737_v6  ;;  %4291 = vmatprep.mubr.f32.mxu0 %v10737_v6  ;;  %4368 = vmatprep.mubr.f32.mxu1 %v10737_v6  ;;  %v3970_v42 = vmul.f32 0.5, %v6013_v29  ;;  %v3984_v62 = vmul.f32 0.5, %v3961_v49 }
 0x923   : > { %6024 = vtanh.f32 %v4192_v19  ;;  %v3980_v37 = vadd.f32 0.5, %v3978_v47 }
 0x924   : > { %6026 = vtanh.f32 %v4179_v61  ;;  %v3972_v9 = vadd.f32 0.5, %v3970_v42  ;;  %v4202_v61 = vmul.f32 0.5, %v4180_v46 }
 0x925   : > { %v3992_v19 = vmul.f32 %v3980_v37, %v10292_v45  ;;  %6028 = vtanh.f32 %v4201_v63 }
 0x926   : > { %6030 = vtanh.f32 %v3984_v62 }
 0x927   : > { %6032 = vtanh.f32 %v4202_v61 }
 0x92a   : > { %v6015_v24 = vpop.eup %6014 }
 0x92b   : > { %v6017_v58 = vpop.eup %6016  ;;  %v4187_v5 = vmul.f32 0.5, %v6015_v24 }
 0x92c   : > { %v6019_v13 = vpop.eup %6018  ;;  %v3994_v7 = vmul.f32 %v6017_v58, %v3972_v9 }
 0x92d   : > { %v6021_v0 = vpop.eup %6020  ;;  %v4189_v6 = vadd.f32 0.5, %v4187_v5  ;;  %v4195_v27 = vmul.f32 0.5, %v6019_v13 }
 0x92e   : > { %v6023_v29 = vpop.eup %6022  ;;  %v10746_v31 = vadd.f32 %v3994_v7, %v3992_v19 }
 0x92f   : > { %v4197_v17 = vadd.f32 0.5, %v4195_v27  ;;  %v4211_v47 = vmul.f32 %v6021_v0, %v4189_v6  ;;  %v4188_v55 = vmul.f32 0.5, %v6023_v29 }
 0x930   : > { %v6025_v20 = vpop.eup %6024  ;;  %6034 = vtanh.f32 %v10746_v31 }
 0x931   : > { %v4209_v42 = vmul.f32 %v4197_v17, %v10295_v3  ;;  %v4190_v49 = vadd.f32 0.5, %v4188_v55  ;;  %v4196_v24 = vmul.f32 0.5, %v6025_v20  ;;  %v6027_v45 = vpop.eup %6026  ;;  %v6678_v55 = vld [vmem:[#allocation12 + $0x1e0] sm:$0xff]  ;;  %v6679_v20 = vld [vmem:[#allocation12 + $0x1f0] sm:$0xff] }
 0x932   : > { %v6029_v9 = vpop.eup %6028 }
 0x933   : > { %v10749_v37 = vadd.f32 %v4211_v47, %v4209_v42  ;;  %v4198_v5 = vadd.f32 0.5, %v4196_v24  ;;  %v4212_v63 = vmul.f32 %v6027_v45, %v4190_v49  ;;  %v6031_v3 = vpop.eup %6030  ;;  %v4205_v58 = vmul.f32 0.5, %v6029_v9  ;;  %v6680_v49 = vld [vmem:[#allocation12 + $0x1c8] sm:$0xff]  ;;  %v6681_v24 = vld [vmem:[#allocation12 + $0x1d8] sm:$0xff]  ;;  %v6682_v45 = vld [vmem:[#allocation12 + $0x1c0] sm:$0xff] }
 0x934   : > { %v6033_v62 = vpop.eup %6032  ;;  %v3988_v13 = vmul.f32 0.5, %v6031_v3  ;;  %v6686_v9 = vld [vmem:[#allocation12 + $0x1a0] sm:$0xff]  ;;  %v6687_v3 = vld [vmem:[#allocation12 + $0x1b0] sm:$0xff] }
 0x935   : > { %6036 = vtanh.f32 %v10749_v37  ;;  %v4210_v6 = vmul.f32 %v4198_v5, %v10300_v15  ;;  %v4207_v0 = vadd.f32 0.5, %v4205_v58  ;;  %v4206_v27 = vmul.f32 0.5, %v6033_v62  ;;  %v6683_v5 = vld [vmem:[#allocation12 + $0x1d0] sm:$0xff]  ;;  %v6688_v58 = vld [vmem:[#allocation12 + $0x188] sm:$0xff]  ;;  %v6689_v62 = vld [vmem:[#allocation12 + $0x198] sm:$0xff] }
 0x936   : > { %v3990_v29 = vadd.f32 0.5, %v3988_v13  ;;  %v6690_v13 = vld [vmem:[#allocation12 + $0x180] sm:$0xff] }
 0x937   : > { %v10754_v46 = vadd.f32 %v4212_v63, %v4210_v6  ;;  %v4208_v17 = vadd.f32 0.5, %v4206_v27  ;;  %v6684_v63 = vld [vmem:[#allocation12 + $0x1a8] sm:$0xff]  ;;  %v6685_v6 = vld [vmem:[#allocation12 + $0x1b8] sm:$0xff] }
 0x938   : > { %v6693_v27 = vld [vmem:[#allocation12 + $0x178] sm:$0xff] }
 0x939   : > { %6038 = vtanh.f32 %v10754_v46 }
 0x93d   : > { %v6035_v19 = vpop.eup %6034 }
 0x93e   : > { %v10761_v15 = vmul.f32 %v6035_v19, %v3990_v29  ;;  %v6691_v19 = vld [vmem:[#allocation12 + $0x190] sm:$0xff] }
 0x93f   : > { %v6695_v29 = vld [vmem:[#allocation12 + $0x170] sm:$0xff] }
 0x942   : > { %v6037_v61 = vpop.eup %6036 }
 0x943   : > { %v10757_v7 = vmul.f32 %v6037_v61, %v4207_v0  ;;  %v6692_v0 = vld [vmem:[#allocation12 + $0x168] sm:$0xff]  ;;  %v6694_v61 = vld [vmem:[#allocation12 + $0x160] sm:$0xff] }
 0x945   : > { %4292 = vmatmul.mubr.f32.vlgmr.msra.gmra.mxu0 %v10757_v7  ;;  %4369 = vmatmul.mubr.f32.vlgmr.msra.gmra.mxu1 %v10757_v7 }
 0x946   : > { %v6039_v47 = vpop.eup %6038  ;;  %4438 = vmatpush1.msra.mxu0 %v6678_v55  ;;  %4515 = vmatpush1.msra.mxu1 %v6679_v20  ;;  %v6698_v55 = vld [vmem:[#allocation12 + $0x140] sm:$0xff]  ;;  %v6699_v20 = vld [vmem:[#allocation12 + $0x150] sm:$0xff] }
 0x947   : > { %4297 = vmatprep.mubr.f32.mxu0 %v10761_v15  ;;  %4374 = vmatprep.mubr.f32.mxu1 %v10761_v15  ;;  %v10765_v42 = vmul.f32 %v6039_v47, %v4208_v17  ;;  %v6696_v17 = vld [vmem:[#allocation12 + $0x148] sm:$0xff]  ;;  %v6697_v47 = vld [vmem:[#allocation12 + $0x158] sm:$0xff] }
 0x948   : > { %4439 = vmatprep.subr.mxu0 %v6680_v49  ;;  %4516 = vmatprep.subr.mxu1 %v6681_v24  ;;  %v6700_v49 = vld [vmem:[#allocation12 + $0x128] sm:$0xff]  ;;  %v6701_v24 = vld [vmem:[#allocation12 + $0x138] sm:$0xff] }
 0x949   : > { %4440 = vmatpush1.msra.mxu0 %v6682_v45  ;;  %4517 = vmatpush1.msra.mxu1 %v6683_v5  ;;  %v6702_v45 = vld [vmem:[#allocation12 + $0x120] sm:$0xff]  ;;  %v6703_v5 = vld [vmem:[#allocation12 + $0x130] sm:$0xff] }
 0x94a   : > { %4441 = vmatprep.subr.mxu0 %v6684_v63  ;;  %4518 = vmatprep.subr.mxu1 %v6685_v6  ;;  %v6704_v63 = vld [vmem:[#allocation12 + $0x108] sm:$0xff]  ;;  %v6705_v6 = vld [vmem:[#allocation12 + $0x118] sm:$0xff] }
 0x94b   : > { %4298 = vmatmul.mubr.f32.gmra.mxu0 %v10765_v42  ;;  %4375 = vmatmul.mubr.f32.gmra.mxu1 %v10765_v42 }
 0x94c   : > { %4442 = vmatpush1.msra.mxu0 %v6686_v9  ;;  %4519 = vmatpush1.msra.mxu1 %v6687_v3  ;;  %v6706_v9 = vld [vmem:[#allocation12 + $0x100] sm:$0xff]  ;;  %v6707_v3 = vld [vmem:[#allocation12 + $0x110] sm:$0xff] }
 0x94d   : > { %4443 = vmatprep.subr.mxu0 %v6688_v58  ;;  %4520 = vmatprep.subr.mxu1 %v6689_v62  ;;  %v6708_v58 = vld [vmem:[#allocation12 + $0xe8] sm:$0xff]  ;;  %v6709_v62 = vld [vmem:[#allocation12 + $0xf8] sm:$0xff] }
 0x94e   : > { %4444 = vmatpush1.msra.mxu0 %v6690_v13  ;;  %4521 = vmatpush1.msra.mxu1 %v6691_v19  ;;  %v6710_v13 = vld [vmem:[#allocation12 + $0xe0] sm:$0xff]  ;;  %v6711_v19 = vld [vmem:[#allocation12 + $0xf0] sm:$0xff] }
 0x94f   : > { %4445 = vmatprep.subr.mxu0 %v6692_v0  ;;  %4522 = vmatprep.subr.mxu1 %v6693_v27  ;;  %v6712_v0 = vld [vmem:[#allocation12 + $0xc8] sm:$0xff]  ;;  %v6713_v27 = vld [vmem:[#allocation12 + $0xd8] sm:$0xff] }
 0x950   : > { %4446 = vmatpush1.msra.mxu0 %v6694_v61  ;;  %4523 = vmatpush1.msra.mxu1 %v6695_v29  ;;  %v6714_v61 = vld [vmem:[#allocation12 + $0xc0] sm:$0xff]  ;;  %v6715_v29 = vld [vmem:[#allocation12 + $0xd0] sm:$0xff] }
 0x951   : > { %4447 = vmatprep.subr.mxu0 %v6696_v17  ;;  %4524 = vmatprep.subr.mxu1 %v6697_v47  ;;  %v6716_v17 = vld [vmem:[#allocation12 + $0xa8] sm:$0xff]  ;;  %v6717_v47 = vld [vmem:[#allocation12 + $0xb8] sm:$0xff] }
 0x952   : > { %4448 = vmatpush1.msra.mxu0 %v6698_v55  ;;  %4525 = vmatpush1.msra.mxu1 %v6699_v20  ;;  %v6718_v55 = vld [vmem:[#allocation12 + $0xa0] sm:$0xff]  ;;  %v6719_v20 = vld [vmem:[#allocation12 + $0xb0] sm:$0xff] }
 0x953   : > { %4449 = vmatprep.subr.mxu0 %v6700_v49  ;;  %4526 = vmatprep.subr.mxu1 %v6701_v24  ;;  %v6720_v49 = vld [vmem:[#allocation12 + $0x88] sm:$0xff]  ;;  %v6721_v24 = vld [vmem:[#allocation12 + $0x98] sm:$0xff] }
 0x954   : > { %4450 = vmatpush1.msra.mxu0 %v6702_v45  ;;  %4527 = vmatpush1.msra.mxu1 %v6703_v5  ;;  %v6722_v45 = vld [vmem:[#allocation12 + $0x80] sm:$0xff]  ;;  %v6723_v5 = vld [vmem:[#allocation12 + $0x90] sm:$0xff] }
 0x955   : > { %4451 = vmatprep.subr.mxu0 %v6704_v63  ;;  %4528 = vmatprep.subr.mxu1 %v6705_v6  ;;  %v6724_v63 = vld [vmem:[#allocation12 + $0x68] sm:$0xff]  ;;  %v6725_v6 = vld [vmem:[#allocation12 + $0x78] sm:$0xff] }
 0x956   : > { %4452 = vmatpush1.msra.mxu0 %v6706_v9  ;;  %4529 = vmatpush1.msra.mxu1 %v6707_v3  ;;  %v6726_v9 = vld [vmem:[#allocation12 + $0x60] sm:$0xff]  ;;  %v6727_v3 = vld [vmem:[#allocation12 + $0x70] sm:$0xff] }
 0x957   : > { %4453 = vmatprep.subr.mxu0 %v6708_v58  ;;  %4530 = vmatprep.subr.mxu1 %v6709_v62  ;;  %v6728_v58 = vld [vmem:[#allocation12 + $0x48] sm:$0xff]  ;;  %v6729_v62 = vld [vmem:[#allocation12 + $0x58] sm:$0xff] }
 0x958   : > { %4454 = vmatpush1.msra.mxu0 %v6710_v13  ;;  %4531 = vmatpush1.msra.mxu1 %v6711_v19  ;;  %v6730_v13 = vld [vmem:[#allocation12 + $0x40] sm:$0xff]  ;;  %v6731_v19 = vld [vmem:[#allocation12 + $0x50] sm:$0xff] }
 0x959   : > { %4455 = vmatprep.subr.mxu0 %v6712_v0  ;;  %4532 = vmatprep.subr.mxu1 %v6713_v27  ;;  %v6732_v0 = vld [vmem:[#allocation12 + $0x28] sm:$0xff]  ;;  %v6733_v27 = vld [vmem:[#allocation12 + $0x38] sm:$0xff] }
 0x95a   : > { %4456 = vmatpush1.msra.mxu0 %v6714_v61  ;;  %4533 = vmatpush1.msra.mxu1 %v6715_v29  ;;  %v6734_v61 = vld [vmem:[#allocation12 + $0x20] sm:$0xff]  ;;  %v6735_v29 = vld [vmem:[#allocation12 + $0x30] sm:$0xff] }
 0x95b   : > { %4457 = vmatprep.subr.mxu0 %v6716_v17  ;;  %4534 = vmatprep.subr.mxu1 %v6717_v47  ;;  %v6736_v17 = vld [vmem:[#allocation12 + $0x8] sm:$0xff]  ;;  %v6737_v47 = vld [vmem:[#allocation12 + $0x18] sm:$0xff] }
 0x95c   : > { %4458 = vmatpush1.msra.mxu0 %v6718_v55  ;;  %4535 = vmatpush1.msra.mxu1 %v6719_v20  ;;  %v6738_v55 = vld [vmem:[#allocation12] sm:$0xff]  ;;  %v6739_v20 = vld [vmem:[#allocation12 + $0x10] sm:$0xff] }
 0x95d   : > { %4459 = vmatprep.subr.mxu0 %v6720_v49  ;;  %4536 = vmatprep.subr.mxu1 %v6721_v24  ;;  %v6740_v49 = vld [vmem:[#allocation13 + $0x1e8] sm:$0xff]  ;;  %v6741_v24 = vld [vmem:[#allocation13 + $0x1f8] sm:$0xff] }
 0x95e   : > { %4460 = vmatpush1.msra.mxu0 %v6722_v45  ;;  %4537 = vmatpush1.msra.mxu1 %v6723_v5  ;;  %v6742_v45 = vld [vmem:[#allocation13 + $0x1e0] sm:$0xff]  ;;  %v6743_v5 = vld [vmem:[#allocation13 + $0x1f0] sm:$0xff] }
 0x95f   : > { %4461 = vmatprep.subr.mxu0 %v6724_v63  ;;  %4538 = vmatprep.subr.mxu1 %v6725_v6  ;;  %v6744_v63 = vld [vmem:[#allocation13 + $0x1c8] sm:$0xff]  ;;  %v6745_v6 = vld [vmem:[#allocation13 + $0x1d8] sm:$0xff] }
 0x960   : > { %4462 = vmatpush1.msra.mxu0 %v6726_v9  ;;  %4539 = vmatpush1.msra.mxu1 %v6727_v3  ;;  %v6747_v9 = vld [vmem:[#allocation13 + $0x1d0] sm:$0xff]  ;;  %v6749_v3 = vld [vmem:[#allocation13 + $0x1b8] sm:$0xff] }
 0x961   : > { %4463 = vmatprep.subr.mxu0 %v6728_v58  ;;  %4540 = vmatprep.subr.mxu1 %v6729_v62  ;;  %v6750_v58 = vld [vmem:[#allocation13 + $0x1a0] sm:$0xff]  ;;  %v6751_v62 = vld [vmem:[#allocation13 + $0x1b0] sm:$0xff] }
 0x962   : > { %4464 = vmatpush1.msra.mxu0 %v6730_v13  ;;  %4541 = vmatpush1.msra.mxu1 %v6731_v19  ;;  %v6752_v13 = vld [vmem:[#allocation13 + $0x188] sm:$0xff]  ;;  %v6753_v19 = vld [vmem:[#allocation13 + $0x198] sm:$0xff] }
 0x963   : > { %4465 = vmatprep.subr.mxu0 %v6732_v0  ;;  %4542 = vmatprep.subr.mxu1 %v6733_v27  ;;  %v6755_v0 = vld [vmem:[#allocation13 + $0x190] sm:$0xff]  ;;  %v6756_v27 = vld [vmem:[#allocation13 + $0x168] sm:$0xff] }
 0x964   : > { %4466 = vmatpush1.msra.mxu0 %v6734_v61  ;;  %4543 = vmatpush1.msra.mxu1 %v6735_v29  ;;  %v6757_v61 = vld [vmem:[#allocation13 + $0x178] sm:$0xff]  ;;  %v6758_v29 = vld [vmem:[#allocation13 + $0x160] sm:$0xff] }
 0x965   : > { %4467 = vmatprep.subr.mxu0 %v6736_v17  ;;  %4544 = vmatprep.subr.mxu1 %v6737_v47  ;;  %v6759_v17 = vld [vmem:[#allocation13 + $0x170] sm:$0xff]  ;;  %v6760_v47 = vld [vmem:[#allocation13 + $0x148] sm:$0xff] }
 0x966   : > { %4468 = vmatpush1.msra.mxu0 %v6738_v55  ;;  %4501 = vmatprep.mubr.f32.mxu0 %v11717_v32  ;;  %v6761_v55 = vld [vmem:[#allocation13 + $0x158] sm:$0xff] }
 0x967   : > { %4545 = vmatpush1.msra.mxu1 %v6739_v20  ;;  %4578 = vmatprep.mubr.f32.mxu1 %v11717_v32  ;;  %v6762_v20 = vld [vmem:[#allocation13 + $0x140] sm:$0xff] }
 0x968   : > { %4502 = vmatmul.mubr.f32.vlgmr.msra.gmra.mxu0 %v10757_v7  ;;  %4579 = vmatmul.mubr.f32.vlgmr.msra.gmra.mxu1 %v10757_v7  ;;  %v6746_v7 = vld [vmem:[#allocation13 + $0x1c0] sm:$0xff] }
 0x969   : > { %4507 = vmatprep.mubr.f32.mxu0 %v11717_v32  ;;  %4584 = vmatprep.mubr.f32.mxu1 %v11717_v32  ;;  %v6748_v32 = vld [vmem:[#allocation13 + $0x1a8] sm:$0xff] }
 0x96a   : > { %4645 = vmatprep.subr.mxu0 %v6740_v49  ;;  %4722 = vmatprep.subr.mxu1 %v6741_v24  ;;  %v6763_v49 = vld [vmem:[#allocation13 + $0x150] sm:$0xff]  ;;  %v12626_v24 = vld [vmem:[#allocation44_spill] sm:$0xff] }
 0x96b   : > { %4646 = vmatpush1.msra.mxu0 %v6742_v45  ;;  %4723 = vmatpush1.msra.mxu1 %v6743_v5  ;;  %v12627_v45 = vld [vmem:[#allocation45_spill] sm:$0xff]  ;;  %v12628_v5 = vld [vmem:[#allocation46_spill] sm:$0xff] }
 0x96c   : > { %4508 = vmatmul.mubr.f32.gmra.mxu0 %v10765_v42  ;;  %4585 = vmatmul.mubr.f32.gmra.mxu1 %v10765_v42  ;;  %v6754_v42 = vld [vmem:[#allocation13 + $0x180] sm:$0xff] }
 0x96d   : > { %4647 = vmatprep.subr.mxu0 %v6744_v63  ;;  %4724 = vmatprep.subr.mxu1 %v6745_v6  ;;  %v12629_v63 = vld [vmem:[#allocation47_spill] sm:$0xff]  ;;  %v12630_v6 = vld [vmem:[#allocation48_spill] sm:$0xff] }
 0x96e   : > { %4648 = vmatpush1.msra.mxu0 %v6746_v7  ;;  %4725 = vmatpush1.msra.mxu1 %v6747_v9  ;;  %v12631_v7 = vld [vmem:[#allocation49_spill] sm:$0xff]  ;;  %v12632_v9 = vld [vmem:[#allocation50_spill] sm:$0xff] }
 0x96f   : > { %4649 = vmatprep.subr.mxu0 %v6748_v32  ;;  %4726 = vmatprep.subr.mxu1 %v6749_v3  ;;  %v12633_v32 = vld [vmem:[#allocation51_spill] sm:$0xff]  ;;  %v12634_v3 = vld [vmem:[#allocation52_spill] sm:$0xff] }
 0x970   : > { %4650 = vmatpush1.msra.mxu0 %v6750_v58  ;;  %4727 = vmatpush1.msra.mxu1 %v6751_v62  ;;  %v12635_v58 = vld [vmem:[#allocation53_spill] sm:$0xff]  ;;  %v12636_v62 = vld [vmem:[#allocation54_spill] sm:$0xff] }
 0x971   : > { %4651 = vmatprep.subr.mxu0 %v6752_v13  ;;  %4728 = vmatprep.subr.mxu1 %v6753_v19  ;;  %v12637_v13 = vld [vmem:[#allocation55_spill] sm:$0xff]  ;;  %v12638_v19 = vld [vmem:[#allocation56_spill] sm:$0xff] }
 0x972   : > { %4652 = vmatpush1.msra.mxu0 %v6754_v42  ;;  %4729 = vmatpush1.msra.mxu1 %v6755_v0  ;;  %v12639_v42 = vld [vmem:[#allocation57_spill] sm:$0xff]  ;;  %v12640_v0 = vld [vmem:[#allocation58_spill] sm:$0xff] }
 0x973   : > { %4653 = vmatprep.subr.mxu0 %v6756_v27  ;;  %4730 = vmatprep.subr.mxu1 %v6757_v61  ;;  %v12641_v27 = vld [vmem:[#allocation59_spill] sm:$0xff]  ;;  %v12642_v61 = vld [vmem:[#allocation60_spill] sm:$0xff] }
 0x974   : > { %4654 = vmatpush1.msra.mxu0 %v6758_v29  ;;  %4731 = vmatpush1.msra.mxu1 %v6759_v17  ;;  %v12643_v29 = vld [vmem:[#allocation61_spill] sm:$0xff]  ;;  %v12644_v17 = vld [vmem:[#allocation62_spill] sm:$0xff] }
 0x975   : > { %4655 = vmatprep.subr.mxu0 %v6760_v47  ;;  %4732 = vmatprep.subr.mxu1 %v6761_v55  ;;  %v12645_v47 = vld [vmem:[#allocation63_spill] sm:$0xff]  ;;  %v12646_v55 = vld [vmem:[#allocation64_spill] sm:$0xff] }
 0x976   : > { %4656 = vmatpush1.msra.mxu0 %v6762_v20  ;;  %4733 = vmatpush1.msra.mxu1 %v6763_v49  ;;  %v12647_v20 = vld [vmem:[#allocation65_spill] sm:$0xff]  ;;  %v12648_v49 = vld [vmem:[#allocation66_spill] sm:$0xff] }
 0x977   : > { %4657 = vmatprep.subr.mxu0 %v10409_v33  ;;  %4734 = vmatprep.subr.mxu1 %v10412_v44  ;;  %v12591_v33 = vld [vmem:[#allocation207_spill] sm:$0xff]  ;;  %v12592_v44 = vld [vmem:[#allocation208_spill] sm:$0xff] }
 0x978   : > { %4658 = vmatpush1.msra.mxu0 %v10415_v16  ;;  %4735 = vmatpush1.msra.mxu1 %v10418_v59  ;;  %v12593_v16 = vld [vmem:[#allocation209_spill] sm:$0xff]  ;;  %v12594_v59 = vld [vmem:[#allocation210_spill] sm:$0xff] }
 0x979   : > { %4659 = vmatprep.subr.mxu0 %v10421_v40  ;;  %4736 = vmatprep.subr.mxu1 %v10424_v12  ;;  %v12595_v40 = vld [vmem:[#allocation211_spill] sm:$0xff]  ;;  %v12596_v12 = vld [vmem:[#allocation212_spill] sm:$0xff] }
 0x97a   : > { %4660 = vmatpush1.msra.mxu0 %v10427_v56  ;;  %4737 = vmatpush1.msra.mxu1 %v10430_v34  ;;  %v12597_v56 = vld [vmem:[#allocation213_spill] sm:$0xff]  ;;  %v12598_v34 = vld [vmem:[#allocation214_spill] sm:$0xff] }
 0x97b   : > { %4661 = vmatprep.subr.mxu0 %v10433_v38  ;;  %4738 = vmatprep.subr.mxu1 %v10436_v26  ;;  %v12599_v38 = vld [vmem:[#allocation105_spill] sm:$0xff] }
 0x97c   : > { %4662 = vmatpush1.msra.mxu0 %v10439_v8  ;;  %4739 = vmatpush1.msra.mxu1 %v10442_v14  ;;  %v12600_v26 = vld [vmem:[#allocation121_spill] sm:$0xff]  ;;  %v12601_v8 = vld [vmem:[#allocation123_spill] sm:$0xff]  ;;  %v12602_v14 = vld [vmem:[#allocation122_spill] sm:$0xff] }
 0x97d   : > { %4663 = vmatprep.subr.mxu0 %v10445_v54  ;;  %4740 = vmatprep.subr.mxu1 %v10448_v1  ;;  %v12603_v54 = vld [vmem:[#allocation125_spill] sm:$0xff]  ;;  %v12604_v1 = vld [vmem:[#allocation127_spill] sm:$0xff] }
 0x97e   : > { %4664 = vmatpush1.msra.mxu0 %v10451_v2  ;;  %4741 = vmatpush1.msra.mxu1 %v10454_v4  ;;  %v12605_v2 = vld [vmem:[#allocation126_spill] sm:$0xff]  ;;  %v12606_v4 = vld [vmem:[#allocation124_spill] sm:$0xff] }
 0x97f   : > { %4665 = vmatprep.subr.mxu0 %v10457_v25  ;;  %4742 = vmatprep.subr.mxu1 %v10460_v43  ;;  %v12607_v25 = vld [vmem:[#allocation128_spill] sm:$0xff]  ;;  %v12608_v43 = vld [vmem:[#allocation109_spill] sm:$0xff] }
 0x980   : > { %4666 = vmatpush1.msra.mxu0 %v10463_v39  ;;  %4743 = vmatpush1.msra.mxu1 %v10466_v23  ;;  %v12609_v39 = vld [vmem:[#allocation111_spill] sm:$0xff]  ;;  %v12610_v23 = vld [vmem:[#allocation110_spill] sm:$0xff] }
 0x981   : > { %4667 = vmatprep.subr.mxu0 %v10469_v48  ;;  %4744 = vmatprep.subr.mxu1 %v10472_v11  ;;  %v12611_v48 = vld [vmem:[#allocation108_spill] sm:$0xff] }
 0x982   : > { %4668 = vmatpush1.msra.mxu0 %v10475_v10  ;;  %4745 = vmatpush1.msra.mxu1 %v10478_v18  ;;  %v12612_v11 = vld [vmem:[#allocation112_spill] sm:$0xff]  ;;  %v12613_v10 = vld [vmem:[#allocation31_spill] sm:$0xff] }
 0x983   : > { %4669 = vmatprep.subr.mxu0 %v10481_v22  ;;  %4746 = vmatprep.subr.mxu1 %v10484_v51  ;;  %v12614_v18 = vld [vmem:[#allocation32_spill] sm:$0xff]  ;;  %v12615_v22 = vld [vmem:[#allocation33_spill] sm:$0xff]  ;;  %v12616_v51 = vld [vmem:[#allocation34_spill] sm:$0xff] }
 0x984   : > { %4670 = vmatpush1.msra.mxu0 %v10487_v60  ;;  %4747 = vmatpush1.msra.mxu1 %v10490_v30  ;;  %v12617_v60 = vld [vmem:[#allocation35_spill] sm:$0xff]  ;;  %v12618_v30 = vld [vmem:[#allocation36_spill] sm:$0xff] }
 0x985   : > { %4671 = vmatprep.subr.mxu0 %v10493_v28  ;;  %4748 = vmatprep.subr.mxu1 %v10496_v36  ;;  %v12619_v28 = vld [vmem:[#allocation37_spill] sm:$0xff]  ;;  %v12620_v36 = vld [vmem:[#allocation38_spill] sm:$0xff] }
 0x986   : > { %4672 = vmatpush1.msra.mxu0 %v10499_v57  ;;  %4749 = vmatpush1.msra.mxu1 %v10502_v21  ;;  %v12621_v57 = vld [vmem:[#allocation39_spill] sm:$0xff]  ;;  %v12622_v21 = vld [vmem:[#allocation40_spill] sm:$0xff] }
 0x987   : > { %4673 = vmatprep.subr.mxu0 %v10505_v41  ;;  %4750 = vmatprep.subr.mxu1 %v10508_v35  ;;  %v12623_v41 = vld [vmem:[#allocation41_spill] sm:$0xff]  ;;  %v12624_v35 = vld [vmem:[#allocation42_spill] sm:$0xff] }
 0x988   : > { %4674 = vmatpush1.msra.mxu0 %v10511_v50  ;;  %4751 = vmatpush1.msra.mxu1 %v12591_v33  ;;  %v12625_v50 = vld [vmem:[#allocation43_spill] sm:$0xff] }
 0x989   : > { %4675 = vmatprep.subr.mxu0 %v12592_v44  ;;  %4752 = vmatprep.subr.mxu1 %v12593_v16  ;;  %v12649_v33 = vld [vmem:[#allocation67_spill] sm:$0xff]  ;;  %v12650_v44 = vld [vmem:[#allocation68_spill] sm:$0xff]  ;;  %v12651_v16 = vld [vmem:[#allocation69_spill] sm:$0xff] }
 0x98a   : > { %4676 = vmatpush1.msra.mxu0 %v12594_v59  ;;  %4753 = vmatpush1.msra.mxu1 %v12595_v40  ;;  %v12652_v59 = vld [vmem:[#allocation70_spill] sm:$0xff]  ;;  %v12653_v40 = vld [vmem:[#allocation71_spill] sm:$0xff] }
 0x98b   : > { %4677 = vmatprep.subr.mxu0 %v12596_v12  ;;  %4754 = vmatprep.subr.mxu1 %v12597_v56  ;;  %v12654_v12 = vld [vmem:[#allocation72_spill] sm:$0xff]  ;;  %v12655_v56 = vld [vmem:[#allocation73_spill] sm:$0xff] }
 0x98c   : > { %4678 = vmatpush2.msra.mxu0 %v12598_v34  ;;  %4755 = vmatpush2.msra.mxu1 %v12599_v38  ;;  %v12656_v34 = vld [vmem:[#allocation74_spill] sm:$0xff]  ;;  %v12657_v38 = vld [vmem:[#allocation75_spill] sm:$0xff] }
 0x98d   : > { %4679 = vmatprep.subr.mxu0 %v12600_v26  ;;  %4756 = vmatprep.subr.mxu1 %v12601_v8  ;;  %v12658_v26 = vld [vmem:[#allocation76_spill] sm:$0xff]  ;;  %v12659_v8 = vld [vmem:[#allocation77_spill] sm:$0xff] }
 0x98e   : > { %4680 = vmatpush2.msra.mxu0 %v12602_v14  ;;  %4757 = vmatpush2.msra.mxu1 %v12603_v54  ;;  %v10881_v14 = vld [vmem:[#allocation15 + $0x78] sm:$0xff] }
 0x98f   : > { %4681 = vmatprep.subr.mxu0 %v12604_v1  ;;  %4758 = vmatprep.subr.mxu1 %v12605_v2  ;;  %v12660_v1 = vld [vmem:[#allocation27_spill] sm:$0xff] }
 0x990   : > { %4682 = vmatpush2.msra.mxu0 %v12606_v4  ;;  %4759 = vmatpush2.msra.mxu1 %v12607_v25 }
 0x991   : > { %4683 = vmatprep.subr.mxu0 %v12608_v43  ;;  %4760 = vmatprep.subr.mxu1 %v12609_v39  ;;  %v12661_v43 = vld [vmem:[#allocation28_spill] sm:$0xff] }
 0x992   : > { %4684 = vmatpush2.msra.mxu0 %v12610_v23  ;;  %4761 = vmatpush2.msra.mxu1 %v12611_v48 }
 0x993   : > { %4685 = vmatprep.subr.mxu0 %v12612_v11  ;;  %4762 = vmatprep.subr.mxu1 %v12613_v10 }
 0x994   : > { %4686 = vmatpush2.msra.mxu0 %v12614_v18  ;;  %4763 = vmatpush2.msra.mxu1 %v12615_v22 }
 0x995   : > { %4687 = vmatprep.subr.mxu0 %v12616_v51  ;;  %4764 = vmatprep.subr.mxu1 %v12617_v60 }
 0x996   : > { %4688 = vmatpush2.msra.mxu0 %v12618_v30  ;;  %4765 = vmatpush2.msra.mxu1 %v12619_v28 }
 0x997   : > { %4689 = vmatprep.subr.mxu0 %v12620_v36  ;;  %4766 = vmatprep.subr.mxu1 %v12621_v57 }
 0x998   : > { %4690 = vmatpush2.msra.mxu0 %v12622_v21  ;;  %4767 = vmatpush2.msra.mxu1 %v12623_v41 }
 0x999   : > { %4691 = vmatprep.subr.mxu0 %v12624_v35  ;;  %4768 = vmatprep.subr.mxu1 %v12625_v50 }
 0x99a   : > { %4692 = vmatpush2.msra.mxu0 %v12626_v24  ;;  %4769 = vmatpush2.msra.mxu1 %v12627_v45  ;;  %v12662_v24 = vld [vmem:[#allocation78_spill] sm:$0xff] }
 0x99b   : > { %4693 = vmatprep.subr.mxu0 %v12628_v5  ;;  %4770 = vmatprep.subr.mxu1 %v12629_v63 }
 0x99c   : > { %4694 = vmatpush2.msra.mxu0 %v12630_v6  ;;  %4771 = vmatpush2.msra.mxu1 %v12631_v7 }
 0x99d   : > { %4695 = vmatprep.subr.mxu0 %v12632_v9  ;;  %4772 = vmatprep.subr.mxu1 %v12633_v32 }
 0x99e   : > { %4696 = vmatpush2.msra.mxu0 %v12634_v3  ;;  %4773 = vmatpush2.msra.mxu1 %v12635_v58 }
 0x99f   : > { %4697 = vmatprep.subr.mxu0 %v12636_v62  ;;  %4774 = vmatprep.subr.mxu1 %v12637_v13 }
 0x9a0   : > { %4698 = vmatpush2.msra.mxu0 %v12638_v19  ;;  %4775 = vmatpush2.msra.mxu1 %v12639_v42  ;;  %v12663_v19 = vld [vmem:[#allocation145_spill] sm:$0xff] }
 0x9a1   : > { %4699 = vmatprep.subr.mxu0 %v12640_v0  ;;  %4776 = vmatprep.subr.mxu1 %v12641_v27 }
 0x9a2   : > { %4700 = vmatpush2.msra.mxu0 %v12642_v61  ;;  %4777 = vmatpush2.msra.mxu1 %v12643_v29 }
 0x9a3   : > { %4701 = vmatprep.subr.mxu0 %v12644_v17  ;;  %4778 = vmatprep.subr.mxu1 %v12645_v47  ;;  %v12664_v47 = vld [vmem:[#allocation147_spill] sm:$0xff] }
 0x9a4   : > { %4702 = vmatpush2.msra.mxu0 %v12646_v55  ;;  %4779 = vmatpush2.msra.mxu1 %v12647_v20  ;;  %v12665_v20 = vld [vmem:[#allocation146_spill] sm:$0xff] }
 0x9a5   : > { %4703 = vmatprep.subr.mxu0 %v12648_v49  ;;  %4780 = vmatprep.subr.mxu1 %v12649_v33 }
 0x9a6   : > { %4704 = vmatpush2.msra.mxu0 %v12650_v44  ;;  %4781 = vmatpush2.msra.mxu1 %v12651_v16  ;;  %v12666_v16 = vld [vmem:[#allocation149_spill] sm:$0xff] }
 0x9a7   : > { %4705 = vmatprep.subr.mxu0 %v12652_v59  ;;  %4782 = vmatprep.subr.mxu1 %v12653_v40 }
 0x9a8   : > { %4706 = vmatpush2.msra.mxu0 %v12654_v12  ;;  %4783 = vmatpush2.msra.mxu1 %v12655_v56 }
 0x9a9   : > { %4707 = vmatprep.subr.mxu0 %v12656_v34  ;;  %4784 = vmatprep.subr.mxu1 %v12657_v38 }
 0x9aa   : > { %4708 = vmatpush2.msra.mxu0 %v12658_v26  ;;  %4785 = vmatpush2.msra.mxu1 %v12659_v8  ;;  %v12667_v26 = vld [vmem:[#allocation151_spill] sm:$0xff] }
 0x9ab   : > { %5516 = vmatprep.subr.mxu0 %v10881_v14 }
 0xa05   : > { %v4293_v54 = vpop.f32.mrf.mxu0  ;;  %v4370_v23 = vpop.f32.mrf.mxu1 }
 0xa06   : > { %v4294_v2 = vadd.f32 %v4293_v54, %v12660_v1  ;;  %v4371_v11 = vadd.f32 %v4370_v23, %v8504_v52 }
 0xa07   : > { %v4295_v4 = vpop.f32.mrf.mxu0  ;;  %v4372_v10 = vpop.f32.mrf.mxu1 }
 0xa08   : > { %v4383_v25 = vmul.f32 0.5, %v4294_v2  ;;  %v4296_v39 = vadd.f32 %v4295_v4, %v12661_v43  ;;  %v4373_v18 = vadd.f32 %v4372_v10, %v8510_v53  ;;  %v12668_v4 = vld [vmem:[#allocation150_spill] sm:$0xff] }
 0xa0a   : > { %6040 = vtanh.f32 %v4383_v25  ;;  %v4391_v48 = vmul.f32 0.5, %v4296_v39  ;;  %v4401_v51 = vmul.f32 0.5, %v4373_v18 }
 0xa0b   : > { %v4299_v22 = vpop.f32.mrf.mxu0  ;;  %v4376_v32 = vpop.f32.mrf.mxu1 }
 0xa0c   : > { %6042 = vtanh.f32 %v4391_v48  ;;  %v4300_v63 = vadd.f32 %v4299_v22, %v12660_v1  ;;  %v4377_v27 = vadd.f32 %v4376_v32, %v8504_v52 }
 0xa0d   : > { %6044 = vtanh.f32 %v4371_v11  ;;  %v4301_v36 = vpop.f32.mrf.mxu0  ;;  %v4378_v3 = vpop.f32.mrf.mxu1  ;;  %v12669_v11 = vld [vmem:[#allocation148_spill] sm:$0xff] }
 0xa0e   : > { %6046 = vtanh.f32 %v4401_v51  ;;  %v4302_v35 = vadd.f32 %v4301_v36, %v12661_v43  ;;  %v4384_v9 = vmul.f32 0.5, %v4300_v63  ;;  %v4379_v22 = vadd.f32 %v4378_v3, %v8510_v53 }
 0xa10   : > { %v4392_v7 = vmul.f32 0.5, %v4302_v35 }
 0xa17   : > { %v6041_v60 = vpop.eup %6040 }
 0xa18   : > { %v4387_v30 = vmul.f32 0.5, %v6041_v60 }
 0xa19   : > { %v6043_v28 = vpop.eup %6042 }
 0xa1a   : > { %v4389_v57 = vadd.f32 0.5, %v4387_v30  ;;  %v4395_v21 = vmul.f32 0.5, %v6043_v28  ;;  %v6045_v50 = vpop.eup %6044  ;;  %v12670_v28 = vld [vmem:[#allocation152_spill] sm:$0xff] }
 0xa1b   : > { %v6047_v58 = vpop.eup %6046 }
 0xa1c   : > { %v4397_v41 = vadd.f32 0.5, %v4395_v21  ;;  %v4411_v5 = vmul.f32 %v6045_v50, %v4389_v57  ;;  %v4405_v0 = vmul.f32 0.5, %v6047_v58 }
 0xa1e   : > { %v4409_v45 = vmul.f32 %v4397_v41, %v12662_v24  ;;  %v4407_v40 = vadd.f32 0.5, %v4405_v0  ;;  %v4402_v41 = vmul.f32 0.5, %v4379_v22  ;;  %v4866_v22 = vld [vmem:[#allocation15 + $0x30] sm:$0xff] }
 0xa20   : > { %v10891_v6 = vadd.f32 %v4411_v5, %v4409_v45 }
 0xa22   : > { %6048 = vtanh.f32 %v10891_v6 }
 0xa23   : > { %6050 = vtanh.f32 %v4392_v7 }
 0xa24   : > { %6052 = vtanh.f32 %v4384_v9 }
 0xa28   : > { %v4503_v62 = vpop.f32.mrf.mxu0  ;;  %v4580_v13 = vpop.f32.mrf.mxu1 }
 0xa29   : > { %v4591_v42 = vadd.f32 %v4503_v62, %v12663_v19  ;;  %v4593_v49 = vadd.f32 %v4580_v13, %v12665_v20 }
 0xa2a   : > { %v4505_v61 = vpop.f32.mrf.mxu0  ;;  %v4582_v29 = vpop.f32.mrf.mxu1 }
 0xa2b   : > { %v4601_v17 = vmul.f32 0.5, %v4591_v42  ;;  %v4592_v55 = vadd.f32 %v4505_v61, %v12664_v47  ;;  %v4594_v10 = vadd.f32 %v4582_v29, %v12669_v11  ;;  %v4870_v11 = vld [vmem:[#allocation15 + $0x50] sm:$0xff] }
 0xa2c   : > { %v4509_v33 = vpop.f32.mrf.mxu0  ;;  %v4586_v12 = vpop.f32.mrf.mxu1 }
 0xa2d   : > { %6054 = vtanh.f32 %v4601_v17  ;;  %v4609_v44 = vmul.f32 0.5, %v4592_v55  ;;  %v4595_v59 = vadd.f32 %v4509_v33, %v12666_v16  ;;  %v4597_v25 = vadd.f32 %v4586_v12, %v12668_v4  ;;  %v4873_v4 = vld [vmem:[#allocation15 + $0x68] sm:$0xff] }
 0xa2e   : > { %6056 = vtanh.f32 %v4377_v27  ;;  %v4511_v56 = vpop.f32.mrf.mxu0  ;;  %v4588_v51 = vpop.f32.mrf.mxu1  ;;  %v4619_v30 = vmul.f32 0.5, %v4594_v10  ;;  %v4868_v10 = vld [vmem:[#allocation15 + $0x40] sm:$0xff] }
 0xa2f   : > { %v6049_v34 = vpop.eup %6048  ;;  %6058 = vtanh.f32 %v4609_v44  ;;  %v4602_v38 = vmul.f32 0.5, %v4595_v59  ;;  %v4596_v8 = vadd.f32 %v4511_v56, %v12667_v26  ;;  %v4598_v36 = vadd.f32 %v4588_v51, %v12670_v28  ;;  %v4865_v51 = vld [vmem:[#allocation15 + $0x28] sm:$0xff]  ;;  %v4862_v28 = vld [vmem:[#allocation15 + $0x10] sm:$0xff] }
 0xa30   : > { %6060 = vtanh.f32 %v4593_v49  ;;  %v10900_v54 = vmul.f32 %v6049_v34, %v4407_v40  ;;  %v6051_v2 = vpop.eup %6050 }
 0xa31   : > { %6062 = vtanh.f32 %v4602_v38  ;;  %v4610_v39 = vmul.f32 0.5, %v4596_v8  ;;  %v6053_v23 = vpop.eup %6052  ;;  %v4396_v48 = vmul.f32 0.5, %v6051_v2  ;;  %v4620_v9 = vmul.f32 0.5, %v4598_v36  ;;  %v4874_v8 = vld [vmem:[#allocation15 + $0x70] sm:$0xff]  ;;  %v4861_v36 = vld [vmem:[#allocation15 + $0x8] sm:$0xff] }
 0xa32   : > { %4709 = vmatprep.mubr.f32.mxu0 %v10900_v54  ;;  %4786 = vmatprep.mubr.f32.mxu1 %v10900_v54  ;;  %v4388_v18 = vmul.f32 0.5, %v6053_v23  ;;  %v4871_v23 = vld [vmem:[#allocation15 + $0x58] sm:$0xff] }
 0xa33   : > { %6064 = vtanh.f32 %v4610_v39  ;;  %v4398_v60 = vadd.f32 0.5, %v4396_v48  ;;  %v4872_v39 = vld [vmem:[#allocation15 + $0x60] sm:$0xff]  ;;  %v12671_v48 = vld [vmem:[#allocation29_spill] sm:$0xff] }
 0xa34   : > { %6066 = vtanh.f32 %v4597_v25  ;;  %v4390_v21 = vadd.f32 0.5, %v4388_v18  ;;  %v4867_v18 = vld [vmem:[#allocation15 + $0x38] sm:$0xff] }
 0xa35   : > { %v4410_v45 = vmul.f32 %v4398_v60, %v10746_v31  ;;  %6068 = vtanh.f32 %v4619_v30  ;;  %v4864_v60 = vld [vmem:[#allocation15 + $0x20] sm:$0xff]  ;;  %v4863_v30 = vld [vmem:[#allocation15 + $0x18] sm:$0xff] }
 0xa36   : > { %6070 = vtanh.f32 %v4402_v41  ;;  %v12673_v41 = vld [vmem:[#allocation100_spill] sm:$0xff] }
 0xa37   : > { %6072 = vtanh.f32 %v4620_v9  ;;  %v12681_v9 = vld [vmem:[#allocation79_spill] sm:$0xff] }
 0xa3a   : > { %v6055_v57 = vpop.eup %6054 }
 0xa3b   : > { %v6057_v35 = vpop.eup %6056  ;;  %v4605_v50 = vmul.f32 0.5, %v6055_v57  ;;  %v4860_v57 = vld [vmem:[#allocation15] sm:$0xff] }
 0xa3c   : > { %v6059_v24 = vpop.eup %6058  ;;  %v4412_v3 = vmul.f32 %v6057_v35, %v4390_v21  ;;  %v12672_v21 = vld [vmem:[#allocation30_spill] sm:$0xff]  ;;  %v12674_v35 = vld [vmem:[#allocation104_spill] sm:$0xff] }
 0xa3d   : > { %v6061_v5 = vpop.eup %6060  ;;  %v4607_v63 = vadd.f32 0.5, %v4605_v50  ;;  %v4613_v7 = vmul.f32 0.5, %v6059_v24  ;;  %v12675_v50 = vld [vmem:[#allocation107_spill] sm:$0xff]  ;;  %v12676_v24 = vld [vmem:[#allocation106_spill] sm:$0xff] }
 0xa3e   : > { %v6063_v32 = vpop.eup %6062  ;;  %v10909_v42 = vadd.f32 %v4412_v3, %v4410_v45  ;;  %v12677_v45 = vld [vmem:[#allocation99_spill] sm:$0xff]  ;;  %v5058_v3 = vld [vmem:[#allocation16 + $0x70] sm:$0xff] }
 0xa3f   : > { %v4615_v58 = vadd.f32 0.5, %v4613_v7  ;;  %v4629_v62 = vmul.f32 %v6061_v5, %v4607_v63  ;;  %v4606_v13 = vmul.f32 0.5, %v6063_v32  ;;  %v12678_v5 = vld [vmem:[#allocation98_spill] sm:$0xff]  ;;  %v12679_v63 = vld [vmem:[#allocation205_spill] sm:$0xff] }
 0xa40   : > { %v6065_v19 = vpop.eup %6064  ;;  %6074 = vtanh.f32 %v10909_v42  ;;  %v12680_v7 = vld [vmem:[#allocation206_spill] sm:$0xff] }
 0xa41   : > { %v4627_v0 = vmul.f32 %v4615_v58, %v10749_v37  ;;  %v4608_v27 = vadd.f32 0.5, %v4606_v13  ;;  %v4614_v61 = vmul.f32 0.5, %v6065_v19  ;;  %v6067_v31 = vpop.eup %6066  ;;  %v5059_v32 = vld [vmem:[#allocation16 + $0x78] sm:$0xff]  ;;  %v5057_v58 = vld [vmem:[#allocation16 + $0x68] sm:$0xff]  ;;  %v5052_v19 = vld [vmem:[#allocation16 + $0x40] sm:$0xff] }
 0xa42   : > { %v6069_v49 = vpop.eup %6068  ;;  %5572 = vmatprep.subr.mxu1 %v5059_v32  ;;  %v5055_v13 = vld [vmem:[#allocation16 + $0x58] sm:$0xff] }
 0xa43   : > { %v4631_v29 = vadd.f32 %v4629_v62, %v4627_v0  ;;  %v4616_v17 = vadd.f32 0.5, %v4614_v61  ;;  %v4630_v47 = vmul.f32 %v6067_v31, %v4608_v27  ;;  %v6071_v33 = vpop.eup %6070  ;;  %v4623_v44 = vmul.f32 0.5, %v6069_v49  ;;  %v5056_v62 = vld [vmem:[#allocation16 + $0x60] sm:$0xff]  ;;  %v5051_v0 = vld [vmem:[#allocation16 + $0x38] sm:$0xff]  ;;  %v5050_v27 = vld [vmem:[#allocation16 + $0x30] sm:$0xff] }
 0xa44   : > { %v6073_v16 = vpop.eup %6072  ;;  %v4406_v59 = vmul.f32 0.5, %v6071_v33  ;;  %v5049_v61 = vld [vmem:[#allocation16 + $0x28] sm:$0xff]  ;;  %v5048_v31 = vld [vmem:[#allocation16 + $0x20] sm:$0xff] }
 0xa45   : > { %6076 = vtanh.f32 %v4631_v29  ;;  %v4628_v55 = vmul.f32 %v4616_v17, %v10754_v46  ;;  %v4625_v40 = vadd.f32 0.5, %v4623_v44  ;;  %v4624_v12 = vmul.f32 0.5, %v6073_v16  ;;  %v5047_v29 = vld [vmem:[#allocation16 + $0x18] sm:$0xff]  ;;  %v5046_v17 = vld [vmem:[#allocation16 + $0x10] sm:$0xff] }
 0xa46   : > { %v4408_v34 = vadd.f32 0.5, %v4406_v59 }
 0xa47   : > { %v4632_v20 = vadd.f32 %v4630_v47, %v4628_v55  ;;  %v4626_v2 = vadd.f32 0.5, %v4624_v12  ;;  %v5045_v47 = vld [vmem:[#allocation16 + $0x8] sm:$0xff]  ;;  %v5044_v55 = vld [vmem:[#allocation16] sm:$0xff] }
 0xa49   : > { %6078 = vtanh.f32 %v4632_v20 }
 0xa4d   : > { %v6075_v37 = vpop.eup %6074 }
 0xa4e   : > { %v10914_v26 = vmul.f32 %v6075_v37, %v4408_v34 }
 0xa52   : > { %v6077_v56 = vpop.eup %6076 }
 0xa53   : > { %v4635_v38 = vmul.f32 %v6077_v56, %v4625_v40 }
 0xa55   : > { %4710 = vmatmul.mubr.f32.vlgmr.msra.gmra.mxu0 %v4635_v38  ;;  %4787 = vmatmul.mubr.f32.vlgmr.msra.gmra.mxu1 %v4635_v38 }
 0xa56   : > { %v6079_v46 = vpop.eup %6078  ;;  %5517 = vmatpush3.msra.mxu0 %v10881_v14  ;;  %4715 = vmatprep.mubr.f32.mxu0 %v10914_v26  ;;  %v4869_v14 = vld [vmem:[#allocation15 + $0x48] sm:$0xff] }
 0xa57   : > { %4792 = vmatprep.mubr.f32.mxu1 %v10914_v26  ;;  %5518 = vmatprep.subr.mxu0 %v4874_v8  ;;  %v4636_v25 = vmul.f32 %v6079_v46, %v4626_v2 }
 0xa58   : > { %5519 = vmatpush3.msra.mxu0 %v4874_v8  ;;  %5573 = vmatpush3.msra.mxu1 %v5059_v32 }
 0xa59   : > { %5520 = vmatprep.subr.mxu0 %v4873_v4  ;;  %4716 = vmatmul.mubr.f32.gmra.mxu0 %v4636_v25 }
 0xa5a   : > { %4793 = vmatmul.mubr.f32.gmra.mxu1 %v4636_v25  ;;  %5521 = vmatpush3.msra.mxu0 %v4873_v4 }
 0xa5b   : > { %5522 = vmatprep.subr.mxu0 %v4872_v39  ;;  %5548 = vmatprep.mubr.f32.mxu0 %v12671_v48 }
 0xa5c   : > { %5523 = vmatpush3.msra.mxu0 %v4872_v39  ;;  %5574 = vmatprep.subr.mxu1 %v5058_v3 }
 0xa5d   : > { %5524 = vmatprep.subr.mxu0 %v4871_v23  ;;  %5575 = vmatpush3.msra.mxu1 %v5058_v3 }
 0xa5e   : > { %5525 = vmatpush3.msra.mxu0 %v4871_v23  ;;  %5576 = vmatprep.subr.mxu1 %v5057_v58 }
 0xa5f   : > { %5526 = vmatprep.subr.mxu0 %v4870_v11  ;;  %5577 = vmatpush3.msra.mxu1 %v5057_v58 }
 0xa60   : > { %5527 = vmatpush3.msra.mxu0 %v4870_v11  ;;  %5578 = vmatprep.subr.mxu1 %v5056_v62 }
 0xa61   : > { %5528 = vmatprep.subr.mxu0 %v4869_v14  ;;  %5579 = vmatpush3.msra.mxu1 %v5056_v62 }
 0xa62   : > { %5529 = vmatpush3.msra.mxu0 %v4869_v14  ;;  %5580 = vmatprep.subr.mxu1 %v5055_v13 }
 0xa63   : > { %5530 = vmatprep.subr.mxu0 %v4868_v10  ;;  %5581 = vmatpush3.msra.mxu1 %v5055_v13 }
 0xa64   : > { %5531 = vmatpush3.msra.mxu0 %v4868_v10 }
 0xa65   : > { %5532 = vmatprep.subr.mxu0 %v4867_v18 }
 0xa66   : > { %5533 = vmatpush3.msra.mxu0 %v4867_v18 }
 0xa67   : > { %5534 = vmatprep.subr.mxu0 %v4866_v22 }
 0xa68   : > { %5535 = vmatpush3.msra.mxu0 %v4866_v22 }
 0xa69   : > { %5536 = vmatprep.subr.mxu0 %v4865_v51 }
 0xa6a   : > { %5537 = vmatpush3.msra.mxu0 %v4865_v51 }
 0xa6b   : > { %5538 = vmatprep.subr.mxu0 %v4864_v60 }
 0xa6c   : > { %5539 = vmatpush3.msra.mxu0 %v4864_v60 }
 0xa6d   : > { %5540 = vmatprep.subr.mxu0 %v4863_v30 }
 0xa6e   : > { %5541 = vmatpush3.msra.mxu0 %v4863_v30 }
 0xa6f   : > { %5542 = vmatprep.subr.mxu0 %v4862_v28 }
 0xa70   : > { %5543 = vmatpush3.msra.mxu0 %v4862_v28 }
 0xa71   : > { %5544 = vmatprep.subr.mxu0 %v4861_v36 }
 0xa72   : > { %5545 = vmatpush3.msra.mxu0 %v4861_v36 }
 0xa73   : > { %5546 = vmatprep.subr.mxu0 %v4860_v57 }
 0xa74   : > { %5547 = vmatpush3.msra.mxu0 %v4860_v57 }
 0xa75   : > { %5549 = vmatmul.mubr.f32.vlgmr.msra.gmra.mxu0 %v12672_v21 }
 0xa76   : > { %5551 = vmatprep.mubr.f32.mxu0 %v12673_v41 }
 0xa79   : > { %5552 = vmatmul.mubr.f32.gmra.mxu0 %v12674_v35 }
 0xa7a   : > { %5554 = vmatprep.mubr.f32.mxu0 %v12675_v50 }
 0xa7d   : > { %5555 = vmatmul.mubr.f32.gmra.mxu0 %v12676_v24 }
 0xa7e   : > { %5557 = vmatprep.mubr.f32.mxu0 %v12677_v45 }
 0xa81   : > { %5558 = vmatmul.mubr.f32.gmra.mxu0 %v12678_v5  ;;  %v10946_v5 = vld [vmem:[%s11049_s7] ss:$0 sm:$0xff] }
 0xa82   : > { %5560 = vmatprep.mubr.f32.mxu0 %v12679_v63 }
 0xa85   : > { %5561 = vmatmul.mubr.f32.gmra.mxu0 %v12680_v7 }
 0xa86   : > { %5563 = vmatprep.mubr.f32.mxu0 %v12681_v9 }
 0xa89   : > { %5564 = vmatmul.mubr.f32.gmra.mxu0 %v10761_v15  ;;  %v5054_v15 = vld [vmem:[#allocation16 + $0x50] sm:$0xff] }
 0xa8a   : > { %5566 = vmatprep.mubr.f32.mxu0 %v10900_v54  ;;  %5582 = vmatprep.subr.mxu1 %v5054_v15  ;;  %v5053_v54 = vld [vmem:[#allocation16 + $0x48] sm:$0xff] }
 0xa8b   : > { %5583 = vmatpush3.msra.mxu1 %v5054_v15 }
 0xa8c   : > { %5584 = vmatprep.subr.mxu1 %v5053_v54 }
 0xa8d   : > { %5567 = vmatmul.mubr.f32.gmra.mxu0 %v10914_v26  ;;  %5585 = vmatpush3.msra.mxu1 %v5053_v54 }
 0xa8e   : > { %5586 = vmatprep.subr.mxu1 %v5052_v19 }
 0xa8f   : > { %5587 = vmatpush3.msra.mxu1 %v5052_v19 }
 0xa90   : > { %5588 = vmatprep.subr.mxu1 %v5051_v0 }
 0xa91   : > { %5589 = vmatpush3.msra.mxu1 %v5051_v0 }
 0xa92   : > { %5590 = vmatprep.subr.mxu1 %v5050_v27 }
 0xa93   : > { %5591 = vmatpush3.msra.mxu1 %v5050_v27 }
 0xa94   : > { %5592 = vmatprep.subr.mxu1 %v5049_v61 }
 0xa95   : > { %5593 = vmatpush3.msra.mxu1 %v5049_v61 }
 0xa96   : > { %5594 = vmatprep.subr.mxu1 %v5048_v31 }
 0xa97   : > { %5595 = vmatpush3.msra.mxu1 %v5048_v31 }
 0xa98   : > { %5596 = vmatprep.subr.mxu1 %v5047_v29 }
 0xa99   : > { %5597 = vmatpush3.msra.mxu1 %v5047_v29 }
 0xa9a   : > { %5598 = vmatprep.subr.mxu1 %v5046_v17 }
 0xa9b   : > { %5599 = vmatpush3.msra.mxu1 %v5046_v17 }
 0xa9c   : > { %5600 = vmatprep.subr.mxu1 %v5045_v47 }
 0xa9d   : > { %5601 = vmatpush3.msra.mxu1 %v5045_v47 }
 0xa9e   : > { %5602 = vmatprep.subr.mxu1 %v5044_v55 }
 0xa9f   : > { %5603 = vmatpush3.msra.mxu1 %v5044_v55 }
 0xb15   : > { %v4711_v20 = vpop.f32.mrf.mxu0  ;;  %v4788_v49 = vpop.f32.mrf.mxu1 }
 0xb16   : > { %v4712_v33 = vadd.f32 %v4711_v20, %v12660_v1  ;;  %v4789_v34 = vadd.f32 %v4788_v49, %v8504_v52 }
 0xb17   : > { %v4713_v44 = vpop.f32.mrf.mxu0  ;;  %v4790_v37 = vpop.f32.mrf.mxu1 }
 0xb18   : > { %v4801_v16 = vmul.f32 0.5, %v4712_v33  ;;  %v4714_v59 = vadd.f32 %v4713_v44, %v12661_v43  ;;  %v4791_v25 = vadd.f32 %v4790_v37, %v8510_v53 }
 0xb19   : > { %v4717_v40 = vpop.f32.mrf.mxu0 }
 0xb1a   : > { %6080 = vtanh.f32 %v4801_v16  ;;  %v4809_v12 = vmul.f32 0.5, %v4714_v59  ;;  %v4718_v56 = vadd.f32 %v4717_v40, %v12660_v1  ;;  %v4794_v2 = vpop.f32.mrf.mxu1  ;;  %v4819_v23 = vmul.f32 0.5, %v4791_v25 }
 0xb1b   : > { %v4719_v38 = vpop.f32.mrf.mxu0  ;;  %v4795_v4 = vadd.f32 %v4794_v2, %v8504_v52 }
 0xb1c   : > { %6082 = vtanh.f32 %v4809_v12  ;;  %v4802_v26 = vmul.f32 0.5, %v4718_v56  ;;  %v4720_v8 = vadd.f32 %v4719_v38, %v12661_v43  ;;  %v4796_v39 = vpop.f32.mrf.mxu1 }
 0xb1d   : > { %v4797_v1 = vadd.f32 %v4796_v39, %v8510_v53 }
 0xb1e   : > { %6084 = vtanh.f32 %v4802_v26  ;;  %v4810_v46 = vmul.f32 0.5, %v4720_v8 }
 0xb1f   : > { %6086 = vtanh.f32 %v4789_v34  ;;  %v4820_v10 = vmul.f32 0.5, %v4797_v1 }
 0xb20   : > { %6088 = vtanh.f32 %v4810_v46 }
 0xb21   : > { %6090 = vtanh.f32 %v4795_v4 }
 0xb22   : > { %6092 = vtanh.f32 %v4819_v23 }
 0xb23   : > { %6094 = vtanh.f32 %v4820_v10 }
 0xb27   : > { %v6081_v48 = vpop.eup %6080 }
 0xb28   : > { %v4805_v11 = vmul.f32 0.5, %v6081_v48 }
 0xb29   : > { %v6083_v14 = vpop.eup %6082 }
 0xb2a   : > { %v4807_v18 = vadd.f32 0.5, %v4805_v11  ;;  %v4813_v43 = vmul.f32 0.5, %v6083_v14 }
 0xb2b   : > { %v6085_v22 = vpop.eup %6084 }
 0xb2c   : > { %v6087_v51 = vpop.eup %6086  ;;  %v4815_v60 = vadd.f32 0.5, %v4813_v43  ;;  %v4806_v30 = vmul.f32 0.5, %v6085_v22 }
 0xb2d   : > { %v6089_v52 = vpop.eup %6088  ;;  %v4829_v36 = vmul.f32 %v6087_v51, %v4807_v18 }
 0xb2e   : > { %v4827_v28 = vmul.f32 %v4815_v60, %v10891_v6  ;;  %v4808_v57 = vadd.f32 0.5, %v4806_v30  ;;  %v4814_v21 = vmul.f32 0.5, %v6089_v52  ;;  %v6091_v35 = vpop.eup %6090  ;;  %v5444_v52 = vld [vmem:[%s11051_s9] ss:$0 sm:$0xff] }
 0xb2f   : > { %v6093_v7 = vpop.eup %6092 }
 0xb30   : > { %v4831_v53 = vadd.f32 %v4829_v36, %v4827_v28  ;;  %v4816_v41 = vadd.f32 0.5, %v4814_v21  ;;  %v4830_v24 = vmul.f32 %v6091_v35, %v4808_v57  ;;  %v6095_v58 = vpop.eup %6094  ;;  %v4823_v62 = vmul.f32 0.5, %v6093_v7 }
 0xb31   : > { %v4824_v61 = vmul.f32 0.5, %v6095_v58 }
 0xb32   : > { %6096 = vtanh.f32 %v4831_v53  ;;  %v4828_v50 = vmul.f32 %v4816_v41, %v10909_v42  ;;  %v4825_v27 = vadd.f32 0.5, %v4823_v62 }
 0xb33   : > { %v4826_v44 = vadd.f32 0.5, %v4824_v61 }
 0xb34   : > { %v4832_v45 = vadd.f32 %v4830_v24, %v4828_v50 }
 0xb35   : > { %v5550_v63 = vpop.f32.mrf.mxu0 }
 0xb36   : > { %6098 = vtanh.f32 %v4832_v45  ;;  %v4955_v6 = vadd.f32 %v5550_v63, %v10946_v5 }
 0xb37   : > { %v4949_v9 = vpop.f32.mrf.mxu0 }
 0xb38   : > { %v4950_v32 = vadd.f32 %v10946_v5, %v4949_v9  ;;  %v5029_v42 = vmax.f32 %v4955_v6, 0.0 }
 0xb39   : > { %v5553_v3 = vpop.f32.mrf.mxu0 }
 0xb3a   : > { %v5028_v13 = vmax.f32 %v4950_v32, 0.0  ;;  %v4965_v15 = vadd.f32 %v5553_v3, %v10946_v5 }
 0xb3b   : > { %v4959_v54 = vpop.f32.mrf.mxu0 }
 0xb3c   : > { %v4960_v19 = vadd.f32 %v10946_v5, %v4959_v54  ;;  %5604 = vmatprep.mubr.f32.mxu1 %v5028_v13  ;;  %v5031_v17 = vmax.f32 %v4965_v15, 0.0 }
 0xb3d   : > { %v5556_v0 = vpop.f32.mrf.mxu0  ;;  %5605 = vmatmul.mubr.f32.vlgmr.msra.gmra.mxu1 %v5029_v42 }
 0xb3e   : > { %v5030_v31 = vmax.f32 %v4960_v19, 0.0  ;;  %v4975_v47 = vadd.f32 %v5556_v0, %v10946_v5 }
 0xb3f   : > { %v6097_v29 = vpop.eup %6096  ;;  %v4969_v55 = vpop.f32.mrf.mxu0 }
 0xb40   : > { %v4970_v20 = vadd.f32 %v10946_v5, %v4969_v55  ;;  %5607 = vmatprep.mubr.f32.mxu1 %v5030_v31  ;;  %v4835_v49 = vmul.f32 %v6097_v29, %v4825_v27  ;;  %v5033_v37 = vmax.f32 %v4975_v47, 0.0 }
 0xb41   : > { %v5559_v33 = vpop.f32.mrf.mxu0  ;;  %5608 = vmatmul.mubr.f32.gmra.mxu1 %v5031_v17 }
 0xb42   : > { %v5032_v16 = vmax.f32 %v4970_v20, 0.0  ;;  %5569 = vmatprep.mubr.f32.mxu0 %v4835_v49  ;;  %v4985_v40 = vadd.f32 %v5559_v33, %v10946_v5 }
 0xb43   : > { %v6099_v59 = vpop.eup %6098  ;;  %v4979_v12 = vpop.f32.mrf.mxu0 }
 0xb44   : > { %v4980_v56 = vadd.f32 %v10946_v5, %v4979_v12  ;;  %5610 = vmatprep.mubr.f32.mxu1 %v5032_v16  ;;  %v4836_v34 = vmul.f32 %v6099_v59, %v4826_v44  ;;  %v5035_v8 = vmax.f32 %v4985_v40, 0.0 }
 0xb45   : > { %v5562_v38 = vpop.f32.mrf.mxu0  ;;  %5611 = vmatmul.mubr.f32.gmra.mxu1 %v5033_v37 }
 0xb46   : > { %v5034_v26 = vmax.f32 %v4980_v56, 0.0  ;;  %5570 = vmatmul.mubr.f32.gmra.mxu0 %v4836_v34  ;;  %v4995_v2 = vadd.f32 %v5562_v38, %v10946_v5 }
 0xb47   : > { %v4989_v46 = vpop.f32.mrf.mxu0 }
 0xb48   : > { %v4990_v4 = vadd.f32 %v10946_v5, %v4989_v46  ;;  %5613 = vmatprep.mubr.f32.mxu1 %v5034_v26  ;;  %v5037_v1 = vmax.f32 %v4995_v2, 0.0 }
 0xb49   : > { %v5565_v25 = vpop.f32.mrf.mxu0  ;;  %5614 = vmatmul.mubr.f32.gmra.mxu1 %v5035_v8 }
 0xb4a   : > { %v5036_v39 = vmax.f32 %v4990_v4, 0.0  ;;  %v5005_v23 = vadd.f32 %v5565_v25, %v10946_v5 }
 0xb4b   : > { %v4999_v48 = vpop.f32.mrf.mxu0 }
 0xb4c   : > { %v5000_v11 = vadd.f32 %v10946_v5, %v4999_v48  ;;  %5616 = vmatprep.mubr.f32.mxu1 %v5036_v39  ;;  %v5039_v18 = vmax.f32 %v5005_v23, 0.0 }
 0xb4d   : > { %v5568_v14 = vpop.f32.mrf.mxu0  ;;  %5617 = vmatmul.mubr.f32.gmra.mxu1 %v5037_v1 }
 0xb4e   : > { %v5038_v10 = vmax.f32 %v5000_v11, 0.0  ;;  %v5015_v43 = vadd.f32 %v5568_v14, %v10946_v5 }
 0xb4f   : > { %v5009_v22 = vpop.f32.mrf.mxu0 }
 0xb50   : > { %v5010_v51 = vadd.f32 %v10946_v5, %v5009_v22  ;;  %5619 = vmatprep.mubr.f32.mxu1 %v5038_v10  ;;  %v5041_v30 = vmax.f32 %v5015_v43, 0.0 }
 0xb51   : > { %5620 = vmatmul.mubr.f32.gmra.mxu1 %v5039_v18 }
 0xb52   : > { %v5040_v60 = vmax.f32 %v5010_v51, 0.0 }
 0xb54   : > { %5622 = vmatprep.mubr.f32.mxu1 %v5040_v60 }
 0xb55   : > { %5623 = vmatmul.mubr.f32.gmra.mxu1 %v5041_v30 }
 0xbfd   : > { %v5606_v28 = vpop.f32.mrf.mxu1 }
 0xbfe   : > { %v5139_v36 = vadd.f32 %v5606_v28, %v5444_v52 }
 0xbff   : > { %v5133_v57 = vpop.f32.mrf.mxu1 }
 0xc00   : > { %5213 = vst [vmem:[%s10967_s4 + $0x8] sm:$0xff] %v5139_v36  ;;  %v5134_v21 = vadd.f32 %v5444_v52, %v5133_v57 }
 0xc01   : > { %v5609_v53 = vpop.f32.mrf.mxu1 }
 0xc02   : > { %5212 = vst [vmem:[%s10967_s4] sm:$0xff] %v5134_v21  ;;  %v5149_v41 = vadd.f32 %v5609_v53, %v5444_v52 }
 0xc03   : > { %v5143_v35 = vpop.f32.mrf.mxu1 }
 0xc04   : > { %5215 = vst [vmem:[%s10967_s4 + $0x18] sm:$0xff] %v5149_v41  ;;  %v5144_v50 = vadd.f32 %v5444_v52, %v5143_v35 }
 0xc05   : > { %v5612_v24 = vpop.f32.mrf.mxu1 }
 0xc06   : > { %5214 = vst [vmem:[%s10967_s4 + $0x10] sm:$0xff] %v5144_v50  ;;  %v5159_v45 = vadd.f32 %v5612_v24, %v5444_v52  ;;  %v5571_v63 = vpop.f32.mrf.mxu0 }
 0xc07   : > { %v5153_v7 = vpop.f32.mrf.mxu1  ;;  %v5025_v6 = vadd.f32 %v5571_v63, %v10946_v5 }
 0xc08   : > { %5217 = vst [vmem:[%s10967_s4 + $0x28] sm:$0xff] %v5159_v45  ;;  %v5154_v9 = vadd.f32 %v5444_v52, %v5153_v7  ;;  %v5019_v32 = vpop.f32.mrf.mxu0 }
 0xc09   : > { %v5020_v3 = vadd.f32 %v10946_v5, %v5019_v32  ;;  %v5615_v58 = vpop.f32.mrf.mxu1  ;;  %v5043_v15 = vmax.f32 %v5025_v6, 0.0 }
 0xc0a   : > { %5216 = vst [vmem:[%s10967_s4 + $0x20] sm:$0xff] %v5154_v9  ;;  %v5169_v62 = vadd.f32 %v5615_v58, %v5444_v52 }
 0xc0b   : > { %v5042_v13 = vmax.f32 %v5020_v3, 0.0  ;;  %v5163_v42 = vpop.f32.mrf.mxu1 }
 0xc0c   : > { %5219 = vst [vmem:[%s10967_s4 + $0x38] sm:$0xff] %v5169_v62  ;;  %v5164_v54 = vadd.f32 %v5444_v52, %v5163_v42 }
 0xc0d   : > { %v5618_v19 = vpop.f32.mrf.mxu1  ;;  %5625 = vmatprep.mubr.f32.mxu1 %v5042_v13 }
 0xc0e   : > { %5218 = vst [vmem:[%s10967_s4 + $0x30] sm:$0xff] %v5164_v54  ;;  %v5179_v0 = vadd.f32 %v5618_v19, %v5444_v52  ;;  %5626 = vmatmul.mubr.f32.gmra.mxu1 %v5043_v15 }
 0xc0f   : > { %v5173_v27 = vpop.f32.mrf.mxu1 }
 0xc10   : > { %5221 = vst [vmem:[%s10967_s4 + $0x48] sm:$0xff] %v5179_v0  ;;  %v5174_v5 = vadd.f32 %v5444_v52, %v5173_v27 }
 0xc11   : > { %v5621_v61 = vpop.f32.mrf.mxu1 }
 0xc12   : > { %5220 = vst [vmem:[%s10967_s4 + $0x40] sm:$0xff] %v5174_v5  ;;  %v5189_v31 = vadd.f32 %v5621_v61, %v5444_v52 }
 0xc13   : > { %v5183_v29 = vpop.f32.mrf.mxu1 }
 0xc14   : > { %5223 = vst [vmem:[%s10967_s4 + $0x58] sm:$0xff] %v5189_v31  ;;  %v5184_v17 = vadd.f32 %v5444_v52, %v5183_v29 }
 0xc15   : > { %v5624_v47 = vpop.f32.mrf.mxu1 }
 0xc16   : > { %5222 = vst [vmem:[%s10967_s4 + $0x50] sm:$0xff] %v5184_v17  ;;  %v5199_v55 = vadd.f32 %v5624_v47, %v5444_v52 }
 0xc17   : > { %v5193_v20 = vpop.f32.mrf.mxu1 }
 0xc18   : > { %5225 = vst [vmem:[%s10967_s4 + $0x68] sm:$0xff] %v5199_v55  ;;  %v5194_v49 = vadd.f32 %v5444_v52, %v5193_v20 }
 0xc1a   : > { %5224 = vst [vmem:[%s10967_s4 + $0x60] sm:$0xff] %v5194_v49 }
 0xcce   : > { %v5627_v33 = vpop.f32.mrf.mxu1 }
 0xccf   : > { %v5209_v44 = vadd.f32 %v5627_v33, %v5444_v52 }
 0xcd0   : > { %v5203_v16 = vpop.f32.mrf.mxu1 }
 0xcd1   : > { %5227 = vst [vmem:[%s10967_s4 + $0x78] sm:$0xff] %v5209_v44  ;;  %v5204_v59 = vadd.f32 %v5444_v52, %v5203_v16 }
 0xcd3   : > { %5226 = vst [vmem:[%s10967_s4 + $0x70] sm:$0xff] %v5204_v59 }
 0xcd4   : > { %6935 = shalt.err (!%p6932_p12)
}
 0xcd5   : > { %s6936_s17 = scalar_lea.hbm %s10990_s19, 2048  ;;  %s6940_s4 = scalar_lea.hbm %s12683_s29, 4096 }
 0xcd6   : > { %p6937_p1 = scmp.ne.s32.totalorder %s10990_s19, %s6936_s17  ;;  %p6941_p10 = scmp.lt.s32.totalorder %s10990_s19, %s12683_s29 }
 0xcd7   : > { %p6942_p4 = scmp.lt.s32.totalorder %s6940_s4, %s6936_s17 }
 0xcd8   : > { %p6938_p13 = pnand %p6937_p1, %p7218_p2 }
 0xcd9   : > { %p6943_p6 = por %p6942_p4, %p6941_p10 }
 0xcda   : > { %p6939_p0 = pneg %p6938_p13 }
 0xcdc   : > { %p6944_p5 = pnand %p6943_p6, %p6939_p0 }
 0xcde   : > { %6947 = shalt.err (!%p6944_p5)
}
 0xcdf   : > { %s7028_s6 = smov 128   ;;  %s7029_s28 = smov 8  }
 0xce0   : > { %5650 = dma.vmem_to_hbm [thread:$0]  (%p7218_p2), %s10992_s27, 2048, %s10990_s19, %s5229_s18, %s7028_s6, %s7028_s6, %s7029_s28  }
 0xce1 PF: > { %s5262_s30 = sand.u32 1, %s6994_s21   ;;  %p12684_p7 = scmp.ge.s32.totalorder %s7014_s26, 2 }
 0xce2   : > { %s5263_s12 = scalar_lea.sflag [#allocation9], %s5262_s30 }
 0xce3   : > { %p5673_p8 = pnand %p12684_p7, %p7226_p3 }
 0xce5   : > { %p5674_p9 = pneg %p5673_p8 }
 0xce7   : > { %6989 = dma.done.wait (%p5674_p9), %s5263_s12, 2048  }
 0xce8   : > { %6991 = vsyncadd (%p5674_p9), %s5263_s12, 4294965248  ;;  %s31_s26 = sadd.s32 1, %s7014_s26   ;;  %s12685_s13 = sld [smem:[#allocation25_spill]] }
 0xce9   : > { %p28_p11 = scmp.ge.s32.totalorder %s31_s26, 4   ;;  %s12686_s25 = sld [smem:[#allocation26_spill]] }
 0xcea   : > { %s12687_s21 = smov %s6998_s22  ;;  %s12688_s22 = smov %s7002_s23 }
 0xceb   : > { %s12689_s23 = smov %s7224_s24  ;;  %30 = sbr.rel (!%p28_p11) target bundleno = 16 (0x10), region = 151 }
 0xcee   : > { %s12690_s24 = smov %s12685_s13 }
 0xcf0   :  { %5268 = vsyncpa [#allocation8], 1 }
 0xcf1   :  { %5270 = vsyncpa [#allocation8 + $0x1], 1 }
 0xcf2   :  { %5271 = vsyncpa [#allocation11], 1 }
 0xcf3   :  { %5272 = vsyncpa [#allocation14], 1 }
 0xcf4   :  { %5273 = vsyncpa [#allocation17], 1 }
 0xcf5   :  { %5274 = vsyncpa [#allocation9], 1 }
 0xcf6   :  { %5276 = vsyncpa [#allocation9 + $0x1], 1 }

</bundles_post_ra>
